<compile_context>
chip_gen: v5e
topology: v5e:2x2
jax: 0.10.0
libtpu: 0.0.40
codegen_flags: <defaults>
</compile_context>

<pallas_src>
import jax
import jax.numpy as jnp
from jax.experimental import pallas as pl
from jax.experimental.pallas import tpu as pltpu

# Small, TPU-friendly stand-in shapes for the BERT backbone + head.
B, S, H = 4, 32, 128          # batch, seq_len, hidden
BS = B * S                    # folded M dimension (= 128, full MXU M tile)
NUM_HEADS, D_HEAD = 2, 64     # H == NUM_HEADS * D_HEAD
FFN = 512                     # intermediate size (4*H)
VOCAB, TYPE_VOCAB, MAX_POS = 100, 2, 64
N_LAYERS = 2                  # BERT-base has 12; 2 layers for a small runnable example
NUM_CLASS = 4
CPAD = 128                    # lane-dense padded class dim for the output store
LN_EPS = 1e-12
ATTN_SCALE = 1.0 / (D_HEAD ** 0.5)

# rows of the packed per-layer small-vector slab (one (8, FFN) DMA per grid step)
_R_BQKV, _R_B1, _R_BO, _R_B2, _R_G1, _R_BE1, _R_G2, _R_BE2 = range(8)
# rows of the packed constant small-vector slab (fetched once)
_C_EMB_G, _C_EMB_B, _C_BP, _C_BFC = range(4)


# ----------------------------- in-kernel helpers -----------------------------
def _layernorm(x, g, b):
    mu = jnp.mean(x, axis=-1, keepdims=True)
    var = jnp.mean((x - mu) ** 2, axis=-1, keepdims=True)
    return (x - mu) * jax.lax.rsqrt(var + LN_EPS) * g + b


def _gelu(x):
    # TODO(synk): PyTorch BertModel uses exact erf GELU; tanh approximation (~1e-3).
    return 0.5 * x * (1.0 + jnp.tanh(0.7978845608028654 * (x + 0.044715 * x * x * x)))


# ----------------------------- fused Pallas kernel -----------------------------
def bert_fused_kernel(x_emb_ref, mask_ref, cvec_ref,
                      wqkv_ref, wo_ref, w1_ref, w2_ref, lvec_ref,
                      wp_ref, wfc_ref,
                      o_ref,
                      x_sc, bias_sc):
    layer = pl.program_id(0)

    @pl.when(layer == 0)
    def _():
        cvec = cvec_ref[...]
        # fused embeddings LayerNorm; activations stay resident in x_sc across layers
        x_sc[...] = _layernorm(x_emb_ref[...],
                               cvec[_C_EMB_G:_C_EMB_G + 1, :],
                               cvec[_C_EMB_B:_C_EMB_B + 1, :])
        # additive key-mask bias, hoisted: constant across layers/heads.
        # rows ordered (head-major, batch): row h*B + b == bias of batch b
        bias = (1.0 - mask_ref[...]) * -10000.0                      # (B, S)
        bias_sc[...] = jnp.concatenate([bias] * NUM_HEADS, axis=0)   # (NH*B, S)

    x = x_sc[...]                            # (BS, H) f32 resident activations
    xb = x.astype(jnp.bfloat16)

    lvec = lvec_ref[0]                       # (8, FFN) packed per-layer vectors
    bqkv = lvec[_R_BQKV:_R_BQKV + 1, :3 * H]
    b1 = lvec[_R_B1:_R_B1 + 1, :FFN]
    bo = lvec[_R_BO:_R_BO + 1, :H]
    b2 = lvec[_R_B2:_R_B2 + 1, :H]
    g1 = lvec[_R_G1:_R_G1 + 1, :H]
    be1 = lvec[_R_BE1:_R_BE1 + 1, :H]
    g2 = lvec[_R_G2:_R_G2 + 1, :H]
    be2 = lvec[_R_BE2:_R_BE2 + 1, :H]

    # fused QKV projection: single (BS,H) @ (H,3H) MXU matmul, bf16 in / f32 acc
    qkv = jnp.dot(xb, wqkv_ref[0], preferred_element_type=jnp.float32) + bqkv

    # head split: (BS, H) -> (NH*B, S, D); only lane slices, sublane reshapes and a
    # leading-axis concat (no lane-dim reshapes, no masked stores).
    # TODO(synk): at BERT-base (NH=12) replace the small Python split loop with a single
    #             relayout once lane-splitting reshapes are worth it.
    def _split_heads(t):
        parts = [t[:, h * D_HEAD:(h + 1) * D_HEAD].reshape(B, S, D_HEAD)
                 for h in range(NUM_HEADS)]
        return jnp.concatenate(parts, axis=0).astype(jnp.bfloat16)

    qh = _split_heads(qkv[:, :H])
    kh = _split_heads(qkv[:, H:2 * H])
    vh = _split_heads(qkv[:, 2 * H:])

    # single batched attention over all (head, batch) pairs
    s = jnp.einsum('bqd,bkd->bqk', qh, kh,
                   preferred_element_type=jnp.float32) * ATTN_SCALE
    s = s + bias_sc[...][:, None, :]
    s = s - jnp.max(s, axis=-1, keepdims=True)
    p = jnp.exp(s)
    p = p * pl.reciprocal(jnp.sum(p, axis=-1, keepdims=True), approx=True)
    ctx = jnp.einsum('bqk,bkd->bqd', p.astype(jnp.bfloat16), vh,
                     preferred_element_type=jnp.float32)             # (NH*B, S, D)

    # output projection without a ctx scratch / lane concat:
    # concat_h(ctx_h) @ Wo == sum_h ctx_h @ Wo[h*D:(h+1)*D, :]  (every result lane-dense)
    wo = wo_ref[0]
    attn_out = None
    for h in range(NUM_HEADS):
        ctx_h = ctx[h * B:(h + 1) * B].reshape(BS, D_HEAD).astype(jnp.bfloat16)
        part = jnp.dot(ctx_h, wo[h * D_HEAD:(h + 1) * D_HEAD, :],
                       preferred_element_type=jnp.float32)
        attn_out = part if attn_out is None else attn_out + part
    attn_out = attn_out + bo

    h1 = _layernorm(x + attn_out, g1, be1)

    ff = _gelu(jnp.dot(h1.astype(jnp.bfloat16), w1_ref[0],
                       preferred_element_type=jnp.float32) + b1)
    ff = jnp.dot(ff.astype(jnp.bfloat16), w2_ref[0],
                 preferred_element_type=jnp.float32) + b2
    x_new = _layernorm(h1 + ff, g2, be2)
    x_sc[...] = x_new

    @pl.when(layer == pl.num_programs(0) - 1)
    def _():
        cvec = cvec_ref[...]
        # fused head: pooler tanh -> fc -> softmax; CLS rows via strided sublane read
        cls = x_sc[pl.ds(0, B, stride=S), :]                          # (B, H)
        pooled = jnp.tanh(jnp.dot(cls.astype(jnp.bfloat16), wp_ref[...],
                                  preferred_element_type=jnp.float32)
                          + cvec[_C_BP:_C_BP + 1, :])
        logits = jnp.dot(pooled.astype(jnp.bfloat16), wfc_ref[...],
                         preferred_element_type=jnp.float32) + cvec[_C_BFC:_C_BFC + 1, :]
        logits = logits - jnp.max(logits, axis=-1, keepdims=True)
        e = jnp.exp(logits)
        # exact divide for the class softmax (padded classes have exp == 0 via -1e9 bias)
        o_ref[...] = e / jnp.sum(e, axis=-1, keepdims=True)


# ----------------------------- wrapper -----------------------------
def _const_spec(shape):
    nd = len(shape)
    return pl.BlockSpec(shape, lambda l, _nd=nd: (0,) * _nd)


def _layer_spec(shape_wo_l):
    nd = len(shape_wo_l)
    return pl.BlockSpec((1,) + shape_wo_l, lambda l, _nd=nd: (l,) + (0,) * _nd)


def bert_encoder_head(x_emb, mask_f32, p):
    in_specs = [
        _const_spec((BS, H)),            # embeddings (post-gather)
        _const_spec((B, S)),             # attention mask
        _const_spec((4, H)),             # packed consts: emb-LN g/b, pooler bias, fc bias
        _layer_spec((H, 3 * H)),         # wqkv
        _layer_spec((H, H)),             # wo
        _layer_spec((H, FFN)),           # w1
        _layer_spec((FFN, H)),           # w2
        _layer_spec((8, FFN)),           # packed per-layer small vectors (1 DMA / step)
        _const_spec((H, H)),             # pooler wp
        _const_spec((H, CPAD)),          # fc wfc (class-padded, lane-dense)
    ]
    return pl.pallas_call(
        bert_fused_kernel,
        out_shape=jax.ShapeDtypeStruct((B, CPAD), jnp.float32),
        grid=(N_LAYERS,),
        in_specs=in_specs,
        out_specs=_const_spec((B, CPAD)),
        scratch_shapes=[pltpu.VMEM((BS, H), jnp.float32),             # resident activations
                        pltpu.VMEM((NUM_HEADS * B, S), jnp.float32)], # hoisted mask bias
        compiler_params=pltpu.CompilerParams(
            dimension_semantics=("arbitrary",),       # layer axis is sequential
            vmem_limit_bytes=32 * 1024 * 1024),       # above v5e's 16 MiB scoped default
    )(x_emb, mask_f32, p["cvec"],
      p["wqkv"], p["wo"], p["w1"], p["w2"], p["lvec"],
      p["wp"], p["wfc"])


# ----------------------------- parameter init -----------------------------
def init_params(key):
    def nrm(k, shape, dtype=jnp.bfloat16):
        return (0.02 * jax.random.normal(k, shape, jnp.float32)).astype(dtype)

    keys = iter(jax.random.split(key, 12))

    wfc_real = nrm(next(keys), (H, NUM_CLASS))
    wfc = jnp.zeros((H, CPAD), jnp.bfloat16).at[:, :NUM_CLASS].set(wfc_real)

    # packed constant small vectors: [emb_ln_g, emb_ln_b, pooler bias, fc bias(-1e9 pad)]
    cvec = jnp.zeros((4, H), jnp.float32)
    cvec = cvec.at[_C_EMB_G, :].set(1.0)
    cvec = cvec.at[_C_BFC, :].set(-1e9)
    cvec = cvec.at[_C_BFC, :NUM_CLASS].set(0.0)

    # packed per-layer small vectors: biases zero, LN gammas one
    lvec = jnp.zeros((N_LAYERS, 8, FFN), jnp.float32)
    lvec = lvec.at[:, _R_G1, :H].set(1.0)
    lvec = lvec.at[:, _R_G2, :H].set(1.0)

    return {
        "word_emb": nrm(next(keys), (VOCAB, H), jnp.float32),
        "pos_emb": nrm(next(keys), (MAX_POS, H), jnp.float32),
        "type_emb": nrm(next(keys), (TYPE_VOCAB, H), jnp.float32),
        "cvec": cvec,
        "lvec": lvec,
        # per-layer weights stacked along leading layer axis; MXU operands are bf16
        "wqkv": nrm(next(keys), (N_LAYERS, H, 3 * H)),
        "wo": nrm(next(keys), (N_LAYERS, H, H)),
        "w1": nrm(next(keys), (N_LAYERS, H, FFN)),
        "w2": nrm(next(keys), (N_LAYERS, FFN, H)),
        "wp": nrm(next(keys), (H, H)),
        "wfc": wfc,
    }


# ----------------------------- full forward -----------------------------
def bert_forward(params, input_ids, attention_mask, token_type_ids):
    # embedding gathers are wrapper glue; everything else runs in the fused kernel
    pos_ids = jnp.arange(S)
    x = (params["word_emb"][input_ids]
         + params["pos_emb"][pos_ids][None, :, :]
         + params["type_emb"][token_type_ids]).astype(jnp.float32)
    x = x.reshape(BS, H)                                     # fold batch into M
    probs_pad = bert_encoder_head(x, attention_mask.astype(jnp.float32), params)
    return probs_pad[:, :NUM_CLASS]                          # (B, num_class)


if __name__ == "__main__":
    key = jax.random.PRNGKey(0)
    k_param, k_ids = jax.random.split(key, 2)

    params = init_params(k_param)
    input_ids = jax.random.randint(k_ids, (B, S), 0, VOCAB, dtype=jnp.int32)
    attention_mask = (jnp.ones((B, S), jnp.int32)
                      .at[1, S - 6:].set(0)                  # pad tails of some sequences
                      .at[3, S - 12:].set(0))
    token_type_ids = jnp.zeros((B, S), jnp.int32).at[:, S // 2:].set(1)

    out = bert_forward(params, input_ids, attention_mask, token_type_ids)
    out = jax.block_until_ready(out)

    assert out.shape == (B, NUM_CLASS)
    assert bool(jnp.all(jnp.isfinite(out)))
    assert bool(jnp.allclose(jnp.sum(out, axis=1), 1.0, atol=1e-4))  # softmax rows sum to 1
    print("KERNEL_OK")
</pallas_src>

<mosaic_0001>
module attributes {stable_mosaic.version = 11 : i64} {
  func.func @bert_fused_kernel(%arg0: i32, %arg1: memref<128x128xf32, #tpu.memory_space<vmem>>, %arg2: memref<4x32xf32, #tpu.memory_space<vmem>>, %arg3: memref<4x128xf32, #tpu.memory_space<vmem>>, %arg4: memref<1x128x384xbf16, #tpu.memory_space<vmem>>, %arg5: memref<1x128x128xbf16, #tpu.memory_space<vmem>>, %arg6: memref<1x128x512xbf16, #tpu.memory_space<vmem>>, %arg7: memref<1x512x128xbf16, #tpu.memory_space<vmem>>, %arg8: memref<1x8x512xf32, #tpu.memory_space<vmem>>, %arg9: memref<128x128xbf16, #tpu.memory_space<vmem>>, %arg10: memref<128x128xbf16, #tpu.memory_space<vmem>>, %arg11: memref<4x128xf32, #tpu.memory_space<vmem>>, %arg12: memref<128x128xf32, #tpu.memory_space<vmem>>, %arg13: memref<8x32xf32, #tpu.memory_space<vmem>>) attributes {dimension_semantics = [#tpu.dimension_semantics<arbitrary>], iteration_bounds = array<i64: 2>, scalar_prefetch = 0 : i64, scratch_operands = 2 : i64, tpu.core_type = #tpu.core_type<tc>, window_params = [{pipeline_mode = #tpu.pipeline_mode<synchronous>, transform_indices = @transform_0, window_bounds = array<i64: 128, 128>}, {pipeline_mode = #tpu.pipeline_mode<synchronous>, transform_indices = @transform_1, window_bounds = array<i64: 4, 32>}, {pipeline_mode = #tpu.pipeline_mode<synchronous>, transform_indices = @transform_2, window_bounds = array<i64: 4, 128>}, {transform_indices = @transform_3, window_bounds = array<i64: 1, 128, 384>}, {transform_indices = @transform_4, window_bounds = array<i64: 1, 128, 128>}, {transform_indices = @transform_5, window_bounds = array<i64: 1, 128, 512>}, {transform_indices = @transform_6, window_bounds = array<i64: 1, 512, 128>}, {transform_indices = @transform_7, window_bounds = array<i64: 1, 8, 512>}, {pipeline_mode = #tpu.pipeline_mode<synchronous>, transform_indices = @transform_8, window_bounds = array<i64: 128, 128>}, {pipeline_mode = #tpu.pipeline_mode<synchronous>, transform_indices = @transform_9, window_bounds = array<i64: 128, 128>}, {pipeline_mode = #tpu.pipeline_mode<synchronous>, transform_indices = @transform_10, window_bounds = array<i64: 4, 128>}]} {
    %c0_i32 = arith.constant 0 : i32
    %0 = arith.cmpi eq, %arg0, %c0_i32 : i32
    %1 = arith.extui %0 : i1 to i32
    %c0_i32_0 = arith.constant 0 : i32
    %2 = arith.cmpi ne, %1, %c0_i32_0 : i32
    scf.if %2 {
      %c0_45 = arith.constant 0 : index
      %c0_46 = arith.constant 0 : index
      %150 = vector.load %arg3[%c0_45, %c0_46] : memref<4x128xf32, #tpu.memory_space<vmem>>, vector<4x128xf32>
      %c0_47 = arith.constant 0 : index
      %c0_48 = arith.constant 0 : index
      %151 = vector.load %arg1[%c0_47, %c0_48] : memref<128x128xf32, #tpu.memory_space<vmem>>, vector<128x128xf32>
      %152 = vector.extract_strided_slice %150 {offsets = [0, 0], sizes = [1, 128], strides = [1, 1]} : vector<4x128xf32> to vector<1x128xf32>
      %153 = vector.extract_strided_slice %150 {offsets = [1, 0], sizes = [1, 128], strides = [1, 1]} : vector<4x128xf32> to vector<1x128xf32>
      %cst_49 = arith.constant dense<0.000000e+00> : vector<128xf32>
      %154 = vector.multi_reduction <add>, %151, %cst_49 [1] : vector<128x128xf32> to vector<128xf32>
      %155 = vector.shape_cast %154 : vector<128xf32> to vector<128x1xf32>
      %cst_50 = arith.constant 1.280000e+02 : f32
      %156 = vector.broadcast %cst_50 : f32 to vector<128x1xf32>
      %157 = arith.divf %155, %156 : vector<128x1xf32>
      %158 = vector.broadcast %157 : vector<128x1xf32> to vector<128x128xf32>
      %159 = arith.subf %151, %158 : vector<128x128xf32>
      %160 = arith.mulf %159, %159 : vector<128x128xf32>
      %cst_51 = arith.constant dense<0.000000e+00> : vector<128xf32>
      %161 = vector.multi_reduction <add>, %160, %cst_51 [1] : vector<128x128xf32> to vector<128xf32>
      %162 = vector.shape_cast %161 : vector<128xf32> to vector<128x1xf32>
      %cst_52 = arith.constant 1.280000e+02 : f32
      %163 = vector.broadcast %cst_52 : f32 to vector<128x1xf32>
      %164 = arith.divf %162, %163 : vector<128x1xf32>
      %165 = vector.broadcast %157 : vector<128x1xf32> to vector<128x128xf32>
      %166 = arith.subf %151, %165 : vector<128x128xf32>
      %cst_53 = arith.constant 9.99999996E-13 : f32
      %167 = vector.broadcast %cst_53 : f32 to vector<128x1xf32>
      %168 = arith.addf %164, %167 : vector<128x1xf32>
      %169 = math.rsqrt %168 : vector<128x1xf32>
      %170 = vector.broadcast %169 : vector<128x1xf32> to vector<128x128xf32>
      %171 = arith.mulf %166, %170 : vector<128x128xf32>
      %172 = vector.broadcast %152 : vector<1x128xf32> to vector<128x128xf32>
      %173 = arith.mulf %171, %172 : vector<128x128xf32>
      %174 = vector.broadcast %153 : vector<1x128xf32> to vector<128x128xf32>
      %175 = arith.addf %173, %174 : vector<128x128xf32>
      %c0_54 = arith.constant 0 : index
      %c0_55 = arith.constant 0 : index
      %176 = vector.load %arg12[%c0_54, %c0_55] : memref<128x128xf32, #tpu.memory_space<vmem>>, vector<128x128xf32>
      tpu.vector_store %arg12[%c0_54, %c0_55], %175 {strides = array<i32>} : memref<128x128xf32, #tpu.memory_space<vmem>>, vector<128x128xf32>,
      %c0_56 = arith.constant 0 : index
      %c0_57 = arith.constant 0 : index
      %177 = vector.load %arg2[%c0_56, %c0_57] : memref<4x32xf32, #tpu.memory_space<vmem>>, vector<4x32xf32>
      %cst_58 = arith.constant 1.000000e+00 : f32
      %178 = vector.broadcast %cst_58 : f32 to vector<4x32xf32>
      %179 = arith.subf %178, %177 : vector<4x32xf32>
      %cst_59 = arith.constant -1.000000e+04 : f32
      %180 = vector.broadcast %cst_59 : f32 to vector<4x32xf32>
      %181 = arith.mulf %179, %180 : vector<4x32xf32>
      %182 = tpu.concatenate %181, %181 in 0 : vector<4x32xf32>, vector<4x32xf32> -> vector<8x32xf32>
      %c0_60 = arith.constant 0 : index
      %c0_61 = arith.constant 0 : index
      %183 = vector.load %arg13[%c0_60, %c0_61] : memref<8x32xf32, #tpu.memory_space<vmem>>, vector<8x32xf32>
      tpu.vector_store %arg13[%c0_60, %c0_61], %182 {strides = array<i32>} : memref<8x32xf32, #tpu.memory_space<vmem>>, vector<8x32xf32>,
    } else {
    }
    %c0 = arith.constant 0 : index
    %c0_1 = arith.constant 0 : index
    %3 = vector.load %arg12[%c0, %c0_1] : memref<128x128xf32, #tpu.memory_space<vmem>>, vector<128x128xf32>
    %4 = arith.truncf %3 : vector<128x128xf32> to vector<128x128xbf16>
    %c0_2 = arith.constant 0 : index
    %c0_3 = arith.constant 0 : index
    %c0_4 = arith.constant 0 : index
    %5 = vector.load %arg8[%c0_2, %c0_3, %c0_4] : memref<1x8x512xf32, #tpu.memory_space<vmem>>, vector<1x8x512xf32>
    %6 = vector.shape_cast %5 : vector<1x8x512xf32> to vector<8x512xf32>
    %7 = vector.extract_strided_slice %6 {offsets = [0, 0], sizes = [1, 384], strides = [1, 1]} : vector<8x512xf32> to vector<1x384xf32>
    %8 = vector.extract_strided_slice %6 {offsets = [1, 0], sizes = [1, 512], strides = [1, 1]} : vector<8x512xf32> to vector<1x512xf32>
    %9 = vector.extract_strided_slice %6 {offsets = [2, 0], sizes = [1, 128], strides = [1, 1]} : vector<8x512xf32> to vector<1x128xf32>
    %10 = vector.extract_strided_slice %6 {offsets = [3, 0], sizes = [1, 128], strides = [1, 1]} : vector<8x512xf32> to vector<1x128xf32>
    %11 = vector.extract_strided_slice %6 {offsets = [4, 0], sizes = [1, 128], strides = [1, 1]} : vector<8x512xf32> to vector<1x128xf32>
    %12 = vector.extract_strided_slice %6 {offsets = [5, 0], sizes = [1, 128], strides = [1, 1]} : vector<8x512xf32> to vector<1x128xf32>
    %13 = vector.extract_strided_slice %6 {offsets = [6, 0], sizes = [1, 128], strides = [1, 1]} : vector<8x512xf32> to vector<1x128xf32>
    %14 = vector.extract_strided_slice %6 {offsets = [7, 0], sizes = [1, 128], strides = [1, 1]} : vector<8x512xf32> to vector<1x128xf32>
    %c0_5 = arith.constant 0 : index
    %c0_6 = arith.constant 0 : index
    %c0_7 = arith.constant 0 : index
    %15 = vector.load %arg4[%c0_5, %c0_6, %c0_7] : memref<1x128x384xbf16, #tpu.memory_space<vmem>>, vector<1x128x384xbf16>
    %16 = vector.shape_cast %15 : vector<1x128x384xbf16> to vector<128x384xbf16>
    %cst = arith.constant dense<0.000000e+00> : vector<128x384xf32>
    %17 = tpu.matmul %4, %16, %cst {dimension_numbers = #tpu.dot_dimension_numbers<[1], [0], [0], [1], [0, 0, 1, 1], [], []>} : vector<128x128xbf16>, vector<128x384xbf16>, vector<128x384xf32> -> vector<128x384xf32>
    %18 = vector.broadcast %7 : vector<1x384xf32> to vector<128x384xf32>
    %19 = arith.addf %17, %18 : vector<128x384xf32>
    %20 = vector.extract_strided_slice %19 {offsets = [0, 0], sizes = [128, 128], strides = [1, 1]} : vector<128x384xf32> to vector<128x128xf32>
    %21 = vector.extract_strided_slice %20 {offsets = [0, 0], sizes = [128, 64], strides = [1, 1]} : vector<128x128xf32> to vector<128x64xf32>
    %22 = vector.shape_cast %21 : vector<128x64xf32> to vector<4x32x64xf32>
    %23 = vector.extract_strided_slice %20 {offsets = [0, 64], sizes = [128, 64], strides = [1, 1]} : vector<128x128xf32> to vector<128x64xf32>
    %24 = vector.shape_cast %23 : vector<128x64xf32> to vector<4x32x64xf32>
    %25 = tpu.concatenate %22, %24 in 0 : vector<4x32x64xf32>, vector<4x32x64xf32> -> vector<8x32x64xf32>
    %26 = arith.truncf %25 : vector<8x32x64xf32> to vector<8x32x64xbf16>
    %27 = vector.extract_strided_slice %19 {offsets = [0, 128], sizes = [128, 128], strides = [1, 1]} : vector<128x384xf32> to vector<128x128xf32>
    %28 = vector.extract_strided_slice %27 {offsets = [0, 0], sizes = [128, 64], strides = [1, 1]} : vector<128x128xf32> to vector<128x64xf32>
    %29 = vector.shape_cast %28 : vector<128x64xf32> to vector<4x32x64xf32>
    %30 = vector.extract_strided_slice %27 {offsets = [0, 64], sizes = [128, 64], strides = [1, 1]} : vector<128x128xf32> to vector<128x64xf32>
    %31 = vector.shape_cast %30 : vector<128x64xf32> to vector<4x32x64xf32>
    %32 = tpu.concatenate %29, %31 in 0 : vector<4x32x64xf32>, vector<4x32x64xf32> -> vector<8x32x64xf32>
    %33 = arith.truncf %32 : vector<8x32x64xf32> to vector<8x32x64xbf16>
    %34 = vector.extract_strided_slice %19 {offsets = [0, 256], sizes = [128, 128], strides = [1, 1]} : vector<128x384xf32> to vector<128x128xf32>
    %35 = vector.extract_strided_slice %34 {offsets = [0, 0], sizes = [128, 64], strides = [1, 1]} : vector<128x128xf32> to vector<128x64xf32>
    %36 = vector.shape_cast %35 : vector<128x64xf32> to vector<4x32x64xf32>
    %37 = vector.extract_strided_slice %34 {offsets = [0, 64], sizes = [128, 64], strides = [1, 1]} : vector<128x128xf32> to vector<128x64xf32>
    %38 = vector.shape_cast %37 : vector<128x64xf32> to vector<4x32x64xf32>
    %39 = tpu.concatenate %36, %38 in 0 : vector<4x32x64xf32>, vector<4x32x64xf32> -> vector<8x32x64xf32>
    %40 = arith.truncf %39 : vector<8x32x64xf32> to vector<8x32x64xbf16>
    "tpu.trace_start"() <{level = 10 : i32, message = "bqd,bkd->bqk"}> : () -> ()
    %cst_8 = arith.constant dense<0.000000e+00> : vector<8x32x32xf32>
    %41 = tpu.matmul %26, %33, %cst_8 {dimension_numbers = #tpu.dot_dimension_numbers<[2], [2], [1], [1], [0, 0, 0, 1, 1, 1], [0], [0]>} : vector<8x32x64xbf16>, vector<8x32x64xbf16>, vector<8x32x32xf32> -> vector<8x32x32xf32>
    "tpu.trace_stop"() : () -> ()
    %cst_9 = arith.constant 1.250000e-01 : f32
    %42 = vector.broadcast %cst_9 : f32 to vector<8x32x32xf32>
    %43 = arith.mulf %41, %42 : vector<8x32x32xf32>
    %c0_10 = arith.constant 0 : index
    %c0_11 = arith.constant 0 : index
    %44 = vector.load %arg13[%c0_10, %c0_11] : memref<8x32xf32, #tpu.memory_space<vmem>>, vector<8x32xf32>
    %45 = vector.shape_cast %44 : vector<8x32xf32> to vector<8x1x32xf32>
    %46 = vector.broadcast %45 : vector<8x1x32xf32> to vector<8x32x32xf32>
    %47 = arith.addf %43, %46 : vector<8x32x32xf32>
    %cst_12 = arith.constant dense<0xFF800000> : vector<8x32xf32>
    %48 = vector.multi_reduction <maximumf>, %47, %cst_12 [2] : vector<8x32x32xf32> to vector<8x32xf32>
    %49 = vector.shape_cast %48 : vector<8x32xf32> to vector<8x32x1xf32>
    %50 = vector.broadcast %49 : vector<8x32x1xf32> to vector<8x32x32xf32>
    %51 = arith.subf %47, %50 : vector<8x32x32xf32>
    %52 = math.exp %51 : vector<8x32x32xf32>
    %cst_13 = arith.constant dense<0.000000e+00> : vector<8x32xf32>
    %53 = vector.multi_reduction <add>, %52, %cst_13 [2] : vector<8x32x32xf32> to vector<8x32xf32>
    %54 = vector.shape_cast %53 : vector<8x32xf32> to vector<8x32x1xf32>
    %55 = tpu.reciprocal %54 {approx = true} : vector<8x32x1xf32> -> vector<8x32x1xf32>
    %56 = vector.broadcast %55 : vector<8x32x1xf32> to vector<8x32x32xf32>
    %57 = arith.mulf %52, %56 : vector<8x32x32xf32>
    %58 = arith.truncf %57 : vector<8x32x32xf32> to vector<8x32x32xbf16>
    "tpu.trace_start"() <{level = 10 : i32, message = "bqk,bkd->bqd"}> : () -> ()
    %cst_14 = arith.constant dense<0.000000e+00> : vector<8x32x64xf32>
    %59 = tpu.matmul %58, %40, %cst_14 {dimension_numbers = #tpu.dot_dimension_numbers<[2], [1], [1], [2], [0, 0, 0, 1, 1, 2], [0], [0]>} : vector<8x32x32xbf16>, vector<8x32x64xbf16>, vector<8x32x64xf32> -> vector<8x32x64xf32>
    "tpu.trace_stop"() : () -> ()
    %c0_15 = arith.constant 0 : index
    %c0_16 = arith.constant 0 : index
    %c0_17 = arith.constant 0 : index
    %60 = vector.load %arg5[%c0_15, %c0_16, %c0_17] : memref<1x128x128xbf16, #tpu.memory_space<vmem>>, vector<1x128x128xbf16>
    %61 = vector.shape_cast %60 : vector<1x128x128xbf16> to vector<128x128xbf16>
    %62 = vector.extract_strided_slice %59 {offsets = [0, 0, 0], sizes = [4, 32, 64], strides = [1, 1, 1]} : vector<8x32x64xf32> to vector<4x32x64xf32>
    %63 = vector.shape_cast %62 : vector<4x32x64xf32> to vector<128x64xf32>
    %64 = arith.truncf %63 : vector<128x64xf32> to vector<128x64xbf16>
    %65 = vector.extract_strided_slice %61 {offsets = [0, 0], sizes = [64, 128], strides = [1, 1]} : vector<128x128xbf16> to vector<64x128xbf16>
    %cst_18 = arith.constant dense<0.000000e+00> : vector<128x128xf32>
    %66 = tpu.matmul %64, %65, %cst_18 {dimension_numbers = #tpu.dot_dimension_numbers<[1], [0], [0], [1], [0, 0, 1, 1], [], []>} : vector<128x64xbf16>, vector<64x128xbf16>, vector<128x128xf32> -> vector<128x128xf32>
    %67 = vector.extract_strided_slice %59 {offsets = [4, 0, 0], sizes = [4, 32, 64], strides = [1, 1, 1]} : vector<8x32x64xf32> to vector<4x32x64xf32>
    %68 = vector.shape_cast %67 : vector<4x32x64xf32> to vector<128x64xf32>
    %69 = arith.truncf %68 : vector<128x64xf32> to vector<128x64xbf16>
    %70 = vector.extract_strided_slice %61 {offsets = [64, 0], sizes = [64, 128], strides = [1, 1]} : vector<128x128xbf16> to vector<64x128xbf16>
    %cst_19 = arith.constant dense<0.000000e+00> : vector<128x128xf32>
    %71 = tpu.matmul %69, %70, %cst_19 {dimension_numbers = #tpu.dot_dimension_numbers<[1], [0], [0], [1], [0, 0, 1, 1], [], []>} : vector<128x64xbf16>, vector<64x128xbf16>, vector<128x128xf32> -> vector<128x128xf32>
    %72 = arith.addf %66, %71 : vector<128x128xf32>
    %73 = vector.broadcast %9 : vector<1x128xf32> to vector<128x128xf32>
    %74 = arith.addf %72, %73 : vector<128x128xf32>
    %75 = arith.addf %3, %74 : vector<128x128xf32>
    %cst_20 = arith.constant dense<0.000000e+00> : vector<128xf32>
    %76 = vector.multi_reduction <add>, %75, %cst_20 [1] : vector<128x128xf32> to vector<128xf32>
    %77 = vector.shape_cast %76 : vector<128xf32> to vector<128x1xf32>
    %cst_21 = arith.constant 1.280000e+02 : f32
    %78 = vector.broadcast %cst_21 : f32 to vector<128x1xf32>
    %79 = arith.divf %77, %78 : vector<128x1xf32>
    %80 = vector.broadcast %79 : vector<128x1xf32> to vector<128x128xf32>
    %81 = arith.subf %75, %80 : vector<128x128xf32>
    %82 = arith.mulf %81, %81 : vector<128x128xf32>
    %cst_22 = arith.constant dense<0.000000e+00> : vector<128xf32>
    %83 = vector.multi_reduction <add>, %82, %cst_22 [1] : vector<128x128xf32> to vector<128xf32>
    %84 = vector.shape_cast %83 : vector<128xf32> to vector<128x1xf32>
    %cst_23 = arith.constant 1.280000e+02 : f32
    %85 = vector.broadcast %cst_23 : f32 to vector<128x1xf32>
    %86 = arith.divf %84, %85 : vector<128x1xf32>
    %87 = vector.broadcast %79 : vector<128x1xf32> to vector<128x128xf32>
    %88 = arith.subf %75, %87 : vector<128x128xf32>
    %cst_24 = arith.constant 9.99999996E-13 : f32
    %89 = vector.broadcast %cst_24 : f32 to vector<128x1xf32>
    %90 = arith.addf %86, %89 : vector<128x1xf32>
    %91 = math.rsqrt %90 : vector<128x1xf32>
    %92 = vector.broadcast %91 : vector<128x1xf32> to vector<128x128xf32>
    %93 = arith.mulf %88, %92 : vector<128x128xf32>
    %94 = vector.broadcast %11 : vector<1x128xf32> to vector<128x128xf32>
    %95 = arith.mulf %93, %94 : vector<128x128xf32>
    %96 = vector.broadcast %12 : vector<1x128xf32> to vector<128x128xf32>
    %97 = arith.addf %95, %96 : vector<128x128xf32>
    %98 = arith.truncf %97 : vector<128x128xf32> to vector<128x128xbf16>
    %c0_25 = arith.constant 0 : index
    %c0_26 = arith.constant 0 : index
    %c0_27 = arith.constant 0 : index
    %99 = vector.load %arg6[%c0_25, %c0_26, %c0_27] : memref<1x128x512xbf16, #tpu.memory_space<vmem>>, vector<1x128x512xbf16>
    %100 = vector.shape_cast %99 : vector<1x128x512xbf16> to vector<128x512xbf16>
    %cst_28 = arith.constant dense<0.000000e+00> : vector<128x512xf32>
    %101 = tpu.matmul %98, %100, %cst_28 {dimension_numbers = #tpu.dot_dimension_numbers<[1], [0], [0], [1], [0, 0, 1, 1], [], []>} : vector<128x128xbf16>, vector<128x512xbf16>, vector<128x512xf32> -> vector<128x512xf32>
    %102 = vector.broadcast %8 : vector<1x512xf32> to vector<128x512xf32>
    %103 = arith.addf %101, %102 : vector<128x512xf32>
    %cst_29 = arith.constant 5.000000e-01 : f32
    %104 = vector.broadcast %cst_29 : f32 to vector<128x512xf32>
    %105 = arith.mulf %104, %103 : vector<128x512xf32>
    %cst_30 = arith.constant 4.471500e-02 : f32
    %106 = vector.broadcast %cst_30 : f32 to vector<128x512xf32>
    %107 = arith.mulf %106, %103 : vector<128x512xf32>
    %108 = arith.mulf %107, %103 : vector<128x512xf32>
    %109 = arith.mulf %108, %103 : vector<128x512xf32>
    %110 = arith.addf %103, %109 : vector<128x512xf32>
    %cst_31 = arith.constant 0.797884583 : f32
    %111 = vector.broadcast %cst_31 : f32 to vector<128x512xf32>
    %112 = arith.mulf %111, %110 : vector<128x512xf32>
    %113 = math.tanh %112 : vector<128x512xf32>
    %cst_32 = arith.constant 1.000000e+00 : f32
    %114 = vector.broadcast %cst_32 : f32 to vector<128x512xf32>
    %115 = arith.addf %114, %113 : vector<128x512xf32>
    %116 = arith.mulf %105, %115 : vector<128x512xf32>
    %117 = arith.truncf %116 : vector<128x512xf32> to vector<128x512xbf16>
    %c0_33 = arith.constant 0 : index
    %c0_34 = arith.constant 0 : index
    %c0_35 = arith.constant 0 : index
    %118 = vector.load %arg7[%c0_33, %c0_34, %c0_35] : memref<1x512x128xbf16, #tpu.memory_space<vmem>>, vector<1x512x128xbf16>
    %119 = vector.shape_cast %118 : vector<1x512x128xbf16> to vector<512x128xbf16>
    %cst_36 = arith.constant dense<0.000000e+00> : vector<128x128xf32>
    %120 = tpu.matmul %117, %119, %cst_36 {dimension_numbers = #tpu.dot_dimension_numbers<[1], [0], [0], [1], [0, 0, 1, 1], [], []>} : vector<128x512xbf16>, vector<512x128xbf16>, vector<128x128xf32> -> vector<128x128xf32>
    %121 = vector.broadcast %10 : vector<1x128xf32> to vector<128x128xf32>
    %122 = arith.addf %120, %121 : vector<128x128xf32>
    %123 = arith.addf %97, %122 : vector<128x128xf32>
    %cst_37 = arith.constant dense<0.000000e+00> : vector<128xf32>
    %124 = vector.multi_reduction <add>, %123, %cst_37 [1] : vector<128x128xf32> to vector<128xf32>
    %125 = vector.shape_cast %124 : vector<128xf32> to vector<128x1xf32>
    %cst_38 = arith.constant 1.280000e+02 : f32
    %126 = vector.broadcast %cst_38 : f32 to vector<128x1xf32>
    %127 = arith.divf %125, %126 : vector<128x1xf32>
    %128 = vector.broadcast %127 : vector<128x1xf32> to vector<128x128xf32>
    %129 = arith.subf %123, %128 : vector<128x128xf32>
    %130 = arith.mulf %129, %129 : vector<128x128xf32>
    %cst_39 = arith.constant dense<0.000000e+00> : vector<128xf32>
    %131 = vector.multi_reduction <add>, %130, %cst_39 [1] : vector<128x128xf32> to vector<128xf32>
    %132 = vector.shape_cast %131 : vector<128xf32> to vector<128x1xf32>
    %cst_40 = arith.constant 1.280000e+02 : f32
    %133 = vector.broadcast %cst_40 : f32 to vector<128x1xf32>
    %134 = arith.divf %132, %133 : vector<128x1xf32>
    %135 = vector.broadcast %127 : vector<128x1xf32> to vector<128x128xf32>
    %136 = arith.subf %123, %135 : vector<128x128xf32>
    %cst_41 = arith.constant 9.99999996E-13 : f32
    %137 = vector.broadcast %cst_41 : f32 to vector<128x1xf32>
    %138 = arith.addf %134, %137 : vector<128x1xf32>
    %139 = math.rsqrt %138 : vector<128x1xf32>
    %140 = vector.broadcast %139 : vector<128x1xf32> to vector<128x128xf32>
    %141 = arith.mulf %136, %140 : vector<128x128xf32>
    %142 = vector.broadcast %13 : vector<1x128xf32> to vector<128x128xf32>
    %143 = arith.mulf %141, %142 : vector<128x128xf32>
    %144 = vector.broadcast %14 : vector<1x128xf32> to vector<128x128xf32>
    %145 = arith.addf %143, %144 : vector<128x128xf32>
    %c0_42 = arith.constant 0 : index
    %c0_43 = arith.constant 0 : index
    %146 = vector.load %arg12[%c0_42, %c0_43] : memref<128x128xf32, #tpu.memory_space<vmem>>, vector<128x128xf32>
    tpu.vector_store %arg12[%c0_42, %c0_43], %145 {strides = array<i32>} : memref<128x128xf32, #tpu.memory_space<vmem>>, vector<128x128xf32>,
    %c1_i32 = arith.constant 1 : i32
    %147 = arith.cmpi eq, %arg0, %c1_i32 : i32
    %148 = arith.extui %147 : i1 to i32
    %c0_i32_44 = arith.constant 0 : i32
    %149 = arith.cmpi ne, %148, %c0_i32_44 : i32
    scf.if %149 {
      %c0_45 = arith.constant 0 : index
      %c0_46 = arith.constant 0 : index
      %150 = vector.load %arg3[%c0_45, %c0_46] : memref<4x128xf32, #tpu.memory_space<vmem>>, vector<4x128xf32>
      %c0_47 = arith.constant 0 : index
      %c0_48 = arith.constant 0 : index
      %151 = tpu.strided_load %arg12[%c0_47, %c0_48] {strides = array<i32: 32, 1>} : memref<128x128xf32, #tpu.memory_space<vmem>>, vector<4x128xf32>
      %152 = arith.truncf %151 : vector<4x128xf32> to vector<4x128xbf16>
      %c0_49 = arith.constant 0 : index
      %c0_50 = arith.constant 0 : index
      %153 = vector.load %arg9[%c0_49, %c0_50] : memref<128x128xbf16, #tpu.memory_space<vmem>>, vector<128x128xbf16>
      %cst_51 = arith.constant dense<0.000000e+00> : vector<4x128xf32>
      %154 = tpu.matmul %152, %153, %cst_51 {dimension_numbers = #tpu.dot_dimension_numbers<[1], [0], [0], [1], [0, 0, 1, 1], [], []>} : vector<4x128xbf16>, vector<128x128xbf16>, vector<4x128xf32> -> vector<4x128xf32>
      %155 = vector.extract_strided_slice %150 {offsets = [2, 0], sizes = [1, 128], strides = [1, 1]} : vector<4x128xf32> to vector<1x128xf32>
      %156 = vector.broadcast %155 : vector<1x128xf32> to vector<4x128xf32>
      %157 = arith.addf %154, %156 : vector<4x128xf32>
      %158 = math.tanh %157 : vector<4x128xf32>
      %159 = arith.truncf %158 : vector<4x128xf32> to vector<4x128xbf16>
      %c0_52 = arith.constant 0 : index
      %c0_53 = arith.constant 0 : index
      %160 = vector.load %arg10[%c0_52, %c0_53] : memref<128x128xbf16, #tpu.memory_space<vmem>>, vector<128x128xbf16>
      %cst_54 = arith.constant dense<0.000000e+00> : vector<4x128xf32>
      %161 = tpu.matmul %159, %160, %cst_54 {dimension_numbers = #tpu.dot_dimension_numbers<[1], [0], [0], [1], [0, 0, 1, 1], [], []>} : vector<4x128xbf16>, vector<128x128xbf16>, vector<4x128xf32> -> vector<4x128xf32>
      %162 = vector.extract_strided_slice %150 {offsets = [3, 0], sizes = [1, 128], strides = [1, 1]} : vector<4x128xf32> to vector<1x128xf32>
      %163 = vector.broadcast %162 : vector<1x128xf32> to vector<4x128xf32>
      %164 = arith.addf %161, %163 : vector<4x128xf32>
      %cst_55 = arith.constant dense<0xFF800000> : vector<4xf32>
      %165 = vector.multi_reduction <maximumf>, %164, %cst_55 [1] : vector<4x128xf32> to vector<4xf32>
      %166 = vector.shape_cast %165 : vector<4xf32> to vector<4x1xf32>
      %167 = vector.broadcast %166 : vector<4x1xf32> to vector<4x128xf32>
      %168 = arith.subf %164, %167 : vector<4x128xf32>
      %169 = math.exp %168 : vector<4x128xf32>
      %cst_56 = arith.constant dense<0.000000e+00> : vector<4xf32>
      %170 = vector.multi_reduction <add>, %169, %cst_56 [1] : vector<4x128xf32> to vector<4xf32>
      %171 = vector.shape_cast %170 : vector<4xf32> to vector<4x1xf32>
      %172 = vector.broadcast %171 : vector<4x1xf32> to vector<4x128xf32>
      %173 = arith.divf %169, %172 : vector<4x128xf32>
      %c0_57 = arith.constant 0 : index
      %c0_58 = arith.constant 0 : index
      %174 = vector.load %arg11[%c0_57, %c0_58] : memref<4x128xf32, #tpu.memory_space<vmem>>, vector<4x128xf32>
      tpu.vector_store %arg11[%c0_57, %c0_58], %173 {strides = array<i32>} : memref<4x128xf32, #tpu.memory_space<vmem>>, vector<4x128xf32>,
    } else {
    }
    return
  }
  func.func @transform_0(%arg0: i32) -> (i32, i32) {
    %c0_i32 = arith.constant 0 : i32
    %c0_i32_0 = arith.constant 0 : i32
    %c0_i32_1 = arith.constant 0 : i32
    return %c0_i32, %c0_i32_0 : i32, i32
  }
  func.func @transform_1(%arg0: i32) -> (i32, i32) {
    %c0_i32 = arith.constant 0 : i32
    %c0_i32_0 = arith.constant 0 : i32
    %c0_i32_1 = arith.constant 0 : i32
    return %c0_i32, %c0_i32_0 : i32, i32
  }
  func.func @transform_2(%arg0: i32) -> (i32, i32) {
    %c0_i32 = arith.constant 0 : i32
    %c0_i32_0 = arith.constant 0 : i32
    %c0_i32_1 = arith.constant 0 : i32
    return %c0_i32, %c0_i32_0 : i32, i32
  }
  func.func @transform_3(%arg0: i32) -> (i32, i32, i32) {
    %c0_i32 = arith.constant 0 : i32
    %c0_i32_0 = arith.constant 0 : i32
    %c0_i32_1 = arith.constant 0 : i32
    return %arg0, %c0_i32, %c0_i32_0 : i32, i32, i32
  }
  func.func @transform_4(%arg0: i32) -> (i32, i32, i32) {
    %c0_i32 = arith.constant 0 : i32
    %c0_i32_0 = arith.constant 0 : i32
    %c0_i32_1 = arith.constant 0 : i32
    return %arg0, %c0_i32, %c0_i32_0 : i32, i32, i32
  }
  func.func @transform_5(%arg0: i32) -> (i32, i32, i32) {
    %c0_i32 = arith.constant 0 : i32
    %c0_i32_0 = arith.constant 0 : i32
    %c0_i32_1 = arith.constant 0 : i32
    return %arg0, %c0_i32, %c0_i32_0 : i32, i32, i32
  }
  func.func @transform_6(%arg0: i32) -> (i32, i32, i32) {
    %c0_i32 = arith.constant 0 : i32
    %c0_i32_0 = arith.constant 0 : i32
    %c0_i32_1 = arith.constant 0 : i32
    return %arg0, %c0_i32, %c0_i32_0 : i32, i32, i32
  }
  func.func @transform_7(%arg0: i32) -> (i32, i32, i32) {
    %c0_i32 = arith.constant 0 : i32
    %c0_i32_0 = arith.constant 0 : i32
    %c0_i32_1 = arith.constant 0 : i32
    return %arg0, %c0_i32, %c0_i32_0 : i32, i32, i32
  }
  func.func @transform_8(%arg0: i32) -> (i32, i32) {
    %c0_i32 = arith.constant 0 : i32
    %c0_i32_0 = arith.constant 0 : i32
    %c0_i32_1 = arith.constant 0 : i32
    return %c0_i32, %c0_i32_0 : i32, i32
  }
  func.func @transform_9(%arg0: i32) -> (i32, i32) {
    %c0_i32 = arith.constant 0 : i32
    %c0_i32_0 = arith.constant 0 : i32
    %c0_i32_1 = arith.constant 0 : i32
    return %c0_i32, %c0_i32_0 : i32, i32
  }
  func.func @transform_10(%arg0: i32) -> (i32, i32) {
    %c0_i32 = arith.constant 0 : i32
    %c0_i32_0 = arith.constant 0 : i32
    %c0_i32_1 = arith.constant 0 : i32
    return %c0_i32, %c0_i32_0 : i32, i32
  }
}

</mosaic_0001>

<bundles_post_ra>
// kernel: tpu_custom_call.1
= control target key start
LH: loop header
LB: loop body
LE: loop exit
PB: predicated region body
PF: predicated region fallthrough
CT: control target
= control target key end

     0   :  { %s10428_s0 = inlined_call_operand.hbm [shape: f32[128,128], index: 0, kind: input, shape index: {}]   ;;  %s10429_s1 = inlined_call_operand.hbm [shape: f32[4,32], index: 1, kind: input, shape index: {}]   ;;  %s10430_s2 = inlined_call_operand.hbm [shape: f32[4,128], index: 2, kind: input, shape index: {}]   ;;  %s10431_s3 = inlined_call_operand.hbm [shape: bf16[2,128,384], index: 3, kind: input, shape index: {}]   ;;  %s10432_s4 = inlined_call_operand.hbm [shape: bf16[2,128,128], index: 4, kind: input, shape index: {}]   ;;  %s10433_s5 = inlined_call_operand.hbm [shape: bf16[2,128,512], index: 5, kind: input, shape index: {}]   ;;  %s10434_s6 = inlined_call_operand.hbm [shape: bf16[2,512,128], index: 6, kind: input, shape index: {}]   ;;  %s10435_s7 = inlined_call_operand.hbm [shape: f32[2,8,512], index: 7, kind: input, shape index: {}]   ;;  %s10436_s8 = inlined_call_operand.hbm [shape: bf16[128,128], index: 8, kind: input, shape index: {}]   ;;  %s10437_s9 = inlined_call_operand.hbm [shape: bf16[128,128], index: 9, kind: input, shape index: {}]   ;;  %s10438_s10 = inlined_call_operand.hbm [shape: f32[4,128], index: 10, kind: output, shape index: {}]  }
   0x1   :  { %10469 = sst [smem:[#allocation52_spill]] %s10428_s0 }
   0x2   :  { %10470 = sst [smem:[#allocation53_spill]] %s10429_s1 }
   0x3   :  { %10471 = sst [smem:[#allocation54_spill]] %s10431_s3 }
   0x4   :  { %10472 = sst [smem:[#allocation55_spill]] %s10436_s8 }
   0x5   :  { %10473 = sst [smem:[#allocation56_spill]] %s10438_s10 }
   0x6   :  { %15 = vsyncpa [#allocation5], 0 }
   0x7   :  { %16 = vsyncpa [#allocation8], 0 }
   0x8   :  { %17 = vsyncpa [#allocation11], 0 }
   0x9   :  { %19 = vsyncpa [#allocation11 + $0x1], 0 }
   0xa   :  { %20 = vsyncpa [#allocation14], 0 }
   0xb   :  { %22 = vsyncpa [#allocation14 + $0x1], 0 }
   0xc   :  { %23 = vsyncpa [#allocation17], 0 }
   0xd   :  { %25 = vsyncpa [#allocation17 + $0x1], 0 }
   0xe   :  { %26 = vsyncpa [#allocation20], 0 }
   0xf   :  { %27 = vsyncpa [#allocation6], 0  ;;  %s7519_s13 = smov 0   ;;  %s7521_s14 = smov 0  }
  0x10   :  { %s7523_s15 = smov 0   ;;  %s7525_s16 = smov 0  }
  0x11 LB: > { %10474 = sst [smem:[#allocation30_spill]] %s7437_s14  ;;  %s7538_s17 = sadd.s32 4294967295, %s7445_s16   ;;  %s7445_s16 = sphi %s7525_s16, %s10543_s16   ;;  %s7441_s15 = sphi %s7523_s15, %s10546_s15   ;;  %s7437_s14 = sphi %s7521_s14, %s10545_s14   ;;  %s7433_s13 = sphi %s7519_s13, %s10544_s13  }
  0x12   : > { %10475 = sst [smem:[#allocation31_spill]] %s7441_s15  ;;  %p116_p0 = scmp.ne.s32.totalorder %s7437_s14, %s7433_s13 }
  0x13   : > { %10476 = sst [smem:[#allocation32_spill]] %s7538_s17  ;;  %p117_p1 = scmp.eq.s32.totalorder %s7538_s17, 0 }
  0x14   : > { %p5761_p2 = scmp.ge.s32.totalorder %s7445_s16, 1  ;;  %p294_p3 = scmp.lt.s32.totalorder %s7445_s16, 3 }
  0x15   : > { %p5762_p4 = scmp.ne.s32.totalorder %s7538_s17, 0  ;;  %p7547_p5 = por %p117_p1, %p116_p0 }
  0x16   : > { %s10479_s1 = sld [smem:[#allocation53_spill]]  ;;  %p7554_p6 = pnand %p5761_p2, %p294_p3 }
  0x17   : > { %s10477_s18 = scalar_select %p7547_p5, 1, 0 }
  0x18   : > { %p6458_p7 = pneg %p7554_p6  ;;  %s7447_s23 = smov [#allocation7]  }
  0x19   : > { %10478 = sst [smem:[#allocation33_spill]] %s10477_s18  ;;  %s322_s24 = sshll.u32 %s7447_s23, 4  ;;  %s323_s24 = int_to_ptr.vmem [resolvable:$true] %s322_s24 }
  0x1a   : > { %s10481_s8 = sld [smem:[#allocation55_spill]]  ;;  %p7565_p8 = pnand %p6458_p7, %p117_p1 }
  0x1b   : > { %s7448_s29 = smov [#allocation18]   ;;  %s10439_s11 = smov 64  }
  0x1c   : > { %s320_s21 = sshll.u32 %s10479_s1, 4  ;;  %s345_s30 = sshll.u32 %s7448_s29, 4  ;;  %s321_s21 = int_to_ptr.hbm [resolvable:$true] %s320_s21  ;;  %s346_s30 = int_to_ptr.vmem [resolvable:$true] %s345_s30 }
  0x1d   : > { %6464 = dma.hbm_to_vmem [thread:$0]  (!%p7565_p8), %s321_s21, 64, %s323_s24, [#allocation8]  }
  0x1e   : > { %s10441_s12 = smov 4   ;;  %s7577_s13 = sadd.s32 1, %s7445_s16  }
  0x1f   : > { %10483 = sst [smem:[#allocation34_spill]] %s7577_s13  ;;  %s100_s19 = ssub.s32 %s7445_s16, %s7577_s13 }
  0x20   : > { %s343_s27 = sshll.u32 %s10481_s8, 4  ;;  %p101_p9 = scmp.eq.s32.totalorder %s100_s19, 0  ;;  %s344_s27 = int_to_ptr.hbm [resolvable:$true] %s343_s27 }
  0x21   : > { %6470 = dma.hbm_to_vmem [thread:$0]  (!%p7565_p8), %s344_s27, 1024, %s346_s30, [#allocation17], %s10439_s11, %s10439_s11, %s10441_s12  }
  0x22   : > { %s103_s20 = sadd.s32 1, %s7441_s15  ;;  %p110_p10 = scmp.ne.s32.totalorder %s7441_s15, %s7437_s14 }
  0x23   : > { %p111_p11 = scmp.eq.s32.totalorder %s7445_s16, 0  ;;  %p6495_p13 = scmp.lt.s32.totalorder %s7445_s16, 2 }
  0x24   : > { %s7586_s23 = scalar_select %p101_p9, %s7441_s15, %s103_s20  }
  0x25   : > { %p112_p12 = por %p111_p11, %p110_p10  ;;  %s7590_s21 = sand.u32 1, %s7445_s16  }
  0x26   : > { %10484 = sst [smem:[#allocation35_spill]] %s7586_s23  ;;  %s7593_s24 = sand.u32 1, %s7441_s15  }
  0x27   : > { %s6421_s25 = smul.u32 192, %s7593_s24  ;;  %p7597_p0 = pnand %p6495_p13, %p112_p12 }
  0x28   : > { %s6422_s26 = smul.u32 192, %s7445_s16  ;;  %s10486_s3 = sld [smem:[#allocation54_spill]] }
  0x29   : > { %s377_s20 = scalar_lea.vmem [#allocation10], %s6421_s25  ;;  %p7607_p3 = pneg %p7597_p0 }
  0x2a   : > { %s385_s11 = sshll.u32 %s377_s20, 4  ;;  %s386_s11 = int_to_ptr.vmem [resolvable:$true] %s385_s11 }
  0x2e   : > { %s382_s19 = scalar_lea.hbm %s10486_s3, %s6422_s26  ;;  %s7122_s29 = scalar_lea.hbm %s10486_s3, 384 }
  0x2f   : > { %s383_s12 = sshll.u32 %s382_s19, 4  ;;  %s384_s12 = int_to_ptr.hbm [resolvable:$true] %s383_s12 }
  0x30   : > { %s7115_s8 = sshra.s32 %s384_s12, 4  ;;  %s7116_s8 = int_to_ptr.hbm [resolvable:$true] %s7115_s8 }
  0x31   : > { %s7117_s23 = scalar_lea.hbm %s7116_s8, 192  ;;  %p7123_p10 = scmp.lt.s32.totalorder %s7116_s8, %s10486_s3 }
  0x32   : > { %p7118_p2 = scmp.ne.s32.totalorder %s7116_s8, %s7117_s23  ;;  %p7124_p11 = scmp.lt.s32.totalorder %s7122_s29, %s7117_s23 }
  0x34   : > { %p7120_p7 = pnand %p7607_p3, %p7118_p2  ;;  %p7125_p12 = por %p7124_p11, %p7123_p10 }
  0x36   : > { %p7121_p9 = pneg %p7120_p7 }
  0x38   : > { %p7126_p13 = pnand %p7125_p12, %p7121_p9 }
  0x3a   : > { %7129 = shalt.err (!%p7126_p13)
}
  0x3b   : > { %s7451_s20 = smov 192   ;;  %s7452_s1 = smov 12  }
  0x3c   : > { %s10488_s13 = scalar_lea.sflag [#allocation11], %s7590_s21  ;;  %s5772_s26 = sshll.u32 %s7593_s24, 8 }
  0x3d   : > { %6477 = dma.hbm_to_vmem [thread:$0]  (!%p7597_p0), %s384_s12, 3072, %s386_s11, %s10488_s13, %s7451_s20, %s7451_s20, %s7452_s1  }
  0x3e   : > { %s6294_s25 = sshll.u32 %s7445_s16, 8  ;;  %s421_s29 = scalar_lea.vmem [#allocation13], %s5772_s26 }
  0x3f   : > { %s426_s8 = scalar_lea.hbm %s10433_s5, %s6294_s25  ;;  %s429_s19 = sshll.u32 %s421_s29, 4  ;;  %s430_s19 = int_to_ptr.vmem [resolvable:$true] %s429_s19 }
  0x40   : > { %s427_s23 = sshll.u32 %s426_s8, 4  ;;  %s10451_s3 = scalar_lea.sflag [#allocation14], %s7590_s21  ;;  %s428_s23 = int_to_ptr.hbm [resolvable:$true] %s427_s23 }
  0x41   : > { %s7145_s18 = sshra.s32 %s428_s23, 4  ;;  %s7152_s12 = scalar_lea.hbm %s10433_s5, 512  ;;  %s7146_s18 = int_to_ptr.hbm [resolvable:$true] %s7145_s18 }
  0x42   : > { %s7147_s14 = scalar_lea.hbm %s7146_s18, 256  ;;  %p7153_p10 = scmp.lt.s32.totalorder %s7146_s18, %s10433_s5 }
  0x43   : > { %p7148_p2 = scmp.ne.s32.totalorder %s7146_s18, %s7147_s14  ;;  %p7154_p11 = scmp.lt.s32.totalorder %s7152_s12, %s7147_s14 }
  0x45   : > { %p7150_p7 = pnand %p7148_p2, %p7607_p3  ;;  %p7155_p12 = por %p7154_p11, %p7153_p10 }
  0x47   : > { %p7151_p9 = pneg %p7150_p7 }
  0x49   : > { %p7156_p13 = pnand %p7155_p12, %p7151_p9 }
  0x4b   : > { %7159 = shalt.err (!%p7156_p13)
}
  0x4c   : > { %s7453_s20 = smov 256   ;;  %s7454_s30 = smov 16  }
  0x4d   : > { %6483 = dma.hbm_to_vmem [thread:$0]  (!%p7597_p0), %s428_s23, 4096, %s430_s19, %s10451_s3, %s7453_s20, %s7453_s20, %s7454_s30  }
  0x4e   : > { %s448_s1 = scalar_lea.hbm %s10434_s6, %s6294_s25  ;;  %s443_s17 = scalar_lea.vmem [#allocation15], %s5772_s26 }
  0x4f   : > { %s449_s11 = sshll.u32 %s448_s1, 4  ;;  %s451_s13 = sshll.u32 %s443_s17, 4  ;;  %s7644_s11 = int_to_ptr.hbm [resolvable:$true] %s449_s11  ;;  %s7646_s13 = int_to_ptr.vmem [resolvable:$true] %s451_s13 }
  0x50   : > { %s10489_s0 = sld [smem:[#allocation52_spill]]  ;;  %s7455_s10 = smov [#allocation4]  }
  0x51   : > { %s307_s23 = sshll.u32 %s7455_s10, 4  ;;  %s332_s26 = sshll.u32 %s10430_s2, 4  ;;  %s308_s23 = int_to_ptr.vmem [resolvable:$true] %s307_s23  ;;  %s333_s26 = int_to_ptr.hbm [resolvable:$true] %s332_s26 }
  0x52   : > { %s7456_s17 = smov 128   ;;  %s7457_s25 = smov 8  }
  0x53   : > { %s7458_s30 = smov [#allocation9]   ;;  %s357_s14 = sshll.u32 %s10437_s9, 4  ;;  %s358_s14 = int_to_ptr.hbm [resolvable:$true] %s357_s14 }
  0x54   : > { %s334_s8 = sshll.u32 %s7458_s30, 4  ;;  %s5769_s18 = sshll.u32 %s7593_s24, 6  ;;  %s335_s8 = int_to_ptr.vmem [resolvable:$true] %s334_s8 }
  0x55   : > { %6467 = dma.hbm_to_vmem [thread:$0]  (!%p7565_p8), %s333_s26, 64, %s335_s8, [#allocation8]  }
  0x56   : > { %s305_s12 = sshll.u32 %s10489_s0, 4  ;;  %s7459_s10 = smov [#allocation19]   ;;  %s306_s12 = int_to_ptr.hbm [resolvable:$true] %s305_s12 }
  0x57   : > { %6461 = dma.hbm_to_vmem [thread:$0]  (!%p7565_p8), %s306_s12, 2048, %s308_s23, [#allocation5], %s7456_s17, %s7456_s17, %s7457_s25  }
  0x58   : > { %s359_s19 = sshll.u32 %s7459_s10, 4  ;;  %s6293_s20 = sshll.u32 %s7445_s16, 6  ;;  %s360_s19 = int_to_ptr.vmem [resolvable:$true] %s359_s19 }
  0x59   : > { %s10490_s3 = smov 4   ;;  %s10491_s12 = smov 64  }
  0x5a   : > { %6473 = dma.hbm_to_vmem [thread:$0]  (!%p7565_p8), %s358_s14, 1024, %s360_s19, [#allocation20], %s10491_s12, %s10491_s12, %s10490_s3  }
  0x5b   : > { %s404_s25 = scalar_lea.hbm %s10432_s4, %s6293_s20  ;;  %s399_s30 = scalar_lea.vmem [#allocation12], %s5769_s18 }
  0x5c   : > { %s407_s29 = sshll.u32 %s399_s30, 4  ;;  %s405_s1 = sshll.u32 %s404_s25, 4  ;;  %s408_s29 = int_to_ptr.vmem [resolvable:$true] %s407_s29  ;;  %s406_s1 = int_to_ptr.hbm [resolvable:$true] %s405_s1 }
  0x5d   : > { %s7265_s26 = sshra.s32 %s406_s1, 4  ;;  %s7272_s14 = scalar_lea.hbm %s10432_s4, 128  ;;  %s7266_s26 = int_to_ptr.hbm [resolvable:$true] %s7265_s26 }
  0x5e   : > { %s7267_s8 = scalar_lea.hbm %s7266_s26, 64  ;;  %p7273_p8 = scmp.lt.s32.totalorder %s7266_s26, %s10432_s4 }
  0x5f   : > { %p7268_p2 = scmp.ne.s32.totalorder %s7266_s26, %s7267_s8  ;;  %p7274_p10 = scmp.lt.s32.totalorder %s7272_s14, %s7267_s8 }
  0x61   : > { %p7270_p7 = pnand %p7268_p2, %p7607_p3  ;;  %p7275_p11 = por %p7274_p10, %p7273_p8 }
  0x63   : > { %p7271_p9 = pneg %p7270_p7 }
  0x65   : > { %p7276_p12 = pnand %p7275_p11, %p7271_p9 }
  0x67   : > { %7279 = shalt.err (!%p7276_p12)
}
  0x68   : > { %s10492_s18 = scalar_lea.sflag [#allocation11], %s7590_s21  ;;  %s7295_s20 = sshra.s32 %s7644_s11, 4  ;;  %s7296_s20 = int_to_ptr.hbm [resolvable:$true] %s7295_s20 }
  0x69   : > { %6480 = dma.hbm_to_vmem [thread:$0]  (!%p7597_p0), %s406_s1, 1024, %s408_s29, %s10492_s18, %s10491_s12, %s10491_s12, %s10490_s3  }
  0x6a   : > { %s7297_s23 = scalar_lea.hbm %s7296_s20, 256  ;;  %s7302_s25 = scalar_lea.hbm %s10434_s6, 512 }
  0x6b   : > { %p7298_p13 = scmp.ne.s32.totalorder %s7296_s20, %s7297_s23  ;;  %p7303_p9 = scmp.lt.s32.totalorder %s7296_s20, %s10434_s6 }
  0x6c   : > { %p7304_p8 = scmp.lt.s32.totalorder %s7302_s25, %s7297_s23 }
  0x6d   : > { %p7300_p2 = pnand %p7298_p13, %p7607_p3 }
  0x6e   : > { %p7305_p10 = por %p7304_p8, %p7303_p9 }
  0x6f   : > { %p7301_p7 = pneg %p7300_p2 }
  0x71   : > { %p7306_p11 = pnand %p7305_p10, %p7301_p7 }
  0x73   : > { %7309 = shalt.err (!%p7306_p11)
}
  0x74   : > { %s10493_s29 = scalar_lea.sflag [#allocation14], %s7590_s21  ;;  %s5778_s1 = sshll.u32 %s7593_s24, 5 }
  0x75   : > { %6486 = dma.hbm_to_vmem [thread:$0]  (!%p7597_p0), %s7644_s11, 4096, %s7646_s13, %s10493_s29, %s10491_s12, %s10491_s12, %s10490_s3  }
  0x76   : > { %s6296_s8 = sshll.u32 %s7445_s16, 5  ;;  %s465_s18 = scalar_lea.vmem [#allocation16], %s5778_s1 }
  0x77   : > { %s470_s14 = scalar_lea.hbm %s10435_s7, %s6296_s8  ;;  %s474_s20 = sshll.u32 %s465_s18, 4  ;;  %s475_s20 = int_to_ptr.vmem [resolvable:$true] %s474_s20 }
  0x78   : > { %s472_s19 = sshll.u32 %s470_s14, 4  ;;  %s462_s23 = scalar_lea.sflag [#allocation17], %s7590_s21  ;;  %s473_s19 = int_to_ptr.hbm [resolvable:$true] %s472_s19 }
  0x79   : > { %s7325_s0 = sshra.s32 %s473_s19, 4  ;;  %s7332_s16 = scalar_lea.hbm %s10435_s7, 64  ;;  %s7326_s0 = int_to_ptr.hbm [resolvable:$true] %s7325_s0 }
  0x7a   : > { %s7327_s17 = scalar_lea.hbm %s7326_s0, 32  ;;  %p7333_p7 = scmp.lt.s32.totalorder %s7326_s0, %s10435_s7 }
  0x7b   : > { %p7328_p12 = scmp.ne.s32.totalorder %s7326_s0, %s7327_s17  ;;  %p7334_p9 = scmp.lt.s32.totalorder %s7332_s16, %s7327_s17 }
  0x7d   : > { %p7330_p13 = pnand %p7328_p12, %p7607_p3  ;;  %p7335_p8 = por %p7334_p9, %p7333_p7 }
  0x7f   : > { %p7331_p2 = pneg %p7330_p13 }
  0x81   : > { %p7336_p10 = pnand %p7335_p8, %p7331_p2 }
  0x83   : > { %7339 = shalt.err (!%p7336_p10)
}
  0x84   : > { %6489 = dma.hbm_to_vmem [thread:$0]  (!%p7597_p0), %s473_s19, 512, %s475_s20, %s462_s23  }
  0x85   : > { %483 = sbr.rel (%p7554_p6) target bundleno = 3305 (0xce9), region = 60 }
  0x8a   : > { %s10494_s15 = sld [smem:[#allocation32_spill]] }
  0x8b   : > { %7400 = dma.done.wait (%p117_p1), [#allocation5], 2048  }
  0x8c   : > { %7402 = vsyncadd (%p117_p1), [#allocation5], 4294965248 }
  0x8d   : > { %7404 = dma.done.wait (%p117_p1), [#allocation8], 128  }
  0x8e   : > { %7406 = vsyncadd (%p117_p1), [#allocation8], 4294967168  ;;  %s10495_s21 = sld [smem:[#allocation30_spill]] }
  0x90   : > { %s500_s27 = sand.u32 1, %s10494_s15  }
  0x91   : > { %s501_s22 = scalar_lea.sflag [#allocation11], %s500_s27 }
  0x94   : > { %s502_s25 = sand.u32 1, %s10495_s21  }
  0x95   : > { %s6423_s30 = smul.u32 192, %s502_s25 }
  0x97   : > { %s7732_s26 = scalar_lea.vmem [#allocation10], %s6423_s30 }
  0x98   : > { %7408 = dma.done.wait (%p7547_p5), %s501_s22, 4096  }
  0x99   : > { %7410 = vsyncadd (%p7547_p5), %s501_s22, 4294963200  ;;  %s5785_s29 = sshll.u32 %s502_s25, 6  ;;  %s5786_s1 = sshll.u32 %s502_s25, 8 }
  0x9a   : > { %s7738_s8 = scalar_lea.vmem [#allocation12], %s5785_s29  ;;  %s521_s28 = scalar_lea.sflag [#allocation14], %s500_s27 }
  0x9b   : > { %s7740_s10 = scalar_lea.vmem [#allocation13], %s5786_s1 }
  0x9c   : > { %7412 = dma.done.wait (%p7547_p5), %s521_s28, 8192  }
  0x9d   : > { %7414 = vsyncadd (%p7547_p5), %s521_s28, 4294959104  ;;  %s5788_s14 = sshll.u32 %s502_s25, 5  ;;  %s7746_s19 = scalar_lea.vmem [#allocation15], %s5786_s1 }
  0x9e   : > { %s541_s18 = scalar_lea.sflag [#allocation17], %s500_s27  ;;  %s7748_s20 = scalar_lea.vmem [#allocation16], %s5788_s14 }
  0x9f   : > { %7416 = dma.done.wait (%p7547_p5), %s541_s18, 512  }
  0xa0   : > { %7418 = vsyncadd (%p7547_p5), %s541_s18, 4294966784 }
  0xa1   : > { %7420 = dma.done.wait (%p117_p1), [#allocation17], 1024  }
  0xa2   : > { %7422 = vsyncadd (%p117_p1), [#allocation17], 4294966272 }
  0xa3   : > { %7424 = dma.done.wait (%p117_p1), [#allocation20], 1024  }
  0xa4   : > { %7426 = vsyncadd (%p117_p1), [#allocation20], 4294966272  ;;  %611 = sbr.rel (%p5762_p4) target bundleno = 486 (0x1e6), region = 104 }
  0xa9   : > { %v7764_v0 = vld [vmem:[#allocation4 + $0x20] sm:$0xff]  ;;  %v615_v1 = vld [vmem:[#allocation4 + $0x10] sm:$0xff]  ;;  %v618_v3 = vld [vmem:[#allocation4 + $0x28] sm:$0xff]  ;;  %v7460_v16 = vmov 128.0  }
  0xaa   : > { %v613_v2 = vld [vmem:[#allocation4] sm:$0xff]  ;;  %637 = vadd.xlane.f32.xlu2 %v7764_v0  ;;  %633 = vadd.xlane.f32.xlu1 %v615_v1  ;;  %v616_v4 = vld [vmem:[#allocation4 + $0x18] sm:$0xff]  ;;  %v614_v5 = vld [vmem:[#allocation4 + $0x8] sm:$0xff]  ;;  %6552 = vrcp.f32 %v7460_v16 }
  0xab   : > { %629 = vadd.xlane.f32.xlu0 %v613_v2  ;;  %v621_v6 = vld [vmem:[#allocation4 + $0x40] sm:$0xff]  ;;  %v7767_v7 = vld [vmem:[#allocation4 + $0x38] sm:$0xff]  ;;  %v619_v8 = vld [vmem:[#allocation4 + $0x30] sm:$0xff] }
  0xac   : > { %v7770_v9 = vld [vmem:[#allocation4 + $0x58] sm:$0xff]  ;;  %v7772_v10 = vld [vmem:[#allocation4 + $0x50] sm:$0xff]  ;;  %v7774_v11 = vld [vmem:[#allocation4 + $0x48] sm:$0xff] }
  0xad   : > { %v7779_v12 = vld [vmem:[#allocation4 + $0x70] sm:$0xff]  ;;  %v7781_v13 = vld [vmem:[#allocation4 + $0x68] sm:$0xff]  ;;  %v7783_v14 = vld [vmem:[#allocation4 + $0x60] sm:$0xff] }
  0xae   : > { %v7788_v15 = vld [vmem:[#allocation4 + $0x78] sm:$0xff] }
  0xb0   : > { %v6553_v17 = vpop.eup %6552 }
  0xb1   : > { %v662_v18 = vmul.f32 128.0, %v6553_v17  ;;  %vm666_vm0 = vweird.f32 %v6553_v17 }
  0xb2   : > { %639 = vadd.xlane.f32.xlu2 %v618_v3  ;;  %635 = vadd.xlane.f32.xlu1 %v616_v4 }
  0xb3   : > { %631 = vadd.xlane.f32.xlu0 %v614_v5  ;;  %v663_v19 = vsub.f32 1.0, %v662_v18 }
  0xb5   : > { %v664_v20 = vmul.f32 %v6553_v17, %v663_v19 }
  0xb7   : > { %v665_v21 = vadd.f32 %v6553_v17, %v664_v20 }
  0xb9   : > { %v7791_v22 = vsel %vm666_vm0, %v6553_v17, %v665_v21 }
  0xba   : > { %645 = vadd.xlane.f32.xlu2 %v621_v6  ;;  %643 = vadd.xlane.f32.xlu1 %v7767_v7 }
  0xbb   : > { %641 = vadd.xlane.f32.xlu0 %v619_v8 }
  0xc2   : > { %651 = vadd.xlane.f32.xlu2 %v7770_v9  ;;  %649 = vadd.xlane.f32.xlu1 %v7772_v10 }
  0xc3   : > { %647 = vadd.xlane.f32.xlu0 %v7774_v11 }
  0xca   : > { %657 = vadd.xlane.f32.xlu2 %v7779_v12  ;;  %655 = vadd.xlane.f32.xlu1 %v7781_v13 }
  0xcb   : > { %653 = vadd.xlane.f32.xlu0 %v7783_v14 }
  0xd3   : > { %659 = vadd.xlane.f32.xlu0 %v7788_v15 }
 0x11d   : > { %v638_v23 = vpop.xlane.xlu2 %637  ;;  %v634_v24 = vpop.xlane.xlu1 %633 }
 0x11e   : > { %v670_v25 = vmul.f32 %v7791_v22, %v634_v24  ;;  %v630_v26 = vpop.xlane.xlu0 %629  ;;  %v672_v43 = vmul.f32 %v7791_v22, %v638_v23 }
 0x11f   : > { %v668_v27 = vmul.f32 %v7791_v22, %v630_v26 }
 0x120   : > { %v7795_v28 = vsub.f32 %v615_v1, %v670_v25  ;;  %v7821_v49 = vsub.f32 %v7764_v0, %v672_v43 }
 0x121   : > { %v7797_v29 = vsub.f32 %v613_v2, %v668_v27 }
 0x122   : > { %v702_v30 = vmul.f32 %v7795_v28, %v7795_v28  ;;  %v704_v55 = vmul.f32 %v7821_v49, %v7821_v49 }
 0x123   : > { %v700_v31 = vmul.f32 %v7797_v29, %v7797_v29 }
 0x124   : > { %720 = vadd.xlane.f32.xlu0 %v702_v30 }
 0x125   : > { %716 = vadd.xlane.f32.xlu1 %v700_v31  ;;  %v640_v32 = vpop.xlane.xlu2 %639  ;;  %v636_v33 = vpop.xlane.xlu1 %635 }
 0x126   : > { %v673_v34 = vmul.f32 %v7791_v22, %v640_v32  ;;  %v671_v35 = vmul.f32 %v7791_v22, %v636_v33  ;;  %v632_v36 = vpop.xlane.xlu0 %631 }
 0x127   : > { %v669_v37 = vmul.f32 %v7791_v22, %v632_v36 }
 0x128   : > { %v7806_v38 = vsub.f32 %v618_v3, %v673_v34  ;;  %v7808_v39 = vsub.f32 %v616_v4, %v671_v35 }
 0x129   : > { %v7810_v40 = vsub.f32 %v614_v5, %v669_v37 }
 0x12a   : > { %v705_v41 = vmul.f32 %v7806_v38, %v7806_v38  ;;  %v703_v42 = vmul.f32 %v7808_v39, %v7808_v39 }
 0x12b   : > { %v701_v44 = vmul.f32 %v7810_v40, %v7810_v40 }
 0x12c   : > { %726 = vadd.xlane.f32.xlu0 %v705_v41 }
 0x12d   : > { %722 = vadd.xlane.f32.xlu1 %v703_v42  ;;  %718 = vadd.xlane.f32.xlu2 %v701_v44  ;;  %v646_v45 = vpop.xlane.xlu2 %645  ;;  %v644_v46 = vpop.xlane.xlu1 %643 }
 0x12e   : > { %v676_v47 = vmul.f32 %v7791_v22, %v646_v45  ;;  %v642_v48 = vpop.xlane.xlu0 %641  ;;  %v675_v53 = vmul.f32 %v7791_v22, %v644_v46 }
 0x12f   : > { %v674_v50 = vmul.f32 %v7791_v22, %v642_v48 }
 0x130   : > { %v7824_v51 = vsub.f32 %v621_v6, %v676_v47  ;;  %v7836_v58 = vsub.f32 %v7767_v7, %v675_v53  ;;  %v612_v53 = vld [vmem:[#allocation9] sm:$0xf] }
 0x131   : > { %v7826_v52 = vsub.f32 %v619_v8, %v674_v50 }
 0x132   : > { %v708_v54 = vmul.f32 %v7824_v51, %v7824_v51  ;;  %v707_v1 = vmul.f32 %v7836_v58, %v7836_v58 }
 0x133   : > { %v706_v56 = vmul.f32 %v7826_v52, %v7826_v52 }
 0x134   : > { %732 = vadd.xlane.f32.xlu0 %v708_v54 }
 0x135   : > { %724 = vadd.xlane.f32.xlu2 %v704_v55  ;;  %728 = vadd.xlane.f32.xlu1 %v706_v56  ;;  %v652_v57 = vpop.xlane.xlu2 %651  ;;  %v650_v59 = vpop.xlane.xlu1 %649 }
 0x136   : > { %v679_v60 = vmul.f32 %v7791_v22, %v652_v57  ;;  %v648_v61 = vpop.xlane.xlu0 %647  ;;  %v678_v2 = vmul.f32 %v7791_v22, %v650_v59 }
 0x137   : > { %v677_v62 = vmul.f32 %v7791_v22, %v648_v61 }
 0x138   : > { %v7841_v63 = vsub.f32 %v7770_v9, %v679_v60  ;;  %v7854_v6 = vsub.f32 %v7772_v10, %v678_v2 }
 0x139   : > { %v7844_v0 = vsub.f32 %v7774_v11, %v677_v62 }
 0x13a   : > { %v711_v3 = vmul.f32 %v7841_v63, %v7841_v63  ;;  %v710_v18 = vmul.f32 %v7854_v6, %v7854_v6 }
 0x13b   : > { %v709_v4 = vmul.f32 %v7844_v0, %v7844_v0 }
 0x13c   : > { %738 = vadd.xlane.f32.xlu0 %v711_v3 }
 0x13d   : > { %730 = vadd.xlane.f32.xlu2 %v707_v1  ;;  %734 = vadd.xlane.f32.xlu1 %v709_v4  ;;  %v658_v5 = vpop.xlane.xlu2 %657  ;;  %v656_v9 = vpop.xlane.xlu1 %655  ;;  %v7901_v4 = vperm.slane %v612_v53, 0 }
 0x13e   : > { %v682_v7 = vmul.f32 %v7791_v22, %v658_v5  ;;  %v654_v8 = vpop.xlane.xlu0 %653  ;;  %v681_v19 = vmul.f32 %v7791_v22, %v656_v9  ;;  %v7903_v5 = vperm.slane %v612_v53, 1 }
 0x13f   : > { %v680_v11 = vmul.f32 %v7791_v22, %v654_v8 }
 0x140   : > { %v7859_v16 = vsub.f32 %v7779_v12, %v682_v7  ;;  %v7872_v12 = vsub.f32 %v7781_v13, %v681_v19 }
 0x141   : > { %v7862_v17 = vsub.f32 %v7783_v14, %v680_v11 }
 0x142   : > { %v714_v10 = vmul.f32 %v7859_v16, %v7859_v16  ;;  %v713_v24 = vmul.f32 %v7872_v12, %v7872_v12 }
 0x143   : > { %v712_v20 = vmul.f32 %v7862_v17, %v7862_v17 }
 0x144   : > { %744 = vadd.xlane.f32.xlu0 %v714_v10 }
 0x145   : > { %736 = vadd.xlane.f32.xlu2 %v710_v18  ;;  %740 = vadd.xlane.f32.xlu1 %v712_v20 }
 0x146   : > { %v660_v21 = vpop.xlane.xlu0 %659 }
 0x147   : > { %v683_v14 = vmul.f32 %v7791_v22, %v660_v21 }
 0x149   : > { %v7876_v23 = vsub.f32 %v7788_v15, %v683_v14 }
 0x14b   : > { %v715_v25 = vmul.f32 %v7876_v23, %v7876_v23 }
 0x14d   : > { %742 = vadd.xlane.f32.xlu2 %v713_v24  ;;  %746 = vadd.xlane.f32.xlu1 %v715_v25 }
 0x197   : > { %v721_v26 = vpop.xlane.xlu0 %720 }
 0x198   : > { %v717_v27 = vpop.xlane.xlu1 %716  ;;  %v750_v30 = vmul.f32 %v721_v26, %v7791_v22 }
 0x199   : > { %v748_v13 = vmul.f32 %v717_v27, %v7791_v22 }
 0x19a   : > { %v766_v31 = vadd.f32 1e-12, %v750_v30 }
 0x19b   : > { %v764_v32 = vadd.f32 1e-12, %v748_v13 }
 0x19c   : > { %6554 = vrsqrt.f32 %v766_v31  ;;  %vm806_vm3 = vweird.f32 %v766_v31 }
 0x19d   : > { %6556 = vrsqrt.f32 %v764_v32  ;;  %vm786_vm4 = vweird.f32 %v764_v32 }
 0x19f   : > { %v727_v15 = vpop.xlane.xlu0 %726 }
 0x1a0   : > { %v723_v33 = vpop.xlane.xlu1 %722  ;;  %v719_v34 = vpop.xlane.xlu2 %718  ;;  %v753_v35 = vmul.f32 %v727_v15, %v7791_v22 }
 0x1a1   : > { %v751_v36 = vmul.f32 %v723_v33, %v7791_v22  ;;  %v749_v37 = vmul.f32 %v719_v34, %v7791_v22 }
 0x1a2   : > { %v6555_v41 = vpop.eup %6554  ;;  %v7887_v42 = vadd.f32 1e-12, %v753_v35 }
 0x1a3   : > { %v6557_v43 = vpop.eup %6556  ;;  %v801_v44 = vmul.f32 %v6555_v41, %v766_v31  ;;  %v7889_v45 = vadd.f32 1e-12, %v751_v36  ;;  %v7891_v46 = vadd.f32 1e-12, %v749_v37  ;;  %vm807_vm1 = vweird.f32 %v6555_v41 }
 0x1a4   : > { %v781_v47 = vmul.f32 %v6557_v43, %v764_v32  ;;  %6558 = vrsqrt.f32 %v7887_v42  ;;  %vm787_vm2 = vweird.f32 %v6557_v43  ;;  %vm808_vm5 = vmor %vm806_vm3, %vm807_vm1  ;;  %vm836_vm7 = vweird.f32 %v7887_v42 }
 0x1a5   : > { %v802_v48 = vmul.f32 %v6555_v41, %v801_v44  ;;  %6560 = vrsqrt.f32 %v7889_v45  ;;  %vm788_vm6 = vmor %vm786_vm4, %vm787_vm2  ;;  %vm816_vm11 = vweird.f32 %v7889_v45  ;;  %vm796_vm12 = vweird.f32 %v7891_v46 }
 0x1a6   : > { %v782_v50 = vmul.f32 %v6557_v43, %v781_v47  ;;  %6562 = vrsqrt.f32 %v7891_v46 }
 0x1a7   : > { %v803_v54 = vmul.f32 0.5, %v802_v48  ;;  %v733_v55 = vpop.xlane.xlu0 %732 }
 0x1a8   : > { %v783_v56 = vmul.f32 0.5, %v782_v50  ;;  %v725_v57 = vpop.xlane.xlu2 %724  ;;  %v729_v59 = vpop.xlane.xlu1 %728  ;;  %v756_v1 = vmul.f32 %v733_v55, %v7791_v22 }
 0x1a9   : > { %v804_v60 = vsub.f32 1.5, %v803_v54  ;;  %v752_v61 = vmul.f32 %v725_v57, %v7791_v22  ;;  %v754_v62 = vmul.f32 %v729_v59, %v7791_v22 }
 0x1aa   : > { %v7899_v2 = vpop.eup %6558  ;;  %v784_v3 = vsub.f32 1.5, %v783_v56  ;;  %v7921_v25 = vadd.f32 1e-12, %v756_v1 }
 0x1ab   : > { %v7905_v7 = vpop.eup %6560  ;;  %v805_v8 = vmul.f32 %v6555_v41, %v804_v60  ;;  %v831_v9 = vmul.f32 %v7899_v2, %v7887_v42  ;;  %v7909_v11 = vadd.f32 1e-12, %v752_v61  ;;  %v7916_v20 = vadd.f32 1e-12, %v754_v62 }
 0x1ac   : > { %v7911_v18 = vpop.eup %6562  ;;  %v785_v19 = vmul.f32 %v6557_v43, %v784_v3  ;;  %v811_v10 = vmul.f32 %v7905_v7, %v7889_v45  ;;  %vm837_vm8 = vweird.f32 %v7899_v2  ;;  %vm817_vm9 = vweird.f32 %v7905_v7 }
 0x1ad   : > { %v809_v21 = vsel %vm808_vm5, %v6555_v41, %v805_v8  ;;  %v791_v14 = vmul.f32 %v7911_v18, %v7891_v46  ;;  %v832_v24 = vmul.f32 %v7899_v2, %v831_v9  ;;  %6564 = vrsqrt.f32 %v7909_v11  ;;  %vm838_vm13 = vmor %vm836_vm7, %vm837_vm8 }
 0x1ae   : > { %v789_v26 = vsel %vm788_vm6, %v6557_v43, %v785_v19  ;;  %v942_v27 = vmul.f32 %v809_v21, %v7795_v28  ;;  %v812_v30 = vmul.f32 %v7905_v7, %v811_v10  ;;  %6566 = vrsqrt.f32 %v7916_v20  ;;  %vm818_vm14 = vmor %vm816_vm11, %vm817_vm9 }
 0x1af   : > { %v940_v13 = vmul.f32 %v789_v26, %v7797_v29  ;;  %v792_v31 = vmul.f32 %v7911_v18, %v791_v14  ;;  %v833_v32 = vmul.f32 0.5, %v832_v24  ;;  %6568 = vrsqrt.f32 %v7921_v25  ;;  %v739_v50 = vpop.xlane.xlu0 %738 }
 0x1b0   : > { %v959_v15 = vmul.f32 %v7901_v4, %v942_v27  ;;  %v813_v33 = vmul.f32 0.5, %v812_v30  ;;  %v731_v34 = vpop.xlane.xlu2 %730  ;;  %v735_v43 = vpop.xlane.xlu1 %734  ;;  %vm797_vm10 = vweird.f32 %v7911_v18  ;;  %vm826_vm15 = vweird.f32 %v7909_v11 }
 0x1b1   : > { %v957_v28 = vmul.f32 %v7901_v4, %v940_v13  ;;  %v793_v35 = vmul.f32 0.5, %v792_v31  ;;  %v834_v36 = vsub.f32 1.5, %v833_v32  ;;  %v755_v41 = vmul.f32 %v731_v34, %v7791_v22  ;;  %vm798_vm0 = vmor %vm796_vm12, %vm797_vm10 }
 0x1b2   : > { %v976_v29 = vadd.f32 %v7903_v5, %v959_v15  ;;  %v814_v37 = vsub.f32 1.5, %v813_v33  ;;  %v757_v46 = vmul.f32 %v735_v43, %v7791_v22  ;;  %v759_v61 = vmul.f32 %v739_v50, %v7791_v22 }
 0x1b3   : > { %v974_v44 = vadd.f32 %v7903_v5, %v957_v28  ;;  %v794_v47 = vsub.f32 1.5, %v793_v35  ;;  %v835_v48 = vmul.f32 %v7899_v2, %v834_v36  ;;  %v7940_v53 = vpop.eup %6564  ;;  %v7949_v55 = vadd.f32 1e-12, %v755_v41 }
 0x1b4   : > { %992 = vst [vmem:[#allocation2 + $0x10] sm:$0xff] %v976_v29  ;;  %v815_v54 = vmul.f32 %v7905_v7, %v814_v37  ;;  %v821_v45 = vmul.f32 %v7940_v53, %v7909_v11  ;;  %v7959_v59 = vpop.eup %6566  ;;  %vm846_vm1 = vweird.f32 %v7916_v20  ;;  %vm827_vm2 = vweird.f32 %v7940_v53 }
 0x1b5   : > { %990 = vst [vmem:[#allocation2] sm:$0xff] %v974_v44  ;;  %v795_v56 = vmul.f32 %v7911_v18, %v794_v47  ;;  %v839_v57 = vsel %vm838_vm13, %v7899_v2, %v835_v48  ;;  %6570 = vrsqrt.f32 %v7949_v55  ;;  %v6569_v62 = vpop.eup %6568  ;;  %v841_v8 = vmul.f32 %v7959_v59, %v7916_v20  ;;  %vm828_vm5 = vmor %vm826_vm15, %vm827_vm2 }
 0x1b6   : > { %v819_v42 = vsel %vm818_vm14, %v7905_v7, %v815_v54  ;;  %v945_v60 = vmul.f32 %v839_v57, %v7806_v38  ;;  %v822_v3 = vmul.f32 %v7940_v53, %v821_v45  ;;  %v861_v38 = vmul.f32 %v6569_v62, %v7921_v25 }
 0x1b7   : > { %v943_v1 = vmul.f32 %v819_v42, %v7808_v39  ;;  %v799_v2 = vsel %vm798_vm0, %v7911_v18, %v795_v56  ;;  %v842_v39 = vmul.f32 %v7959_v59, %v841_v8  ;;  %v7984_v13 = vadd.f32 1e-12, %v759_v61  ;;  %v745_v37 = vpop.xlane.xlu0 %744 }
 0x1b8   : > { %v941_v7 = vmul.f32 %v799_v2, %v7810_v40  ;;  %v962_v9 = vmul.f32 %v7901_v4, %v945_v60  ;;  %v737_v19 = vpop.xlane.xlu2 %736  ;;  %v823_v21 = vmul.f32 0.5, %v822_v3  ;;  %v862_v24 = vmul.f32 %v6569_v62, %v861_v38  ;;  %v741_v33 = vpop.xlane.xlu1 %740 }
 0x1b9   : > { %v960_v10 = vmul.f32 %v7901_v4, %v943_v1  ;;  %v7981_v40 = vadd.f32 1e-12, %v757_v46  ;;  %v843_v30 = vmul.f32 0.5, %v842_v39  ;;  %vm866_vm3 = vweird.f32 %v7921_v25 }
 0x1ba   : > { %v958_v18 = vmul.f32 %v7901_v4, %v941_v7  ;;  %v979_v14 = vadd.f32 %v7903_v5, %v962_v9  ;;  %v824_v27 = vsub.f32 1.5, %v823_v21  ;;  %v863_v15 = vmul.f32 0.5, %v862_v24 }
 0x1bb   : > { %v977_v26 = vadd.f32 %v7903_v5, %v960_v10  ;;  %v7986_v31 = vpop.eup %6570  ;;  %6572 = vrsqrt.f32 %v7981_v40  ;;  %v844_v28 = vsub.f32 1.5, %v843_v30  ;;  %vm847_vm4 = vweird.f32 %v7959_v59  ;;  %v1006_v30 = vld [vmem:[#allocation7] sm:$0xf] }
 0x1bc   : > { %v975_v32 = vadd.f32 %v7903_v5, %v958_v18  ;;  %995 = vst [vmem:[#allocation2 + $0x28] sm:$0xff] %v979_v14  ;;  %v825_v34 = vmul.f32 %v7940_v53, %v824_v27  ;;  %v851_v35 = vmul.f32 %v7986_v31, %v7949_v55  ;;  %v864_v36 = vsub.f32 1.5, %v863_v15  ;;  %vm848_vm7 = vmor %vm846_vm1, %vm847_vm4 }
 0x1bd   : > { %993 = vst [vmem:[#allocation2 + $0x18] sm:$0xff] %v977_v26  ;;  %vm867_vm6 = vweird.f32 %v6569_v62  ;;  %6574 = vrsqrt.f32 %v7984_v13  ;;  %v758_v29 = vmul.f32 %v737_v19, %v7791_v22  ;;  %v845_v43 = vmul.f32 %v7959_v59, %v844_v28 }
 0x1be   : > { %991 = vst [vmem:[#allocation2 + $0x8] sm:$0xff] %v975_v32  ;;  %v829_v41 = vsel %vm828_vm5, %v7940_v53, %v825_v34  ;;  %v852_v44 = vmul.f32 %v7986_v31, %v851_v35  ;;  %v760_v47 = vmul.f32 %v741_v33, %v7791_v22  ;;  %v865_v11 = vmul.f32 %v6569_v62, %v864_v36  ;;  %vm868_vm9 = vmor %vm866_vm3, %vm867_vm6 }
 0x1bf   : > { %v944_v48 = vmul.f32 %v829_v41, %v7821_v49  ;;  %vm856_vm8 = vweird.f32 %v7949_v55  ;;  %v8009_v50 = vadd.f32 1e-12, %v758_v29  ;;  %v849_v54 = vsel %vm848_vm7, %v7959_v59, %v845_v43 }
 0x1c0   : > { %v853_v53 = vmul.f32 0.5, %v852_v44  ;;  %v8014_v56 = vadd.f32 1e-12, %v760_v47  ;;  %v762_v57 = vmul.f32 %v745_v37, %v7791_v22  ;;  %v743_v45 = vpop.xlane.xlu2 %742  ;;  %v946_v46 = vmul.f32 %v849_v54, %v7826_v52  ;;  %v747_v39 = vpop.xlane.xlu1 %746 }
 0x1c1   : > { %v8017_v49 = vpop.eup %6572  ;;  %v961_v20 = vmul.f32 %v7901_v4, %v944_v48  ;;  %v869_v42 = vsel %vm868_vm9, %v6569_v62, %v865_v11  ;;  %6576 = vrsqrt.f32 %v8009_v50  ;;  %vm857_vm10 = vweird.f32 %v7986_v31 }
 0x1c2   : > { %v948_v59 = vmul.f32 %v869_v42, %v7824_v51  ;;  %v854_v60 = vsub.f32 1.5, %v853_v53  ;;  %v871_v25 = vmul.f32 %v8017_v49, %v7981_v40  ;;  %v963_v2 = vmul.f32 %v7901_v4, %v946_v46  ;;  %vm858_vm11 = vmor %vm856_vm8, %vm857_vm10 }
 0x1c3   : > { %v8026_v61 = vpop.eup %6574  ;;  %v978_v1 = vadd.f32 %v7903_v5, %v961_v20  ;;  %6578 = vrsqrt.f32 %v8014_v56  ;;  %v761_v52 = vmul.f32 %v743_v45, %v7791_v22  ;;  %vm876_vm12 = vweird.f32 %v7981_v40 }
 0x1c4   : > { %v965_v62 = vmul.f32 %v7901_v4, %v948_v59  ;;  %v855_v51 = vmul.f32 %v7986_v31, %v854_v60  ;;  %v872_v3 = vmul.f32 %v8017_v49, %v871_v25  ;;  %v891_v8 = vmul.f32 %v8026_v61, %v7984_v13 }
 0x1c5   : > { %994 = vst [vmem:[#allocation2 + $0x20] sm:$0xff] %v978_v1  ;;  %v980_v7 = vadd.f32 %v7903_v5, %v963_v2  ;;  %vm896_vm13 = vweird.f32 %v7984_v13  ;;  %v8042_v9 = vadd.f32 1e-12, %v762_v57  ;;  %vm877_vm14 = vweird.f32 %v8017_v49 }
 0x1c6   : > { %v982_v38 = vadd.f32 %v7903_v5, %v965_v62  ;;  %v859_v19 = vsel %vm858_vm11, %v7986_v31, %v855_v51  ;;  %v873_v10 = vmul.f32 0.5, %v872_v3  ;;  %v892_v21 = vmul.f32 %v8026_v61, %v891_v8  ;;  %vm878_vm1 = vmor %vm876_vm12, %vm877_vm14 }
 0x1c7   : > { %v8047_v18 = vpop.eup %6576  ;;  %996 = vst [vmem:[#allocation2 + $0x30] sm:$0xff] %v980_v7  ;;  %v947_v55 = vmul.f32 %v859_v19, %v7836_v58  ;;  %6580 = vrsqrt.f32 %v8042_v9  ;;  %v8052_v14 = vadd.f32 1e-12, %v761_v52  ;;  %vm886_vm15 = vweird.f32 %v8009_v50 }
 0x1c8   : > { %998 = vst [vmem:[#allocation2 + $0x40] sm:$0xff] %v982_v38  ;;  %v874_v24 = vsub.f32 1.5, %v873_v10  ;;  %v893_v26 = vmul.f32 0.5, %v892_v21  ;;  %v881_v27 = vmul.f32 %v8047_v18, %v8009_v50  ;;  %vm897_vm0 = vweird.f32 %v8026_v61 }
 0x1c9   : > { %v8057_v31 = vpop.eup %6578  ;;  %v964_v32 = vmul.f32 %v7901_v4, %v947_v55  ;;  %6582 = vrsqrt.f32 %v8052_v14  ;;  %v763_v58 = vmul.f32 %v747_v39, %v7791_v22  ;;  %vm906_vm2 = vweird.f32 %v8014_v56  ;;  %vm898_vm4 = vmor %vm896_vm13, %vm897_vm0 }
 0x1ca   : > { %v875_v15 = vmul.f32 %v8017_v49, %v874_v24  ;;  %v894_v33 = vsub.f32 1.5, %v893_v26  ;;  %v882_v34 = vmul.f32 %v8047_v18, %v881_v27  ;;  %v901_v28 = vmul.f32 %v8057_v31, %v8014_v56 }
 0x1cb   : > { %v981_v35 = vadd.f32 %v7903_v5, %v964_v32  ;;  %v8073_v36 = vadd.f32 1e-12, %v763_v58  ;;  %v1007_v22 = vsub.f32 1.0, %v1006_v30  ;;  %vm926_vm3 = vweird.f32 %v8042_v9 }
 0x1cc   : > { %v879_v29 = vsel %vm878_vm1, %v8017_v49, %v875_v15  ;;  %v895_v37 = vmul.f32 %v8026_v61, %v894_v33  ;;  %v883_v41 = vmul.f32 0.5, %v882_v34  ;;  %v902_v43 = vmul.f32 %v8057_v31, %v901_v28 }
 0x1cd   : > { %v6581_v44 = vpop.eup %6580  ;;  %997 = vst [vmem:[#allocation2 + $0x38] sm:$0xff] %v981_v35  ;;  %v949_v47 = vmul.f32 %v879_v29, %v7844_v0  ;;  %vm887_vm5 = vweird.f32 %v8047_v18  ;;  %6584 = vrsqrt.f32 %v8073_v36  ;;  %v1008_v40 = vmul.f32 -10000.0, %v1007_v22 }
 0x1ce   : > { %v899_v48 = vsel %vm898_vm4, %v8026_v61, %v895_v37  ;;  %v884_v11 = vsub.f32 1.5, %v883_v41  ;;  %v903_v54 = vmul.f32 0.5, %v902_v43  ;;  %v921_v53 = vmul.f32 %v6581_v44, %v8042_v9  ;;  %vm888_vm7 = vmor %vm886_vm15, %vm887_vm5 }
 0x1cf   : > { %v6583_v57 = vpop.eup %6582  ;;  %v966_v45 = vmul.f32 %v7901_v4, %v949_v47  ;;  %v951_v0 = vmul.f32 %v899_v48, %v7841_v63  ;;  %vm907_vm6 = vweird.f32 %v8057_v31  ;;  %v1010_v13 = vrot.slane %v1008_v40, 4 }
 0x1d0   : > { %v885_v49 = vmul.f32 %v8047_v18, %v884_v11  ;;  %v904_v20 = vsub.f32 1.5, %v903_v54  ;;  %v922_v46 = vmul.f32 %v6581_v44, %v921_v53  ;;  %v911_v42 = vmul.f32 %v6583_v57, %v8052_v14  ;;  %vm908_vm10 = vmor %vm906_vm2, %vm907_vm6 }
 0x1d1   : > { %v983_v59 = vadd.f32 %v7903_v5, %v966_v45  ;;  %v968_v60 = vmul.f32 %v7901_v4, %v951_v0  ;;  %vm927_vm8 = vweird.f32 %v6581_v44  ;;  %vm1012_vm9 = vcmask 1043456  }
 0x1d2   : > { %v889_v63 = vsel %vm888_vm7, %v8047_v18, %v885_v49  ;;  %v905_v25 = vmul.f32 %v8057_v31, %v904_v20  ;;  %v923_v61 = vmul.f32 0.5, %v922_v46  ;;  %v912_v1 = vmul.f32 %v6583_v57, %v911_v42  ;;  %vm928_vm13 = vmor %vm926_vm3, %vm927_vm8 }
 0x1d3   : > { %v6585_v2 = vpop.eup %6584  ;;  %999 = vst [vmem:[#allocation2 + $0x48] sm:$0xff] %v983_v59  ;;  %v985_v52 = vadd.f32 %v7903_v5, %v968_v60  ;;  %v950_v62 = vmul.f32 %v889_v63, %v7854_v6  ;;  %v1013_v50 = vsel %vm1012_vm9, %v1008_v40, %v1010_v13  ;;  %vm1014_vm11 = vcmask 261120  }
 0x1d4   : > { %v909_v51 = vsel %vm908_vm10, %v8057_v31, %v905_v25  ;;  %v924_v3 = vsub.f32 1.5, %v923_v61  ;;  %v913_v8 = vmul.f32 0.5, %v912_v1  ;;  %v931_v7 = vmul.f32 %v6585_v2, %v8073_v36  ;;  %1015 = vst.msk [vmem:[#allocation3] sm:$0xff] %vm1014_vm11, %v1013_v50 }
 0x1d5   : > { %1001 = vst [vmem:[#allocation2 + $0x58] sm:$0xff] %v985_v52  ;;  %v967_v38 = vmul.f32 %v7901_v4, %v950_v62  ;;  %v952_v19 = vmul.f32 %v909_v51, %v7862_v17  ;;  %vm917_vm12 = vweird.f32 %v6583_v57  ;;  %vm916_vm14 = vweird.f32 %v8052_v14 }
 0x1d6   : > { %v925_v6 = vmul.f32 %v6581_v44, %v924_v3  ;;  %v914_v10 = vsub.f32 1.5, %v913_v8  ;;  %v932_v21 = vmul.f32 %v6585_v2, %v931_v7  ;;  %vm918_vm15 = vmor %vm916_vm14, %vm917_vm12  ;;  %vm937_vm0 = vweird.f32 %v6585_v2 }
 0x1d7   : > { %v984_v56 = vadd.f32 %v7903_v5, %v967_v38  ;;  %v969_v39 = vmul.f32 %v7901_v4, %v952_v19  ;;  %vm936_vm1 = vweird.f32 %v8073_v36 }
 0x1d8   : > { %v929_v18 = vsel %vm928_vm13, %v6581_v44, %v925_v6  ;;  %v915_v55 = vmul.f32 %v6583_v57, %v914_v10  ;;  %v933_v24 = vmul.f32 0.5, %v932_v21  ;;  %vm938_vm2 = vmor %vm936_vm1, %vm937_vm0 }
 0x1d9   : > { %1000 = vst [vmem:[#allocation2 + $0x50] sm:$0xff] %v984_v56  ;;  %v986_v17 = vadd.f32 %v7903_v5, %v969_v39  ;;  %v954_v26 = vmul.f32 %v929_v18, %v7859_v16 }
 0x1da   : > { %v919_v27 = vsel %vm918_vm15, %v6583_v57, %v915_v55  ;;  %v934_v30 = vsub.f32 1.5, %v933_v24 }
 0x1db   : > { %1002 = vst [vmem:[#allocation2 + $0x60] sm:$0xff] %v986_v17  ;;  %v971_v31 = vmul.f32 %v7901_v4, %v954_v26  ;;  %v953_v9 = vmul.f32 %v919_v27, %v7872_v12 }
 0x1dc   : > { %v935_v32 = vmul.f32 %v6585_v2, %v934_v30 }
 0x1dd   : > { %v988_v14 = vadd.f32 %v7903_v5, %v971_v31  ;;  %v970_v58 = vmul.f32 %v7901_v4, %v953_v9 }
 0x1de   : > { %v939_v15 = vsel %vm938_vm2, %v6585_v2, %v935_v32 }
 0x1df   : > { %1004 = vst [vmem:[#allocation2 + $0x70] sm:$0xff] %v988_v14  ;;  %v987_v16 = vadd.f32 %v7903_v5, %v970_v58  ;;  %v955_v33 = vmul.f32 %v939_v15, %v7876_v23 }
 0x1e1   : > { %1003 = vst [vmem:[#allocation2 + $0x68] sm:$0xff] %v987_v16  ;;  %v972_v34 = vmul.f32 %v7901_v4, %v955_v33 }
 0x1e3   : > { %v989_v28 = vadd.f32 %v7903_v5, %v972_v34 }
 0x1e5   : > { %1005 = vst [vmem:[#allocation2 + $0x78] sm:$0xff] %v989_v28 }
 0x1e6 PF: > { %v5878_v12 = vld [vmem:[%s7732_s26 + $0xa8] sm:$0xf]  ;;  %v6319_v35 = vld [vmem:[%s7732_s26 + $0xb0] sm:$0xf0]  ;;  %v5866_v36 = vld [vmem:[%s7732_s26 + $0x90] sm:$0xf] }
 0x1e7   : > { %v5879_v23 = vor.u32 %v6319_v35, %v5878_v12  ;;  %v6316_v22 = vld [vmem:[%s7732_s26 + $0x98] sm:$0xf0]  ;;  %v5854_v5 = vld [vmem:[%s7732_s26 + $0x78] sm:$0xf]  ;;  %v6313_v29 = vld [vmem:[%s7732_s26 + $0x80] sm:$0xf0] }
 0x1e8   : > { %v5867_v4 = vor.u32 %v6316_v22, %v5866_v36  ;;  %v5855_v37 = vor.u32 %v6313_v29, %v5854_v5  ;;  %v5842_v41 = vld [vmem:[%s7732_s26 + $0x60] sm:$0xf]  ;;  %v6310_v43 = vld [vmem:[%s7732_s26 + $0x68] sm:$0xf0]  ;;  %v5830_v47 = vld [vmem:[%s7732_s26 + $0x48] sm:$0xf] }
 0x1e9   : > { %1207 = vmatpush.bf16.msra.mxu0 %v5879_v23  ;;  %6409 = vmatpush.bf16.msra.mxu1 %v5879_v23  ;;  %v5843_v44 = vor.u32 %v6310_v43, %v5842_v41  ;;  %v6307_v40 = vld [vmem:[%s7732_s26 + $0x50] sm:$0xf0]  ;;  %v5818_v11 = vld [vmem:[%s7732_s26 + $0x30] sm:$0xf]  ;;  %v6304_v54 = vld [vmem:[%s7732_s26 + $0x38] sm:$0xf0] }
 0x1ea   : > { %v5831_v48 = vor.u32 %v6307_v40, %v5830_v47  ;;  %v5819_v53 = vor.u32 %v6304_v54, %v5818_v11  ;;  %v5806_v57 = vld [vmem:[%s7732_s26 + $0x18] sm:$0xf]  ;;  %v6301_v45 = vld [vmem:[%s7732_s26 + $0x20] sm:$0xf0]  ;;  %v5794_v13 = vld [vmem:[%s7732_s26] sm:$0xf] }
 0x1eb   : > { %v5807_v0 = vor.u32 %v6301_v45, %v5806_v57  ;;  %v6298_v49 = vld [vmem:[%s7732_s26 + $0x8] sm:$0xf0]  ;;  %v1016_v20 = vld [vmem:[#allocation2] sm:$0xff]  ;;  %v1017_v42 = vld [vmem:[#allocation2 + $0x8] sm:$0xff]  ;;  %s7461_s23 = smov 64   ;;  %vm1662_vm3 = vcmask 523264  }
 0x1ec   : > { %v5795_v46 = vor.u32 %v6298_v49, %v5794_v13  ;;  %v1024_v59 = vld [vmem:[#allocation2 + $0x40] sm:$0xff]  ;;  %v1025_v60 = vld [vmem:[#allocation2 + $0x48] sm:$0xff]  ;;  %v8144_v63 = vpack.c.bf16 %v1017_v42, %v1016_v20  ;;  %v6318_v61 = vld [vmem:[%s7732_s26 + $0xac] sm:$0xf]  ;;  %vm2140_vm4 = vcmask 261120   ;;  %s10540_s0 = sld [smem:[#allocation32_spill]] }
 0x1ed   : > { %1208 = vmatpush.bf16.msra.mxu0 %v5867_v4  ;;  %6410 = vmatpush.bf16.msra.mxu1 %v5867_v4  ;;  %v8146_v25 = vpack.c.bf16 %v1025_v60, %v1024_v59  ;;  %v5880_v1 = vld [vmem:[%s7732_s26 + $0xb4] sm:$0xf0]  ;;  %v6315_v52 = vld [vmem:[%s7732_s26 + $0x94] sm:$0xf]  ;;  %v5868_v62 = vld [vmem:[%s7732_s26 + $0x9c] sm:$0xf0] }
 0x1ee   : > { %v5883_v2 = vor.u32 %v6318_v61, %v5880_v1  ;;  %v5871_v50 = vor.u32 %v6315_v52, %v5868_v62  ;;  %v6312_v51 = vld [vmem:[%s7732_s26 + $0x7c] sm:$0xf]  ;;  %v5856_v3 = vld [vmem:[%s7732_s26 + $0x84] sm:$0xf0]  ;;  %v6309_v7 = vld [vmem:[%s7732_s26 + $0x64] sm:$0xf] }
 0x1ef   : > { %v5859_v8 = vor.u32 %v6312_v51, %v5856_v3  ;;  %v5844_v38 = vld [vmem:[%s7732_s26 + $0x6c] sm:$0xf0]  ;;  %v1018_v19 = vld [vmem:[#allocation2 + $0x10] sm:$0xff]  ;;  %v1019_v6 = vld [vmem:[#allocation2 + $0x18] sm:$0xff] }
 0x1f0   : > { %v1026_v10 = vld [vmem:[#allocation2 + $0x50] sm:$0xff]  ;;  %v1027_v21 = vld [vmem:[#allocation2 + $0x58] sm:$0xff]  ;;  %v5847_v56 = vor.u32 %v6309_v7, %v5844_v38  ;;  %v8158_v39 = vpack.c.bf16 %v1019_v6, %v1018_v19  ;;  %v5832_v24 = vld [vmem:[%s7732_s26 + $0x54] sm:$0xf0] }
 0x1f1   : > { %1209 = vmatpush.bf16.msra.mxu0 %v5855_v37  ;;  %6411 = vmatpush.bf16.msra.mxu1 %v5855_v37  ;;  %v8160_v18 = vpack.c.bf16 %v1027_v21, %v1026_v10  ;;  %v6306_v55 = vld [vmem:[%s7732_s26 + $0x4c] sm:$0xf]  ;;  %v6303_v26 = vld [vmem:[%s7732_s26 + $0x34] sm:$0xf]  ;;  %v5820_v27 = vld [vmem:[%s7732_s26 + $0x3c] sm:$0xf0] }
 0x1f2   : > { %v5835_v17 = vor.u32 %v6306_v55, %v5832_v24  ;;  %v5823_v30 = vor.u32 %v6303_v26, %v5820_v27  ;;  %v6300_v31 = vld [vmem:[%s7732_s26 + $0x1c] sm:$0xf]  ;;  %v5808_v9 = vld [vmem:[%s7732_s26 + $0x24] sm:$0xf0]  ;;  %v6297_v14 = vld [vmem:[%s7732_s26 + $0x4] sm:$0xf] }
 0x1f3   : > { %v5811_v32 = vor.u32 %v6300_v31, %v5808_v9  ;;  %v5796_v58 = vld [vmem:[%s7732_s26 + $0xc] sm:$0xf0]  ;;  %v1021_v16 = vld [vmem:[#allocation2 + $0x28] sm:$0xff]  ;;  %v1022_v36 = vld [vmem:[#allocation2 + $0x30] sm:$0xff]  ;;  %p6224_p1 = scmp.ne.s32.totalorder %s10540_s0, 1 }
 0x1f4   : > { %v1020_v15 = vld [vmem:[#allocation2 + $0x20] sm:$0xff]  ;;  %v1029_v34 = vld [vmem:[#allocation2 + $0x68] sm:$0xff]  ;;  %v5799_v28 = vor.u32 %v6297_v14, %v5796_v58  ;;  %v1023_v23 = vld [vmem:[#allocation2 + $0x38] sm:$0xff] }
 0x1f5   : > { %1210 = vmatpush.bf16.msra.mxu0 %v5843_v44  ;;  %6412 = vmatpush.bf16.msra.mxu1 %v5843_v44  ;;  %v1028_v33 = vld [vmem:[#allocation2 + $0x60] sm:$0xff]  ;;  %v8172_v12 = vpack.c.bf16 %v1021_v16, %v1020_v15  ;;  %v1030_v22 = vld [vmem:[#allocation2 + $0x70] sm:$0xff]  ;;  %v1031_v4 = vld [vmem:[#allocation2 + $0x78] sm:$0xff]  ;;  %v8178_v5 = vpack.c.bf16 %v1023_v23, %v1022_v36 }
 0x1f6   : > { %v8174_v35 = vpack.c.bf16 %v1029_v34, %v1028_v33  ;;  %v8180_v29 = vpack.c.bf16 %v1031_v4, %v1030_v22  ;;  %v5886_v37 = vld [vmem:[%s7732_s26 + $0xb0] sm:$0xf]  ;;  %v6320_v41 = vld [vmem:[%s7732_s26 + $0xb8] sm:$0xf0]  ;;  %v5874_v44 = vld [vmem:[%s7732_s26 + $0x98] sm:$0xf] }
 0x1f7   : > { %v5887_v43 = vor.u32 %v6320_v41, %v5886_v37  ;;  %v6317_v47 = vld [vmem:[%s7732_s26 + $0xa0] sm:$0xf0]  ;;  %v5862_v11 = vld [vmem:[%s7732_s26 + $0x80] sm:$0xf]  ;;  %v6314_v54 = vld [vmem:[%s7732_s26 + $0x88] sm:$0xf0] }
 0x1f8   : > { %v5875_v40 = vor.u32 %v6317_v47, %v5874_v44  ;;  %v5863_v45 = vor.u32 %v6314_v54, %v5862_v11  ;;  %v5850_v13 = vld [vmem:[%s7732_s26 + $0x68] sm:$0xf]  ;;  %v6311_v49 = vld [vmem:[%s7732_s26 + $0x70] sm:$0xf0]  ;;  %v5838_v59 = vld [vmem:[%s7732_s26 + $0x50] sm:$0xf] }
 0x1f9   : > { %1211 = vmatpush.bf16.msra.mxu0 %v5831_v48  ;;  %6413 = vmatpush.bf16.msra.mxu1 %v5831_v48  ;;  %v1040_v48 = vld [vmem:[%s7748_s20] sm:$0xff]  ;;  %v5851_v20 = vor.u32 %v6311_v49, %v5850_v13  ;;  %v6308_v60 = vld [vmem:[%s7732_s26 + $0x58] sm:$0xf0]  ;;  %v5802_v26 = vld [vmem:[%s7732_s26 + $0x8] sm:$0xf] }
 0x1fa   : > { %1305 = vmatpush.bf16.msra.mxu2 %v5887_v43  ;;  %v6305_v7 = vld [vmem:[%s7732_s26 + $0x40] sm:$0xf0]  ;;  %v5814_v21 = vld [vmem:[%s7732_s26 + $0x20] sm:$0xf]  ;;  %v6299_v27 = vld [vmem:[%s7732_s26 + $0x10] sm:$0xf0] }
 0x1fd   : > { %1212 = vmatpush.bf16.msra.mxu0 %v5819_v53  ;;  %6414 = vmatpush.bf16.msra.mxu1 %v5819_v53 }
 0x1fe   : > { %1306 = vmatpush.bf16.msra.mxu2 %v5875_v40 }
 0x201   : > { %1213 = vmatpush.bf16.msra.mxu0 %v5807_v0  ;;  %6415 = vmatpush.bf16.msra.mxu1 %v5807_v0  ;;  %v8195_v0 = vperm.slane %v1040_v48, 0 }
 0x202   : > { %1307 = vmatpush.bf16.msra.mxu2 %v5863_v45 }
 0x205   : > { %1214 = vmatpush.bf16.msra.mxu0 %v5795_v46  ;;  %6416 = vmatpush.bf16.msra.mxu1 %v5795_v46 }
 0x206   : > { %1308 = vmatpush.bf16.msra.mxu2 %v5851_v20 }
 0x208   : > { %1215 = vmatmul.bf16.vlgmr.msra.gmra.mxu0 %v8144_v63  ;;  %1235 = vmatmul.bf16.vlgmr.msra.gmra.mxu1 %v8146_v25 }
 0x209   : > { %1256 = vmatpush.bf16.msrb.mxu1 %v5883_v2  ;;  %v5839_v2 = vor.u32 %v6308_v60, %v5838_v59 }
 0x20b   : > { %1309 = vmatpush.bf16.msra.mxu2 %v5839_v2 }
 0x20d   : > { %1257 = vmatpush.bf16.msrb.mxu1 %v5871_v50 }
 0x211   : > { %1258 = vmatpush.bf16.msrb.mxu1 %v5859_v8  ;;  %v5826_v8 = vld [vmem:[%s7732_s26 + $0x38] sm:$0xf] }
 0x212   : > { %v5827_v38 = vor.u32 %v6305_v7, %v5826_v8 }
 0x214   : > { %1310 = vmatpush.bf16.msra.mxu2 %v5827_v38 }
 0x215   : > { %1259 = vmatpush.bf16.msrb.mxu1 %v5847_v56  ;;  %v6302_v56 = vld [vmem:[%s7732_s26 + $0x28] sm:$0xf0] }
 0x218   : > { %1220 = vmatmul.bf16.gmra.mxu0 %v8158_v39  ;;  %1240 = vmatmul.bf16.gmra.mxu1 %v8160_v18 }
 0x219   : > { %1260 = vmatpush.bf16.msrb.mxu1 %v5835_v17  ;;  %v5815_v17 = vor.u32 %v6302_v56, %v5814_v21 }
 0x21b   : > { %1311 = vmatpush.bf16.msra.mxu2 %v5815_v17 }
 0x21d   : > { %1261 = vmatpush.bf16.msrb.mxu1 %v5823_v30  ;;  %v5803_v30 = vor.u32 %v6299_v27, %v5802_v26 }
 0x21f   : > { %1312 = vmatpush.bf16.msra.mxu2 %v5803_v30 }
 0x221   : > { %1262 = vmatpush.bf16.msrb.mxu1 %v5811_v32 }
 0x222   : > { %1313 = vmatmul.bf16.vlgmr.msra.gmra.mxu2 %v8144_v63 }
 0x225   : > { %1263 = vmatpush.bf16.msrb.mxu1 %v5799_v28 }
 0x228   : > { %1225 = vmatmul.bf16.gmra.mxu0 %v8172_v12  ;;  %1245 = vmatmul.bf16.gmra.mxu1 %v8174_v35 }
 0x232   : > { %1318 = vmatmul.bf16.gmra.mxu2 %v8158_v39 }
 0x238   : > { %1230 = vmatmul.bf16.gmra.mxu0 %v8178_v5  ;;  %1250 = vmatmul.bf16.gmra.mxu1 %v8180_v29 }
 0x242   : > { %1323 = vmatmul.bf16.gmra.mxu2 %v8172_v12 }
 0x248   : > { %1264 = vmatmul.bf16.vlgmr.msrb.gmra.mxu1 %v8144_v63 }
 0x252   : > { %1328 = vmatmul.bf16.gmra.mxu2 %v8178_v5 }
 0x258   : > { %1269 = vmatmul.bf16.gmra.mxu1 %v8158_v39 }
 0x262   : > { %1333 = vmatmul.bf16.gmra.mxu2 %v8146_v25 }
 0x268   : > { %1274 = vmatmul.bf16.gmra.mxu1 %v8172_v12 }
 0x272   : > { %1338 = vmatmul.bf16.gmra.mxu2 %v8160_v18 }
 0x278   : > { %1279 = vmatmul.bf16.gmra.mxu1 %v8178_v5 }
 0x282   : > { %1343 = vmatmul.bf16.gmra.mxu2 %v8174_v35 }
 0x285   : > { %v1216_v53 = vpop.f32.mrf.mxu0  ;;  %v1236_v57 = vpop.f32.mrf.mxu1 }
 0x286   : > { %v8201_v46 = vadd.f32 %v1236_v57, %v8195_v0  ;;  %v8204_v42 = vadd.f32 %v1216_v53, %v8195_v0 }
 0x288   : > { %1284 = vmatmul.bf16.gmra.mxu1 %v8146_v25  ;;  %v1426_v52 = vpack.c.bf16 %v8201_v46, %v8201_v46  ;;  %v1418_v2 = vpack.c.bf16 %v8204_v42, %v8204_v42 }
 0x28a   : > { %v8222_v19 = vunpack.c.l.b16 %v1426_v52 }
 0x28d   : > { %v1218_v61 = vpop.f32.mrf.mxu0  ;;  %v1238_v1 = vpop.f32.mrf.mxu1 }
 0x28e   : > { %v8211_v62 = vadd.f32 %v1218_v61, %v8195_v0  ;;  %v8214_v50 = vadd.f32 %v1238_v1, %v8195_v0 }
 0x290   : > { %v1427_v51 = vpack.c.bf16 %v8214_v50, %v8214_v50  ;;  %v6596_v3 = vpack.i.bf16 %v8211_v62, %v8204_v42  ;;  %v1419_v52 = vpack.c.bf16 %v8211_v62, %v8211_v62  ;;  %v6636_v30 = vpack.i.bf16 %v8214_v50, %v8201_v46  ;;  %v1041_v46 = vld [vmem:[%s7748_s20 + $0x8] sm:$0xff] }
 0x292   : > { %v8224_v6 = vunpack.c.l.b16 %v1427_v51  ;;  %6597 = vrot.lane.b32.xlu1 %v6596_v3, %s7461_s23  ;;  %v8304_v3 = vunpack.c.l.b16 %v1418_v2  ;;  %v8306_v8 = vunpack.c.l.b16 %v1419_v52  ;;  %1348 = vmatmul.bf16.gmra.mxu2 %v8180_v29 }
 0x294   : > { %v1753_v10 = vpack.c.b16 %v8224_v6, %v8222_v19  ;;  %v1650_v17 = vpack.c.b16 %v8306_v8, %v8304_v3 }
 0x295   : > { %v1221_v55 = vpop.f32.mrf.mxu0  ;;  %v1241_v24 = vpop.f32.mrf.mxu1 }
 0x296   : > { %v8235_v31 = vadd.f32 %v1241_v24, %v8195_v0  ;;  %v8238_v9 = vadd.f32 %v1221_v55, %v8195_v0 }
 0x298   : > { %1289 = vmatmul.bf16.gmra.mxu1 %v8160_v18  ;;  %v1428_v58 = vpack.c.bf16 %v8235_v31, %v8235_v31 }
 0x29a   : > { %v8250_v28 = vunpack.c.l.b16 %v1428_v58 }
 0x29d   : > { %v1223_v32 = vpop.f32.mrf.mxu0  ;;  %v1243_v14 = vpop.f32.mrf.mxu1 }
 0x29e   : > { %v1224_v15 = vadd.f32 %v1223_v32, %v8195_v0  ;;  %v8244_v16 = vadd.f32 %v1243_v14, %v8195_v0  ;;  %v1420_v32 = vpack.c.bf16 %v8238_v9, %v8238_v9 }
 0x2a0   : > { %v6601_v33 = vpack.i.bf16 %v1224_v15, %v8238_v9  ;;  %v1429_v34 = vpack.c.bf16 %v8244_v16, %v8244_v16  ;;  %v1421_v14 = vpack.c.bf16 %v1224_v15, %v1224_v15  ;;  %v8333_v58 = vunpack.c.l.b16 %v1420_v32 }
 0x2a1   : > { %v8344_v9 = vperm.slane %v1041_v46, 0 }
 0x2a2   : > { %v8252_v36 = vunpack.c.l.b16 %v1429_v34  ;;  %6602 = vrot.lane.b32.xlu1 %v6601_v33, %s7461_s23  ;;  %v8335_v33 = vunpack.c.l.b16 %v1421_v14 }
 0x2a4   : > { %v1754_v23 = vpack.c.b16 %v8252_v36, %v8250_v28 }
 0x2a5   : > { %v1226_v22 = vpop.f32.mrf.mxu0  ;;  %v1246_v4 = vpop.f32.mrf.mxu1 }
 0x2a6   : > { %v8258_v37 = vadd.f32 %v1226_v22, %v8195_v0  ;;  %v8261_v63 = vadd.f32 %v1246_v4, %v8195_v0  ;;  %v6641_v22 = vpack.i.bf16 %v8244_v16, %v8235_v31  ;;  %v1651_v4 = vpack.c.b16 %v8335_v33, %v8333_v58 }
 0x2a8   : > { %1294 = vmatmul.bf16.gmra.mxu1 %v8174_v35  ;;  %v1422_v41 = vpack.c.bf16 %v8258_v37, %v8258_v37  ;;  %v1430_v47 = vpack.c.bf16 %v8261_v63, %v8261_v63 }
 0x2aa   : > { %v8275_v11 = vunpack.c.l.b16 %v1422_v41  ;;  %v8285_v13 = vunpack.c.l.b16 %v1430_v47 }
 0x2ad   : > { %v1228_v43 = vpop.f32.mrf.mxu0  ;;  %v1248_v44 = vpop.f32.mrf.mxu1 }
 0x2ae   : > { %v8269_v40 = vadd.f32 %v1228_v43, %v8195_v0  ;;  %v8272_v48 = vadd.f32 %v1248_v44, %v8195_v0 }
 0x2b0   : > { %v1423_v54 = vpack.c.bf16 %v8269_v40, %v8269_v40  ;;  %v6616_v53 = vpack.i.bf16 %v8269_v40, %v8258_v37  ;;  %v1431_v57 = vpack.c.bf16 %v8272_v48, %v8272_v48  ;;  %v6646_v45 = vpack.i.bf16 %v8272_v48, %v8261_v63 }
 0x2b2   : > { %v8287_v49 = vunpack.c.l.b16 %v1423_v54  ;;  %v8289_v20 = vunpack.c.l.b16 %v1431_v57 }
 0x2b4   : > { %v1702_v39 = vpack.c.b16 %v8287_v49, %v8275_v11  ;;  %v1804_v59 = vpack.c.b16 %v8289_v20, %v8285_v13 }
 0x2b5   : > { %v1231_v60 = vpop.f32.mrf.mxu0  ;;  %v1251_v61 = vpop.f32.mrf.mxu1 }
 0x2b6   : > { %v8296_v1 = vadd.f32 %v1251_v61, %v8195_v0  ;;  %v1232_v51 = vadd.f32 %v1231_v60, %v8195_v0 }
 0x2b8   : > { %1299 = vmatmul.bf16.gmra.mxu1 %v8180_v29  ;;  %v1432_v21 = vpack.c.bf16 %v8296_v1, %v8296_v1  ;;  %v1424_v25 = vpack.c.bf16 %v1232_v51, %v1232_v51 }
 0x2ba   : > { %v8321_v26 = vunpack.c.l.b16 %v1432_v21 }
 0x2bd   : > { %v1233_v7 = vpop.f32.mrf.mxu0  ;;  %v1253_v38 = vpop.f32.mrf.mxu1 }
 0x2be   : > { %v1234_v56 = vadd.f32 %v1233_v7, %v8195_v0  ;;  %v8312_v55 = vadd.f32 %v1253_v38, %v8195_v0 }
 0x2c0   : > { %v6621_v42 = vpack.i.bf16 %v1234_v56, %v1232_v51  ;;  %v1433_v62 = vpack.c.bf16 %v8312_v55, %v8312_v55  ;;  %v6651_v24 = vpack.i.bf16 %v8312_v55, %v8296_v1  ;;  %v1425_v21 = vpack.c.bf16 %v1234_v56, %v1234_v56 }
 0x2c2   : > { %v8323_v27 = vunpack.c.l.b16 %v1433_v62  ;;  %6622 = vrot.lane.b32.xlu1 %v6621_v42, %s7461_s23  ;;  %v1700_v62 = vunpack.c.l.b16 %v1424_v25 }
 0x2c4   : > { %v1805_v12 = vpack.c.b16 %v8323_v27, %v8321_v26 }
 0x2c5   : > { %v1265_v0 = vpop.f32.mrf.mxu1 }
 0x2c6   : > { %v1266_v31 = vadd.f32 %v1265_v0, %v8344_v9  ;;  %v1701_v0 = vunpack.c.l.b16 %v1425_v21 }
 0x2c8   : > { %v1514_v61 = vpack.c.bf16 %v1266_v31, %v1266_v31  ;;  %v1703_v14 = vpack.c.b16 %v1701_v0, %v1700_v62  ;;  %v1042_v62 = vld [vmem:[%s7748_s20 + $0x10] sm:$0xff] }
 0x2ca   : > { %6637 = vrot.lane.b32.xlu1 %v6636_v30, %s7461_s23  ;;  %v1656_v7 = vunpack.c.l.b16 %v1514_v61 }
 0x2cd   : > { %v1267_v34 = vpop.f32.mrf.mxu1 }
 0x2ce   : > { %v1268_v43 = vadd.f32 %v1267_v34, %v8344_v9 }
 0x2d0   : > { %v1515_v54 = vpack.c.bf16 %v1268_v43, %v1268_v43  ;;  %v6591_v38 = vpack.i.bf16 %v1268_v43, %v1266_v31 }
 0x2d2   : > { %6642 = vrot.lane.b32.xlu1 %v6641_v22, %s7461_s23  ;;  %v1657_v3 = vunpack.c.l.b16 %v1515_v54 }
 0x2d4   : > { %v1660_v42 = vpack.c.b16 %v1657_v3, %v1656_v7  ;;  %v1314_v7 = vpop.f32.mrf.mxu2 }
 0x2d5   : > { %v1270_v50 = vpop.f32.mrf.mxu1 }
 0x2d6   : > { %v1271_v15 = vadd.f32 %v1270_v50, %v8344_v9  ;;  %v1670_v32 = vsel %vm1662_vm3, %v1660_v42, 0 }
 0x2d8   : > { %v1516_v44 = vpack.c.bf16 %v1271_v15, %v1271_v15 }
 0x2da   : > { %v1658_v57 = vunpack.c.l.b16 %v1516_v44 }
 0x2dc   : > { %v1316_v0 = vpop.f32.mrf.mxu2 }
 0x2dd   : > { %v1272_v41 = vpop.f32.mrf.mxu1 }
 0x2de   : > { %v1273_v5 = vadd.f32 %v1272_v41, %v8344_v9 }
 0x2e0   : > { %v1517_v16 = vpack.c.bf16 %v1273_v5, %v1273_v5  ;;  %v6586_v47 = vpack.i.bf16 %v1273_v5, %v1271_v15 }
 0x2e2   : > { %6587 = vrot.lane.b32.xlu0 %v6586_v47, %s7461_s23  ;;  %v1659_v60 = vunpack.c.l.b16 %v1517_v16 }
 0x2e4   : > { %v1661_v2 = vpack.c.b16 %v1659_v60, %v1658_v57 }
 0x2e5   : > { %v1275_v52 = vpop.f32.mrf.mxu1 }
 0x2e6   : > { %v1673_v8 = vsel %vm1662_vm3, %v1661_v2, 0  ;;  %v1276_v18 = vadd.f32 %v1275_v52, %v8344_v9 }
 0x2e7   : > { %1681 = vmatpush.bf16.xpose.msra.mxu3 %v1673_v8 }
 0x2ea   : > { %6592 = vrot.lane.b32.xlu0 %v6591_v38, %s7461_s23 }
 0x2ed   : > { %v1277_v30 = vpop.f32.mrf.mxu1 }
 0x2ee   : > { %v1278_v33 = vadd.f32 %v1277_v30, %v8344_v9 }
 0x2ef   : > { %1682 = vmatpush.bf16.xpose.msra.mxu3 %v1670_v32 }
 0x2f0   : > { %v1519_v15 = vpack.c.bf16 %v1278_v33, %v1278_v33  ;;  %v6611_v35 = vpack.i.bf16 %v1278_v33, %v1276_v18 }
 0x2f2   : > { %6617 = vrot.lane.b32.xlu0 %v6616_v53, %s7461_s23  ;;  %v1518_v53 = vpack.c.bf16 %v1276_v18, %v1276_v18  ;;  %v1709_v43 = vunpack.c.l.b16 %v1519_v15 }
 0x2f4   : > { %v1708_v5 = vunpack.c.l.b16 %v1518_v53 }
 0x2f5   : > { %v1280_v58 = vpop.f32.mrf.mxu1 }
 0x2f6   : > { %5888 = vmatmul.msk.bf16.vlgmr.msra.gmra.mxu3 %vm1662_vm3, %v1650_v17  ;;  %v1281_v51 = vadd.f32 %v1280_v58, %v8344_v9  ;;  %v1712_v31 = vpack.c.b16 %v1709_v43, %v1708_v5 }
 0x2f8   : > { %v1520_v34 = vpack.c.bf16 %v1281_v51, %v1281_v51  ;;  %v1721_v57 = vsel %vm1662_vm3, %v1712_v31, 0 }
 0x2fa   : > { %v1710_v37 = vunpack.c.l.b16 %v1520_v34 }
 0x2fd   : > { %v1282_v56 = vpop.f32.mrf.mxu1 }
 0x2fe   : > { %v1283_v22 = vadd.f32 %v1282_v56, %v8344_v9 }
 0x300   : > { %v1521_v46 = vpack.c.bf16 %v1283_v22, %v1283_v22  ;;  %v6606_v50 = vpack.i.bf16 %v1283_v22, %v1281_v51 }
 0x302   : > { %v1711_v40 = vunpack.c.l.b16 %v1521_v46  ;;  %6607 = vrot.lane.b32.xlu2 %v6606_v50, %s7461_s23 }
 0x304   : > { %v1713_v17 = vpack.c.b16 %v1711_v40, %v1710_v37 }
 0x305   : > { %v1285_v41 = vpop.f32.mrf.mxu1 }
 0x306   : > { %5889 = vmatmul.msk.bf16.gmra.mxu3 %vm1662_vm3, %v1651_v4  ;;  %v1724_v44 = vsel %vm1662_vm3, %v1713_v17, 0  ;;  %v1286_v47 = vadd.f32 %v1285_v41, %v8344_v9 }
 0x307   : > { %1732 = vmatpush.bf16.xpose.msrb.mxu3 %v1724_v44 }
 0x308   : > { %v1522_v49 = vpack.c.bf16 %v1286_v47, %v1286_v47 }
 0x30a   : > { %6612 = vrot.lane.b32.xlu2 %v6611_v35, %s7461_s23  ;;  %v1759_v55 = vunpack.c.l.b16 %v1522_v49 }
 0x30d   : > { %v1287_v16 = vpop.f32.mrf.mxu1 }
 0x30e   : > { %v1288_v54 = vadd.f32 %v1287_v16, %v8344_v9 }
 0x30f   : > { %1733 = vmatpush.bf16.xpose.msrb.mxu3 %v1721_v57 }
 0x310   : > { %v6631_v60 = vpack.i.bf16 %v1288_v54, %v1286_v47  ;;  %v1523_v38 = vpack.c.bf16 %v1288_v54, %v1288_v54 }
 0x312   : > { %6632 = vrot.lane.b32.xlu0 %v6631_v60, %s7461_s23  ;;  %v1760_v42 = vunpack.c.l.b16 %v1523_v38 }
 0x315   : > { %v1290_v4 = vpop.f32.mrf.mxu1 }
 0x316   : > { %5890 = vmatmul.msk.bf16.vlgmr.msrb.gmra.mxu3 %vm1662_vm3, %v1702_v39  ;;  %v1291_v61 = vadd.f32 %v1290_v4, %v8344_v9 }
 0x318   : > { %v1524_v52 = vpack.c.bf16 %v1291_v61, %v1291_v61 }
 0x31a   : > { %6652 = vrot.lane.b32.xlu0 %v6651_v24, %s7461_s23  ;;  %v1761_v25 = vunpack.c.l.b16 %v1524_v52  ;;  %v1763_v24 = vpack.c.b16 %v1760_v42, %v1759_v55 }
 0x31c   : > { %v1772_v51 = vsel %vm1662_vm3, %v1763_v24, 0 }
 0x31d   : > { %v1292_v2 = vpop.f32.mrf.mxu1 }
 0x31e   : > { %v1293_v29 = vadd.f32 %v1292_v2, %v8344_v9 }
 0x320   : > { %v1525_v3 = vpack.c.bf16 %v1293_v29, %v1293_v29  ;;  %v6626_v8 = vpack.i.bf16 %v1293_v29, %v1291_v61 }
 0x322   : > { %v1762_v11 = vunpack.c.l.b16 %v1525_v3  ;;  %6627 = vrot.lane.b32.xlu2 %v6626_v8, %s7461_s23 }
 0x324   : > { %v1764_v39 = vpack.c.b16 %v1762_v11, %v1761_v25 }
 0x325   : > { %v1295_v21 = vpop.f32.mrf.mxu1 }
 0x326   : > { %5891 = vmatmul.msk.bf16.gmra.mxu3 %vm1662_vm3, %v1703_v14  ;;  %v1775_v1 = vsel %vm1662_vm3, %v1764_v39, 0  ;;  %v1296_v32 = vadd.f32 %v1295_v21, %v8344_v9  ;;  %v8396_v14 = vperm.slane %v1042_v62, 0 }
 0x327   : > { %1783 = vmatpush.bf16.xpose.msra.mxu3 %v1775_v1 }
 0x328   : > { %v8400_v33 = vadd.f32 %v1314_v7, %v8396_v14  ;;  %v8403_v63 = vadd.f32 %v1316_v0, %v8396_v14 }
 0x32a   : > { %6647 = vrot.lane.b32.xlu2 %v6646_v45, %s7461_s23  ;;  %v1319_v45 = vpop.f32.mrf.mxu2  ;;  %v6671_v34 = vpack.i.bf16 %v8403_v63, %v8400_v33  ;;  %v1610_v62 = vpack.c.bf16 %v8400_v33, %v8400_v33  ;;  %v1611_v0 = vpack.c.bf16 %v8403_v63, %v8403_v63 }
 0x32b   : > { %v1320_v19 = vadd.f32 %v1319_v45, %v8396_v14 }
 0x32d   : > { %v1297_v30 = vpop.f32.mrf.mxu1  ;;  %v1612_v61 = vpack.c.bf16 %v1320_v19, %v1320_v19 }
 0x32e   : > { %v1298_v58 = vadd.f32 %v1297_v30, %v8344_v9 }
 0x32f   : > { %1784 = vmatpush.bf16.xpose.msra.mxu3 %v1772_v51  ;;  %v2541_v39 = vunpack.c.l.b16 %v1612_v61 }
 0x330   : > { %v6656_v56 = vpack.i.bf16 %v1298_v58, %v1296_v32  ;;  %v1527_v53 = vpack.c.bf16 %v1298_v58, %v1298_v58 }
 0x332   : > { %6657 = vrot.lane.b32.xlu0 %v6656_v56, %s7461_s23  ;;  %v1321_v15 = vpop.f32.mrf.mxu2  ;;  %v1811_v44 = vunpack.c.l.b16 %v1527_v53 }
 0x333   : > { %v1322_v6 = vadd.f32 %v1321_v15, %v8396_v14 }
 0x335   : > { %v1300_v48 = vpop.f32.mrf.mxu1  ;;  %v6666_v5 = vpack.i.bf16 %v1322_v6, %v1320_v19  ;;  %v1613_v2 = vpack.c.bf16 %v1322_v6, %v1322_v6 }
 0x336   : > { %5892 = vmatmul.msk.bf16.vlgmr.msra.gmra.mxu3 %vm1662_vm3, %v1753_v10  ;;  %v1301_v22 = vadd.f32 %v1300_v48, %v8344_v9  ;;  %v1526_v10 = vpack.c.bf16 %v1296_v32, %v1296_v32 }
 0x337   : > { %v2542_v21 = vunpack.c.l.b16 %v1613_v2 }
 0x338   : > { %v1528_v46 = vpack.c.bf16 %v1301_v22, %v1301_v22  ;;  %v1810_v35 = vunpack.c.l.b16 %v1526_v10 }
 0x339   : > { %v2544_v58 = vpack.c.b16 %v2542_v21, %v2541_v39 }
 0x33a   : > { %6672 = vrot.lane.b32.xlu0 %v6671_v34, %s7461_s23  ;;  %v1812_v17 = vunpack.c.l.b16 %v1528_v46  ;;  %v1814_v31 = vpack.c.b16 %v1811_v44, %v1810_v35  ;;  %v2540_v46 = vunpack.c.l.b16 %v1611_v0 }
 0x33c   : > { %v1823_v16 = vsel %vm1662_vm3, %v1814_v31, 0 }
 0x33d   : > { %v1302_v18 = vpop.f32.mrf.mxu1 }
 0x33e   : > { %v1303_v50 = vadd.f32 %v1302_v18, %v8344_v9  ;;  %v2539_v18 = vunpack.c.l.b16 %v1610_v62 }
 0x340   : > { %v1529_v37 = vpack.c.bf16 %v1303_v50, %v1303_v50  ;;  %v6661_v40 = vpack.i.bf16 %v1303_v50, %v1301_v22  ;;  %v2543_v10 = vpack.c.b16 %v2540_v46, %v2539_v18 }
 0x342   : > { %v1813_v41 = vunpack.c.l.b16 %v1529_v37  ;;  %6662 = vrot.lane.b32.xlu2 %v6661_v40, %s7461_s23 }
 0x344   : > { %v1815_v43 = vpack.c.b16 %v1813_v41, %v1812_v17 }
 0x346   : > { %5893 = vmatmul.msk.bf16.gmra.mxu3 %vm1662_vm3, %v1754_v23  ;;  %v1826_v9 = vsel %vm1662_vm3, %v1815_v43, 0 }
 0x347   : > { %1834 = vmatpush.bf16.xpose.msrb.mxu3 %v1826_v9 }
 0x34a   : > { %6667 = vrot.lane.b32.xlu2 %v6666_v5, %s7461_s23 }
 0x34f   : > { %1835 = vmatpush.bf16.xpose.msrb.mxu3 %v1823_v16 }
 0x354   : > { %v6588_v47 = vpop.permute.xlu0 %6587 }
 0x355   : > { %v6590_v54 = vunpack.i.h.bf16 %v6588_v47  ;;  %v6589_v57 = vunpack.i.l.bf16 %v6588_v47 }
 0x356   : > { %5894 = vmatmul.msk.bf16.vlgmr.msrb.gmra.mxu3 %vm1662_vm3, %v1804_v59  ;;  %v6598_v59 = vpop.permute.xlu1 %6597 }
 0x357   : > { %v1533_v28 = vpack.c.bf16 %v6590_v54, %v6590_v54  ;;  %v1532_v36 = vpack.c.bf16 %v6589_v57, %v6589_v57  ;;  %v6600_v37 = vunpack.i.h.bf16 %v6598_v59  ;;  %v6599_v40 = vunpack.i.l.bf16 %v6598_v59 }
 0x359   : > { %v1864_v23 = vunpack.c.l.b16 %v1533_v28  ;;  %v1863_v60 = vunpack.c.l.b16 %v1532_v36  ;;  %v1435_v44 = vpack.c.bf16 %v6600_v37, %v6600_v37  ;;  %v1434_v26 = vpack.c.bf16 %v6599_v40, %v6599_v40  ;;  %v8441_v28 = vld [vmem:[#allocation3] sm:$0xff] }
 0x35b   : > { %v1866_v4 = vpack.c.b16 %v1864_v23, %v1863_v60  ;;  %v1852_v5 = vunpack.c.l.b16 %v1435_v44  ;;  %v1851_v35 = vunpack.c.l.b16 %v1434_v26  ;;  %v2092_v60 = vperm.slane %v8441_v28, 0 }
 0x35c   : > { %v6608_v52 = vpop.permute.xlu2 %6607  ;;  %v6593_v29 = vpop.permute.xlu0 %6592 }
 0x35d   : > { %v6610_v3 = vunpack.i.h.bf16 %v6608_v52  ;;  %v6609_v8 = vunpack.i.l.bf16 %v6608_v52  ;;  %v6595_v7 = vunpack.i.h.bf16 %v6593_v29  ;;  %v6594_v38 = vunpack.i.l.bf16 %v6593_v29 }
 0x35e   : > { %v1877_v25 = vsel %vm1662_vm3, %v1866_v4, 0  ;;  %v6603_v6 = vpop.permute.xlu1 %6602  ;;  %v1855_v16 = vpack.c.b16 %v1852_v5, %v1851_v35  ;;  %v2085_v5 = vrot.slane %v8441_v28, 1 }
 0x35f   : > { %v1537_v11 = vpack.c.bf16 %v6610_v3, %v6610_v3  ;;  %v1536_v49 = vpack.c.bf16 %v6609_v8, %v6609_v8  ;;  %v1531_v13 = vpack.c.bf16 %v6595_v7, %v6595_v7  ;;  %v1530_v20 = vpack.c.bf16 %v6594_v38, %v6594_v38  ;;  %1885 = vmatpush.bf16.xpose.msra.mxu3 %v1877_v25 }
 0x360   : > { %v6605_v36 = vunpack.i.h.bf16 %v6603_v6  ;;  %v6604_v23 = vunpack.i.l.bf16 %v6603_v6 }
 0x361   : > { %v1915_v42 = vunpack.c.l.b16 %v1537_v11  ;;  %v1914_v1 = vunpack.c.l.b16 %v1536_v49  ;;  %v1862_v55 = vunpack.c.l.b16 %v1531_v13  ;;  %v1861_v24 = vunpack.c.l.b16 %v1530_v20 }
 0x362   : > { %v1437_v29 = vpack.c.bf16 %v6605_v36, %v6605_v36  ;;  %v1436_v3 = vpack.c.bf16 %v6604_v23, %v6604_v23 }
 0x363   : > { %v1865_v30 = vpack.c.b16 %v1862_v55, %v1861_v24  ;;  %v1917_v32 = vpack.c.b16 %v1915_v42, %v1914_v1 }
 0x364   : > { %v6613_v51 = vpop.permute.xlu2 %6612  ;;  %v6618_v56 = vpop.permute.xlu0 %6617  ;;  %v1854_v39 = vunpack.c.l.b16 %v1437_v29  ;;  %v1853_v21 = vunpack.c.l.b16 %v1436_v3 }
 0x365   : > { %v6615_v48 = vunpack.i.h.bf16 %v6613_v51  ;;  %v6614_v45 = vunpack.i.l.bf16 %v6613_v51  ;;  %v1874_v34 = vsel %vm1662_vm3, %v1865_v30, 0  ;;  %v1928_v22 = vsel %vm1662_vm3, %v1917_v32, 0 }
 0x366   : > { %5895 = vmatmul.msk.bf16.gmra.mxu3 %vm1662_vm3, %v1805_v12  ;;  %1936 = vmatpush.bf16.xpose.msrb.mxu0 %v1928_v22  ;;  %v6620_v33 = vunpack.i.h.bf16 %v6618_v56  ;;  %v6619_v63 = vunpack.i.l.bf16 %v6618_v56  ;;  %v6623_v47 = vpop.permute.xlu1 %6622  ;;  %v1856_v32 = vpack.c.b16 %v1854_v39, %v1853_v21 }
 0x367   : > { %v1535_v50 = vpack.c.bf16 %v6615_v48, %v6615_v48  ;;  %v1534_v15 = vpack.c.bf16 %v6614_v45, %v6614_v45  ;;  %1886 = vmatpush.bf16.xpose.msra.mxu3 %v1874_v34  ;;  %v6625_v54 = vunpack.i.h.bf16 %v6623_v47  ;;  %v6624_v57 = vunpack.i.l.bf16 %v6623_v47 }
 0x368   : > { %v1439_v41 = vpack.c.bf16 %v6620_v33, %v6620_v33  ;;  %v1438_v19 = vpack.c.bf16 %v6619_v63, %v6619_v63 }
 0x369   : > { %v1913_v53 = vunpack.c.l.b16 %v1535_v50  ;;  %v1912_v17 = vunpack.c.l.b16 %v1534_v15  ;;  %v1441_v4 = vpack.c.bf16 %v6625_v54, %v6625_v54  ;;  %v1440_v61 = vpack.c.bf16 %v6624_v57, %v6624_v57 }
 0x36a   : > { %v1903_v27 = vunpack.c.l.b16 %v1439_v41  ;;  %v1902_v12 = vunpack.c.l.b16 %v1438_v19  ;;  %v8467_v54 = vperm.slane %v2085_v5, 0 }
 0x36b   : > { %v1916_v43 = vpack.c.b16 %v1913_v53, %v1912_v17  ;;  %v1905_v38 = vunpack.c.l.b16 %v1441_v4  ;;  %v1904_v25 = vunpack.c.l.b16 %v1440_v61 }
 0x36c   : > { %v1906_v31 = vpack.c.b16 %v1903_v27, %v1902_v12 }
 0x36d   : > { %v1925_v9 = vsel %vm1662_vm3, %v1916_v43, 0  ;;  %v1907_v24 = vpack.c.b16 %v1905_v38, %v1904_v25 }
 0x36e   : > { %1937 = vmatpush.bf16.xpose.msrb.mxu0 %v1925_v9  ;;  %v6638_v51 = vpop.permute.xlu1 %6637 }
 0x36f   : > { %2559 = vmatpush.bf16.msrb.mxu3 %v2544_v58  ;;  %v6640_v46 = vunpack.i.h.bf16 %v6638_v51  ;;  %v6639_v33 = vunpack.i.l.bf16 %v6638_v51 }
 0x371   : > { %v1443_v53 = vpack.c.bf16 %v6640_v46, %v6640_v46  ;;  %v1442_v17 = vpack.c.bf16 %v6639_v33, %v6639_v33 }
 0x373   : > { %2560 = vmatpush.bf16.msrb.mxu3 %v2543_v10  ;;  %v1954_v10 = vunpack.c.l.b16 %v1443_v53  ;;  %v1953_v43 = vunpack.c.l.b16 %v1442_v17 }
 0x375   : > { %5898 = vmatmul.msk.bf16.vlgmr.msrb.gmra.mxu0 %vm1662_vm3, %v1906_v31  ;;  %v1957_v27 = vpack.c.b16 %v1954_v10, %v1953_v43 }
 0x376   : > { %5896 = vmatmul.msk.bf16.vlgmr.msra.gmra.mxu3 %vm1662_vm3, %v1855_v16  ;;  %v6643_v35 = vpop.permute.xlu1 %6642 }
 0x377   : > { %v6645_v16 = vunpack.i.h.bf16 %v6643_v35  ;;  %v6644_v47 = vunpack.i.l.bf16 %v6643_v35 }
 0x379   : > { %v1684_v2 = vpop.f32.mrf.mxu3  ;;  %v1445_v23 = vpack.c.bf16 %v6645_v16, %v6645_v16  ;;  %v1444_v4 = vpack.c.bf16 %v6644_v47, %v6644_v47 }
 0x37a   : > { %v2051_v52 = vmul.f32 0.125, %v1684_v2 }
 0x37b   : > { %v1956_v25 = vunpack.c.l.b16 %v1445_v23 }
 0x37c   : > { %v6628_v8 = vpop.permute.xlu2 %6627  ;;  %v8445_v7 = vadd.f32 %v2092_v60, %v2051_v52 }
 0x37d   : > { %v6630_v11 = vunpack.i.h.bf16 %v6628_v8  ;;  %v6629_v49 = vunpack.i.l.bf16 %v6628_v8 }
 0x37e   : > { %v2141_v13 = vsel %vm2140_vm4, %v8445_v7, -inf }
 0x37f   : > { %v1541_v20 = vpack.c.bf16 %v6630_v11, %v6630_v11  ;;  %v1540_v59 = vpack.c.bf16 %v6629_v49, %v6629_v49  ;;  %2142 = vmax.xlane.f32.xlu1 %v2141_v13  ;;  %v1955_v11 = vunpack.c.l.b16 %v1444_v4 }
 0x381   : > { %v1966_v42 = vunpack.c.l.b16 %v1541_v20  ;;  %v1965_v1 = vunpack.c.l.b16 %v1540_v59  ;;  %v1686_v55 = vpop.f32.mrf.mxu3  ;;  %v1958_v21 = vpack.c.b16 %v1956_v25, %v1955_v11 }
 0x382   : > { %v2052_v62 = vmul.f32 0.125, %v1686_v55 }
 0x383   : > { %v1968_v0 = vpack.c.b16 %v1966_v42, %v1965_v1 }
 0x384   : > { %v6633_v30 = vpop.permute.xlu0 %6632  ;;  %v8449_v58 = vadd.f32 %v2092_v60, %v2052_v62  ;;  %v6648_v12 = vpop.permute.xlu2 %6647 }
 0x385   : > { %v6635_v56 = vunpack.i.h.bf16 %v6633_v30  ;;  %v6634_v48 = vunpack.i.l.bf16 %v6633_v30  ;;  %5899 = vmatmul.msk.bf16.gmra.mxu0 %vm1662_vm3, %v1907_v24  ;;  %v1979_v45 = vsel %vm1662_vm3, %v1968_v0, 0 }
 0x386   : > { %5897 = vmatmul.msk.bf16.gmra.mxu3 %vm1662_vm3, %v1856_v32  ;;  %v2144_v34 = vsel %vm2140_vm4, %v8449_v58, -inf  ;;  %1987 = vmatpush.bf16.xpose.msra.mxu1 %v1979_v45  ;;  %v6650_v32 = vunpack.i.h.bf16 %v6648_v12  ;;  %v6649_v45 = vunpack.i.l.bf16 %v6648_v12 }
 0x387   : > { %v1539_v22 = vpack.c.bf16 %v6635_v56, %v6635_v56  ;;  %v1538_v18 = vpack.c.bf16 %v6634_v48, %v6634_v48  ;;  %2145 = vmax.xlane.f32.xlu2 %v2144_v34  ;;  %v1324_v56 = vpop.f32.mrf.mxu2 }
 0x388   : > { %v1447_v53 = vpack.c.bf16 %v6650_v32, %v6650_v32  ;;  %v1446_v17 = vpack.c.bf16 %v6649_v45, %v6649_v45 }
 0x389   : > { %v1964_v63 = vunpack.c.l.b16 %v1539_v22  ;;  %v1963_v50 = vunpack.c.l.b16 %v1538_v18  ;;  %v1689_v15 = vpop.f32.mrf.mxu3 }
 0x38a   : > { %v2053_v37 = vmul.f32 0.125, %v1689_v15  ;;  %v2005_v35 = vunpack.c.l.b16 %v1447_v53 }
 0x38b   : > { %v1967_v40 = vpack.c.b16 %v1964_v63, %v1963_v50 }
 0x38c   : > { %v8456_v41 = vadd.f32 %v2092_v60, %v2053_v37  ;;  %v8469_v61 = vpop.permute.xlu0 %6652 }
 0x38d   : > { %v1976_v19 = vsel %vm1662_vm3, %v1967_v40, 0  ;;  %v6654_v11 = vunpack.i.l.bf16 %v8469_v61 }
 0x38e   : > { %v2147_v6 = vsel %vm2140_vm4, %v8456_v41, -inf  ;;  %1988 = vmatpush.bf16.xpose.msra.mxu1 %v1976_v19 }
 0x38f   : > { %2148 = vmax.xlane.f32.xlu0 %v2147_v6  ;;  %v1326_v5 = vpop.f32.mrf.mxu2 }
 0x391   : > { %v1691_v44 = vpop.f32.mrf.mxu3 }
 0x392   : > { %v2054_v26 = vmul.f32 0.125, %v1691_v44 }
 0x394   : > { %v8461_v9 = vadd.f32 %v2092_v60, %v2054_v26 }
 0x395   : > { %5900 = vmatmul.msk.bf16.vlgmr.msra.gmra.mxu1 %vm1662_vm3, %v1957_v27 }
 0x396   : > { %v2150_v31 = vsel %vm2140_vm4, %v8461_v9, -inf }
 0x397   : > { %2151 = vmax.xlane.f32.xlu2 %v2150_v31  ;;  %v2004_v31 = vunpack.c.l.b16 %v1446_v17  ;;  %v1329_v25 = vpop.f32.mrf.mxu2 }
 0x399   : > { %v1735_v57 = vpop.f32.mrf.mxu3 }
 0x39a   : > { %v2055_v36 = vmul.f32 0.125, %v1735_v57 }
 0x39c   : > { %v6663_v60 = vpop.permute.xlu2 %6662  ;;  %v8472_v2 = vadd.f32 %v8467_v54, %v2055_v36 }
 0x39d   : > { %v6665_v52 = vunpack.i.h.bf16 %v6663_v60  ;;  %v6664_v29 = vunpack.i.l.bf16 %v6663_v60  ;;  %v2008_v60 = vpack.c.b16 %v2005_v35, %v2004_v31  ;;  %v2087_v31 = vrot.slane %v8441_v28, 3 }
 0x39e   : > { %v2153_v3 = vsel %vm2140_vm4, %v8472_v2, -inf }
 0x39f   : > { %v1545_v8 = vpack.c.bf16 %v6665_v52, %v6665_v52  ;;  %v1544_v38 = vpack.c.bf16 %v6664_v29, %v6664_v29  ;;  %2154 = vmax.xlane.f32.xlu0 %v2153_v3  ;;  %v2086_v3 = vrot.slane %v8441_v28, 2 }
 0x3a1   : > { %v2017_v49 = vunpack.c.l.b16 %v1545_v8  ;;  %v2016_v13 = vunpack.c.l.b16 %v1544_v38  ;;  %v1737_v20 = vpop.f32.mrf.mxu3  ;;  %v6655_v8 = vunpack.i.h.bf16 %v8469_v61  ;;  %v8506_v61 = vadd.f32 %v1326_v5, %v8396_v14 }
 0x3a2   : > { %v2056_v59 = vmul.f32 0.125, %v1737_v20 }
 0x3a3   : > { %v2019_v39 = vpack.c.b16 %v2017_v49, %v2016_v13  ;;  %v2094_v49 = vperm.slane %v2086_v3, 0  ;;  %v1449_v20 = vpack.c.bf16 %v6655_v8, %v6655_v8 }
 0x3a4   : > { %v6658_v42 = vpop.permute.xlu0 %6657  ;;  %v8477_v1 = vadd.f32 %v8467_v54, %v2056_v59  ;;  %v6668_v55 = vpop.permute.xlu2 %6667 }
 0x3a5   : > { %v6660_v24 = vunpack.i.h.bf16 %v6658_v42  ;;  %v6659_v62 = vunpack.i.l.bf16 %v6658_v42  ;;  %v2030_v0 = vsel %vm1662_vm3, %v2019_v39, 0  ;;  %v6670_v30 = vunpack.i.h.bf16 %v6668_v55  ;;  %5901 = vmatmul.msk.bf16.gmra.mxu1 %vm1662_vm3, %v1958_v21 }
 0x3a6   : > { %2038 = vmatpush.bf16.xpose.msrb.mxu2 %v2030_v0  ;;  %v2156_v51 = vsel %vm2140_vm4, %v8477_v1, -inf  ;;  %v6669_v48 = vunpack.i.l.bf16 %v6668_v55  ;;  %v8501_v21 = vadd.f32 %v1324_v56, %v8396_v14  ;;  %v2007_v42 = vunpack.c.l.b16 %v1449_v20 }
 0x3a7   : > { %v1543_v34 = vpack.c.bf16 %v6660_v24, %v6660_v24  ;;  %v1542_v22 = vpack.c.bf16 %v6659_v62, %v6659_v62  ;;  %2157 = vmax.xlane.f32.xlu1 %v2156_v51  ;;  %v1629_v18 = vpack.c.bf16 %v6670_v30, %v6670_v30  ;;  %v1331_v24 = vpop.f32.mrf.mxu2  ;;  %v8509_v0 = vadd.f32 %v1329_v25, %v8396_v14 }
 0x3a8   : > { %v1628_v46 = vpack.c.bf16 %v6669_v48, %v6669_v48  ;;  %v8512_v30 = vadd.f32 %v1331_v24, %v8396_v14  ;;  %v1614_v32 = vpack.c.bf16 %v8501_v21, %v8501_v21  ;;  %v1615_v56 = vpack.c.bf16 %v8506_v61, %v8506_v61 }
 0x3a9   : > { %v2015_v33 = vunpack.c.l.b16 %v1543_v34  ;;  %v2014_v63 = vunpack.c.l.b16 %v1542_v22  ;;  %v1740_v50 = vpop.f32.mrf.mxu3  ;;  %v2730_v15 = vunpack.c.l.b16 %v1629_v18  ;;  %v6681_v48 = vpack.i.bf16 %v8506_v61, %v8501_v21 }
 0x3aa   : > { %v2057_v37 = vmul.f32 0.125, %v1740_v50  ;;  %v2729_v40 = vunpack.c.l.b16 %v1628_v46  ;;  %v1616_v45 = vpack.c.bf16 %v8509_v0, %v8509_v0  ;;  %v1617_v34 = vpack.c.bf16 %v8512_v30, %v8512_v30 }
 0x3ab   : > { %v2018_v19 = vpack.c.b16 %v2015_v33, %v2014_v63  ;;  %v2586_v50 = vunpack.c.l.b16 %v1614_v32 }
 0x3ac   : > { %v8484_v6 = vadd.f32 %v8467_v54, %v2057_v37  ;;  %v2732_v10 = vpack.c.b16 %v2730_v15, %v2729_v40  ;;  %v6673_v43 = vpop.permute.xlu0 %6672  ;;  %v2588_v46 = vunpack.c.l.b16 %v1616_v45  ;;  %v2589_v33 = vunpack.c.l.b16 %v1617_v34 }
 0x3ad   : > { %v2027_v44 = vsel %vm1662_vm3, %v2018_v19, 0  ;;  %v6675_v26 = vunpack.i.h.bf16 %v6673_v43  ;;  %v6674_v27 = vunpack.i.l.bf16 %v6673_v43  ;;  %v2587_v15 = vunpack.c.l.b16 %v1615_v56 }
 0x3ae   : > { %2039 = vmatpush.bf16.xpose.msrb.mxu2 %v2027_v44  ;;  %v2159_v12 = vsel %vm2140_vm4, %v8484_v6, -inf  ;;  %2747 = vmatpush.bf16.msra.mxu3 %v2732_v10  ;;  %v2591_v37 = vpack.c.b16 %v2589_v33, %v2588_v46 }
 0x3af   : > { %2160 = vmax.xlane.f32.xlu0 %v2159_v12  ;;  %v1627_v16 = vpack.c.bf16 %v6675_v26, %v6675_v26  ;;  %v1626_v47 = vpack.c.bf16 %v6674_v27, %v6674_v27  ;;  %v1334_v53 = vpop.f32.mrf.mxu2  ;;  %v2590_v19 = vpack.c.b16 %v2587_v15, %v2586_v50  ;;  %v6676_v27 = vpack.i.bf16 %v8512_v30, %v8509_v0 }
 0x3b0   : > { %2606 = vmatpush.bf16.msra.mxu0 %v2591_v37  ;;  %v2089_v50 = vrot.slane %v8441_v28, 5 }
 0x3b1   : > { %v1742_v57 = vpop.f32.mrf.mxu3  ;;  %v2728_v36 = vunpack.c.l.b16 %v1627_v16  ;;  %v2727_v23 = vunpack.c.l.b16 %v1626_v47 }
 0x3b2   : > { %v2058_v4 = vmul.f32 0.125, %v1742_v57  ;;  %v2095_v57 = vperm.slane %v2087_v31, 0 }
 0x3b3   : > { %v2731_v52 = vpack.c.b16 %v2728_v36, %v2727_v23 }
 0x3b4   : > { %v8490_v29 = vadd.f32 %v8467_v54, %v2058_v4  ;;  %v1448_v54 = vpack.c.bf16 %v6654_v11, %v6654_v11  ;;  %2607 = vmatpush.bf16.msra.mxu0 %v2590_v19 }
 0x3b5   : > { %5902 = vmatmul.msk.bf16.vlgmr.msrb.gmra.mxu2 %vm1662_vm3, %v2008_v60  ;;  %2748 = vmatpush.bf16.msra.mxu3 %v2731_v52  ;;  %v8543_v60 = vadd.f32 %v1334_v53, %v8396_v14 }
 0x3b6   : > { %v2162_v38 = vsel %vm2140_vm4, %v8490_v29, -inf  ;;  %v2006_v62 = vunpack.c.l.b16 %v1448_v54 }
 0x3b7   : > { %2163 = vmax.xlane.f32.xlu1 %v2162_v38  ;;  %v1336_v26 = vpop.f32.mrf.mxu2 }
 0x3b8   : > { %v2009_v18 = vpack.c.b16 %v2007_v42, %v2006_v62  ;;  %v8554_v25 = vadd.f32 %v1336_v26, %v8396_v14 }
 0x3b9   : > { %v1786_v13 = vpop.f32.mrf.mxu3 }
 0x3ba   : > { %v2059_v59 = vmul.f32 0.125, %v1786_v13  ;;  %v1619_v54 = vpack.c.bf16 %v8554_v25, %v8554_v25  ;;  %v6691_v42 = vpack.i.bf16 %v8554_v25, %v8543_v60 }
 0x3bc   : > { %v8498_v39 = vadd.f32 %v2094_v49, %v2059_v59 }
 0x3be   : > { %v2165_v55 = vsel %vm2140_vm4, %v8498_v39, -inf }
 0x3bf   : > { %2166 = vmax.xlane.f32.xlu1 %v2165_v55  ;;  %v1339_v47 = vpop.f32.mrf.mxu2 }
 0x3c0   : > { %v8548_v8 = vadd.f32 %v1339_v47, %v8396_v14 }
 0x3c1   : > { %v1788_v51 = vpop.f32.mrf.mxu3 }
 0x3c2   : > { %v2060_v22 = vmul.f32 0.125, %v1788_v51  ;;  %v1620_v13 = vpack.c.bf16 %v8548_v8, %v8548_v8  ;;  %v2634_v51 = vunpack.c.l.b16 %v1619_v54 }
 0x3c4   : > { %v8524_v63 = vadd.f32 %v2094_v49, %v2060_v22  ;;  %v2635_v55 = vunpack.c.l.b16 %v1620_v13 }
 0x3c5   : > { %5903 = vmatmul.msk.bf16.gmra.mxu2 %vm1662_vm3, %v2009_v18 }
 0x3c6   : > { %v2168_v40 = vsel %vm2140_vm4, %v8524_v63, -inf }
 0x3c7   : > { %2169 = vmax.xlane.f32.xlu2 %v2168_v40  ;;  %v1341_v3 = vpop.f32.mrf.mxu2 }
 0x3c8   : > { %v8551_v38 = vadd.f32 %v1341_v3, %v8396_v14 }
 0x3c9   : > { %v1791_v17 = vpop.f32.mrf.mxu3 }
 0x3ca   : > { %v2061_v10 = vmul.f32 0.125, %v1791_v17  ;;  %v1621_v20 = vpack.c.bf16 %v8551_v38, %v8551_v38  ;;  %v6686_v40 = vpack.i.bf16 %v8551_v38, %v8548_v8  ;;  %v8577_v17 = vperm.slane %v2089_v50, 0 }
 0x3cc   : > { %v8529_v43 = vadd.f32 %v2094_v49, %v2061_v10  ;;  %v2636_v24 = vunpack.c.l.b16 %v1621_v20 }
 0x3ce   : > { %v2171_v44 = vsel %vm2140_vm4, %v8529_v43, -inf  ;;  %v2638_v56 = vpack.c.b16 %v2636_v24, %v2635_v55 }
 0x3cf   : > { %2172 = vmax.xlane.f32.xlu1 %v2171_v44  ;;  %v1344_v34 = vpop.f32.mrf.mxu2 }
 0x3d0   : > { %2653 = vmatpush.bf16.msrb.mxu1 %v2638_v56  ;;  %v8599_v54 = vadd.f32 %v1344_v34, %v8396_v14 }
 0x3d1   : > { %v1793_v12 = vpop.f32.mrf.mxu3 }
 0x3d2   : > { %v2062_v5 = vmul.f32 0.125, %v1793_v12 }
 0x3d4   : > { %v8535_v35 = vadd.f32 %v2094_v49, %v2062_v5  ;;  %v1618_v49 = vpack.c.bf16 %v8543_v60, %v8543_v60  ;;  %v2088_v5 = vrot.slane %v8441_v28, 4 }
 0x3d6   : > { %v2174_v16 = vsel %vm2140_vm4, %v8535_v35, -inf  ;;  %v2633_v32 = vunpack.c.l.b16 %v1618_v49 }
 0x3d7   : > { %2175 = vmax.xlane.f32.xlu2 %v2174_v16  ;;  %v1346_v37 = vpop.f32.mrf.mxu2 }
 0x3d8   : > { %v2637_v18 = vpack.c.b16 %v2634_v51, %v2633_v32  ;;  %v8608_v51 = vadd.f32 %v1346_v37, %v8396_v14 }
 0x3d9   : > { %v1837_v36 = vpop.f32.mrf.mxu3 }
 0x3da   : > { %v2063_v23 = vmul.f32 0.125, %v1837_v36  ;;  %2654 = vmatpush.bf16.msrb.mxu1 %v2637_v18  ;;  %v1623_v50 = vpack.c.bf16 %v8608_v51, %v8608_v51 }
 0x3dc   : > { %v8540_v4 = vadd.f32 %v2095_v57, %v2063_v23 }
 0x3de   : > { %v2177_v52 = vsel %vm2140_vm4, %v8540_v4, -inf }
 0x3df   : > { %2178 = vmax.xlane.f32.xlu1 %v2177_v52  ;;  %v1349_v36 = vpop.f32.mrf.mxu2  ;;  %v8590_v52 = vperm.slane %v2088_v5, 0 }
 0x3e0   : > { %v8602_v24 = vadd.f32 %v1349_v36, %v8396_v14 }
 0x3e1   : > { %v1839_v11 = vpop.f32.mrf.mxu3 }
 0x3e2   : > { %v2064_v59 = vmul.f32 0.125, %v1839_v11 }
 0x3e4   : > { %v8566_v62 = vadd.f32 %v2095_v57, %v2064_v59 }
 0x3e6   : > { %v2180_v45 = vsel %vm2140_vm4, %v8566_v62, -inf }
 0x3e7   : > { %2181 = vmax.xlane.f32.xlu1 %v2180_v45  ;;  %v1351_v55 = vpop.f32.mrf.mxu2 }
 0x3e8   : > { %v8605_v32 = vadd.f32 %v1351_v55, %v8396_v14  ;;  %v6701_v14 = vpack.i.bf16 %v8608_v51, %v8599_v54 }
 0x3e9   : > { %v1842_v22 = vpop.f32.mrf.mxu3 }
 0x3ea   : > { %v2065_v46 = vmul.f32 0.125, %v1842_v22  ;;  %v1625_v34 = vpack.c.bf16 %v8605_v32, %v8605_v32 }
 0x3ec   : > { %v8570_v33 = vadd.f32 %v2095_v57, %v2065_v46  ;;  %v1622_v46 = vpack.c.bf16 %v8599_v54, %v8599_v54 }
 0x3ee   : > { %v2183_v15 = vsel %vm2140_vm4, %v8570_v33, -inf }
 0x3ef   : > { %2184 = vmax.xlane.f32.xlu1 %v2183_v15 }
 0x3f1   : > { %v1844_v53 = vpop.f32.mrf.mxu3 }
 0x3f2   : > { %v2066_v19 = vmul.f32 0.125, %v1844_v53  ;;  %v1939_v10 = vpop.f32.mrf.mxu0  ;;  %v2143_v44 = vpop.xlane.xlu1 %2142  ;;  %v2683_v53 = vunpack.c.l.b16 %v1625_v34  ;;  %v6696_v34 = vpack.i.bf16 %v8605_v32, %v8602_v24 }
 0x3f3   : > { %v2071_v26 = vmul.f32 0.125, %v1939_v10  ;;  %v2237_v31 = vsub.f32 %v8445_v7, %v2143_v44 }
 0x3f4   : > { %v8579_v12 = vadd.f32 %v2095_v57, %v2066_v19 }
 0x3f5   : > { %v8584_v16 = vadd.f32 %v8577_v17, %v2071_v26  ;;  %v2269_v57 = vmul.f32 1.442695, %v2237_v31  ;;  %v2680_v31 = vunpack.c.l.b16 %v1622_v46 }
 0x3f6   : > { %v2186_v47 = vsel %vm2140_vm4, %v8579_v12, -inf }
 0x3f7   : > { %2187 = vmax.xlane.f32.xlu1 %v2186_v47  ;;  %v2201_v23 = vsel %vm2140_vm4, %v8584_v16, -inf  ;;  %6706 = vpow2.f32 %v2269_v57  ;;  %v2681_v47 = vunpack.c.l.b16 %v1623_v50 }
 0x3f8   : > { %2202 = vmax.xlane.f32.xlu0 %v2201_v23 }
 0x3f9   : > { %v1888_v3 = vpop.f32.mrf.mxu3 }
 0x3fa   : > { %v2067_v11 = vmul.f32 0.125, %v1888_v3  ;;  %v1941_v49 = vpop.f32.mrf.mxu0  ;;  %v2146_v13 = vpop.xlane.xlu2 %2145  ;;  %v2684_v3 = vpack.c.b16 %v2681_v47, %v2680_v31 }
 0x3fb   : > { %v2238_v20 = vsub.f32 %v8449_v58, %v2146_v13  ;;  %v1624_v58 = vpack.c.bf16 %v8602_v24, %v8602_v24  ;;  %v2072_v10 = vmul.f32 0.125, %v1941_v49 }
 0x3fc   : > { %v8593_v7 = vadd.f32 %v8590_v52, %v2067_v11 }
 0x3fd   : > { %v2271_v56 = vmul.f32 1.442695, %v2238_v20  ;;  %v8620_v15 = vpop.eup %6706  ;;  %v2682_v37 = vunpack.c.l.b16 %v1624_v58  ;;  %v8630_v23 = vadd.f32 %v8577_v17, %v2072_v10 }
 0x3fe   : > { %v2189_v59 = vsel %vm2140_vm4, %v8593_v7, -inf  ;;  %v2333_v26 = vsel %vm2140_vm4, %v8620_v15, 0.0 }
 0x3ff   : > { %2190 = vmax.xlane.f32.xlu1 %v2189_v59  ;;  %6708 = vpow2.f32 %v2271_v56  ;;  %v2685_v44 = vpack.c.b16 %v2683_v53, %v2682_v37  ;;  %v2204_v59 = vsel %vm2140_vm4, %v8630_v23, -inf }
 0x401   : > { %v1890_v45 = vpop.f32.mrf.mxu3  ;;  %2700 = vmatpush.bf16.msra.mxu2 %v2685_v44 }
 0x402   : > { %v2068_v22 = vmul.f32 0.125, %v1890_v45  ;;  %v1944_v18 = vpop.f32.mrf.mxu0  ;;  %v2149_v57 = vpop.xlane.xlu0 %2148 }
 0x403   : > { %v2239_v20 = vsub.f32 %v8456_v41, %v2149_v57 }
 0x404   : > { %v8623_v19 = vadd.f32 %v8590_v52, %v2068_v22 }
 0x405   : > { %v8632_v11 = vpop.eup %6708  ;;  %2701 = vmatpush.bf16.msra.mxu2 %v2684_v3  ;;  %v2273_v22 = vmul.f32 1.442695, %v2239_v20 }
 0x406   : > { %v2192_v5 = vsel %vm2140_vm4, %v8623_v19, -inf  ;;  %v2336_v45 = vsel %vm2140_vm4, %v8632_v11, 0.0 }
 0x407   : > { %2334 = vadd.xlane.f32.xlu1 %v2333_v26  ;;  %2193 = vmax.xlane.f32.xlu2 %v2192_v5  ;;  %6710 = vpow2.f32 %v2273_v22 }
 0x409   : > { %v1893_v36 = vpop.f32.mrf.mxu3 }
 0x40a   : > { %v2152_v49 = vpop.xlane.xlu2 %2151  ;;  %v1946_v13 = vpop.f32.mrf.mxu0  ;;  %v2069_v55 = vmul.f32 0.125, %v1893_v36 }
 0x40b   : > { %v2240_v56 = vsub.f32 %v8461_v9, %v2152_v49  ;;  %v2074_v58 = vmul.f32 0.125, %v1946_v13 }
 0x40c   : > { %v8646_v53 = vadd.f32 %v8590_v52, %v2069_v55 }
 0x40d   : > { %v2275_v50 = vmul.f32 1.442695, %v2240_v56  ;;  %v8643_v41 = vadd.f32 %v8577_v17, %v2074_v58  ;;  %v8657_v36 = vpop.eup %6710  ;;  %v2090_v56 = vrot.slane %v8441_v28, 6 }
 0x40e   : > { %v2195_v26 = vsel %vm2140_vm4, %v8646_v53, -inf  ;;  %v2339_v20 = vsel %vm2140_vm4, %v8657_v36, 0.0 }
 0x40f   : > { %2205 = vmax.xlane.f32.xlu1 %v2204_v59  ;;  %2337 = vadd.xlane.f32.xlu2 %v2336_v45  ;;  %6712 = vpow2.f32 %v2275_v50  ;;  %v2210_v44 = vsel %vm2140_vm4, %v8643_v41, -inf  ;;  %v2073_v59 = vmul.f32 0.125, %v1944_v18  ;;  %v2098_v50 = vperm.slane %v2090_v56, 0 }
 0x411   : > { %v1895_v46 = vpop.f32.mrf.mxu3 }
 0x412   : > { %v2070_v37 = vmul.f32 0.125, %v1895_v46  ;;  %v1990_v9 = vpop.f32.mrf.mxu1  ;;  %v2155_v31 = vpop.xlane.xlu0 %2154  ;;  %v8670_v46 = vadd.f32 %v8577_v17, %v2073_v59 }
 0x413   : > { %v2241_v13 = vsub.f32 %v8472_v2, %v2155_v31 }
 0x414   : > { %v8649_v10 = vadd.f32 %v8590_v52, %v2070_v37 }
 0x415   : > { %v8660_v3 = vpop.eup %6712  ;;  %v2277_v45 = vmul.f32 1.442695, %v2241_v13 }
 0x416   : > { %v2198_v5 = vsel %vm2140_vm4, %v8649_v10, -inf  ;;  %v2342_v55 = vsel %vm2140_vm4, %v8660_v3, 0.0 }
 0x417   : > { %2211 = vmax.xlane.f32.xlu1 %v2210_v44  ;;  %2196 = vmax.xlane.f32.xlu2 %v2195_v26 }
 0x418   : > { %2199 = vmax.xlane.f32.xlu0 %v2198_v5  ;;  %v2207_v5 = vsel %vm2140_vm4, %v8670_v46, -inf }
 0x41a   : > { %v2158_v47 = vpop.xlane.xlu1 %2157  ;;  %v1992_v52 = vpop.f32.mrf.mxu1 }
 0x41b   : > { %v2242_v57 = vsub.f32 %v8477_v1, %v2158_v47 }
 0x41d   : > { %v2279_v49 = vmul.f32 1.442695, %v2242_v57 }
 0x41f   : > { %6714 = vpow2.f32 %v2279_v49  ;;  %2340 = vadd.xlane.f32.xlu2 %v2339_v20  ;;  %v2076_v49 = vmul.f32 0.125, %v1992_v52  ;;  %v2075_v20 = vmul.f32 0.125, %v1990_v9 }
 0x420   : > { %2343 = vadd.xlane.f32.xlu0 %v2342_v55  ;;  %6716 = vpow2.f32 %v2277_v45 }
 0x421   : > { %v8691_v45 = vadd.f32 %v2098_v50, %v2076_v49 }
 0x422   : > { %v2161_v58 = vpop.xlane.xlu0 %2160  ;;  %v1995_v1 = vpop.f32.mrf.mxu1 }
 0x423   : > { %v2243_v22 = vsub.f32 %v8484_v6, %v2161_v58  ;;  %v2077_v2 = vmul.f32 0.125, %v1995_v1  ;;  %v8693_v58 = vadd.f32 %v2098_v50, %v2075_v20  ;;  %v2216_v52 = vsel %vm2140_vm4, %v8691_v45, -inf }
 0x425   : > { %v8672_v37 = vpop.eup %6714  ;;  %v2281_v18 = vmul.f32 1.442695, %v2243_v22  ;;  %v8676_v26 = vadd.f32 %v2098_v50, %v2077_v2  ;;  %v2213_v9 = vsel %vm2140_vm4, %v8693_v58, -inf }
 0x426   : > { %v2348_v44 = vsel %vm2140_vm4, %v8672_v37, 0.0  ;;  %v8682_v31 = vpop.eup %6716 }
 0x427   : > { %6718 = vpow2.f32 %v2281_v18  ;;  %2349 = vadd.xlane.f32.xlu1 %v2348_v44  ;;  %v2219_v6 = vsel %vm2140_vm4, %v8676_v26, -inf  ;;  %v2345_v59 = vsel %vm2140_vm4, %v8682_v31, 0.0 }
 0x428   : > { %2208 = vmax.xlane.f32.xlu0 %v2207_v5  ;;  %2220 = vmax.xlane.f32.xlu2 %v2219_v6 }
 0x42a   : > { %v2164_v17 = vpop.xlane.xlu1 %2163  ;;  %v1997_v1 = vpop.f32.mrf.mxu1 }
 0x42b   : > { %v2244_v57 = vsub.f32 %v8490_v29, %v2164_v17  ;;  %v2078_v22 = vmul.f32 0.125, %v1997_v1 }
 0x42d   : > { %v8684_v47 = vpop.eup %6718  ;;  %v2283_v55 = vmul.f32 1.442695, %v2244_v57  ;;  %v8703_v17 = vadd.f32 %v2098_v50, %v2078_v22 }
 0x42e   : > { %v2351_v13 = vsel %vm2140_vm4, %v8684_v47, 0.0 }
 0x42f   : > { %2352 = vadd.xlane.f32.xlu1 %v2351_v13  ;;  %6720 = vpow2.f32 %v2283_v55  ;;  %v2222_v20 = vsel %vm2140_vm4, %v8703_v17, -inf }
 0x430   : > { %2346 = vadd.xlane.f32.xlu0 %v2345_v59 }
 0x432   : > { %v2167_v56 = vpop.xlane.xlu1 %2166 }
 0x433   : > { %v2245_v29 = vsub.f32 %v8498_v39, %v2167_v56  ;;  %v2091_v39 = vrot.slane %v8441_v28, 7 }
 0x435   : > { %v2285_v2 = vmul.f32 1.442695, %v2245_v29  ;;  %v8700_v5 = vpop.eup %6720  ;;  %v8710_v59 = vperm.slane %v2091_v39, 0 }
 0x436   : > { %v2354_v49 = vsel %vm2140_vm4, %v8700_v5, 0.0 }
 0x437   : > { %2217 = vmax.xlane.f32.xlu1 %v2216_v52  ;;  %6722 = vpow2.f32 %v2285_v2 }
 0x438   : > { %2214 = vmax.xlane.f32.xlu0 %v2213_v9  ;;  %v2041_v18 = vpop.f32.mrf.mxu2 }
 0x439   : > { %v2079_v13 = vmul.f32 0.125, %v2041_v18 }
 0x43a   : > { %v2170_v44 = vpop.xlane.xlu2 %2169 }
 0x43b   : > { %v2246_v6 = vsub.f32 %v8524_v63, %v2170_v44  ;;  %v8715_v28 = vadd.f32 %v8710_v59, %v2079_v13 }
 0x43d   : > { %v2287_v57 = vmul.f32 1.442695, %v2246_v6  ;;  %v8712_v63 = vpop.eup %6722  ;;  %v2225_v9 = vsel %vm2140_vm4, %v8715_v28, -inf }
 0x43e   : > { %v2357_v52 = vsel %vm2140_vm4, %v8712_v63, 0.0 }
 0x43f   : > { %6724 = vpow2.f32 %v2287_v57  ;;  %2355 = vadd.xlane.f32.xlu1 %v2354_v49 }
 0x440   : > { %2223 = vmax.xlane.f32.xlu0 %v2222_v20  ;;  %v2043_v50 = vpop.f32.mrf.mxu2 }
 0x441   : > { %v2080_v29 = vmul.f32 0.125, %v2043_v50 }
 0x442   : > { %v2173_v55 = vpop.xlane.xlu1 %2172 }
 0x443   : > { %v2247_v1 = vsub.f32 %v8529_v43, %v2173_v55  ;;  %v8727_v44 = vadd.f32 %v8710_v59, %v2080_v29 }
 0x445   : > { %v8717_v56 = vpop.eup %6724  ;;  %v2289_v2 = vmul.f32 1.442695, %v2247_v1  ;;  %v2228_v6 = vsel %vm2140_vm4, %v8727_v44, -inf }
 0x446   : > { %v2360_v22 = vsel %vm2140_vm4, %v8717_v56, 0.0 }
 0x447   : > { %2358 = vadd.xlane.f32.xlu1 %v2357_v52  ;;  %2361 = vadd.xlane.f32.xlu2 %v2360_v22  ;;  %6726 = vpow2.f32 %v2289_v2 }
 0x448   : > { %2226 = vmax.xlane.f32.xlu0 %v2225_v9  ;;  %v2046_v39 = vpop.f32.mrf.mxu2 }
 0x44a   : > { %v2176_v18 = vpop.xlane.xlu2 %2175 }
 0x44b   : > { %v2248_v43 = vsub.f32 %v8535_v35, %v2176_v18 }
 0x44d   : > { %v2291_v57 = vmul.f32 1.442695, %v2248_v43  ;;  %v8732_v13 = vpop.eup %6726 }
 0x44e   : > { %v2363_v20 = vsel %vm2140_vm4, %v8732_v13, 0.0 }
 0x44f   : > { %2229 = vmax.xlane.f32.xlu1 %v2228_v6  ;;  %6728 = vpow2.f32 %v2291_v57 }
 0x450   : > { %v2048_v1 = vpop.f32.mrf.mxu2 }
 0x451   : > { %v2082_v29 = vmul.f32 0.125, %v2048_v1 }
 0x452   : > { %v2179_v49 = vpop.xlane.xlu1 %2178 }
 0x453   : > { %v2249_v35 = vsub.f32 %v8540_v4, %v2179_v49  ;;  %v8746_v2 = vadd.f32 %v8710_v59, %v2082_v29 }
 0x455   : > { %v8736_v50 = vpop.eup %6728  ;;  %v2293_v22 = vmul.f32 1.442695, %v2249_v35  ;;  %v2234_v43 = vsel %vm2140_vm4, %v8746_v2, -inf }
 0x456   : > { %v2366_v52 = vsel %vm2140_vm4, %v8736_v50, 0.0 }
 0x457   : > { %2364 = vadd.xlane.f32.xlu1 %v2363_v20  ;;  %6730 = vpow2.f32 %v2293_v22 }
 0x45a   : > { %v2182_v55 = vpop.xlane.xlu1 %2181 }
 0x45b   : > { %v2250_v18 = vsub.f32 %v8566_v62, %v2182_v55 }
 0x45c   : > { %6682 = vrot.lane.b32.xlu0 %v6681_v48, %s7461_s23 }
 0x45d   : > { %v2295_v21 = vmul.f32 1.442695, %v2250_v18  ;;  %v8753_v48 = vpop.eup %6730 }
 0x45e   : > { %v2369_v4 = vsel %vm2140_vm4, %v8753_v48, 0.0 }
 0x45f   : > { %2367 = vadd.xlane.f32.xlu1 %v2366_v52  ;;  %6732 = vpow2.f32 %v2295_v21  ;;  %v2081_v52 = vmul.f32 0.125, %v2046_v39 }
 0x462   : > { %v2185_v9 = vpop.xlane.xlu1 %2184 }
 0x465   : > { %v8757_v57 = vpop.eup %6732 }
 0x466   : > { %v2372_v20 = vsel %vm2140_vm4, %v8757_v57, 0.0 }
 0x467   : > { %2235 = vmax.xlane.f32.xlu1 %v2234_v43  ;;  %v8768_v43 = vadd.f32 %v8710_v59, %v2081_v52 }
 0x46a   : > { %v8751_v61 = vpop.xlane.xlu1 %2187 }
 0x46f   : > { %2370 = vadd.xlane.f32.xlu1 %v2369_v4 }
 0x472   : > { %v2191_v6 = vpop.xlane.xlu1 %2190 }
 0x473   : > { %v2253_v49 = vsub.f32 %v8593_v7, %v2191_v6  ;;  %v2203_v7 = vpop.xlane.xlu0 %2202 }
 0x475   : > { %v2301_v62 = vmul.f32 1.442695, %v2253_v49 }
 0x477   : > { %6734 = vpow2.f32 %v2301_v62  ;;  %2373 = vadd.xlane.f32.xlu1 %v2372_v20  ;;  %v2231_v62 = vsel %vm2140_vm4, %v8768_v43, -inf }
 0x47a   : > { %v2335_v55 = vpop.xlane.xlu1 %2334  ;;  %v2194_v1 = vpop.xlane.xlu2 %2193 }
 0x47b   : > { %v2254_v35 = vsub.f32 %v8623_v19, %v2194_v1  ;;  %6736 = vrcp.f32 %v2335_v55  ;;  %v2257_v19 = vsub.f32 %v8584_v16, %v2203_v7  ;;  %v2251_v1 = vsub.f32 %v8570_v33, %v2185_v9 }
 0x47d   : > { %v8763_v29 = vpop.eup %6734  ;;  %v2303_v18 = vmul.f32 1.442695, %v2254_v35  ;;  %v2309_v55 = vmul.f32 1.442695, %v2257_v19 }
 0x47e   : > { %v2381_v22 = vsel %vm2140_vm4, %v8763_v29, 0.0 }
 0x47f   : > { %2382 = vadd.xlane.f32.xlu2 %v2381_v22 }
 0x481   : > { %v6737_v6 = vpop.eup %6736 }
 0x482   : > { %v2206_v21 = vpop.xlane.xlu1 %2205  ;;  %v2338_v4 = vpop.xlane.xlu2 %2337  ;;  %v2461_v20 = vmul.f32 %v6737_v6, %v8620_v15 }
 0x483   : > { %v2258_v49 = vsub.f32 %v8630_v23, %v2206_v21  ;;  %6738 = vrcp.f32 %v2338_v4  ;;  %v2297_v4 = vmul.f32 1.442695, %v2251_v1 }
 0x484   : > { %6740 = vpow2.f32 %v2303_v18  ;;  %v2493_v52 = vpack.c.bf16 %v2461_v20, %v2461_v20 }
 0x485   : > { %v2311_v39 = vmul.f32 1.442695, %v2258_v49 }
 0x486   : > { %2232 = vmax.xlane.f32.xlu0 %v2231_v62  ;;  %v2529_v33 = vunpack.c.l.b16 %v2493_v52 }
 0x487   : > { %6742 = vpow2.f32 %v2311_v39 }
 0x488   : > { %6744 = vpow2.f32 %v2309_v55 }
 0x489   : > { %v6739_v59 = vpop.eup %6738 }
 0x48a   : > { %v8776_v35 = vpop.eup %6740  ;;  %v2462_v23 = vmul.f32 %v6739_v59, %v8632_v11  ;;  %v8779_v22 = vpop.xlane.xlu2 %2196  ;;  %v2252_v59 = vsub.f32 %v8579_v12, %v8751_v61 }
 0x48b   : > { %v2200_v16 = vpop.xlane.xlu0 %2199  ;;  %v2212_v7 = vpop.xlane.xlu1 %2211  ;;  %v2384_v6 = vsel %vm2140_vm4, %v8776_v35, 0.0 }
 0x48c   : > { %v2494_v18 = vpack.c.bf16 %v2462_v23, %v2462_v23  ;;  %v2256_v21 = vsub.f32 %v8649_v10, %v2200_v16  ;;  %v2260_v19 = vsub.f32 %v8643_v41, %v2212_v7  ;;  %v2299_v23 = vmul.f32 1.442695, %v2252_v59 }
 0x48d   : > { %v8782_v15 = vpop.eup %6742 }
 0x48e   : > { %v2530_v9 = vunpack.c.l.b16 %v2494_v18  ;;  %v2307_v49 = vmul.f32 1.442695, %v2256_v21  ;;  %2385 = vadd.xlane.f32.xlu0 %v2384_v6  ;;  %v2396_v11 = vsel %vm2140_vm4, %v8782_v15, 0.0  ;;  %v8789_v62 = vpop.eup %6744  ;;  %v2315_v20 = vmul.f32 1.442695, %v2260_v19 }
 0x48f   : > { %2397 = vadd.xlane.f32.xlu1 %v2396_v11  ;;  %v2393_v1 = vsel %vm2140_vm4, %v8789_v62, 0.0 }
 0x490   : > { %v2533_v39 = vpack.c.b16 %v2530_v9, %v2529_v33  ;;  %6746 = vpow2.f32 %v2307_v49 }
 0x491   : > { %6748 = vpow2.f32 %v2297_v4 }
 0x492   : > { %5904 = vmatmul.msk.bf16.vlgmr.msrb.gmra.mxu3 %vm2140_vm4, %v2533_v39  ;;  %v2341_v10 = vpop.xlane.xlu2 %2340 }
 0x493   : > { %6750 = vrcp.f32 %v2341_v10  ;;  %v2344_v55 = vpop.xlane.xlu0 %2343 }
 0x494   : > { %6752 = vrcp.f32 %v2344_v55 }
 0x495   : > { %6754 = vpow2.f32 %v2315_v20 }
 0x496   : > { %2394 = vadd.xlane.f32.xlu0 %v2393_v1  ;;  %v8796_v41 = vpop.eup %6746  ;;  %6756 = vpow2.f32 %v2299_v23 }
 0x497   : > { %6677 = vrot.lane.b32.xlu2 %v6676_v27, %s7461_s23  ;;  %v8802_v52 = vpop.eup %6748  ;;  %v2390_v16 = vsel %vm2140_vm4, %v8796_v41, 0.0 }
 0x498   : > { %2391 = vadd.xlane.f32.xlu1 %v2390_v16  ;;  %v2375_v27 = vsel %vm2140_vm4, %v8802_v52, 0.0 }
 0x499   : > { %v6751_v12 = vpop.eup %6750 }
 0x49a   : > { %v6753_v61 = vpop.eup %6752  ;;  %v2350_v18 = vpop.xlane.xlu1 %2349  ;;  %v2463_v7 = vmul.f32 %v6751_v12, %v8657_v36 }
 0x49b   : > { %v2209_v21 = vpop.xlane.xlu0 %2208  ;;  %v2464_v4 = vmul.f32 %v6753_v61, %v8660_v3  ;;  %v2221_v6 = vpop.xlane.xlu2 %2220  ;;  %6758 = vrcp.f32 %v2350_v18 }
 0x49c   : > { %v2495_v33 = vpack.c.bf16 %v2463_v7, %v2463_v7  ;;  %v8808_v0 = vpop.eup %6754  ;;  %v2263_v30 = vsub.f32 %v8676_v26, %v2221_v6 }
 0x49d   : > { %v2496_v9 = vpack.c.bf16 %v2464_v4, %v2464_v4  ;;  %v2402_v36 = vsel %vm2140_vm4, %v8808_v0, 0.0  ;;  %v8815_v39 = vpop.eup %6756 }
 0x49e   : > { %2376 = vadd.xlane.f32.xlu0 %v2375_v27  ;;  %v2531_v49 = vunpack.c.l.b16 %v2495_v33  ;;  %v2321_v11 = vmul.f32 1.442695, %v2263_v30  ;;  %v2378_v55 = vsel %vm2140_vm4, %v8815_v39, 0.0  ;;  %v2255_v33 = vsub.f32 %v8646_v53, %v8779_v22 }
 0x49f   : > { %v2532_v19 = vunpack.c.l.b16 %v2496_v9 }
 0x4a0   : > { %2403 = vadd.xlane.f32.xlu1 %v2402_v36  ;;  %6760 = vpow2.f32 %v2321_v11 }
 0x4a1   : > { %v2534_v3 = vpack.c.b16 %v2532_v19, %v2531_v49  ;;  %v6759_v20 = vpop.eup %6758  ;;  %v2305_v49 = vmul.f32 1.442695, %v2255_v33  ;;  %v2259_v19 = vsub.f32 %v8670_v46, %v2209_v21 }
 0x4a2   : > { %v2353_v10 = vpop.xlane.xlu1 %2352  ;;  %v2466_v59 = vmul.f32 %v6759_v20, %v8672_v37 }
 0x4a3   : > { %5905 = vmatmul.msk.bf16.gmra.mxu3 %vm2140_vm4, %v2534_v3  ;;  %v2347_v26 = vpop.xlane.xlu0 %2346  ;;  %v2313_v3 = vmul.f32 1.442695, %v2259_v19 }
 0x4a4   : > { %6762 = vrcp.f32 %v2347_v26  ;;  %v2498_v12 = vpack.c.bf16 %v2466_v59, %v2466_v59 }
 0x4a5   : > { %6764 = vrcp.f32 %v2353_v10 }
 0x4a6   : > { %2379 = vadd.xlane.f32.xlu0 %v2378_v55  ;;  %v8821_v1 = vpop.eup %6760  ;;  %v2577_v37 = vunpack.c.l.b16 %v2498_v12 }
 0x4a7   : > { %v2411_v6 = vsel %vm2140_vm4, %v8821_v1, 0.0 }
 0x4aa   : > { %v6763_v23 = vpop.eup %6762  ;;  %v2218_v16 = vpop.xlane.xlu1 %2217 }
 0x4ab   : > { %v2465_v61 = vmul.f32 %v6763_v23, %v8682_v31  ;;  %v2215_v18 = vpop.xlane.xlu0 %2214  ;;  %v6765_v31 = vpop.eup %6764  ;;  %v2262_v46 = vsub.f32 %v8691_v45, %v2218_v16 }
 0x4ac   : > { %v2261_v7 = vsub.f32 %v8693_v58, %v2215_v18  ;;  %v2467_v36 = vmul.f32 %v6765_v31, %v8684_v47 }
 0x4ad   : > { %v2497_v4 = vpack.c.bf16 %v2465_v61, %v2465_v61 }
 0x4ae   : > { %v2317_v30 = vmul.f32 1.442695, %v2261_v7  ;;  %2412 = vadd.xlane.f32.xlu0 %v2411_v6  ;;  %v2499_v55 = vpack.c.bf16 %v2467_v36, %v2467_v36 }
 0x4af   : > { %v2576_v27 = vunpack.c.l.b16 %v2497_v4  ;;  %v2319_v4 = vmul.f32 1.442695, %v2262_v46 }
 0x4b0   : > { %6766 = vpow2.f32 %v2317_v30  ;;  %v2578_v47 = vunpack.c.l.b16 %v2499_v55 }
 0x4b1   : > { %v2580_v9 = vpack.c.b16 %v2577_v37, %v2576_v27 }
 0x4b2   : > { %v2356_v11 = vpop.xlane.xlu1 %2355 }
 0x4b3   : > { %6768 = vrcp.f32 %v2356_v11  ;;  %5906 = vmatmul.msk.bf16.vlgmr.msra.gmra.mxu0 %vm2140_vm4, %v2580_v9  ;;  %v2224_v55 = vpop.xlane.xlu0 %2223 }
 0x4b4   : > { %6770 = vpow2.f32 %v2305_v49 }
 0x4b6   : > { %v8830_v58 = vpop.eup %6766 }
 0x4b7   : > { %v2405_v53 = vsel %vm2140_vm4, %v8830_v58, 0.0 }
 0x4b8   : > { %2406 = vadd.xlane.f32.xlu1 %v2405_v53 }
 0x4b9   : > { %v6769_v22 = vpop.eup %6768 }
 0x4ba   : > { %v2359_v10 = vpop.xlane.xlu1 %2358  ;;  %v2362_v26 = vpop.xlane.xlu2 %2361  ;;  %v2468_v20 = vmul.f32 %v6769_v22, %v8700_v5 }
 0x4bb   : > { %6772 = vrcp.f32 %v2359_v10  ;;  %v8837_v59 = vpop.eup %6770 }
 0x4bc   : > { %6774 = vrcp.f32 %v2362_v26  ;;  %v2500_v23 = vpack.c.bf16 %v2468_v20, %v2468_v20  ;;  %v2387_v12 = vsel %vm2140_vm4, %v8837_v59, 0.0 }
 0x4bd   : > { %6776 = vpow2.f32 %v2313_v3 }
 0x4be   : > { %v2579_v21 = vunpack.c.l.b16 %v2500_v23  ;;  %6778 = vpow2.f32 %v2319_v4 }
 0x4c0   : > { %2388 = vadd.xlane.f32.xlu2 %v2387_v12  ;;  %v2581_v61 = vpack.c.b16 %v2579_v21, %v2578_v47 }
 0x4c1   : > { %v6773_v18 = vpop.eup %6772 }
 0x4c2   : > { %v6775_v7 = vpop.eup %6774  ;;  %v2469_v5 = vmul.f32 %v6773_v18, %v8712_v63  ;;  %6697 = vrot.lane.b32.xlu0 %v6696_v34, %s7461_s23  ;;  %v2230_v6 = vpop.xlane.xlu1 %2229 }
 0x4c3   : > { %v2470_v45 = vmul.f32 %v6775_v7, %v8717_v56  ;;  %5907 = vmatmul.msk.bf16.gmra.mxu0 %vm2140_vm4, %v2581_v61  ;;  %v8849_v16 = vpop.eup %6776  ;;  %v2266_v19 = vsub.f32 %v8727_v44, %v2230_v6  ;;  %v2264_v44 = vsub.f32 %v8703_v17, %v2224_v55 }
 0x4c4   : > { %v2501_v33 = vpack.c.bf16 %v2469_v5, %v2469_v5  ;;  %v2399_v63 = vsel %vm2140_vm4, %v8849_v16, 0.0  ;;  %v8854_v24 = vpop.eup %6778 }
 0x4c5   : > { %v2502_v30 = vpack.c.bf16 %v2470_v45, %v2470_v45  ;;  %v2408_v32 = vsel %vm2140_vm4, %v8854_v24, 0.0  ;;  %v2327_v10 = vmul.f32 1.442695, %v2266_v19  ;;  %v2323_v47 = vmul.f32 1.442695, %v2264_v44 }
 0x4c6   : > { %v2623_v37 = vunpack.c.l.b16 %v2501_v33 }
 0x4c7   : > { %v2624_v27 = vunpack.c.l.b16 %v2502_v30 }
 0x4c8   : > { %2400 = vadd.xlane.f32.xlu2 %v2399_v63 }
 0x4c9   : > { %v2627_v9 = vpack.c.b16 %v2624_v27, %v2623_v37 }
 0x4ca   : > { %v2365_v49 = vpop.xlane.xlu1 %2364 }
 0x4cb   : > { %5908 = vmatmul.msk.bf16.vlgmr.msrb.gmra.mxu1 %vm2140_vm4, %v2627_v9  ;;  %6780 = vrcp.f32 %v2365_v49 }
 0x4d0   : > { %2409 = vadd.xlane.f32.xlu2 %v2408_v32 }
 0x4d1   : > { %6687 = vrot.lane.b32.xlu1 %v6686_v40, %s7461_s23  ;;  %v6781_v56 = vpop.eup %6780 }
 0x4d2   : > { %v2368_v34 = vpop.xlane.xlu1 %2367  ;;  %v2471_v11 = vmul.f32 %v6781_v56, %v8732_v13  ;;  %v2227_v13 = vpop.xlane.xlu0 %2226 }
 0x4d3   : > { %6782 = vrcp.f32 %v2368_v34  ;;  %v2265_v32 = vsub.f32 %v8715_v28, %v2227_v13 }
 0x4d4   : > { %v2503_v36 = vpack.c.bf16 %v2471_v11, %v2471_v11  ;;  %6784 = vpow2.f32 %v2327_v10 }
 0x4d5   : > { %v2325_v10 = vmul.f32 1.442695, %v2265_v32 }
 0x4d6   : > { %v2625_v26 = vunpack.c.l.b16 %v2503_v36 }
 0x4d9   : > { %v6783_v31 = vpop.eup %6782 }
 0x4da   : > { %v2472_v53 = vmul.f32 %v6783_v31, %v8736_v50  ;;  %v8865_v22 = vpop.xlane.xlu1 %2235  ;;  %v8868_v40 = vpop.eup %6784 }
 0x4db   : > { %v2420_v46 = vsel %vm2140_vm4, %v8868_v40, 0.0  ;;  %v6683_v61 = vpop.permute.xlu0 %6682 }
 0x4dc   : > { %v2504_v3 = vpack.c.bf16 %v2472_v53, %v2472_v53  ;;  %v6685_v6 = vunpack.i.h.bf16 %v6683_v61  ;;  %v6684_v45 = vunpack.i.l.bf16 %v6683_v61 }
 0x4de   : > { %v2626_v20 = vunpack.c.l.b16 %v2504_v3  ;;  %v1630_v63 = vpack.c.bf16 %v6684_v45, %v6684_v45 }
 0x4e0   : > { %v2628_v8 = vpack.c.b16 %v2626_v20, %v2625_v26  ;;  %v2774_v31 = vunpack.c.l.b16 %v1630_v63  ;;  %v2268_v20 = vsub.f32 %v8746_v2, %v8865_v22 }
 0x4e2   : > { %v2371_v38 = vpop.xlane.xlu1 %2370  ;;  %5909 = vmatmul.msk.bf16.gmra.mxu1 %vm2140_vm4, %v2628_v8 }
 0x4e3   : > { %6786 = vrcp.f32 %v2371_v38  ;;  %v2331_v38 = vmul.f32 1.442695, %v2268_v20 }
 0x4e8   : > { %6692 = vrot.lane.b32.xlu2 %v6691_v42, %s7461_s23 }
 0x4e9   : > { %v6787_v23 = vpop.eup %6786 }
 0x4ea   : > { %v2374_v50 = vpop.xlane.xlu1 %2373  ;;  %v2473_v21 = vmul.f32 %v6787_v23, %v8753_v48 }
 0x4eb   : > { %6788 = vrcp.f32 %v2374_v50 }
 0x4ec   : > { %2421 = vadd.xlane.f32.xlu0 %v2420_v46  ;;  %6790 = vpow2.f32 %v2323_v47  ;;  %v2505_v18 = vpack.c.bf16 %v2473_v21, %v2473_v21 }
 0x4ee   : > { %v2670_v17 = vunpack.c.l.b16 %v2505_v18 }
 0x4f1   : > { %v6789_v12 = vpop.eup %6788 }
 0x4f2   : > { %v2474_v60 = vmul.f32 %v6789_v12, %v8757_v57  ;;  %v2383_v25 = vpop.xlane.xlu2 %2382  ;;  %v8879_v4 = vpop.eup %6790  ;;  %v1631_v57 = vpack.c.bf16 %v6685_v6, %v6685_v6 }
 0x4f3   : > { %v2414_v30 = vsel %vm2140_vm4, %v8879_v4, 0.0  ;;  %6792 = vrcp.f32 %v2383_v25 }
 0x4f4   : > { %v2506_v42 = vpack.c.bf16 %v2474_v60, %v2474_v60  ;;  %v2775_v11 = vunpack.c.l.b16 %v1631_v57 }
 0x4f6   : > { %v2671_v7 = vunpack.c.l.b16 %v2506_v42  ;;  %v2778_v28 = vpack.c.b16 %v2775_v11, %v2774_v31  ;;  %v6322_v11 = vld [vmem:[%s7738_s8 + $0x8] sm:$0xff] }
 0x4f8   : > { %v2674_v5 = vpack.c.b16 %v2671_v7, %v2670_v17 }
 0x4f9   : > { %v8881_v33 = vpop.xlane.xlu0 %2232  ;;  %v6793_v53 = vpop.eup %6792 }
 0x4fa   : > { %5910 = vmatmul.msk.bf16.vlgmr.msra.gmra.mxu2 %vm2140_vm4, %v2674_v5  ;;  %v6678_v48 = vpop.permute.xlu2 %6677  ;;  %v2477_v26 = vmul.f32 %v6793_v53, %v8763_v29  ;;  %v2267_v25 = vsub.f32 %v8768_v43, %v8881_v33 }
 0x4fb   : > { %v6680_v37 = vunpack.i.h.bf16 %v6678_v48  ;;  %v6679_v27 = vunpack.i.l.bf16 %v6678_v48  ;;  %2415 = vadd.xlane.f32.xlu1 %v2414_v30 }
 0x4fc   : > { %v2509_v51 = vpack.c.bf16 %v2477_v26, %v2477_v26  ;;  %v2329_v7 = vmul.f32 1.442695, %v2267_v25 }
 0x4fd   : > { %v1633_v9 = vpack.c.bf16 %v6680_v37, %v6680_v37  ;;  %v1632_v49 = vpack.c.bf16 %v6679_v27, %v6679_v27 }
 0x4fe   : > { %v2717_v50 = vunpack.c.l.b16 %v2509_v51 }
 0x4ff   : > { %v2777_v34 = vunpack.c.l.b16 %v1633_v9  ;;  %v2776_v56 = vunpack.c.l.b16 %v1632_v49  ;;  %v6324_v9 = vld [vmem:[%s7738_s8 + $0x18] sm:$0xff] }
 0x500   : > { %6702 = vrot.lane.b32.xlu0 %v6701_v14, %s7461_s23 }
 0x501   : > { %v2779_v19 = vpack.c.b16 %v2777_v34, %v2776_v56  ;;  %v2386_v36 = vpop.xlane.xlu0 %2385 }
 0x502   : > { %6794 = vrcp.f32 %v2386_v36  ;;  %v2398_v3 = vpop.xlane.xlu1 %2397 }
 0x503   : > { %2794 = vmatpush.bf16.msrb.mxu0 %v2779_v19  ;;  %6796 = vrcp.f32 %v2398_v3 }
 0x504   : > { %6798 = vpow2.f32 %v2325_v10  ;;  %v6321_v10 = vld [vmem:[%s7738_s8] sm:$0xff] }
 0x507   : > { %2795 = vmatpush.bf16.msrb.mxu0 %v2778_v28 }
 0x508   : > { %v6795_v54 = vpop.eup %6794 }
 0x509   : > { %v2478_v14 = vmul.f32 %v6795_v54, %v8776_v35  ;;  %v2395_v55 = vpop.xlane.xlu0 %2394  ;;  %v6797_v8 = vpop.eup %6796 }
 0x50a   : > { %6800 = vrcp.f32 %v2395_v55  ;;  %v8895_v13 = vpop.eup %6798  ;;  %v2482_v29 = vmul.f32 %v6797_v8, %v8782_v15 }
 0x50b   : > { %v2510_v44 = vpack.c.bf16 %v2478_v14, %v2478_v14  ;;  %6802 = vpow2.f32 %v2331_v38  ;;  %v2417_v2 = vsel %vm2140_vm4, %v8895_v13, 0.0  ;;  %v2392_v57 = vpop.xlane.xlu1 %2391  ;;  %3082 = vmatpush.bf16.msra.mxu0 %v6324_v9 }
 0x50c   : > { %v2514_v22 = vpack.c.bf16 %v2482_v29, %v2482_v29 }
 0x50d   : > { %v2718_v23 = vunpack.c.l.b16 %v2510_v44 }
 0x50e   : > { %v2765_v18 = vunpack.c.l.b16 %v2514_v22 }
 0x50f   : > { %v2721_v46 = vpack.c.b16 %v2718_v23, %v2717_v50 }
 0x510   : > { %v6801_v47 = vpop.eup %6800 }
 0x511   : > { %v2481_v35 = vmul.f32 %v6801_v47, %v8789_v62  ;;  %5912 = vmatmul.msk.bf16.vlgmr.msra.gmra.mxu3 %vm2140_vm4, %v2721_v46  ;;  %v2377_v21 = vpop.xlane.xlu0 %2376  ;;  %2418 = vadd.xlane.f32.xlu2 %v2417_v2  ;;  %v8902_v61 = vpop.eup %6802 }
 0x512   : > { %6804 = vrcp.f32 %v2377_v21  ;;  %v2426_v42 = vsel %vm2140_vm4, %v8902_v61, 0.0 }
 0x513   : > { %v2513_v12 = vpack.c.bf16 %v2481_v35, %v2481_v35  ;;  %v2404_v49 = vpop.xlane.xlu1 %2403 }
 0x515   : > { %v2764_v60 = vunpack.c.l.b16 %v2513_v12 }
 0x517   : > { %v2768_v15 = vpack.c.b16 %v2765_v18, %v2764_v60 }
 0x518   : > { %v6805_v62 = vpop.eup %6804 }
 0x519   : > { %v2380_v17 = vpop.xlane.xlu0 %2379  ;;  %5914 = vmatmul.msk.bf16.vlgmr.msrb.gmra.mxu0 %vm2140_vm4, %v2768_v15  ;;  %2427 = vadd.xlane.f32.xlu2 %v2426_v42  ;;  %v2475_v5 = vmul.f32 %v6805_v62, %v8802_v52 }
 0x51a   : > { %6806 = vrcp.f32 %v2380_v17 }
 0x51b   : > { %6808 = vpow2.f32 %v2329_v7  ;;  %v2507_v48 = vpack.c.bf16 %v2475_v5, %v2475_v5 }
 0x51c   : > { %6810 = vrcp.f32 %v2392_v57 }
 0x51d   : > { %v2672_v33 = vunpack.c.l.b16 %v2507_v48 }
 0x520   : > { %v6807_v6 = vpop.eup %6806 }
 0x521   : > { %v2476_v45 = vmul.f32 %v6807_v6, %v8815_v39  ;;  %v8911_v37 = vpop.eup %6808  ;;  %v8916_v52 = vpop.xlane.xlu0 %2412  ;;  %v6323_v39 = vld [vmem:[%s7738_s8 + $0x10] sm:$0xff] }
 0x522   : > { %v2423_v63 = vsel %vm2140_vm4, %v8911_v37, 0.0  ;;  %3083 = vmatpush.bf16.msra.mxu0 %v6323_v39  ;;  %v6811_v34 = vpop.eup %6810 }
 0x523   : > { %v2508_v43 = vpack.c.bf16 %v2476_v45, %v2476_v45  ;;  %v2480_v36 = vmul.f32 %v6811_v34, %v8796_v41 }
 0x525   : > { %v2673_v30 = vunpack.c.l.b16 %v2508_v43  ;;  %v2512_v54 = vpack.c.bf16 %v2480_v36, %v2480_v36 }
 0x526   : > { %3084 = vmatpush.bf16.msra.mxu0 %v6322_v11 }
 0x527   : > { %v2675_v27 = vpack.c.b16 %v2673_v30, %v2672_v33  ;;  %v2720_v50 = vunpack.c.l.b16 %v2512_v54 }
 0x529   : > { %5911 = vmatmul.msk.bf16.gmra.mxu2 %vm2140_vm4, %v2675_v27 }
 0x52a   : > { %2424 = vadd.xlane.f32.xlu0 %v2423_v63  ;;  %3085 = vmatpush.bf16.msra.mxu0 %v6321_v10 }
 0x52b   : > { %v2407_v51 = vpop.xlane.xlu1 %2406 }
 0x533   : > { %v2389_v32 = vpop.xlane.xlu2 %2388 }
 0x534   : > { %6812 = vrcp.f32 %v2389_v32  ;;  %v6698_v56 = vpop.permute.xlu0 %6697 }
 0x535   : > { %v6700_v31 = vunpack.i.h.bf16 %v6698_v56  ;;  %v6699_v19 = vunpack.i.l.bf16 %v6698_v56  ;;  %6814 = vrcp.f32 %v2404_v49 }
 0x537   : > { %v1641_v53 = vpack.c.bf16 %v6700_v31, %v6700_v31  ;;  %v1640_v3 = vpack.c.bf16 %v6699_v19, %v6699_v19  ;;  %v2609_v19 = vpop.f32.mrf.mxu0 }
 0x539   : > { %v2871_v26 = vunpack.c.l.b16 %v1641_v53  ;;  %v2870_v28 = vunpack.c.l.b16 %v1640_v3 }
 0x53a   : > { %v6813_v20 = vpop.eup %6812 }
 0x53b   : > { %v2479_v14 = vmul.f32 %v6813_v20, %v8837_v59  ;;  %v2873_v55 = vpack.c.b16 %v2871_v26, %v2870_v28  ;;  %v2401_v8 = vpop.xlane.xlu2 %2400  ;;  %v6815_v38 = vpop.eup %6814 }
 0x53c   : > { %6816 = vrcp.f32 %v2401_v8  ;;  %v2484_v41 = vmul.f32 %v6815_v38, %v8808_v0  ;;  %v2562_v0 = vpop.f32.mrf.mxu3 }
 0x53d   : > { %v2511_v44 = vpack.c.bf16 %v2479_v14, %v2479_v14  ;;  %2888 = vmatpush.bf16.msrb.mxu2 %v2873_v55  ;;  %6818 = vrcp.f32 %v2407_v51 }
 0x53e   : > { %v2516_v59 = vpack.c.bf16 %v2484_v41, %v2484_v41 }
 0x53f   : > { %v2719_v23 = vunpack.c.l.b16 %v2511_v44  ;;  %v2611_v28 = vpop.f32.mrf.mxu0 }
 0x540   : > { %v2767_v25 = vunpack.c.l.b16 %v2516_v59  ;;  %v2919_v41 = vpack.c.bf16 %v2611_v28, %v2609_v19 }
 0x541   : > { %v2722_v29 = vpack.c.b16 %v2720_v50, %v2719_v23 }
 0x542   : > { %v6817_v46 = vpop.eup %6816 }
 0x543   : > { %v6688_v47 = vpop.permute.xlu1 %6687  ;;  %v2410_v2 = vpop.xlane.xlu2 %2409  ;;  %5913 = vmatmul.msk.bf16.gmra.mxu3 %vm2140_vm4, %v2722_v29  ;;  %v2483_v22 = vmul.f32 %v6817_v46, %v8849_v16 }
 0x544   : > { %v6690_v35 = vunpack.i.h.bf16 %v6688_v47  ;;  %v6689_v21 = vunpack.i.l.bf16 %v6688_v47  ;;  %6820 = vrcp.f32 %v2410_v2  ;;  %v6819_v42 = vpop.eup %6818  ;;  %v2564_v32 = vpop.f32.mrf.mxu3 }
 0x545   : > { %v2515_v12 = vpack.c.bf16 %v2483_v22, %v2483_v22  ;;  %v2485_v45 = vmul.f32 %v6819_v42, %v8830_v58  ;;  %6822 = vrcp.f32 %v8916_v52 }
 0x546   : > { %v1637_v18 = vpack.c.bf16 %v6690_v35, %v6690_v35  ;;  %v1636_v60 = vpack.c.bf16 %v6689_v21, %v6689_v21 }
 0x547   : > { %v2766_v15 = vunpack.c.l.b16 %v2515_v12  ;;  %v2517_v63 = vpack.c.bf16 %v2485_v45, %v2485_v45  ;;  %v6325_v45 = vld [vmem:[%s7738_s8 + $0x20] sm:$0xff] }
 0x548   : > { %v2824_v17 = vunpack.c.l.b16 %v1637_v18  ;;  %v2823_v62 = vunpack.c.l.b16 %v1636_v60  ;;  %v2656_v12 = vpop.f32.mrf.mxu1 }
 0x549   : > { %v2769_v7 = vpack.c.b16 %v2767_v25, %v2766_v15  ;;  %v2811_v56 = vunpack.c.l.b16 %v2517_v63  ;;  %v6328_v25 = vld [vmem:[%s7738_s8 + $0x38] sm:$0xff] }
 0x54a   : > { %v6821_v5 = vpop.eup %6820  ;;  %v2826_v6 = vpack.c.b16 %v2824_v17, %v2823_v62  ;;  %6417 = vmatpush.bf16.msrb.mxu3 %v6328_v25 }
 0x54b   : > { %v2486_v16 = vmul.f32 %v6821_v5, %v8854_v24  ;;  %v6693_v48 = vpop.permute.xlu2 %6692  ;;  %5915 = vmatmul.msk.bf16.gmra.mxu0 %vm2140_vm4, %v2769_v7  ;;  %v2917_v24 = vpack.c.bf16 %v2564_v32, %v2562_v0  ;;  %v6823_v10 = vpop.eup %6822  ;;  %v6327_v0 = vld [vmem:[%s7738_s8 + $0x30] sm:$0xff] }
 0x54c   : > { %v6695_v43 = vunpack.i.h.bf16 %v6693_v48  ;;  %v6694_v33 = vunpack.i.l.bf16 %v6693_v48  ;;  %2841 = vmatpush.bf16.msra.mxu1 %v2826_v6  ;;  %v2567_v11 = vpop.f32.mrf.mxu3  ;;  %v2487_v26 = vmul.f32 %v6823_v10, %v8821_v1  ;;  %v2614_v1 = vpop.f32.mrf.mxu0  ;;  %v6326_v6 = vld [vmem:[%s7738_s8 + $0x28] sm:$0xff] }
 0x54d   : > { %v2518_v30 = vpack.c.bf16 %v2486_v16, %v2486_v16 }
 0x54e   : > { %v1635_v27 = vpack.c.bf16 %v6695_v43, %v6695_v43  ;;  %v1634_v57 = vpack.c.bf16 %v6694_v33, %v6694_v33  ;;  %v2519_v38 = vpack.c.bf16 %v2487_v26, %v2487_v26  ;;  %6418 = vmatpush.bf16.msrb.mxu3 %v6327_v0 }
 0x54f   : > { %v2812_v49 = vunpack.c.l.b16 %v2518_v30 }
 0x550   : > { %v2822_v9 = vunpack.c.l.b16 %v1635_v27  ;;  %v2821_v39 = vunpack.c.l.b16 %v1634_v57  ;;  %v2813_v46 = vunpack.c.l.b16 %v2519_v38 }
 0x551   : > { %v2815_v58 = vpack.c.b16 %v2812_v49, %v2811_v56 }
 0x552   : > { %v2825_v34 = vpack.c.b16 %v2822_v9, %v2821_v39  ;;  %6419 = vmatpush.bf16.msrb.mxu3 %v6326_v6 }
 0x554   : > { %2842 = vmatpush.bf16.msra.mxu1 %v2825_v34  ;;  %v2569_v31 = vpop.f32.mrf.mxu3 }
 0x555   : > { %v2918_v36 = vpack.c.bf16 %v2569_v31, %v2567_v11 }
 0x556   : > { %6420 = vmatpush.bf16.msrb.mxu3 %v6325_v45 }
 0x557   : > { %5916 = vmatmul.msk.bf16.vlgmr.msra.gmra.mxu1 %vm2140_vm4, %v2815_v58 }
 0x55b   : > { %5960 = vmatmul.msk.bf16.vlgmr.msra.gmra.mxu0 %vm1662_vm3, %v2917_v24 }
 0x55f   : > { %v2422_v53 = vpop.xlane.xlu0 %2421 }
 0x56b   : > { %5961 = vmatmul.msk.bf16.gmra.mxu0 %vm1662_vm3, %v2918_v36 }
 0x56e   : > { %v2416_v3 = vpop.xlane.xlu1 %2415 }
 0x56f   : > { %6824 = vrcp.f32 %v2416_v3 }
 0x570   : > { %6826 = vrcp.f32 %v2422_v53 }
 0x572   : > { %v6703_v20 = vpop.permute.xlu0 %6702 }
 0x573   : > { %v6705_v54 = vunpack.i.h.bf16 %v6703_v20  ;;  %v6704_v51 = vunpack.i.l.bf16 %v6703_v20 }
 0x575   : > { %v6825_v14 = vpop.eup %6824  ;;  %v1639_v55 = vpack.c.bf16 %v6705_v54, %v6705_v54  ;;  %v1638_v8 = vpack.c.bf16 %v6704_v51, %v6704_v51 }
 0x576   : > { %v2488_v44 = vmul.f32 %v6825_v14, %v8879_v4  ;;  %v6827_v59 = vpop.eup %6826  ;;  %v2616_v4 = vpop.f32.mrf.mxu0 }
 0x577   : > { %v2869_v52 = vunpack.c.l.b16 %v1639_v55  ;;  %v2868_v50 = vunpack.c.l.b16 %v1638_v8  ;;  %v2490_v35 = vmul.f32 %v6827_v59, %v8868_v40  ;;  %v2920_v21 = vpack.c.bf16 %v2616_v4, %v2614_v1  ;;  %v2658_v40 = vpop.f32.mrf.mxu1 }
 0x578   : > { %v2520_v23 = vpack.c.bf16 %v2488_v44, %v2488_v44 }
 0x579   : > { %v2872_v29 = vpack.c.b16 %v2869_v52, %v2868_v50  ;;  %v2522_v60 = vpack.c.bf16 %v2490_v35, %v2490_v35 }
 0x57a   : > { %v2814_v47 = vunpack.c.l.b16 %v2520_v23 }
 0x57b   : > { %2889 = vmatpush.bf16.msrb.mxu2 %v2872_v29  ;;  %5962 = vmatmul.msk.bf16.gmra.mxu0 %vm1662_vm3, %v2919_v41  ;;  %v2859_v17 = vunpack.c.l.b16 %v2522_v60 }
 0x57c   : > { %v2816_v2 = vpack.c.b16 %v2814_v47, %v2813_v46 }
 0x57d   : > { %v2703_v34 = vpop.f32.mrf.mxu2 }
 0x57e   : > { %5917 = vmatmul.msk.bf16.gmra.mxu1 %vm2140_vm4, %v2816_v2 }
 0x57f   : > { %2985 = vmatpush.bf16.msra.mxu2 %v6328_v25  ;;  %v2661_v16 = vpop.f32.mrf.mxu1  ;;  %v7029_v25 = vld [vmem:[#allocation2] sm:$0xff] }
 0x583   : > { %2986 = vmatpush.bf16.msra.mxu2 %v6327_v0 }
 0x584   : > { %v2419_v22 = vpop.xlane.xlu2 %2418 }
 0x585   : > { %6828 = vrcp.f32 %v2419_v22  ;;  %v2705_v24 = vpop.f32.mrf.mxu2 }
 0x587   : > { %2987 = vmatpush.bf16.msra.mxu2 %v6326_v6  ;;  %v2663_v63 = vpop.f32.mrf.mxu1 }
 0x588   : > { %v2922_v39 = vpack.c.bf16 %v2663_v63, %v2661_v16 }
 0x58b   : > { %v6829_v18 = vpop.eup %6828  ;;  %5963 = vmatmul.msk.bf16.gmra.mxu0 %vm1662_vm3, %v2920_v21  ;;  %2988 = vmatpush.bf16.msra.mxu2 %v6325_v45  ;;  %v8962_v21 = vld [vmem:[%s7748_s20] sm:$0xff] }
 0x58c   : > { %v2489_v15 = vmul.f32 %v6829_v18, %v8895_v13  ;;  %v2428_v5 = vpop.xlane.xlu2 %2427  ;;  %v2921_v13 = vpack.c.bf16 %v2658_v40, %v2656_v12  ;;  %v8965_v12 = vperm.slane %v8962_v21, 2  ;;  %v7030_v40 = vld [vmem:[#allocation2 + $0x8] sm:$0xff] }
 0x58d   : > { %6830 = vrcp.f32 %v2428_v5 }
 0x58e   : > { %v2521_v42 = vpack.c.bf16 %v2489_v15, %v2489_v15 }
 0x590   : > { %v2858_v62 = vunpack.c.l.b16 %v2521_v42 }
 0x592   : > { %v2862_v7 = vpack.c.b16 %v2859_v17, %v2858_v62 }
 0x593   : > { %v6831_v43 = vpop.eup %6830 }
 0x594   : > { %5918 = vmatmul.msk.bf16.vlgmr.msrb.gmra.mxu2 %vm2140_vm4, %v2862_v7  ;;  %v2492_v33 = vmul.f32 %v6831_v43, %v8902_v61  ;;  %v2750_v58 = vpop.f32.mrf.mxu3  ;;  %v2923_v61 = vpack.c.bf16 %v2705_v24, %v2703_v34  ;;  %v7031_v43 = vld [vmem:[#allocation2 + $0x10] sm:$0xff] }
 0x596   : > { %v2524_v27 = vpack.c.bf16 %v2492_v33, %v2492_v33  ;;  %v2797_v11 = vpop.f32.mrf.mxu0 }
 0x598   : > { %v2861_v49 = vunpack.c.l.b16 %v2524_v27 }
 0x59b   : > { %5964 = vmatmul.msk.bf16.gmra.mxu0 %vm1662_vm3, %v2921_v13 }
 0x59c   : > { %v2752_v31 = vpop.f32.mrf.mxu3 }
 0x59d   : > { %v2425_v48 = vpop.xlane.xlu0 %2424  ;;  %v2925_v19 = vpack.c.bf16 %v2752_v31, %v2750_v58 }
 0x59e   : > { %6832 = vrcp.f32 %v2425_v48  ;;  %v2799_v36 = vpop.f32.mrf.mxu0 }
 0x59f   : > { %v2927_v8 = vpack.c.bf16 %v2799_v36, %v2797_v11 }
 0x5a4   : > { %v6833_v30 = vpop.eup %6832 }
 0x5a5   : > { %v2491_v57 = vmul.f32 %v6833_v30, %v8911_v37 }
 0x5a7   : > { %v2523_v9 = vpack.c.bf16 %v2491_v57, %v2491_v57 }
 0x5a9   : > { %v2860_v32 = vunpack.c.l.b16 %v2523_v9 }
 0x5ab   : > { %5965 = vmatmul.msk.bf16.gmra.mxu0 %vm1662_vm3, %v2922_v39  ;;  %v2863_v56 = vpack.c.b16 %v2861_v49, %v2860_v32  ;;  %v7032_v49 = vld [vmem:[#allocation2 + $0x18] sm:$0xff] }
 0x5ac   : > { %v2708_v37 = vpop.f32.mrf.mxu2 }
 0x5ad   : > { %5919 = vmatmul.msk.bf16.gmra.mxu2 %vm2140_vm4, %v2863_v56  ;;  %v7033_v56 = vld [vmem:[#allocation2 + $0x38] sm:$0xff] }
 0x5b4   : > { %v2710_v53 = vpop.f32.mrf.mxu2 }
 0x5b5   : > { %v2924_v26 = vpack.c.bf16 %v2710_v53, %v2708_v37  ;;  %v7034_v53 = vld [vmem:[#allocation2 + $0x20] sm:$0xff] }
 0x5bb   : > { %5966 = vmatmul.msk.bf16.gmra.mxu0 %vm1662_vm3, %v2923_v61 }
 0x5bd   : > { %5936 = vmatmul.msk.bf16.vlgmr.msra.gmra.mxu2 %vm1662_vm3, %v2925_v19 }
 0x5c6   : > { %v2755_v3 = vpop.f32.mrf.mxu3 }
 0x5c8   : > { %v2802_v10 = vpop.f32.mrf.mxu0 }
 0x5cb   : > { %5967 = vmatmul.msk.bf16.gmra.mxu0 %vm1662_vm3, %v2924_v26 }
 0x5ce   : > { %v2757_v28 = vpop.f32.mrf.mxu3 }
 0x5cf   : > { %v2926_v20 = vpack.c.bf16 %v2757_v28, %v2755_v3 }
 0x5d0   : > { %v2804_v54 = vpop.f32.mrf.mxu0 }
 0x5d1   : > { %v2928_v51 = vpack.c.bf16 %v2804_v54, %v2802_v10  ;;  %5937 = vmatmul.msk.bf16.gmra.mxu2 %vm1662_vm3, %v2926_v20  ;;  %v7035_v10 = vld [vmem:[#allocation2 + $0x40] sm:$0xff] }
 0x5d3   : > { %5939 = vmatmul.msk.bf16.vlgmr.msrb.gmra.mxu3 %vm1662_vm3, %v2928_v51  ;;  %v7036_v51 = vld [vmem:[#allocation2 + $0x28] sm:$0xff] }
 0x5d4   : > { %v2844_v14 = vpop.f32.mrf.mxu1 }
 0x5d8   : > { %v3087_v23 = vpop.f32.mrf.mxu0 }
 0x5dc   : > { %v2846_v55 = vpop.f32.mrf.mxu1 }
 0x5dd   : > { %v2929_v38 = vpack.c.bf16 %v2846_v55, %v2844_v14  ;;  %v7462_v55 = vmov 128.0  }
 0x5de   : > { %6834 = vrcp.f32 %v7462_v55 }
 0x5e0   : > { %v3089_v46 = vpop.f32.mrf.mxu0 }
 0x5e1   : > { %5938 = vmatmul.msk.bf16.gmra.mxu2 %vm1662_vm3, %v2927_v8 }
 0x5e3   : > { %5940 = vmatmul.msk.bf16.gmra.mxu3 %vm1662_vm3, %v2929_v38 }
 0x5e4   : > { %v6835_v8 = vpop.eup %6834 }
 0x5e5   : > { %v3193_v38 = vmul.f32 128.0, %v6835_v8  ;;  %vm3197_vm5 = vweird.f32 %v6835_v8 }
 0x5e8   : > { %v3092_v1 = vpop.f32.mrf.mxu0 }
 0x5f0   : > { %v3094_v22 = vpop.f32.mrf.mxu0 }
 0x5f8   : > { %v3097_v35 = vpop.f32.mrf.mxu0 }
 0x5fb   : > { %v2849_v44 = vpop.f32.mrf.mxu1 }
 0x600   : > { %v3099_v0 = vpop.f32.mrf.mxu0 }
 0x603   : > { %v2851_v52 = vpop.f32.mrf.mxu1 }
 0x604   : > { %v2930_v50 = vpack.c.bf16 %v2851_v52, %v2849_v44  ;;  %v3194_v44 = vsub.f32 1.0, %v3193_v38 }
 0x606   : > { %5941 = vmatmul.msk.bf16.gmra.mxu3 %vm1662_vm3, %v2930_v50  ;;  %v3195_v52 = vmul.f32 %v6835_v8, %v3194_v44 }
 0x608   : > { %v3102_v6 = vpop.f32.mrf.mxu0  ;;  %v3196_v50 = vadd.f32 %v6835_v8, %v3195_v52  ;;  %v7040_v52 = vld [vmem:[#allocation2 + $0x58] sm:$0xff] }
 0x610   : > { %v3104_v30 = vpop.f32.mrf.mxu0 }
 0x617   : > { %v2891_v41 = vpop.f32.mrf.mxu2 }
 0x618   : > { %v3107_v31 = vpop.f32.mrf.mxu0 }
 0x61f   : > { %v2893_v29 = vpop.f32.mrf.mxu2 }
 0x620   : > { %v2931_v47 = vpack.c.bf16 %v2893_v29, %v2891_v41  ;;  %v8996_v41 = vsel %vm3197_vm5, %v6835_v8, %v3196_v50 }
 0x621   : > { %10497 = vst [vmem:[#allocation36_spill] sm:$0xff] %v8996_v41 }
 0x622   : > { %5942 = vmatmul.msk.bf16.gmra.mxu3 %vm1662_vm3, %v2931_v47 }
 0x630   : > { %v2896_v2 = vpop.f32.mrf.mxu2 }
 0x638   : > { %v2898_v59 = vpop.f32.mrf.mxu2 }
 0x639   : > { %v2932_v4 = vpack.c.bf16 %v2898_v59, %v2896_v2 }
 0x63b   : > { %5943 = vmatmul.msk.bf16.gmra.mxu3 %vm1662_vm3, %v2932_v4 }
 0x640   : > { %v2990_v18 = vpop.f32.mrf.mxu2 }
 0x641   : > { %v3088_v60 = vadd.f32 %v3087_v23, %v2990_v18  ;;  %v3109_v23 = vpop.f32.mrf.mxu0 }
 0x643   : > { %v3128_v15 = vadd.f32 %v8965_v12, %v3088_v60 }
 0x645   : > { %v3144_v42 = vadd.f32 %v7029_v25, %v3128_v15 }
 0x647   : > { %3160 = vadd.xlane.f32.xlu1 %v3144_v42 }
 0x648   : > { %v2992_v17 = vpop.f32.mrf.mxu2 }
 0x649   : > { %v3090_v62 = vadd.f32 %v3089_v46, %v2992_v17  ;;  %v3112_v2 = vpop.f32.mrf.mxu0 }
 0x64b   : > { %v3129_v7 = vadd.f32 %v8965_v12, %v3090_v62 }
 0x64d   : > { %v8969_v5 = vadd.f32 %v7030_v40, %v3129_v7 }
 0x64f   : > { %3162 = vadd.xlane.f32.xlu2 %v8969_v5 }
 0x651   : > { %v3114_v17 = vpop.f32.mrf.mxu0 }
 0x654   : > { %v2995_v45 = vpop.f32.mrf.mxu2 }
 0x655   : > { %v3093_v13 = vadd.f32 %v3092_v1, %v2995_v45 }
 0x656   : > { %v3005_v16 = vpop.f32.mrf.mxu3 }
 0x657   : > { %v3130_v48 = vadd.f32 %v8965_v12, %v3093_v13 }
 0x659   : > { %v8973_v33 = vadd.f32 %v7031_v43, %v3130_v48  ;;  %v3117_v45 = vpop.f32.mrf.mxu0 }
 0x65b   : > { %3164 = vadd.xlane.f32.xlu1 %v8973_v33 }
 0x65c   : > { %v2997_v27 = vpop.f32.mrf.mxu2 }
 0x65d   : > { %v3095_v57 = vadd.f32 %v3094_v22, %v2997_v27  ;;  %v3103_v22 = vadd.f32 %v3102_v6, %v3005_v16 }
 0x65e   : > { %v3007_v63 = vpop.f32.mrf.mxu3 }
 0x65f   : > { %v3105_v9 = vadd.f32 %v3104_v30, %v3007_v63  ;;  %v3131_v39 = vadd.f32 %v8965_v12, %v3095_v57  ;;  %v3134_v18 = vadd.f32 %v8965_v12, %v3103_v22  ;;  %v7038_v63 = vld [vmem:[#allocation2 + $0x48] sm:$0xff]  ;;  %v7041_v22 = vld [vmem:[#allocation2 + $0x60] sm:$0xff] }
 0x661   : > { %v8977_v32 = vadd.f32 %v7032_v49, %v3131_v39  ;;  %v3135_v34 = vadd.f32 %v8965_v12, %v3105_v9  ;;  %v9028_v39 = vpop.f32.mrf.mxu0 }
 0x663   : > { %3166 = vadd.xlane.f32.xlu2 %v8977_v32  ;;  %v8981_v58 = vadd.f32 %v7033_v56, %v3135_v34 }
 0x664   : > { %v3000_v24 = vpop.f32.mrf.mxu2 }
 0x665   : > { %v3098_v11 = vadd.f32 %v3097_v35, %v3000_v24  ;;  %3174 = vadd.xlane.f32.xlu0 %v8981_v58 }
 0x666   : > { %v3010_v61 = vpop.f32.mrf.mxu3 }
 0x667   : > { %v3132_v19 = vadd.f32 %v8965_v12, %v3098_v11  ;;  %v3108_v37 = vadd.f32 %v3107_v31, %v3010_v61 }
 0x669   : > { %v3136_v36 = vadd.f32 %v8965_v12, %v3108_v37  ;;  %v8986_v3 = vadd.f32 %v7034_v53, %v3132_v19  ;;  %v7039_v19 = vld [vmem:[#allocation2 + $0x50] sm:$0xff] }
 0x66b   : > { %3168 = vadd.xlane.f32.xlu1 %v8986_v3  ;;  %v8989_v26 = vadd.f32 %v7035_v10, %v3136_v36 }
 0x66c   : > { %v3002_v28 = vpop.f32.mrf.mxu2 }
 0x66d   : > { %v3100_v20 = vadd.f32 %v3099_v0, %v3002_v28  ;;  %3176 = vadd.xlane.f32.xlu0 %v8989_v26 }
 0x66e   : > { %v3012_v29 = vpop.f32.mrf.mxu3 }
 0x66f   : > { %v3133_v54 = vadd.f32 %v8965_v12, %v3100_v20  ;;  %v9050_v20 = vpop.f32.mrf.mxu0 }
 0x671   : > { %v8993_v14 = vadd.f32 %v7036_v51, %v3133_v54 }
 0x673   : > { %3170 = vadd.xlane.f32.xlu2 %v8993_v14 }
 0x689   : > { %v3015_v4 = vpop.f32.mrf.mxu3 }
 0x68a   : > { %v3113_v57 = vadd.f32 %v3112_v2, %v3015_v4  ;;  %v7042_v4 = vld [vmem:[#allocation2 + $0x78] sm:$0xff] }
 0x68c   : > { %v3138_v24 = vadd.f32 %v8965_v12, %v3113_v57 }
 0x68e   : > { %v9041_v37 = vadd.f32 %v7039_v19, %v3138_v24  ;;  %v6050_v19 = vld [vmem:[%s7740_s10 + $0xa0] sm:$0xf] }
 0x691   : > { %v3017_v62 = vpop.f32.mrf.mxu3 }
 0x692   : > { %v3115_v36 = vadd.f32 %v3114_v17, %v3017_v62  ;;  %v6084_v17 = vld [vmem:[%s7740_s10 + $0xf0] sm:$0xf0]  ;;  %v6090_v62 = vld [vmem:[%s7740_s10 + $0xe8] sm:$0xf] }
 0x694   : > { %v3139_v51 = vadd.f32 %v8965_v12, %v3115_v36  ;;  %v6351_v36 = vld [vmem:[%s7740_s10 + $0xac] sm:$0xf0] }
 0x696   : > { %v9061_v50 = vadd.f32 %v7040_v52, %v3139_v51  ;;  %v6058_v51 = vld [vmem:[%s7740_s10 + $0xa8] sm:$0xf]  ;;  %v6060_v52 = vld [vmem:[%s7740_s10 + $0xb8] sm:$0xf0] }
 0x6a5   : > { %v3020_v13 = vpop.f32.mrf.mxu3 }
 0x6ad   : > { %v9030_v49 = vpop.f32.mrf.mxu3 }
 0x6ba   : > { %v3161_v46 = vpop.xlane.xlu1 %3160 }
 0x6bb   : > { %v3199_v47 = vmul.f32 %v8996_v41, %v3161_v46  ;;  %v3124_v46 = vpop.f32.mrf.mxu0 }
 0x6bd   : > { %v8999_v1 = vsub.f32 %v3144_v42, %v3199_v47  ;;  %v7037_v42 = vld [vmem:[#allocation2 + $0x30] sm:$0xff] }
 0x6be   : > { %v9010_v0 = vadd.f32 %v7037_v42, %v3134_v18  ;;  %v9044_v53 = vpop.f32.mrf.mxu3  ;;  %v6082_v18 = vld [vmem:[%s7740_s10 + $0xe0] sm:$0xf] }
 0x6bf   : > { %v3231_v59 = vmul.f32 %v8999_v1, %v8999_v1 }
 0x6c1   : > { %3247 = vadd.xlane.f32.xlu1 %v3231_v59 }
 0x6c2   : > { %v3163_v35 = vpop.xlane.xlu2 %3162 }
 0x6c3   : > { %v3200_v60 = vmul.f32 %v8996_v41, %v3163_v35 }
 0x6c5   : > { %v9006_v15 = vsub.f32 %v8969_v5, %v3200_v60  ;;  %v3110_v5 = vadd.f32 %v3109_v23, %v3012_v29  ;;  %v6359_v60 = vld [vmem:[%s7740_s10 + $0xec] sm:$0xf0] }
 0x6c6   : > { %v3027_v29 = vpop.f32.mrf.mxu3  ;;  %v6083_v42 = vor.u32 %v6359_v60, %v6082_v18 }
 0x6c7   : > { %v3232_v25 = vmul.f32 %v9006_v15, %v9006_v15  ;;  %v3137_v30 = vadd.f32 %v8965_v12, %v3110_v5  ;;  %v3125_v47 = vadd.f32 %v3124_v46, %v3027_v29  ;;  %v6358_v5 = vld [vmem:[%s7740_s10 + $0xec] sm:$0xf]  ;;  %v6034_v29 = vld [vmem:[%s7740_s10 + $0x80] sm:$0xf]  ;;  %v6347_v46 = vld [vmem:[%s7740_s10 + $0x8c] sm:$0xf0] }
 0x6c8   : > { %3725 = vmatpush.bf16.msrb.mxu1 %v6083_v42  ;;  %v6044_v42 = vld [vmem:[%s7740_s10 + $0x98] sm:$0xf0] }
 0x6c9   : > { %3249 = vadd.xlane.f32.xlu2 %v3232_v25  ;;  %3172 = vadd.xlane.f32.xlu1 %v9010_v0  ;;  %v9026_v9 = vadd.f32 %v7038_v63, %v3137_v30  ;;  %v6357_v25 = vld [vmem:[%s7740_s10 + $0xe4] sm:$0xf]  ;;  %v6074_v63 = vld [vmem:[%s7740_s10 + $0xc8] sm:$0xf] }
 0x6ca   : > { %v6353_v30 = vld [vmem:[%s7740_s10 + $0xc4] sm:$0xf] }
 0x6ce   : > { %v3165_v7 = vpop.xlane.xlu1 %3164 }
 0x6cf   : > { %v3201_v40 = vmul.f32 %v8996_v41, %v3165_v7  ;;  %v6360_v7 = vld [vmem:[%s7740_s10 + $0xf4] sm:$0xf0] }
 0x6d1   : > { %v9015_v6 = vsub.f32 %v8973_v33, %v3201_v40  ;;  %v6087_v40 = vor.u32 %v6357_v25, %v6084_v17  ;;  %v6346_v25 = vld [vmem:[%s7740_s10 + $0x8c] sm:$0xf] }
 0x6d2   : > { %v6047_v17 = vor.u32 %v6346_v25, %v6044_v42  ;;  %v6329_v25 = vld [vmem:[%s7740_s10 + $0x4] sm:$0xf] }
 0x6d3   : > { %v3233_v16 = vmul.f32 %v9015_v6, %v9015_v6  ;;  %3774 = vmatpush.bf16.msrb.mxu2 %v6087_v40  ;;  %v6341_v40 = vld [vmem:[%s7740_s10 + $0x64] sm:$0xf] }
 0x6d5   : > { %3251 = vadd.xlane.f32.xlu2 %v3233_v16 }
 0x6d6   : > { %v3167_v48 = vpop.xlane.xlu2 %3166 }
 0x6d7   : > { %v3202_v43 = vmul.f32 %v8996_v41, %v3167_v48  ;;  %v6066_v48 = vld [vmem:[%s7740_s10 + $0xc0] sm:$0xf] }
 0x6d8   : > { %v3175_v34 = vpop.xlane.xlu0 %3174 }
 0x6d9   : > { %v9022_v27 = vsub.f32 %v8977_v32, %v3202_v43  ;;  %v3206_v31 = vmul.f32 %v8996_v41, %v3175_v34  ;;  %v6355_v43 = vld [vmem:[%s7740_s10 + $0xcc] sm:$0xf0]  ;;  %v6356_v34 = vld [vmem:[%s7740_s10 + $0xd4] sm:$0xf0] }
 0x6da   : > { %v6067_v57 = vor.u32 %v6355_v43, %v6066_v48  ;;  %v6075_v24 = vor.u32 %v6356_v34, %v6074_v63  ;;  %v6002_v63 = vld [vmem:[%s7740_s10 + $0x40] sm:$0xf]  ;;  %v6339_v34 = vld [vmem:[%s7740_s10 + $0x4c] sm:$0xf0] }
 0x6db   : > { %v3234_v33 = vmul.f32 %v9022_v27, %v9022_v27  ;;  %v9047_v28 = vsub.f32 %v8981_v58, %v3206_v31  ;;  %v3118_v58 = vadd.f32 %v3117_v45, %v3020_v13  ;;  %v6091_v45 = vor.u32 %v6360_v7, %v6090_v62  ;;  %v6092_v13 = vld [vmem:[%s7740_s10 + $0xf8] sm:$0xf0]  ;;  %v6018_v62 = vld [vmem:[%s7740_s10 + $0x60] sm:$0xf]  ;;  %v6343_v7 = vld [vmem:[%s7740_s10 + $0x6c] sm:$0xf0] }
 0x6dc   : > { %v6095_v16 = vor.u32 %v6358_v5, %v6092_v13  ;;  %v6076_v31 = vld [vmem:[%s7740_s10 + $0xd8] sm:$0xf0]  ;;  %3726 = vmatpush.bf16.msrb.mxu1 %v6067_v57  ;;  %v6020_v5 = vld [vmem:[%s7740_s10 + $0x70] sm:$0xf0]  ;;  %v6026_v13 = vld [vmem:[%s7740_s10 + $0x68] sm:$0xf] }
 0x6dd   : > { %3253 = vadd.xlane.f32.xlu1 %v3234_v33  ;;  %3178 = vadd.xlane.f32.xlu2 %v9026_v9  ;;  %v3238_v44 = vmul.f32 %v9047_v28, %v9047_v28  ;;  %v3140_v23 = vadd.f32 %v8965_v12, %v3118_v58  ;;  %v6068_v33 = vld [vmem:[%s7740_s10 + $0xd0] sm:$0xf0]  ;;  %v6350_v58 = vld [vmem:[%s7740_s10 + $0xac] sm:$0xf]  ;;  %v6023_v48 = vor.u32 %v6341_v40, %v6020_v5  ;;  %v6028_v57 = vld [vmem:[%s7740_s10 + $0x78] sm:$0xf0] }
 0x6de   : > { %v3169_v56 = vpop.xlane.xlu1 %3168  ;;  %3823 = vmatpush.bf16.msra.mxu3 %v6091_v45  ;;  %3872 = vmatpush.bf16.msrb.mxu0 %v6095_v16  ;;  %v6019_v45 = vor.u32 %v6343_v7, %v6018_v62  ;;  %v6344_v16 = vld [vmem:[%s7740_s10 + $0x74] sm:$0xf0]  ;;  %v5972_v62 = vld [vmem:[%s7740_s10 + $0x10] sm:$0xf0]  ;;  %v5978_v7 = vld [vmem:[%s7740_s10 + $0x8] sm:$0xf] }
 0x6df   : > { %v3203_v32 = vmul.f32 %v8996_v41, %v3169_v56  ;;  %v9070_v59 = vadd.f32 %v7041_v22, %v3140_v23  ;;  %v6071_v56 = vor.u32 %v6353_v30, %v6068_v33  ;;  %v6063_v23 = vor.u32 %v6350_v58, %v6060_v52  ;;  %v6036_v22 = vld [vmem:[%s7740_s10 + $0x90] sm:$0xf0]  ;;  %v6342_v30 = vld [vmem:[%s7740_s10 + $0x6c] sm:$0xf]  ;;  %v5994_v52 = vld [vmem:[%s7740_s10 + $0x28] sm:$0xf] }
 0x6e0   : > { %v3177_v54 = vpop.xlane.xlu0 %3176  ;;  %v6027_v43 = vor.u32 %v6344_v16, %v6026_v13  ;;  %v6031_v33 = vor.u32 %v6342_v30, %v6028_v57  ;;  %v5988_v58 = vld [vmem:[%s7740_s10 + $0x30] sm:$0xf0]  ;;  %v5975_v40 = vor.u32 %v6329_v25, %v5972_v62  ;;  %v6330_v5 = vld [vmem:[%s7740_s10 + $0xc] sm:$0xf]  ;;  %v5980_v13 = vld [vmem:[%s7740_s10 + $0x18] sm:$0xf0] }
 0x6e1   : > { %v9036_v11 = vsub.f32 %v8986_v3, %v3203_v32  ;;  %v3207_v8 = vmul.f32 %v8996_v41, %v3177_v54  ;;  %v6354_v32 = vld [vmem:[%s7740_s10 + $0xcc] sm:$0xf]  ;;  %3775 = vmatpush.bf16.msrb.mxu2 %v6071_v56  ;;  %v6052_v54 = vld [vmem:[%s7740_s10 + $0xb0] sm:$0xf0]  ;;  %v6337_v56 = vld [vmem:[%s7740_s10 + $0x44] sm:$0xf] }
 0x6e2   : > { %3824 = vmatpush.bf16.msra.mxu3 %v6075_v24  ;;  %v6003_v24 = vor.u32 %v6339_v34, %v6002_v63 }
 0x6e3   : > { %v3235_v61 = vmul.f32 %v9036_v11, %v9036_v11 }
 0x6e5   : > { %3255 = vadd.xlane.f32.xlu1 %v3235_v61  ;;  %3180 = vadd.xlane.f32.xlu2 %v9041_v37  ;;  %v6079_v61 = vor.u32 %v6354_v32, %v6076_v31  ;;  %v6004_v32 = vld [vmem:[%s7740_s10 + $0x50] sm:$0xf0]  ;;  %v6010_v31 = vld [vmem:[%s7740_s10 + $0x48] sm:$0xf] }
 0x6e6   : > { %v3171_v10 = vpop.xlane.xlu2 %3170 }
 0x6e7   : > { %v3204_v3 = vmul.f32 %v8996_v41, %v3171_v10  ;;  %v6349_v10 = vld [vmem:[%s7740_s10 + $0xa4] sm:$0xf]  ;;  %3873 = vmatpush.bf16.msrb.mxu0 %v6079_v61  ;;  %v6340_v61 = vld [vmem:[%s7740_s10 + $0x54] sm:$0xf0] }
 0x6e9   : > { %v9054_v55 = vsub.f32 %v8993_v14, %v3204_v3  ;;  %v9065_v14 = vsub.f32 %v8989_v26, %v3207_v8  ;;  %v3143_v26 = vadd.f32 %v8965_v12, %v3125_v47  ;;  %v6051_v3 = vor.u32 %v6351_v36, %v6050_v19  ;;  %v6352_v8 = vld [vmem:[%s7740_s10 + $0xb4] sm:$0xf0]  ;;  %v6345_v47 = vld [vmem:[%s7740_s10 + $0x84] sm:$0xf] }
 0x6ea   : > { %v6039_v18 = vor.u32 %v6345_v47, %v6036_v22  ;;  %v6007_v19 = vor.u32 %v6337_v56, %v6004_v32  ;;  %v6011_v36 = vor.u32 %v6340_v61, %v6010_v31  ;;  %v5996_v22 = vld [vmem:[%s7740_s10 + $0x38] sm:$0xf0]  ;;  %v3120_v32 = vadd.f32 %v9028_v39, %v9030_v49 }
 0x6eb   : > { %v3236_v38 = vmul.f32 %v9054_v55, %v9054_v55  ;;  %v3239_v2 = vmul.f32 %v9065_v14, %v9065_v14  ;;  %v9074_v35 = vadd.f32 %v7042_v4, %v3143_v26  ;;  %3727 = vmatpush.bf16.msrb.mxu1 %v6051_v3  ;;  %3874 = vmatpush.bf16.msrb.mxu0 %v6063_v23  ;;  %v6042_v26 = vld [vmem:[%s7740_s10 + $0x88] sm:$0xf]  ;;  %v6348_v4 = vld [vmem:[%s7740_s10 + $0x94] sm:$0xf0]  ;;  %v6012_v3 = vld [vmem:[%s7740_s10 + $0x58] sm:$0xf0] }
 0x6ec   : > { %v6043_v60 = vor.u32 %v6348_v4, %v6042_v26  ;;  %v6336_v23 = vld [vmem:[%s7740_s10 + $0x34] sm:$0xf0] }
 0x6ed   : > { %3257 = vadd.xlane.f32.xlu0 %v3236_v38  ;;  %3261 = vadd.xlane.f32.xlu2 %v3238_v44  ;;  %v6055_v38 = vor.u32 %v6349_v10, %v6052_v54  ;;  %v6059_v44 = vor.u32 %v6352_v8, %v6058_v51  ;;  %v6338_v10 = vld [vmem:[%s7740_s10 + $0x4c] sm:$0xf]  ;;  %v5986_v51 = vld [vmem:[%s7740_s10 + $0x20] sm:$0xf]  ;;  %v6335_v8 = vld [vmem:[%s7740_s10 + $0x2c] sm:$0xf0]  ;;  %v5995_v47 = vor.u32 %v6336_v23, %v5994_v52 }
 0x6ee   : > { %3182 = vadd.xlane.f32.xlu1 %v9061_v50  ;;  %v6015_v54 = vor.u32 %v6338_v10, %v6012_v3  ;;  %v7043_v49 = vld [vmem:[#allocation2 + $0x68] sm:$0xff] }
 0x6ef   : > { %3776 = vmatpush.bf16.msrb.mxu2 %v6055_v38  ;;  %3825 = vmatpush.bf16.msra.mxu3 %v6059_v44  ;;  %v6333_v38 = vld [vmem:[%s7740_s10 + $0x24] sm:$0xf]  ;;  %v5987_v44 = vor.u32 %v6335_v8, %v5986_v51  ;;  %v3123_v8 = vadd.f32 %v9050_v20, %v9044_v53  ;;  %v9160_v53 = vperm.slane %v8962_v21, 4 }
 0x6f0   : > { %3875 = vmatpush.bf16.msrb.mxu0 %v6047_v17 }
 0x6f3   : > { %3777 = vmatpush.bf16.msrb.mxu2 %v6039_v18  ;;  %3826 = vmatpush.bf16.msra.mxu3 %v6043_v60  ;;  %v5970_v18 = vld [vmem:[%s7740_s10] sm:$0xf]  ;;  %v6331_v60 = vld [vmem:[%s7740_s10 + $0xc] sm:$0xf0] }
 0x6f4   : > { %3876 = vmatpush.bf16.msrb.mxu0 %v6031_v33  ;;  %v5971_v17 = vor.u32 %v6331_v60, %v5970_v18  ;;  %v7044_v18 = vld [vmem:[#allocation2 + $0x70] sm:$0xff] }
 0x6f5   : > { %3263 = vadd.xlane.f32.xlu2 %v3239_v2  ;;  %v6035_v2 = vor.u32 %v6347_v46, %v6034_v29  ;;  %v5991_v46 = vor.u32 %v6333_v38, %v5988_v58 }
 0x6f6   : > { %3184 = vadd.xlane.f32.xlu1 %v9070_v59 }
 0x6f7   : > { %3728 = vmatpush.bf16.msrb.mxu1 %v6035_v2  ;;  %3778 = vmatpush.bf16.msrb.mxu2 %v6023_v48  ;;  %v6334_v2 = vld [vmem:[%s7740_s10 + $0x2c] sm:$0xf]  ;;  %v5983_v48 = vor.u32 %v6330_v5, %v5980_v13 }
 0x6f8   : > { %3827 = vmatpush.bf16.msra.mxu3 %v6027_v43  ;;  %3877 = vmatpush.bf16.msrb.mxu0 %v6015_v54  ;;  %v5999_v4 = vor.u32 %v6334_v2, %v5996_v22 }
 0x6fb   : > { %3729 = vmatpush.bf16.msrb.mxu1 %v6019_v45  ;;  %3779 = vmatpush.bf16.msrb.mxu2 %v6007_v19  ;;  %v6332_v45 = vld [vmem:[%s7740_s10 + $0x14] sm:$0xf0] }
 0x6fc   : > { %3828 = vmatpush.bf16.msra.mxu3 %v6011_v36  ;;  %3878 = vmatpush.bf16.msrb.mxu0 %v5999_v4  ;;  %v5979_v16 = vor.u32 %v6332_v45, %v5978_v7  ;;  %v3141_v36 = vadd.f32 %v8965_v12, %v3120_v32 }
 0x6fd   : > { %3190 = vadd.xlane.f32.xlu2 %v9074_v35 }
 0x6fe   : > { %v9155_v38 = vadd.f32 %v7043_v49, %v3141_v36 }
 0x6ff   : > { %3730 = vmatpush.bf16.msrb.mxu1 %v6003_v24  ;;  %3780 = vmatpush.bf16.msrb.mxu2 %v5991_v46 }
 0x700   : > { %3829 = vmatpush.bf16.msra.mxu3 %v5995_v47  ;;  %3879 = vmatpush.bf16.msrb.mxu0 %v5983_v48 }
 0x703   : > { %3731 = vmatpush.bf16.msrb.mxu1 %v5987_v44  ;;  %3781 = vmatpush.bf16.msrb.mxu2 %v5975_v40 }
 0x704   : > { %3830 = vmatpush.bf16.msra.mxu3 %v5979_v16 }
 0x707   : > { %3732 = vmatpush.bf16.msrb.mxu1 %v5971_v17 }
 0x734   : > { %v3248_v29 = vpop.xlane.xlu1 %3247 }
 0x735   : > { %v3279_v26 = vmul.f32 %v3248_v29, %v8996_v41  ;;  %v3142_v29 = vadd.f32 %v8965_v12, %v3123_v8  ;;  %v9168_v12 = vperm.slane %v8962_v21, 5 }
 0x737   : > { %v3295_v42 = vadd.f32 1e-12, %v3279_v26  ;;  %v9165_v60 = vadd.f32 %v7044_v18, %v3142_v29 }
 0x739   : > { %6836 = vrsqrt.f32 %v3295_v42  ;;  %vm3317_vm7 = vweird.f32 %v3295_v42 }
 0x73c   : > { %v3250_v43 = vpop.xlane.xlu2 %3249  ;;  %v3173_v30 = vpop.xlane.xlu1 %3172 }
 0x73d   : > { %v3280_v57 = vmul.f32 %v3250_v43, %v8996_v41  ;;  %v3205_v33 = vmul.f32 %v8996_v41, %v3173_v30 }
 0x73f   : > { %v6837_v63 = vpop.eup %6836  ;;  %v3296_v34 = vadd.f32 1e-12, %v3280_v57  ;;  %v9145_v56 = vsub.f32 %v9010_v0, %v3205_v33 }
 0x740   : > { %v3312_v24 = vmul.f32 %v6837_v63, %v3295_v42  ;;  %vm3318_vm6 = vweird.f32 %v6837_v63 }
 0x741   : > { %6838 = vrsqrt.f32 %v3296_v34  ;;  %v3237_v31 = vmul.f32 %v9145_v56, %v9145_v56  ;;  %vm3319_vm8 = vmor %vm3317_vm7, %vm3318_vm6  ;;  %vm3327_vm10 = vweird.f32 %v3296_v34 }
 0x742   : > { %v3313_v61 = vmul.f32 %v6837_v63, %v3312_v24 }
 0x743   : > { %3259 = vadd.xlane.f32.xlu0 %v3237_v31 }
 0x744   : > { %v3314_v19 = vmul.f32 0.5, %v3313_v61 }
 0x746   : > { %v3315_v10 = vsub.f32 1.5, %v3314_v19 }
 0x747   : > { %v6839_v3 = vpop.eup %6838 }
 0x748   : > { %v3316_v54 = vmul.f32 %v6837_v63, %v3315_v10  ;;  %v3322_v51 = vmul.f32 %v6839_v3, %v3296_v34  ;;  %v3252_v0 = vpop.xlane.xlu2 %3251  ;;  %vm3328_vm9 = vweird.f32 %v6839_v3 }
 0x749   : > { %v3281_v39 = vmul.f32 %v3252_v0, %v8996_v41  ;;  %vm3329_vm11 = vmor %vm3327_vm10, %vm3328_vm9 }
 0x74a   : > { %v3323_v44 = vmul.f32 %v6839_v3, %v3322_v51  ;;  %v3320_v52 = vsel %vm3319_vm8, %v6837_v63, %v3316_v54 }
 0x74b   : > { %v3297_v58 = vadd.f32 1e-12, %v3281_v39  ;;  %3186 = vadd.xlane.f32.xlu0 %v9155_v38  ;;  %v3471_v20 = vmul.f32 %v3320_v52, %v8999_v1 }
 0x74c   : > { %v3324_v23 = vmul.f32 0.5, %v3323_v44 }
 0x74d   : > { %6840 = vrsqrt.f32 %v3297_v58  ;;  %v3488_v17 = vmul.f32 %v9160_v53, %v3471_v20  ;;  %vm3337_vm13 = vweird.f32 %v3297_v58 }
 0x74e   : > { %v3325_v46 = vsub.f32 1.5, %v3324_v23 }
 0x74f   : > { %v9180_v13 = vadd.f32 %v9168_v12, %v3488_v17 }
 0x750   : > { %v3326_v47 = vmul.f32 %v6839_v3, %v3325_v46  ;;  %v3254_v2 = vpop.xlane.xlu1 %3253  ;;  %v3179_v22 = vpop.xlane.xlu2 %3178 }
 0x751   : > { %v3282_v26 = vmul.f32 %v3254_v2, %v8996_v41  ;;  %v3208_v4 = vmul.f32 %v8996_v41, %v3179_v22 }
 0x752   : > { %v3330_v25 = vsel %vm3329_vm11, %v6839_v3, %v3326_v47 }
 0x753   : > { %v6841_v42 = vpop.eup %6840  ;;  %v3472_v1 = vmul.f32 %v3330_v25, %v9006_v15  ;;  %v3298_v62 = vadd.f32 1e-12, %v3282_v26  ;;  %v9173_v7 = vsub.f32 %v9026_v9, %v3208_v4  ;;  %3188 = vadd.xlane.f32.xlu0 %v9165_v60 }
 0x754   : > { %v3332_v40 = vmul.f32 %v6841_v42, %v3297_v58  ;;  %vm3338_vm12 = vweird.f32 %v6841_v42 }
 0x755   : > { %v3489_v45 = vmul.f32 %v9160_v53, %v3472_v1  ;;  %6842 = vrsqrt.f32 %v3298_v62  ;;  %v3240_v21 = vmul.f32 %v9173_v7, %v9173_v7  ;;  %vm3339_vm14 = vmor %vm3337_vm13, %vm3338_vm12  ;;  %vm3347_vm0 = vweird.f32 %v3298_v62 }
 0x756   : > { %v3333_v5 = vmul.f32 %v6841_v42, %v3332_v40 }
 0x757   : > { %v9183_v16 = vadd.f32 %v9168_v12, %v3489_v45  ;;  %3265 = vadd.xlane.f32.xlu1 %v3240_v21 }
 0x758   : > { %v3334_v15 = vmul.f32 0.5, %v3333_v5  ;;  %v3256_v9 = vpop.xlane.xlu1 %3255  ;;  %v3181_v48 = vpop.xlane.xlu2 %3180 }
 0x759   : > { %10498 = vst [vmem:[#allocation37_spill] sm:$0xff] %v9183_v16  ;;  %v3283_v43 = vmul.f32 %v3256_v9, %v8996_v41  ;;  %v3209_v30 = vmul.f32 %v8996_v41, %v3181_v48  ;;  %v3521_v57 = vpack.c.bf16 %v9183_v16, %v9180_v13 }
 0x75a   : > { %v3335_v33 = vsub.f32 1.5, %v3334_v15 }
 0x75b   : > { %v6843_v63 = vpop.eup %6842  ;;  %v3299_v34 = vadd.f32 1e-12, %v3283_v43  ;;  %v9190_v24 = vsub.f32 %v9041_v37, %v3209_v30  ;;  %3733 = vmatmul.bf16.vlgmr.msrb.gmra.mxu1 %v3521_v57  ;;  %3782 = vmatmul.bf16.vlgmr.msrb.gmra.mxu2 %v3521_v57 }
 0x75c   : > { %v3336_v32 = vmul.f32 %v6841_v42, %v3335_v33  ;;  %v3342_v31 = vmul.f32 %v6843_v63, %v3298_v62  ;;  %3831 = vmatmul.bf16.vlgmr.msra.gmra.mxu3 %v3521_v57  ;;  %3880 = vmatmul.bf16.vlgmr.msrb.gmra.mxu0 %v3521_v57  ;;  %vm3348_vm15 = vweird.f32 %v6843_v63 }
 0x75d   : > { %6844 = vrsqrt.f32 %v3299_v34  ;;  %v3241_v61 = vmul.f32 %v9190_v24, %v9190_v24  ;;  %vm3349_vm1 = vmor %vm3347_vm0, %vm3348_vm15  ;;  %vm3357_vm3 = vweird.f32 %v3299_v34 }
 0x75e   : > { %v3343_v19 = vmul.f32 %v6843_v63, %v3342_v31  ;;  %v3340_v36 = vsel %vm3339_vm14, %v6841_v42, %v3336_v32 }
 0x75f   : > { %3267 = vadd.xlane.f32.xlu1 %v3241_v61  ;;  %v3473_v49 = vmul.f32 %v3340_v36, %v9015_v6 }
 0x760   : > { %v3344_v10 = vmul.f32 0.5, %v3343_v19  ;;  %v3258_v3 = vpop.xlane.xlu0 %3257  ;;  %v9194_v37 = vpop.xlane.xlu2 %3261 }
 0x761   : > { %v3284_v54 = vmul.f32 %v3258_v3, %v8996_v41  ;;  %v3183_v51 = vpop.xlane.xlu1 %3182  ;;  %v3490_v2 = vmul.f32 %v9160_v53, %v3473_v49 }
 0x762   : > { %v3345_v0 = vsub.f32 1.5, %v3344_v10  ;;  %v3210_v8 = vmul.f32 %v8996_v41, %v3183_v51 }
 0x763   : > { %v6845_v39 = vpop.eup %6844  ;;  %v3300_v44 = vadd.f32 1e-12, %v3284_v54  ;;  %v9211_v42 = vadd.f32 %v9168_v12, %v3490_v2 }
 0x764   : > { %v3346_v58 = vmul.f32 %v6843_v63, %v3345_v0  ;;  %v3352_v52 = vmul.f32 %v6845_v39, %v3299_v34  ;;  %v9200_v23 = vsub.f32 %v9061_v50, %v3210_v8  ;;  %vm3358_vm2 = vweird.f32 %v6845_v39 }
 0x765   : > { %6846 = vrsqrt.f32 %v3300_v44  ;;  %10499 = vst [vmem:[#allocation38_spill] sm:$0xff] %v9211_v42  ;;  %vm3359_vm4 = vmor %vm3357_vm3, %vm3358_vm2  ;;  %vm3367_vm6 = vweird.f32 %v3300_v44 }
 0x766   : > { %v3350_v29 = vsel %vm3349_vm1, %v6843_v63, %v3346_v58  ;;  %v3353_v46 = vmul.f32 %v6845_v39, %v3352_v52  ;;  %v3242_v20 = vmul.f32 %v9200_v23, %v9200_v23 }
 0x767   : > { %v3474_v47 = vmul.f32 %v3350_v29, %v9022_v27 }
 0x768   : > { %v3354_v22 = vmul.f32 0.5, %v3353_v46  ;;  %3269 = vadd.xlane.f32.xlu0 %v3242_v20  ;;  %v9206_v6 = vpop.xlane.xlu2 %3263 }
 0x769   : > { %v3185_v26 = vpop.xlane.xlu1 %3184  ;;  %v3491_v4 = vmul.f32 %v9160_v53, %v3474_v47  ;;  %v3287_v29 = vmul.f32 %v9206_v6, %v8996_v41 }
 0x76a   : > { %v3355_v50 = vsub.f32 1.5, %v3354_v22  ;;  %v3211_v18 = vmul.f32 %v8996_v41, %v3185_v26 }
 0x76b   : > { %v6847_v25 = vpop.eup %6846  ;;  %v9214_v17 = vadd.f32 %v9168_v12, %v3491_v4  ;;  %v3303_v22 = vadd.f32 1e-12, %v3287_v29 }
 0x76c   : > { %v3356_v27 = vmul.f32 %v6845_v39, %v3355_v50  ;;  %v3362_v1 = vmul.f32 %v6847_v25, %v3300_v44  ;;  %v9217_v62 = vsub.f32 %v9070_v59, %v3211_v18  ;;  %vm3368_vm5 = vweird.f32 %v6847_v25 }
 0x76d   : > { %10500 = vst [vmem:[#allocation39_spill] sm:$0xff] %v9214_v17  ;;  %v3522_v45 = vpack.c.bf16 %v9214_v17, %v9211_v42  ;;  %vm3369_vm7 = vmor %vm3367_vm6, %vm3368_vm5  ;;  %vm3397_vm15 = vweird.f32 %v3303_v22 }
 0x76e   : > { %v3363_v40 = vmul.f32 %v6847_v25, %v3362_v1  ;;  %v3243_v21 = vmul.f32 %v9217_v62, %v9217_v62  ;;  %v3360_v5 = vsel %vm3359_vm4, %v6845_v39, %v3356_v27 }
 0x76f   : > { %3738 = vmatmul.bf16.gmra.mxu1 %v3522_v45  ;;  %3787 = vmatmul.bf16.gmra.mxu2 %v3522_v45  ;;  %v3475_v43 = vmul.f32 %v3360_v5, %v9036_v11 }
 0x770   : > { %v3364_v15 = vmul.f32 0.5, %v3363_v40  ;;  %v3191_v9 = vpop.xlane.xlu2 %3190  ;;  %3836 = vmatmul.bf16.gmra.mxu3 %v3522_v45  ;;  %3885 = vmatmul.bf16.gmra.mxu0 %v3522_v45 }
 0x771   : > { %v3214_v48 = vmul.f32 %v8996_v41, %v3191_v9  ;;  %3271 = vadd.xlane.f32.xlu2 %v3243_v21  ;;  %v3492_v32 = vmul.f32 %v9160_v53, %v3475_v43 }
 0x772   : > { %v3365_v59 = vsub.f32 1.5, %v3364_v15 }
 0x773   : > { %v9226_v30 = vsub.f32 %v9074_v35, %v3214_v48  ;;  %v9234_v61 = vadd.f32 %v9168_v12, %v3492_v32 }
 0x774   : > { %v3366_v57 = vmul.f32 %v6847_v25, %v3365_v59 }
 0x775   : > { %v3246_v63 = vmul.f32 %v9226_v30, %v9226_v30  ;;  %10501 = vst [vmem:[#allocation40_spill] sm:$0xff] %v9234_v61 }
 0x776   : > { %v3370_v33 = vsel %vm3369_vm7, %v6847_v25, %v3366_v57 }
 0x777   : > { %v3476_v34 = vmul.f32 %v3370_v33, %v9054_v55  ;;  %v3286_v55 = vmul.f32 %v9194_v37, %v8996_v41 }
 0x779   : > { %v3493_v31 = vmul.f32 %v9160_v53, %v3476_v34  ;;  %3277 = vadd.xlane.f32.xlu2 %v3246_v63  ;;  %v3302_v19 = vadd.f32 1e-12, %v3286_v55 }
 0x77b   : > { %v9237_v11 = vadd.f32 %v9168_v12, %v3493_v31  ;;  %6848 = vrsqrt.f32 %v3302_v19  ;;  %vm3387_vm9 = vweird.f32 %v3302_v19 }
 0x77d   : > { %10502 = vst [vmem:[#allocation41_spill] sm:$0xff] %v9237_v11  ;;  %v3523_v35 = vpack.c.bf16 %v9237_v11, %v9234_v61 }
 0x77f   : > { %3743 = vmatmul.bf16.gmra.mxu1 %v3523_v35  ;;  %3792 = vmatmul.bf16.gmra.mxu2 %v3523_v35 }
 0x780   : > { %3841 = vmatmul.bf16.gmra.mxu3 %v3523_v35  ;;  %3890 = vmatmul.bf16.gmra.mxu0 %v3523_v35 }
 0x781   : > { %v6849_v36 = vpop.eup %6848 }
 0x782   : > { %v3382_v10 = vmul.f32 %v6849_v36, %v3302_v19  ;;  %vm3388_vm8 = vweird.f32 %v6849_v36 }
 0x783   : > { %vm3389_vm10 = vmor %vm3387_vm9, %vm3388_vm8 }
 0x784   : > { %v3383_v3 = vmul.f32 %v6849_v36, %v3382_v10 }
 0x786   : > { %v3384_v8 = vmul.f32 0.5, %v3383_v3 }
 0x788   : > { %v3385_v39 = vsub.f32 1.5, %v3384_v8 }
 0x78a   : > { %v3386_v37 = vmul.f32 %v6849_v36, %v3385_v39 }
 0x78c   : > { %v3390_v2 = vsel %vm3389_vm10, %v6849_v36, %v3386_v37 }
 0x78d   : > { %v3478_v18 = vmul.f32 %v3390_v2, %v9047_v28 }
 0x78f   : > { %v3495_v28 = vmul.f32 %v9160_v53, %v3478_v18 }
 0x791   : > { %v9267_v48 = vadd.f32 %v9168_v12, %v3495_v28 }
 0x793   : > { %10504 = vst [vmem:[#allocation43_spill] sm:$0xff] %v9267_v48 }
 0x7b6   : > { %v3260_v54 = vpop.xlane.xlu0 %3259 }
 0x7b7   : > { %v3285_v51 = vmul.f32 %v3260_v54, %v8996_v41 }
 0x7b9   : > { %v3301_v0 = vadd.f32 1e-12, %v3285_v51 }
 0x7bb   : > { %6850 = vrsqrt.f32 %v3301_v0  ;;  %vm3377_vm12 = vweird.f32 %v3301_v0 }
 0x7bc   : > { %6852 = vrsqrt.f32 %v3303_v22 }
 0x7be   : > { %v3187_v49 = vpop.xlane.xlu0 %3186 }
 0x7bf   : > { %v3212_v44 = vmul.f32 %v8996_v41, %v3187_v49 }
 0x7c1   : > { %v6851_v58 = vpop.eup %6850  ;;  %v9246_v52 = vsub.f32 %v9155_v38, %v3212_v44 }
 0x7c2   : > { %v3372_v46 = vmul.f32 %v6851_v58, %v3301_v0  ;;  %vm3378_vm11 = vweird.f32 %v6851_v58  ;;  %v6853_v15 = vpop.eup %6852 }
 0x7c3   : > { %v3244_v20 = vmul.f32 %v9246_v52, %v9246_v52  ;;  %vm3379_vm13 = vmor %vm3377_vm12, %vm3378_vm11  ;;  %v3392_v43 = vmul.f32 %v6853_v15, %v3303_v22  ;;  %vm3398_vm14 = vweird.f32 %v6853_v15 }
 0x7c4   : > { %v3373_v47 = vmul.f32 %v6851_v58, %v3372_v46  ;;  %vm3399_vm1 = vmor %vm3397_vm15, %vm3398_vm14 }
 0x7c5   : > { %3273 = vadd.xlane.f32.xlu1 %v3244_v20  ;;  %v3393_v32 = vmul.f32 %v6853_v15, %v3392_v43 }
 0x7c6   : > { %v3374_v26 = vmul.f32 0.5, %v3373_v47  ;;  %v3189_v4 = vpop.xlane.xlu0 %3188 }
 0x7c7   : > { %v3213_v38 = vmul.f32 %v8996_v41, %v3189_v4  ;;  %v3394_v35 = vmul.f32 0.5, %v3393_v32 }
 0x7c8   : > { %v3375_v50 = vsub.f32 1.5, %v3374_v26 }
 0x7c9   : > { %v9255_v6 = vsub.f32 %v9165_v60, %v3213_v38  ;;  %v3395_v3 = vsub.f32 1.5, %v3394_v35  ;;  %v7047_v35 = vld [vmem:[%s7748_s20 + $0x10] sm:$0xff] }
 0x7ca   : > { %v3376_v25 = vmul.f32 %v6851_v58, %v3375_v50  ;;  %v3266_v27 = vpop.xlane.xlu1 %3265 }
 0x7cb   : > { %v3288_v1 = vmul.f32 %v3266_v27, %v8996_v41  ;;  %v3245_v40 = vmul.f32 %v9255_v6, %v9255_v6  ;;  %v3396_v8 = vmul.f32 %v6853_v15, %v3395_v3 }
 0x7cc   : > { %v3380_v45 = vsel %vm3379_vm13, %v6851_v58, %v3376_v25 }
 0x7cd   : > { %v3477_v21 = vmul.f32 %v3380_v45, %v9145_v56  ;;  %v3304_v5 = vadd.f32 1e-12, %v3288_v1  ;;  %3275 = vadd.xlane.f32.xlu0 %v3245_v40  ;;  %v3400_v58 = vsel %vm3399_vm1, %v6853_v15, %v3396_v8 }
 0x7ce   : > { %v3479_v20 = vmul.f32 %v3400_v58, %v9065_v14 }
 0x7cf   : > { %6854 = vrsqrt.f32 %v3304_v5  ;;  %v3494_v60 = vmul.f32 %v9160_v53, %v3477_v21  ;;  %vm3407_vm2 = vweird.f32 %v3304_v5 }
 0x7d0   : > { %v3496_v22 = vmul.f32 %v9160_v53, %v3479_v20 }
 0x7d1   : > { %v9264_v9 = vadd.f32 %v9168_v12, %v3494_v60 }
 0x7d2   : > { %v3268_v59 = vpop.xlane.xlu1 %3267  ;;  %v9278_v27 = vadd.f32 %v9168_v12, %v3496_v22 }
 0x7d3   : > { %10503 = vst [vmem:[#allocation42_spill] sm:$0xff] %v9264_v9  ;;  %v3289_v57 = vmul.f32 %v3268_v59, %v8996_v41  ;;  %v3524_v56 = vpack.c.bf16 %v9267_v48, %v9264_v9  ;;  %v7045_v59 = vld [vmem:[%s7748_s20] sm:$0xff] }
 0x7d4   : > { %10505 = vst [vmem:[#allocation44_spill] sm:$0xff] %v9278_v27 }
 0x7d5   : > { %v6855_v33 = vpop.eup %6854  ;;  %v3305_v63 = vadd.f32 1e-12, %v3289_v57  ;;  %3748 = vmatmul.bf16.gmra.mxu1 %v3524_v56  ;;  %3797 = vmatmul.bf16.gmra.mxu2 %v3524_v56 }
 0x7d6   : > { %v3402_v34 = vmul.f32 %v6855_v33, %v3304_v5  ;;  %3846 = vmatmul.bf16.gmra.mxu3 %v3524_v56  ;;  %3895 = vmatmul.bf16.gmra.mxu0 %v3524_v56  ;;  %vm3408_vm0 = vweird.f32 %v6855_v33  ;;  %v1043_v56 = vld [vmem:[%s7748_s20 + $0x18] sm:$0xff] }
 0x7d7   : > { %6856 = vrsqrt.f32 %v3305_v63  ;;  %vm3409_vm3 = vmor %vm3407_vm2, %vm3408_vm0  ;;  %vm3417_vm8 = vweird.f32 %v3305_v63 }
 0x7d8   : > { %v3403_v31 = vmul.f32 %v6855_v33, %v3402_v34  ;;  %v3734_v43 = vpop.f32.mrf.mxu1 }
 0x7d9   : > { %v3881_v32 = vpop.f32.mrf.mxu0 }
 0x7da   : > { %v3404_v36 = vmul.f32 0.5, %v3403_v31 }
 0x7db   : > { %v3270_v55 = vpop.xlane.xlu0 %3269 }
 0x7dc   : > { %v3290_v19 = vmul.f32 %v3270_v55, %v8996_v41  ;;  %v3405_v51 = vsub.f32 1.5, %v3404_v36  ;;  %v9308_v55 = vperm.slane %v7047_v35, 1 }
 0x7dd   : > { %v6857_v10 = vpop.eup %6856 }
 0x7de   : > { %v3306_v54 = vadd.f32 1e-12, %v3290_v19  ;;  %v3412_v0 = vmul.f32 %v6857_v10, %v3305_v63  ;;  %v3406_v39 = vmul.f32 %v6855_v33, %v3405_v51  ;;  %vm3418_vm5 = vweird.f32 %v6857_v10  ;;  %v3783_v31 = vpop.f32.mrf.mxu2 }
 0x7df   : > { %vm3419_vm9 = vmor %vm3417_vm8, %vm3418_vm5  ;;  %v9310_v19 = vperm.slane %v1043_v56, 1  ;;  %v3832_v36 = vpop.f32.mrf.mxu3 }
 0x7e0   : > { %6858 = vrsqrt.f32 %v3306_v54  ;;  %v3413_v49 = vmul.f32 %v6857_v10, %v3412_v0  ;;  %v3410_v29 = vsel %vm3409_vm3, %v6855_v33, %v3406_v39  ;;  %vm3427_vm6 = vweird.f32 %v3306_v54  ;;  %v7046_v33 = vld [vmem:[%s7748_s20 + $0x8] sm:$0xff] }
 0x7e1   : > { %v3480_v2 = vmul.f32 %v3410_v29, %v9173_v7  ;;  %v9305_v63 = vperm.slane %v7046_v33, 1  ;;  %v9318_v51 = vadd.f32 %v3832_v36, %v9308_v55  ;;  %v3882_v0 = vadd.f32 %v3881_v32, %v9310_v19 }
 0x7e2   : > { %v3414_v46 = vmul.f32 0.5, %v3413_v49 }
 0x7e3   : > { %v3497_v18 = vmul.f32 %v9160_v53, %v3480_v2  ;;  %v3987_v58 = vmul.f32 0.044715, %v9318_v51 }
 0x7e4   : > { %v3415_v4 = vsub.f32 1.5, %v3414_v46  ;;  %v3272_v34 = vpop.xlane.xlu2 %3271  ;;  %v3883_v46 = vpop.f32.mrf.mxu0 }
 0x7e5   : > { %v9281_v14 = vadd.f32 %v9168_v12, %v3497_v18 }
 0x7e6   : > { %v6859_v44 = vpop.eup %6858  ;;  %v3416_v25 = vmul.f32 %v6857_v10, %v3415_v4  ;;  %v3785_v2 = vpop.f32.mrf.mxu2  ;;  %v9334_v4 = vadd.f32 %v3883_v46, %v9310_v19 }
 0x7e7   : > { %v3422_v37 = vmul.f32 %v6859_v44, %v3306_v54  ;;  %vm3428_vm4 = vweird.f32 %v6859_v44  ;;  %10506 = vst [vmem:[#allocation45_spill] sm:$0xff] %v9281_v14  ;;  %v3525_v1 = vpack.c.bf16 %v9281_v14, %v9278_v27  ;;  %v9315_v54 = vadd.f32 %v3783_v31, %v9305_v63  ;;  %v6373_v14 = vld [vmem:[%s7746_s19 + $0x60] sm:$0xff] }
 0x7e8   : > { %vm3429_vm7 = vmor %vm3427_vm6, %vm3428_vm4  ;;  %v3420_v40 = vsel %vm3419_vm9, %v6857_v10, %v3416_v25  ;;  %v3291_v10 = vmul.f32 %v3272_v34, %v8996_v41 }
 0x7e9   : > { %v3423_v47 = vmul.f32 %v6859_v44, %v3422_v37  ;;  %3753 = vmatmul.bf16.gmra.mxu1 %v3525_v1  ;;  %3802 = vmatmul.bf16.gmra.mxu2 %v3525_v1  ;;  %v3481_v21 = vmul.f32 %v3420_v40, %v9190_v24  ;;  %v9298_v24 = vperm.slane %v7045_v59, 1  ;;  %v3986_v49 = vmul.f32 0.044715, %v9315_v54 }
 0x7ea   : > { %3851 = vmatmul.bf16.gmra.mxu3 %v3525_v1  ;;  %3900 = vmatmul.bf16.gmra.mxu0 %v3525_v1  ;;  %v9321_v8 = vadd.f32 1e-12, %v3291_v10  ;;  %v3988_v37 = vmul.f32 0.044715, %v3882_v0  ;;  %v9340_v1 = vadd.f32 %v3785_v2, %v9305_v63 }
 0x7eb   : > { %v3424_v26 = vmul.f32 0.5, %v3423_v47  ;;  %v3498_v28 = vmul.f32 %v9160_v53, %v3481_v21  ;;  %v9301_v57 = vadd.f32 %v3734_v43, %v9298_v24  ;;  %v4050_v47 = vmul.f32 %v3986_v49, %v9315_v54 }
 0x7ec   : > { %6860 = vrsqrt.f32 %v9321_v8  ;;  %v3278_v22 = vpop.xlane.xlu2 %3277  ;;  %v3990_v34 = vmul.f32 0.044715, %v9340_v1  ;;  %vm3437_vm10 = vweird.f32 %v9321_v8 }
 0x7ed   : > { %v3425_v38 = vsub.f32 1.5, %v3424_v26  ;;  %v9293_v15 = vadd.f32 %v9168_v12, %v3498_v28  ;;  %v3985_v3 = vmul.f32 0.044715, %v9301_v57  ;;  %v4051_v26 = vmul.f32 %v3987_v58, %v9318_v51 }
 0x7ee   : > { %v3294_v21 = vmul.f32 %v3278_v22, %v8996_v41  ;;  %v3992_v28 = vmul.f32 0.044715, %v9334_v4  ;;  %v4054_v58 = vmul.f32 %v3990_v34, %v9340_v1  ;;  %v6376_v34 = vld [vmem:[%s7746_s19 + $0x78] sm:$0xff] }
 0x7ef   : > { %v3426_v50 = vmul.f32 %v6859_v44, %v3425_v38  ;;  %10508 = vst [vmem:[#allocation47_spill] sm:$0xff] %v9293_v15  ;;  %v4049_v39 = vmul.f32 %v3985_v3, %v9301_v57  ;;  %v3834_v38 = vpop.f32.mrf.mxu3  ;;  %4835 = vmatpush.bf16.msra.mxu2 %v6376_v34 }
 0x7f0   : > { %v9356_v35 = vadd.f32 1e-12, %v3294_v21  ;;  %v4056_v10 = vmul.f32 %v3992_v28, %v9334_v4  ;;  %v9374_v28 = vmul.f32 0.5, %v9301_v57 }
 0x7f1   : > { %v3430_v7 = vsel %vm3429_vm7, %v6859_v44, %v3426_v50  ;;  %v3736_v44 = vpop.f32.mrf.mxu1  ;;  %v4113_v20 = vmul.f32 %v4049_v39, %v9301_v57  ;;  %v4052_v50 = vmul.f32 %v3988_v37, %v3882_v0 }
 0x7f2   : > { %v3482_v45 = vmul.f32 %v3430_v7, %v9200_v23  ;;  %v9327_v29 = vadd.f32 %v3736_v44, %v9298_v24  ;;  %v4114_v7 = vmul.f32 %v4050_v47, %v9315_v54  ;;  %v9342_v40 = vpop.eup %6860  ;;  %v4120_v2 = vmul.f32 %v4056_v10, %v9334_v4 }
 0x7f3   : > { %v4177_v25 = vadd.f32 %v4113_v20, %v9301_v57  ;;  %v3432_v33 = vmul.f32 %v9342_v40, %v9321_v8  ;;  %v9387_v10 = vmul.f32 0.5, %v9315_v54  ;;  %v9390_v57 = vmul.f32 0.5, %v9318_v51 }
 0x7f4   : > { %v3499_v5 = vmul.f32 %v9160_v53, %v3482_v45  ;;  %v3989_v18 = vmul.f32 0.044715, %v9327_v29  ;;  %v9345_v45 = vadd.f32 %v3834_v38, %v9308_v55  ;;  %v4178_v56 = vadd.f32 %v4114_v7, %v9315_v54  ;;  %v3788_v7 = vpop.f32.mrf.mxu2  ;;  %v6367_v54 = vld [vmem:[%s7746_s19 + $0x30] sm:$0xff] }
 0x7f5   : > { %v4241_v43 = vmul.f32 0.7978846, %v4177_v25  ;;  %v3433_v44 = vmul.f32 %v9342_v40, %v3432_v33  ;;  %v4118_v25 = vmul.f32 %v4054_v58, %v9340_v1  ;;  %v6368_v33 = vld [vmem:[%s7746_s19 + $0x38] sm:$0xff]  ;;  %vm3438_vm11 = vweird.f32 %v9342_v40 }
 0x7f6   : > { %v9290_v60 = vadd.f32 %v9168_v12, %v3499_v5  ;;  %v4115_v5 = vmul.f32 %v4051_v26, %v9318_v51  ;;  %v4053_v59 = vmul.f32 %v3989_v18, %v9327_v29  ;;  %v3991_v31 = vmul.f32 0.044715, %v9345_v45  ;;  %v3886_v26 = vpop.f32.mrf.mxu0  ;;  %4786 = vmatpush.bf16.msra.mxu1 %v6368_v33  ;;  %vm9452_vm12 = vmor %vm3437_vm10, %vm3438_vm11 }
 0x7f7   : > { %6862 = vtanh.f32 %v4241_v43  ;;  %v4242_v49 = vmul.f32 0.7978846, %v4178_v56  ;;  %v3434_v18 = vmul.f32 0.5, %v3433_v44  ;;  %v3837_v43 = vpop.f32.mrf.mxu3  ;;  %v4182_v58 = vadd.f32 %v4118_v25, %v9340_v1 }
 0x7f8   : > { %10507 = vst [vmem:[#allocation46_spill] sm:$0xff] %v9290_v60  ;;  %v3526_v23 = vpack.c.bf16 %v9290_v60, %v9293_v15  ;;  %v4179_v36 = vadd.f32 %v4115_v5, %v9318_v51  ;;  %v4117_v39 = vmul.f32 %v4053_v59, %v9327_v29  ;;  %v4055_v46 = vmul.f32 %v3991_v31, %v9345_v45  ;;  %v6384_v31 = vld [vmem:[%s7746_s19 + $0xb8] sm:$0xff]  ;;  %v6375_v51 = vld [vmem:[%s7746_s19 + $0x70] sm:$0xff] }
 0x7f9   : > { %v3739_v32 = vpop.f32.mrf.mxu1  ;;  %6864 = vrsqrt.f32 %v9356_v35  ;;  %v4184_v59 = vadd.f32 %v4120_v2, %v9334_v4  ;;  %v3435_v44 = vsub.f32 1.5, %v3434_v18  ;;  %4884 = vmatpush.bf16.msrb.mxu3 %v6384_v31  ;;  %v6391_v2 = vld [vmem:[%s7746_s19 + $0xf0] sm:$0xff]  ;;  %v9413_v18 = vmul.f32 0.5, %v9340_v1  ;;  %4836 = vmatpush.bf16.msra.mxu2 %v6375_v51 }
 0x7fa   : > { %3758 = vmatmul.bf16.gmra.mxu1 %v3526_v23  ;;  %3807 = vmatmul.bf16.gmra.mxu2 %v3526_v23  ;;  %v4243_v47 = vmul.f32 0.7978846, %v4179_v36  ;;  %v4181_v38 = vadd.f32 %v4117_v39, %v9327_v29  ;;  %6866 = vtanh.f32 %v4242_v49  ;;  %v4119_v21 = vmul.f32 %v4055_v46, %v9345_v45  ;;  %v6392_v39 = vld [vmem:[%s7746_s19 + $0xf8] sm:$0xff] }
 0x7fb   : > { %3856 = vmatmul.bf16.gmra.mxu3 %v3526_v23  ;;  %3905 = vmatmul.bf16.gmra.mxu0 %v3526_v23  ;;  %v4116_v23 = vmul.f32 %v4052_v50, %v3882_v0  ;;  %v9397_v49 = vmul.f32 0.5, %v9327_v29  ;;  %v6383_v29 = vld [vmem:[%s7746_s19 + $0xb0] sm:$0xff]  ;;  %v4246_v1 = vmul.f32 0.7978846, %v4182_v58  ;;  %vm3467_vm14 = vweird.f32 %v9356_v35 }
 0x7fc   : > { %4933 = vmatpush.bf16.msra.mxu0 %v6392_v39  ;;  %4787 = vmatpush.bf16.msra.mxu1 %v6367_v54  ;;  %v9438_v54 = vadd.f32 %v3837_v43, %v9308_v55  ;;  %v3790_v51 = vpop.f32.mrf.mxu2 }
 0x7fd   : > { %v4180_v3 = vadd.f32 %v4116_v23, %v3882_v0  ;;  %v6863_v5 = vpop.eup %6862  ;;  %v9376_v23 = vmul.f32 0.5, %v3882_v0  ;;  %v4245_v0 = vmul.f32 0.7978846, %v4181_v38  ;;  %4885 = vmatpush.bf16.msrb.mxu3 %v6383_v29 }
 0x7fe   : > { %v9402_v46 = vadd.f32 1.0, %v6863_v5  ;;  %v3888_v31 = vpop.f32.mrf.mxu0 }
 0x7ff   : > { %v4244_v50 = vmul.f32 0.7978846, %v4180_v3  ;;  %v9384_v36 = vpop.eup %6864  ;;  %v9393_v3 = vadd.f32 %v3739_v32, %v9298_v24  ;;  %v4183_v32 = vadd.f32 %v4119_v21, %v9345_v45  ;;  %v9468_v8 = vadd.f32 %v3888_v31, %v9310_v19  ;;  %v6389_v31 = vld [vmem:[%s7746_s19 + $0xe0] sm:$0xff] }
 0x800   : > { %v6867_v38 = vpop.eup %6866  ;;  %v3462_v25 = vmul.f32 %v9384_v36, %v9356_v35  ;;  %4934 = vmatpush.bf16.msra.mxu0 %v6391_v2  ;;  %vm3468_vm0 = vweird.f32 %v9384_v36 }
 0x801   : > { %v9379_v56 = vpop.f32.mrf.mxu1  ;;  %v3993_v5 = vmul.f32 0.044715, %v9393_v3  ;;  %v9444_v60 = vadd.f32 1.0, %v6867_v38  ;;  %vm9549_vm3 = vmor %vm3467_vm14, %vm3468_vm0 }
 0x802   : > { %v3463_v58 = vmul.f32 %v9384_v36, %v3462_v25  ;;  %v6390_v25 = vld [vmem:[%s7746_s19 + $0xe8] sm:$0xff] }
 0x803   : > { %v9457_v43 = vmul.f32 %v3993_v5, %v9393_v3  ;;  %v6365_v5 = vld [vmem:[%s7746_s19 + $0x20] sm:$0xff] }
 0x804   : > { %4935 = vmatpush.bf16.msra.mxu0 %v6390_v25  ;;  %v3464_v2 = vmul.f32 0.5, %v3463_v58 }
 0x806   : > { %v3465_v48 = vsub.f32 1.5, %v3464_v2  ;;  %v3891_v9 = vpop.f32.mrf.mxu0 }
 0x808   : > { %4936 = vmatpush.bf16.msra.mxu0 %v6389_v31 }
 0x838   : > { %v3274_v37 = vpop.xlane.xlu1 %3273 }
 0x839   : > { %v3292_v20 = vmul.f32 %v3274_v37, %v8996_v41 }
 0x83b   : > { %v9368_v22 = vadd.f32 1e-12, %v3292_v20  ;;  %v9406_v20 = vadd.f32 %v3886_v26, %v9310_v19  ;;  %v9420_v26 = vmul.f32 0.5, %v9345_v45  ;;  %v4247_v45 = vmul.f32 0.7978846, %v4183_v32 }
 0x83d   : > { %6868 = vrsqrt.f32 %v9368_v22  ;;  %vm3447_vm15 = vweird.f32 %v9368_v22 }
 0x83e   : > { %6870 = vtanh.f32 %v4243_v47 }
 0x83f   : > { %6872 = vtanh.f32 %v4244_v50  ;;  %v4248_v50 = vmul.f32 0.7978846, %v4184_v59  ;;  %v3436_v59 = vmul.f32 %v9342_v40, %v3435_v44 }
 0x840   : > { %v3276_v37 = vpop.xlane.xlu0 %3275  ;;  %6874 = vtanh.f32 %v4245_v0  ;;  %v3996_v0 = vmul.f32 0.044715, %v9406_v20 }
 0x841   : > { %v3293_v47 = vmul.f32 %v3276_v37, %v8996_v41  ;;  %v9431_v37 = vadd.f32 %v3788_v7, %v9305_v63  ;;  %v6374_v41 = vld [vmem:[%s7746_s19 + $0x68] sm:$0xff]  ;;  %v3440_v38 = vsel %vm9452_vm12, %v9342_v40, %v3436_v59  ;;  %v9477_v59 = vadd.f32 %v3790_v51, %v9305_v63 }
 0x842   : > { %v6382_v7 = vld [vmem:[%s7746_s19 + $0xa8] sm:$0xff]  ;;  %4837 = vmatpush.bf16.msra.mxu2 %v6374_v41  ;;  %v9473_v27 = vmul.f32 %v3996_v0, %v9406_v20 }
 0x843   : > { %v9417_v21 = vpop.eup %6868  ;;  %v9423_v33 = vadd.f32 1e-12, %v3293_v47  ;;  %v6366_v47 = vld [vmem:[%s7746_s19 + $0x28] sm:$0xff]  ;;  %v3994_v40 = vmul.f32 0.044715, %v9431_v37  ;;  %4886 = vmatpush.bf16.msrb.mxu3 %v6382_v7 }
 0x844   : > { %v6871_v34 = vpop.eup %6870  ;;  %v3442_v39 = vmul.f32 %v9417_v21, %v9368_v22  ;;  %4788 = vmatpush.bf16.msra.mxu1 %v6366_v47  ;;  %vm3448_vm13 = vweird.f32 %v9417_v21 }
 0x845   : > { %6876 = vrsqrt.f32 %v9423_v33  ;;  %v9434_v44 = vpop.eup %6872  ;;  %v9446_v29 = vadd.f32 1.0, %v6871_v34  ;;  %v3839_v34 = vpop.f32.mrf.mxu3  ;;  %vm3449_vm1 = vmor %vm3447_vm15, %vm3448_vm13  ;;  %vm3457_vm4 = vweird.f32 %v9423_v33 }
 0x846   : > { %6878 = vtanh.f32 %v4248_v50  ;;  %v3443_v32 = vmul.f32 %v9417_v21, %v3442_v39  ;;  %v9461_v50 = vadd.f32 %v9379_v56, %v9298_v24  ;;  %v3744_v39 = vpop.f32.mrf.mxu1  ;;  %v6875_v56 = vpop.eup %6874  ;;  %v9489_v51 = vadd.f32 %v3839_v34, %v9308_v55  ;;  %4838 = vmatpush.bf16.msra.mxu2 %v6373_v14 }
 0x847   : > { %6880 = vtanh.f32 %v4246_v1  ;;  %v6381_v1 = vld [vmem:[%s7746_s19 + $0xa0] sm:$0xff]  ;;  %v9492_v7 = vadd.f32 %v3744_v39, %v9298_v24  ;;  %v3998_v34 = vmul.f32 0.044715, %v9477_v59  ;;  %v4373_v39 = vadd.f32 1.0, %v6875_v56 }
 0x848   : > { %v3444_v15 = vmul.f32 0.5, %v3443_v32  ;;  %6882 = vtanh.f32 %v4247_v45  ;;  %v3995_v32 = vmul.f32 0.044715, %v9438_v54  ;;  %v3483_v45 = vmul.f32 %v3440_v38, %v9217_v62  ;;  %4789 = vmatpush.bf16.msra.mxu1 %v6365_v5  ;;  %4887 = vmatpush.bf16.msrb.mxu3 %v6381_v1 }
 0x849   : > { %v3997_v0 = vmul.f32 0.044715, %v9461_v50  ;;  %v4058_v38 = vmul.f32 %v3994_v40, %v9431_v37  ;;  %v3999_v40 = vmul.f32 0.044715, %v9489_v51  ;;  %v4001_v61 = vmul.f32 0.044715, %v9492_v7 }
 0x84a   : > { %v3445_v41 = vsub.f32 1.5, %v3444_v15  ;;  %v4000_v15 = vmul.f32 0.044715, %v9468_v8  ;;  %v9507_v22 = vmul.f32 %v3995_v32, %v9438_v54  ;;  %v3500_v1 = vmul.f32 %v9160_v53, %v3483_v45 }
 0x84b   : > { %v9483_v47 = vpop.eup %6876  ;;  %v4061_v56 = vmul.f32 %v3997_v0, %v9461_v50  ;;  %v4062_v32 = vmul.f32 %v3998_v34, %v9477_v59  ;;  %v3466_v45 = vmul.f32 %v9384_v36, %v3465_v48  ;;  %v3793_v0 = vpop.f32.mrf.mxu2 }
 0x84c   : > { %v9494_v58 = vpop.eup %6878  ;;  %v3446_v25 = vmul.f32 %v9417_v21, %v3445_v41  ;;  %v3452_v62 = vmul.f32 %v9483_v47, %v9423_v33  ;;  %v9517_v31 = vmul.f32 %v4000_v15, %v9468_v8  ;;  %vm3458_vm2 = vweird.f32 %v9483_v47  ;;  %v6388_v33 = vld [vmem:[%s7746_s19 + $0xd8] sm:$0xff] }
 0x84d   : > { %v6881_v41 = vpop.eup %6880  ;;  %vm9564_vm5 = vmor %vm3457_vm4, %vm3458_vm2  ;;  %4937 = vmatpush.bf16.msra.mxu0 %v6388_v33 }
 0x84e   : > { %v3450_v14 = vsel %vm3449_vm1, %v9417_v21, %v3446_v25  ;;  %v3453_v5 = vmul.f32 %v9483_v47, %v3452_v62  ;;  %v6883_v11 = vpop.eup %6882  ;;  %v9521_v21 = vmul.f32 %v9402_v46, %v9374_v28  ;;  %v9525_v25 = vadd.f32 %v3891_v9, %v9310_v19 }
 0x84f   : > { %v3484_v17 = vmul.f32 %v3450_v14, %v9246_v52  ;;  %v9529_v52 = vmul.f32 %v4373_v39, %v9397_v49  ;;  %v4374_v28 = vadd.f32 1.0, %v6881_v41  ;;  %v9534_v46 = vmul.f32 %v3999_v40, %v9489_v51  ;;  %v3746_v39 = vpop.f32.mrf.mxu1  ;;  %v6364_v41 = vld [vmem:[%s7746_s19 + $0x18] sm:$0xff] }
 0x850   : > { %v3454_v2 = vmul.f32 0.5, %v3453_v5  ;;  %v9537_v9 = vmul.f32 %v4001_v61, %v9492_v7  ;;  %v9540_v49 = vadd.f32 %v9168_v12, %v3500_v1  ;;  %v6372_v14 = vld [vmem:[%s7746_s19 + $0x58] sm:$0xff]  ;;  %v4375_v5 = vadd.f32 1.0, %v6883_v11  ;;  %4790 = vmatpush.bf16.msra.mxu1 %v6364_v41  ;;  %v6387_v41 = vld [vmem:[%s7746_s19 + $0xd0] sm:$0xff] }
 0x851   : > { %v3501_v62 = vmul.f32 %v9160_v53, %v3484_v17  ;;  %v3842_v17 = vpop.f32.mrf.mxu3  ;;  %v4121_v40 = vmul.f32 %v9457_v43, %v9393_v3  ;;  %v9560_v1 = vadd.f32 %v3793_v0, %v9305_v63  ;;  %v3470_v43 = vsel %vm9549_vm3, %v9384_v36, %v3466_v45  ;;  %4839 = vmatpush.bf16.msra.mxu2 %v6372_v14  ;;  %v6371_v45 = vld [vmem:[%s7746_s19 + $0x50] sm:$0xff] }
 0x852   : > { %v3455_v15 = vsub.f32 1.5, %v3454_v2  ;;  %10511 = vst [vmem:[#allocation48_spill] sm:$0xff] %v9540_v49  ;;  %v4004_v0 = vmul.f32 0.044715, %v9525_v25  ;;  %v3928_v11 = vmul.f32 0.5, %v9334_v4  ;;  %v9590_v48 = vadd.f32 %v3746_v39, %v9298_v24  ;;  %4938 = vmatpush.bf16.msra.mxu0 %v6387_v41 }
 0x853   : > { %v9543_v34 = vadd.f32 %v9168_v12, %v3501_v62  ;;  %v6380_v62 = vld [vmem:[%s7746_s19 + $0x98] sm:$0xff]  ;;  %v4122_v36 = vmul.f32 %v4058_v38, %v9431_v37  ;;  %v9598_v4 = vmul.f32 %v9444_v60, %v9387_v10  ;;  %v4002_v39 = vmul.f32 0.044715, %v9560_v1 }
 0x854   : > { %v3456_v61 = vmul.f32 %v9483_v47, %v3455_v15  ;;  %v4125_v15 = vmul.f32 %v4061_v56, %v9461_v50  ;;  %v9587_v56 = vadd.f32 %v3842_v17, %v9308_v55  ;;  %v4185_v17 = vadd.f32 %v4121_v40, %v9393_v3  ;;  %4888 = vmatpush.bf16.msrb.mxu3 %v6380_v62  ;;  %v6370_v62 = vld [vmem:[%s7746_s19 + $0x48] sm:$0xff] }
 0x855   : > { %10512 = vst [vmem:[#allocation49_spill] sm:$0xff] %v9543_v34  ;;  %v3527_v2 = vpack.c.bf16 %v9543_v34, %v9540_v49  ;;  %v9583_v34 = vmul.f32 %v4374_v28, %v9413_v18  ;;  %v6363_v18 = vld [vmem:[%s7746_s19 + $0x10] sm:$0xff]  ;;  %v9601_v28 = vmul.f32 %v4375_v5, %v9420_v26  ;;  %v4126_v60 = vmul.f32 %v4062_v32, %v9477_v59 }
 0x856   : > { %v3460_v42 = vsel %vm9564_vm5, %v9483_v47, %v3456_v61  ;;  %v4372_v47 = vadd.f32 1.0, %v9434_v44  ;;  %v3893_v61 = vpop.f32.mrf.mxu0  ;;  %v6379_v44 = vld [vmem:[%s7746_s19 + $0x90] sm:$0xff]  ;;  %v4189_v14 = vadd.f32 %v4125_v15, %v9461_v50  ;;  %v3486_v10 = vmul.f32 %v3470_v43, %v9226_v30  ;;  %4791 = vmatpush.bf16.msra.mxu1 %v6363_v18  ;;  %4840 = vmatpush.bf16.msra.mxu2 %v6371_v45  ;;  %v3795_v15 = vpop.f32.mrf.mxu2  ;;  %v6386_v18 = vld [vmem:[%s7746_s19 + $0xc8] sm:$0xff] }
 0x857   : > { %3763 = vmatmul.bf16.gmra.mxu1 %v3527_v2  ;;  %3812 = vmatmul.bf16.gmra.mxu2 %v3527_v2  ;;  %v3485_v38 = vmul.f32 %v3460_v42, %v9255_v6  ;;  %v9612_v26 = vmul.f32 %v4004_v0, %v9525_v25  ;;  %v9616_v42 = vmul.f32 %v9446_v29, %v9390_v57  ;;  %v4376_v6 = vadd.f32 1.0, %v9494_v58 }
 0x858   : > { %3861 = vmatmul.bf16.gmra.mxu3 %v3527_v2  ;;  %3910 = vmatmul.bf16.gmra.mxu0 %v3527_v2  ;;  %v4003_v5 = vmul.f32 0.044715, %v9587_v56  ;;  %v4005_v40 = vmul.f32 0.044715, %v9590_v48  ;;  %v4186_v32 = vadd.f32 %v4122_v36, %v9431_v37  ;;  %v9625_v35 = vadd.f32 %v3893_v61, %v9310_v19  ;;  %v6362_v2 = vld [vmem:[%s7746_s19 + $0x8] sm:$0xff] }
 0x859   : > { %v9632_v29 = vmul.f32 %v4372_v47, %v9376_v23  ;;  %v4249_v58 = vmul.f32 0.7978846, %v4185_v17  ;;  %v9635_v33 = vmul.f32 %v4002_v39, %v9560_v1  ;;  %v3844_v43 = vpop.f32.mrf.mxu3  ;;  %v3502_v0 = vmul.f32 %v9160_v53, %v3485_v38  ;;  %4889 = vmatpush.bf16.msrb.mxu3 %v6379_v44  ;;  %v6378_v36 = vld [vmem:[%s7746_s19 + $0x88] sm:$0xff]  ;;  %4939 = vmatpush.bf16.msra.mxu0 %v6386_v18 }
 0x85a   : > { %v4253_v45 = vmul.f32 0.7978846, %v4189_v14  ;;  %v4190_v61 = vadd.f32 %v4126_v60, %v9477_v59  ;;  %v3503_v23 = vmul.f32 %v9160_v53, %v3486_v10  ;;  %4792 = vmatpush.bf16.msra.mxu1 %v6362_v2  ;;  %4841 = vmatpush.bf16.msra.mxu2 %v6370_v62  ;;  %v9642_v47 = vmul.f32 %v4376_v6, %v3928_v11  ;;  %v6361_v11 = vld [vmem:[%s7746_s19] sm:$0xff] }
 0x85b   : > { %v4123_v17 = vmul.f32 %v9507_v22, %v9438_v54  ;;  %v9647_v39 = vmul.f32 %v4003_v5, %v9587_v56  ;;  %v4069_v38 = vmul.f32 %v4005_v40, %v9590_v48  ;;  %v4250_v44 = vmul.f32 0.7978846, %v4186_v32  ;;  %v6369_v60 = vld [vmem:[%s7746_s19 + $0x40] sm:$0xff] }
 0x85c   : > { %v4127_v41 = vmul.f32 %v9534_v46, %v9489_v51  ;;  %v9653_v53 = vadd.f32 %v3795_v15, %v9305_v63  ;;  %v9656_v14 = vadd.f32 %v3844_v43, %v9308_v55  ;;  %6884 = vtanh.f32 %v4249_v58  ;;  %v6377_v6 = vld [vmem:[%s7746_s19 + $0x80] sm:$0xff]  ;;  %v3749_v58 = vpop.f32.mrf.mxu1 }
 0x85d   : > { %v4124_v22 = vmul.f32 %v9473_v27, %v9406_v20  ;;  %v9663_v10 = vadd.f32 %v9168_v12, %v3502_v0  ;;  %4890 = vmatpush.bf16.msrb.mxu3 %v6378_v36  ;;  %v6385_v5 = vld [vmem:[%s7746_s19 + $0xc0] sm:$0xff]  ;;  %6886 = vtanh.f32 %v4253_v45  ;;  %v4254_v46 = vmul.f32 0.7978846, %v4190_v61 }
 0x85e   : > { %v4128_v40 = vmul.f32 %v9517_v31, %v9468_v8  ;;  %v4008_v32 = vmul.f32 0.044715, %v9625_v35  ;;  %4793 = vmatpush.bf16.msra.mxu1 %v6361_v11  ;;  %4842 = vmatpush.bf16.msra.mxu2 %v6369_v60  ;;  %v3929_v2 = vmul.f32 0.5, %v9393_v3  ;;  %v3933_v27 = vmul.f32 0.5, %v9461_v50  ;;  %v3896_v18 = vpop.f32.mrf.mxu0 }
 0x85f   : > { %10517 = vst [vmem:[#allocation50_spill] sm:$0xff] %v9663_v10  ;;  %v4187_v62 = vadd.f32 %v4123_v17, %v9438_v54  ;;  %v9674_v15 = vadd.f32 %v9168_v12, %v3503_v23  ;;  %6888 = vtanh.f32 %v4250_v44  ;;  %v4191_v43 = vadd.f32 %v4127_v41, %v9489_v51  ;;  %4940 = vmatpush.bf16.msra.mxu0 %v6385_v5 }
 0x860   : > { %v4129_v31 = vmul.f32 %v9537_v9, %v9492_v7  ;;  %v4006_v0 = vmul.f32 0.044715, %v9653_v53  ;;  %v4007_v36 = vmul.f32 0.044715, %v9656_v14  ;;  %v4188_v50 = vadd.f32 %v4124_v22, %v9406_v20 }
 0x861   : > { %10518 = vst [vmem:[#allocation51_spill] sm:$0xff] %v9674_v15  ;;  %v3528_v12 = vpack.c.bf16 %v9674_v15, %v9663_v10  ;;  %4891 = vmatpush.bf16.msrb.mxu3 %v6377_v6  ;;  %6890 = vtanh.f32 %v4254_v46  ;;  %v4192_v45 = vadd.f32 %v4128_v40, %v9468_v8  ;;  %v4133_v9 = vmul.f32 %v4069_v38, %v9590_v48  ;;  %v3798_v46 = vpop.f32.mrf.mxu2 }
 0x862   : > { %v6885_v61 = vpop.eup %6884  ;;  %v4072_v23 = vmul.f32 %v4008_v32, %v9625_v35  ;;  %v3930_v17 = vmul.f32 0.5, %v9431_v37  ;;  %v9691_v44 = vmul.f32 0.5, %v9477_v59  ;;  %v4251_v41 = vmul.f32 0.7978846, %v4187_v62 }
 0x863   : > { %v6887_v11 = vpop.eup %6886  ;;  %v9694_v60 = vmul.f32 0.5, %v9438_v54  ;;  %v9697_v22 = vmul.f32 0.5, %v9489_v51  ;;  %v4255_v6 = vmul.f32 0.7978846, %v4191_v43  ;;  %v4193_v38 = vadd.f32 %v4129_v31, %v9492_v7  ;;  %v3847_v54 = vpop.f32.mrf.mxu3 }
 0x864   : > { %v4070_v5 = vmul.f32 %v4006_v0, %v9653_v53  ;;  %v4071_v37 = vmul.f32 %v4007_v36, %v9656_v14  ;;  %v9703_v59 = vmul.f32 0.5, %v9406_v20  ;;  %v4252_v40 = vmul.f32 0.7978846, %v4188_v50 }
 0x865   : > { %v6889_v32 = vpop.eup %6888  ;;  %v4377_v62 = vadd.f32 1.0, %v6885_v61  ;;  %v9706_v51 = vmul.f32 0.5, %v9468_v8  ;;  %v4256_v43 = vmul.f32 0.7978846, %v4192_v45  ;;  %v4197_v31 = vadd.f32 %v4133_v9, %v9590_v48 }
 0x866   : > { %v4381_v3 = vadd.f32 1.0, %v6887_v11  ;;  %6892 = vtanh.f32 %v4251_v41  ;;  %v9710_v0 = vmul.f32 0.5, %v9492_v7  ;;  %v9713_v36 = vmul.f32 0.5, %v9590_v48  ;;  %v3751_v48 = vpop.f32.mrf.mxu1 }
 0x867   : > { %3768 = vmatmul.bf16.gmra.mxu1 %v3528_v12  ;;  %3817 = vmatmul.bf16.gmra.mxu2 %v3528_v12  ;;  %v6891_v20 = vpop.eup %6890  ;;  %6894 = vtanh.f32 %v4255_v6  ;;  %v4257_v50 = vmul.f32 0.7978846, %v4193_v38  ;;  %v4130_v8 = vmul.f32 %v9635_v33, %v9560_v1  ;;  %v4378_v45 = vadd.f32 1.0, %v6889_v32 }
 0x868   : > { %3866 = vmatmul.bf16.gmra.mxu3 %v3528_v12  ;;  %3915 = vmatmul.bf16.gmra.mxu0 %v3528_v12  ;;  %v9716_v12 = vmul.f32 0.5, %v9560_v1  ;;  %6896 = vtanh.f32 %v4252_v40  ;;  %v9721_v9 = vmul.f32 0.5, %v9653_v53  ;;  %v4134_v7 = vmul.f32 %v4070_v5, %v9653_v53  ;;  %v3898_v5 = vpop.f32.mrf.mxu0 }
 0x869   : > { %v9725_v61 = vadd.f32 %v3749_v58, %v9298_v24  ;;  %v9727_v41 = vmul.f32 %v4377_v62, %v3929_v2  ;;  %6898 = vtanh.f32 %v4256_v43  ;;  %v4261_v11 = vmul.f32 0.7978846, %v4197_v31 }
 0x86a   : > { %v9730_v6 = vadd.f32 %v3896_v18, %v9310_v19  ;;  %v9732_v38 = vmul.f32 %v4381_v3, %v3933_v27  ;;  %v4382_v33 = vadd.f32 1.0, %v6891_v20  ;;  %v4135_v40 = vmul.f32 %v4071_v37, %v9656_v14 }
 0x86b   : > { %v9736_v32 = vadd.f32 %v3798_v46, %v9305_v63  ;;  %6900 = vtanh.f32 %v4257_v50  ;;  %v4194_v58 = vadd.f32 %v4130_v8, %v9560_v1  ;;  %v4136_v2 = vmul.f32 %v4072_v23, %v9625_v35 }
 0x86c   : > { %v6893_v62 = vpop.eup %6892  ;;  %v9741_v43 = vadd.f32 %v3751_v48, %v9298_v24  ;;  %v9743_v18 = vmul.f32 %v4378_v45, %v3930_v17  ;;  %v4198_v27 = vadd.f32 %v4134_v7, %v9653_v53  ;;  %v4131_v3 = vmul.f32 %v9647_v39, %v9587_v56  ;;  %v3800_v53 = vpop.f32.mrf.mxu2 }
 0x86d   : > { %v6895_v37 = vpop.eup %6894  ;;  %v4009_v46 = vmul.f32 0.044715, %v9725_v61  ;;  %v9750_v31 = vadd.f32 %v3847_v54, %v9308_v55  ;;  %6902 = vtanh.f32 %v4261_v11  ;;  %v4132_v1 = vmul.f32 %v9612_v26, %v9525_v25  ;;  %v3849_v45 = vpop.f32.mrf.mxu3 }
 0x86e   : > { %v6897_v23 = vpop.eup %6896  ;;  %v4012_v20 = vmul.f32 0.044715, %v9730_v6  ;;  %v9756_v17 = vadd.f32 %v3898_v5, %v9310_v19  ;;  %v9759_v50 = vmul.f32 0.5, %v9587_v56  ;;  %v4199_v39 = vadd.f32 %v4135_v40, %v9656_v14  ;;  %v9790_v16 = vpop.f32.mrf.mxu1 }
 0x86f   : > { %v6899_v8 = vpop.eup %6898  ;;  %v4010_v54 = vmul.f32 0.044715, %v9736_v32  ;;  %v4258_v26 = vmul.f32 0.7978846, %v4194_v58  ;;  %v4200_v48 = vadd.f32 %v4136_v2, %v9625_v35  ;;  %v4013_v11 = vmul.f32 0.044715, %v9741_v43 }
 0x870   : > { %v9768_v5 = vmul.f32 %v4382_v33, %v9691_v44  ;;  %v4262_v57 = vmul.f32 0.7978846, %v4198_v27  ;;  %v4195_v30 = vadd.f32 %v4131_v3, %v9587_v56  ;;  %v4073_v40 = vmul.f32 %v4009_v46, %v9725_v61 }
 0x871   : > { %v6901_v15 = vpop.eup %6900  ;;  %v4011_v10 = vmul.f32 0.044715, %v9750_v31  ;;  %v9774_v49 = vadd.f32 %v3800_v53, %v9305_v63  ;;  %v4196_v58 = vadd.f32 %v4132_v1, %v9525_v25  ;;  %v4076_v2 = vmul.f32 %v4012_v20, %v9730_v6 }
 0x872   : > { %v4016_v7 = vmul.f32 0.044715, %v9756_v17  ;;  %v9780_v44 = vadd.f32 %v3849_v45, %v9308_v55  ;;  %v4263_v33 = vmul.f32 0.7978846, %v4199_v39  ;;  %v4074_v56 = vmul.f32 %v4010_v54, %v9736_v32 }
 0x873   : > { %v6903_v27 = vpop.eup %6902  ;;  %v10519_v3 = vpack.c.bf16 %v9529_v52, %v9521_v21  ;;  %v10520_v46 = vpack.c.bf16 %v9583_v34, %v9598_v4  ;;  %v4383_v1 = vadd.f32 1.0, %v6895_v37  ;;  %6904 = vtanh.f32 %v4258_v26 }
 0x874   : > { %v4264_v20 = vmul.f32 0.7978846, %v4200_v48  ;;  %v4077_v53 = vmul.f32 %v4013_v11, %v9741_v43  ;;  %v10521_v39 = vpack.c.bf16 %v9601_v28, %v9616_v42  ;;  %v10522_v54 = vpack.c.bf16 %v9642_v47, %v9632_v29  ;;  %v9803_v28 = vpop.f32.mrf.mxu2 }
 0x875   : > { %v4379_v21 = vadd.f32 1.0, %v6893_v62  ;;  %6906 = vtanh.f32 %v4262_v57  ;;  %v4259_v52 = vmul.f32 0.7978846, %v4195_v30  ;;  %v4075_v34 = vmul.f32 %v4011_v10, %v9750_v31  ;;  %v9806_v29 = vpop.f32.mrf.mxu3  ;;  %v9813_v10 = vpop.f32.mrf.mxu0 }
 0x876   : > { %v4014_v4 = vmul.f32 0.044715, %v9774_v49  ;;  %v4260_v37 = vmul.f32 0.7978846, %v4196_v58  ;;  %v4137_v45 = vmul.f32 %v4073_v40, %v9725_v61  ;;  %v4080_v26 = vmul.f32 %v4016_v7, %v9756_v17 }
 0x877   : > { %4794 = vmatmul.bf16.vlgmr.msra.gmra.mxu1 %v10519_v3  ;;  %4843 = vmatmul.bf16.vlgmr.msra.gmra.mxu2 %v10520_v46  ;;  %v4015_v48 = vmul.f32 0.044715, %v9780_v44  ;;  %6908 = vtanh.f32 %v4263_v33  ;;  %v4140_v42 = vmul.f32 %v4076_v2, %v9730_v6  ;;  %v9809_v30 = vmul.f32 %v4383_v1, %v9697_v22 }
 0x878   : > { %4892 = vmatmul.bf16.vlgmr.msrb.gmra.mxu3 %v10521_v39  ;;  %4941 = vmatmul.bf16.vlgmr.msra.gmra.mxu0 %v10522_v54  ;;  %v3943_v57 = vmul.f32 0.5, %v9656_v14  ;;  %6910 = vtanh.f32 %v4264_v20  ;;  %v4138_v47 = vmul.f32 %v4074_v56, %v9736_v32  ;;  %v4380_v62 = vadd.f32 1.0, %v6897_v23 }
 0x879   : > { %v4384_v7 = vadd.f32 1.0, %v6899_v8  ;;  %6912 = vtanh.f32 %v4259_v52  ;;  %v4141_v11 = vmul.f32 %v4077_v53, %v9741_v43  ;;  %v6905_v40 = vpop.eup %6904  ;;  %v4078_v58 = vmul.f32 %v4014_v4, %v9774_v49 }
 0x87a   : > { %6914 = vtanh.f32 %v4260_v37  ;;  %v4201_v2 = vadd.f32 %v4137_v45, %v9725_v61  ;;  %v4139_v22 = vmul.f32 %v4075_v34, %v9750_v31  ;;  %v4079_v14 = vmul.f32 %v4015_v48, %v9780_v44 }
 0x87b   : > { %v6907_v33 = vpop.eup %6906  ;;  %v4443_v56 = vmul.f32 %v4379_v21, %v9694_v60  ;;  %v4144_v3 = vmul.f32 %v4080_v26, %v9756_v17  ;;  %v4204_v23 = vadd.f32 %v4140_v42, %v9730_v6  ;;  %v4502_v8 = vpack.c.bf16 %v9768_v5, %v9743_v18  ;;  %v3756_v5 = vpop.f32.mrf.mxu1 }
 0x87c   : > { %v4385_v46 = vadd.f32 1.0, %v6901_v15  ;;  %v3940_v1 = vmul.f32 0.5, %v9525_v25  ;;  %v4202_v20 = vadd.f32 %v4138_v47, %v9736_v32  ;;  %v4448_v54 = vmul.f32 %v4384_v7, %v9706_v51  ;;  %v3805_v47 = vpop.f32.mrf.mxu2 }
 0x87d   : > { %v6909_v53 = vpop.eup %6908  ;;  %v4503_v39 = vpack.c.bf16 %v9809_v30, %v4443_v56  ;;  %v3944_v52 = vmul.f32 0.5, %v9625_v35  ;;  %v4205_v60 = vadd.f32 %v4141_v11, %v9741_v43  ;;  %v4444_v34 = vmul.f32 %v4380_v62, %v9703_v59  ;;  %v3903_v56 = vpop.f32.mrf.mxu0 }
 0x87e   : > { %v6911_v21 = vpop.eup %6910  ;;  %v4265_v4 = vmul.f32 0.7978846, %v4201_v2  ;;  %v4142_v18 = vmul.f32 %v4078_v58, %v9774_v49  ;;  %v4203_v15 = vadd.f32 %v4139_v22, %v9750_v31  ;;  %v4389_v37 = vadd.f32 1.0, %v6903_v27  ;;  %v3854_v2 = vpop.f32.mrf.mxu3 }
 0x87f   : > { %v6913_v25 = vpop.eup %6912  ;;  %v4143_v45 = vmul.f32 %v4079_v14, %v9780_v44  ;;  %v4208_v26 = vadd.f32 %v4144_v3, %v9756_v17  ;;  %v4268_v51 = vmul.f32 0.7978846, %v4204_v23  ;;  %v9837_v35 = vmul.f32 %v4385_v46, %v9710_v0 }
 0x880   : > { %v6915_v48 = vpop.eup %6914  ;;  %v4390_v42 = vadd.f32 1.0, %v6907_v33  ;;  %v4391_v30 = vadd.f32 1.0, %v6909_v53  ;;  %v4266_v59 = vmul.f32 0.7978846, %v4202_v20  ;;  %v4504_v62 = vpack.c.bf16 %v4448_v54, %v4444_v34 }
 0x881   : > { %v4386_v7 = vadd.f32 1.0, %v6905_v40  ;;  %v4392_v11 = vadd.f32 1.0, %v6911_v21  ;;  %v4269_v58 = vmul.f32 0.7978846, %v4205_v60  ;;  %v4387_v22 = vadd.f32 1.0, %v6913_v25 }
 0x882   : > { %6916 = vtanh.f32 %v4265_v4  ;;  %v4206_v27 = vadd.f32 %v4142_v18, %v9774_v49  ;;  %v4267_v14 = vmul.f32 0.7978846, %v4203_v15  ;;  %v4388_v3 = vadd.f32 1.0, %v6915_v48 }
 0x883   : > { %v4207_v23 = vadd.f32 %v4143_v45, %v9780_v44  ;;  %v4272_v0 = vmul.f32 0.7978846, %v4208_v26  ;;  %6918 = vtanh.f32 %v4268_v51  ;;  %v10523_v33 = vpack.c.bf16 %v9732_v38, %v9727_v41  ;;  %v3759_v34 = vpop.f32.mrf.mxu1 }
 0x884   : > { %v9845_v40 = vmul.f32 %v4389_v37, %v9713_v36  ;;  %v9848_v46 = vmul.f32 %v4390_v42, %v9721_v9  ;;  %v9850_v20 = vmul.f32 %v4391_v30, %v3943_v57  ;;  %6920 = vtanh.f32 %v4266_v59  ;;  %v3808_v48 = vpop.f32.mrf.mxu2 }
 0x885   : > { %v9854_v53 = vadd.f32 %v9790_v16, %v9298_v24  ;;  %v9857_v54 = vmul.f32 %v4386_v7, %v9716_v12  ;;  %v9859_v41 = vmul.f32 %v4392_v11, %v3944_v52  ;;  %6922 = vtanh.f32 %v4269_v58 }
 0x886   : > { %v9863_v36 = vadd.f32 %v9813_v10, %v9310_v19  ;;  %v9866_v9 = vmul.f32 %v4387_v22, %v9759_v50  ;;  %v4270_v38 = vmul.f32 0.7978846, %v4206_v27  ;;  %6924 = vtanh.f32 %v4267_v14  ;;  %v9905_v59 = vpop.f32.mrf.mxu3 }
 0x887   : > { %4799 = vmatmul.bf16.gmra.mxu1 %v10523_v33  ;;  %4848 = vmatmul.bf16.gmra.mxu2 %v4502_v8  ;;  %v9869_v16 = vadd.f32 %v3756_v5, %v9298_v24  ;;  %v9871_v57 = vmul.f32 %v4388_v3, %v3940_v1  ;;  %v4271_v8 = vmul.f32 0.7978846, %v4207_v23  ;;  %6926 = vtanh.f32 %v4272_v0 }
 0x888   : > { %4897 = vmatmul.bf16.gmra.mxu3 %v4503_v39  ;;  %4946 = vmatmul.bf16.gmra.mxu0 %v4504_v62  ;;  %v6917_v12 = vpop.eup %6916  ;;  %v9874_v39 = vadd.f32 %v3903_v56, %v9310_v19  ;;  %v4505_v10 = vpack.c.bf16 %v9845_v40, %v9837_v35  ;;  %v4506_v50 = vpack.c.bf16 %v9848_v46, %v9857_v54  ;;  %v4017_v21 = vmul.f32 0.044715, %v9854_v53 }
 0x889   : > { %v4507_v52 = vpack.c.bf16 %v9850_v20, %v9866_v9  ;;  %v6919_v60 = vpop.eup %6918  ;;  %v9884_v1 = vadd.f32 %v3805_v47, %v9305_v63  ;;  %v4508_v4 = vpack.c.bf16 %v9859_v41, %v9871_v57  ;;  %v3945_v18 = vmul.f32 0.5, %v9725_v61 }
 0x88a   : > { %v6921_v15 = vpop.eup %6920  ;;  %v4020_v25 = vmul.f32 0.044715, %v9863_v36  ;;  %v9891_v5 = vadd.f32 %v3854_v2, %v9308_v55  ;;  %6928 = vtanh.f32 %v4270_v38  ;;  %v3948_v37 = vmul.f32 0.5, %v9730_v6 }
 0x88b   : > { %v6923_v45 = vpop.eup %6922  ;;  %v9896_v26 = vadd.f32 %v9803_v28, %v9305_v63  ;;  %v4021_v51 = vmul.f32 0.044715, %v9869_v16  ;;  %v3946_v35 = vmul.f32 0.5, %v9736_v32  ;;  %6930 = vtanh.f32 %v4271_v8  ;;  %v9911_v32 = vpop.f32.mrf.mxu0 }
 0x88c   : > { %v6925_v61 = vpop.eup %6924  ;;  %v9902_v42 = vadd.f32 %v9806_v29, %v9308_v55  ;;  %v4024_v30 = vmul.f32 0.044715, %v9874_v39  ;;  %v3949_v6 = vmul.f32 0.5, %v9741_v43  ;;  %v3947_v28 = vmul.f32 0.5, %v9750_v31 }
 0x88d   : > { %v6927_v47 = vpop.eup %6926  ;;  %v4081_v62 = vmul.f32 %v4017_v21, %v9854_v53  ;;  %v4022_v7 = vmul.f32 0.044715, %v9884_v1  ;;  %v4393_v11 = vadd.f32 1.0, %v6917_v12  ;;  %v4396_v58 = vadd.f32 1.0, %v6919_v60  ;;  %v3761_v21 = vpop.f32.mrf.mxu1 }
 0x88e   : > { %v4084_v29 = vmul.f32 %v4020_v25, %v9863_v36  ;;  %v4023_v2 = vmul.f32 0.044715, %v9891_v5  ;;  %v4397_v22 = vadd.f32 1.0, %v6923_v45  ;;  %v4394_v27 = vadd.f32 1.0, %v6921_v15 }
 0x88f   : > { %v4018_v14 = vmul.f32 0.044715, %v9896_v26  ;;  %v4085_v43 = vmul.f32 %v4021_v51, %v9869_v16  ;;  %v4395_v31 = vadd.f32 1.0, %v6925_v61  ;;  %v3952_v56 = vmul.f32 0.5, %v9756_v17 }
 0x890   : > { %v6929_v3 = vpop.eup %6928  ;;  %v4019_v23 = vmul.f32 0.044715, %v9902_v42  ;;  %v4088_v0 = vmul.f32 %v4024_v30, %v9874_v39  ;;  %v3950_v33 = vmul.f32 0.5, %v9774_v49  ;;  %v4400_v40 = vadd.f32 1.0, %v6927_v47  ;;  %v3810_v30 = vpop.f32.mrf.mxu2 }
 0x891   : > { %v6931_v46 = vpop.eup %6930  ;;  %v4086_v54 = vmul.f32 %v4022_v7, %v9884_v1  ;;  %v9922_v41 = vmul.f32 %v4393_v11, %v3945_v18  ;;  %v9924_v38 = vmul.f32 %v4396_v58, %v3948_v37  ;;  %v4145_v57 = vmul.f32 %v4081_v62, %v9854_v53  ;;  %v3859_v47 = vpop.f32.mrf.mxu3 }
 0x892   : > { %v4087_v8 = vmul.f32 %v4023_v2, %v9891_v5  ;;  %v9928_v17 = vmul.f32 %v4397_v22, %v3949_v6  ;;  %v9930_v12 = vmul.f32 %v4394_v27, %v3946_v35  ;;  %v4148_v60 = vmul.f32 %v4084_v29, %v9863_v36 }
 0x893   : > { %v4082_v49 = vmul.f32 %v4018_v14, %v9896_v26  ;;  %v4398_v15 = vadd.f32 1.0, %v6929_v3  ;;  %v9934_v25 = vmul.f32 %v4395_v31, %v3947_v28  ;;  %v4149_v18 = vmul.f32 %v4085_v43, %v9869_v16  ;;  %v3908_v9 = vpop.f32.mrf.mxu0 }
 0x894   : > { %v4083_v37 = vmul.f32 %v4019_v23, %v9902_v42  ;;  %v4399_v45 = vadd.f32 1.0, %v6931_v46  ;;  %v9938_v51 = vmul.f32 %v4400_v40, %v3952_v56  ;;  %v4152_v35 = vmul.f32 %v4088_v0, %v9874_v39 }
 0x895   : > { %v9942_v61 = vadd.f32 %v3759_v34, %v9298_v24  ;;  %v3951_v6 = vmul.f32 0.5, %v9780_v44  ;;  %v4209_v28 = vadd.f32 %v4145_v57, %v9854_v53  ;;  %v4509_v34 = vpack.c.bf16 %v9928_v17, %v9922_v41 }
 0x896   : > { %v4151_v62 = vmul.f32 %v4087_v8, %v9891_v5  ;;  %v4212_v7 = vadd.f32 %v4148_v60, %v9863_v36  ;;  %v9958_v20 = vadd.f32 %v3808_v48, %v9305_v63  ;;  %v4462_v44 = vmul.f32 %v4398_v15, %v3950_v33 }
 0x897   : > { %4804 = vmatmul.bf16.gmra.mxu1 %v4505_v10  ;;  %4853 = vmatmul.bf16.gmra.mxu2 %v4506_v50  ;;  %v4150_v10 = vmul.f32 %v4086_v54, %v9884_v1  ;;  %v9951_v50 = vadd.f32 %v3761_v21, %v9298_v24  ;;  %v9963_v11 = vadd.f32 %v3810_v30, %v9305_v63  ;;  %v4025_v22 = vmul.f32 0.044715, %v9942_v61 }
 0x898   : > { %4902 = vmatmul.bf16.gmra.mxu3 %v4507_v52  ;;  %4951 = vmatmul.bf16.gmra.mxu0 %v4508_v4  ;;  %v4213_v52 = vadd.f32 %v4149_v18, %v9869_v16  ;;  %v4146_v4 = vmul.f32 %v4082_v49, %v9896_v26  ;;  %v4463_v58 = vmul.f32 %v4399_v45, %v3951_v6  ;;  %v4273_v48 = vmul.f32 0.7978846, %v4209_v28 }
 0x899   : > { %v4147_v29 = vmul.f32 %v4083_v37, %v9902_v42  ;;  %v4216_v2 = vadd.f32 %v4152_v35, %v9874_v39  ;;  %v9969_v27 = vadd.f32 %v3859_v47, %v9308_v55  ;;  %v4214_v14 = vadd.f32 %v4150_v10, %v9884_v1 }
 0x89a   : > { %v4029_v43 = vmul.f32 0.044715, %v9951_v50  ;;  %v9974_v31 = vadd.f32 %v3908_v9, %v9310_v19  ;;  %v4215_v56 = vadd.f32 %v4151_v62, %v9891_v5  ;;  %v4276_v3 = vmul.f32 0.7978846, %v4212_v7 }
 0x89b   : > { %v4026_v23 = vmul.f32 0.044715, %v9958_v20  ;;  %v9980_v0 = vadd.f32 %v9905_v59, %v9308_v55  ;;  %v4277_v33 = vmul.f32 0.7978846, %v4213_v52  ;;  %v4210_v40 = vadd.f32 %v4146_v4, %v9896_v26 }
 0x89c   : > { %v9985_v46 = vadd.f32 %v9911_v32, %v9310_v19  ;;  %v4030_v54 = vmul.f32 0.044715, %v9963_v11  ;;  %v4211_v41 = vadd.f32 %v4147_v29, %v9902_v42  ;;  %v4280_v57 = vmul.f32 0.7978846, %v4216_v2 }
 0x89d   : > { %v4089_v8 = vmul.f32 %v4025_v22, %v9942_v61  ;;  %v4031_v17 = vmul.f32 0.044715, %v9969_v27  ;;  %6932 = vtanh.f32 %v4273_v48  ;;  %v4278_v60 = vmul.f32 0.7978846, %v4214_v14 }
 0x89e   : > { %v4093_v59 = vmul.f32 %v4029_v43, %v9951_v50  ;;  %v4032_v49 = vmul.f32 0.044715, %v9974_v31  ;;  %v4279_v21 = vmul.f32 0.7978846, %v4215_v56  ;;  %6934 = vtanh.f32 %v4276_v3 }
 0x89f   : > { %v4090_v32 = vmul.f32 %v4026_v23, %v9958_v20  ;;  %v4027_v15 = vmul.f32 0.044715, %v9980_v0  ;;  %6936 = vtanh.f32 %v4277_v33  ;;  %v4274_v18 = vmul.f32 0.7978846, %v4210_v40 }
 0x8a0   : > { %v4028_v37 = vmul.f32 0.044715, %v9985_v46  ;;  %v4094_v45 = vmul.f32 %v4030_v54, %v9963_v11  ;;  %v4275_v35 = vmul.f32 0.7978846, %v4211_v41  ;;  %6938 = vtanh.f32 %v4280_v57 }
 0x8a1   : > { %v4095_v30 = vmul.f32 %v4031_v17, %v9969_v27  ;;  %v4512_v6 = vpack.c.bf16 %v9938_v51, %v9924_v38  ;;  %6940 = vtanh.f32 %v4278_v60  ;;  %v4153_v28 = vmul.f32 %v4089_v8, %v9942_v61 }
 0x8a2   : > { %v4096_v10 = vmul.f32 %v4032_v49, %v9974_v31  ;;  %v4510_v47 = vpack.c.bf16 %v4462_v44, %v9930_v12  ;;  %6942 = vtanh.f32 %v4279_v21  ;;  %v4157_v62 = vmul.f32 %v4093_v59, %v9951_v50 }
 0x8a3   : > { %v6933_v7 = vpop.eup %6932  ;;  %v4091_v9 = vmul.f32 %v4027_v15, %v9980_v0  ;;  %v4511_v52 = vpack.c.bf16 %v4463_v58, %v9934_v25  ;;  %6944 = vtanh.f32 %v4274_v18  ;;  %v4154_v4 = vmul.f32 %v4090_v32, %v9958_v20 }
 0x8a4   : > { %v6935_v29 = vpop.eup %6934  ;;  %v4092_v38 = vmul.f32 %v4028_v37, %v9985_v46  ;;  %6946 = vtanh.f32 %v4275_v35  ;;  %v4158_v51 = vmul.f32 %v4094_v45, %v9963_v11  ;;  %v4217_v44 = vadd.f32 %v4153_v28, %v9942_v61 }
 0x8a5   : > { %v6937_v12 = vpop.eup %6936  ;;  %v4159_v2 = vmul.f32 %v4095_v30, %v9969_v27  ;;  %v3953_v25 = vmul.f32 0.5, %v9854_v53  ;;  %v3956_v58 = vmul.f32 0.5, %v9863_v36  ;;  %v4221_v48 = vadd.f32 %v4157_v62, %v9951_v50 }
 0x8a6   : > { %v6939_v22 = vpop.eup %6938  ;;  %v3954_v43 = vmul.f32 0.5, %v9896_v26  ;;  %v3955_v56 = vmul.f32 0.5, %v9902_v42  ;;  %v4218_v3 = vadd.f32 %v4154_v4, %v9958_v20  ;;  %v4155_v23 = vmul.f32 %v4091_v9, %v9980_v0 }
 0x8a7   : > { %4809 = vmatmul.bf16.gmra.mxu1 %v4509_v34  ;;  %4858 = vmatmul.bf16.gmra.mxu2 %v4510_v47  ;;  %v4160_v34 = vmul.f32 %v4096_v10, %v9974_v31  ;;  %v6941_v14 = vpop.eup %6940  ;;  %v3957_v40 = vmul.f32 0.5, %v9869_v16  ;;  %v3960_v53 = vmul.f32 0.5, %v9874_v39  ;;  %v4222_v36 = vadd.f32 %v4158_v51, %v9963_v11 }
 0x8a8   : > { %4907 = vmatmul.bf16.gmra.mxu3 %v4511_v52  ;;  %4956 = vmatmul.bf16.gmra.mxu0 %v4512_v6  ;;  %v6943_v33 = vpop.eup %6942  ;;  %v4156_v54 = vmul.f32 %v4092_v38, %v9985_v46  ;;  %v3958_v57 = vmul.f32 0.5, %v9884_v1  ;;  %v3959_v26 = vmul.f32 0.5, %v9891_v5  ;;  %v4281_v8 = vmul.f32 0.7978846, %v4217_v44 }
 0x8a9   : > { %v6945_v41 = vpop.eup %6944  ;;  %v4223_v42 = vadd.f32 %v4159_v2, %v9969_v27  ;;  %v4405_v60 = vadd.f32 1.0, %v6937_v12  ;;  %v4406_v59 = vadd.f32 1.0, %v6941_v14  ;;  %v4285_v49 = vmul.f32 0.7978846, %v4221_v48 }
 0x8aa   : > { %v6947_v17 = vpop.eup %6946  ;;  %v4224_v16 = vadd.f32 %v4160_v34, %v9974_v31  ;;  %v4407_v21 = vadd.f32 1.0, %v6943_v33  ;;  %v4408_v39 = vadd.f32 1.0, %v6939_v22  ;;  %v4282_v32 = vmul.f32 0.7978846, %v4218_v3 }
 0x8ab   : > { %v4219_v15 = vadd.f32 %v4155_v23, %v9980_v0  ;;  %v4401_v18 = vadd.f32 1.0, %v6933_v7  ;;  %v4402_v37 = vadd.f32 1.0, %v6945_v41  ;;  %v4286_v45 = vmul.f32 0.7978846, %v4222_v36 }
 0x8ac   : > { %v4220_v1 = vadd.f32 %v4156_v54, %v9985_v46  ;;  %v4403_v5 = vadd.f32 1.0, %v6947_v17  ;;  %v4404_v35 = vadd.f32 1.0, %v6935_v29  ;;  %6948 = vtanh.f32 %v4281_v8 }
 0x8ad   : > { %v4287_v30 = vmul.f32 0.7978846, %v4223_v42  ;;  %v4469_v6 = vmul.f32 %v4405_v60, %v3957_v40  ;;  %v4470_v28 = vmul.f32 %v4406_v59, %v3958_v57  ;;  %6950 = vtanh.f32 %v4285_v49 }
 0x8ae   : > { %v4288_v10 = vmul.f32 0.7978846, %v4224_v16  ;;  %v4471_v47 = vmul.f32 %v4407_v21, %v3959_v26  ;;  %v4472_v62 = vmul.f32 %v4408_v39, %v3960_v53  ;;  %6952 = vtanh.f32 %v4282_v32 }
 0x8af   : > { %v4283_v9 = vmul.f32 0.7978846, %v4219_v15  ;;  %v4465_v52 = vmul.f32 %v4401_v18, %v3953_v25  ;;  %v4466_v4 = vmul.f32 %v4402_v37, %v3954_v43  ;;  %6954 = vtanh.f32 %v4286_v45 }
 0x8b0   : > { %v4284_v7 = vmul.f32 0.7978846, %v4220_v1  ;;  %v4467_v38 = vmul.f32 %v4403_v5, %v3955_v56  ;;  %v4468_v51 = vmul.f32 %v4404_v35, %v3956_v58  ;;  %6956 = vtanh.f32 %v4287_v30 }
 0x8b1   : > { %v4513_v12 = vpack.c.bf16 %v4469_v6, %v4465_v52  ;;  %v4514_v44 = vpack.c.bf16 %v4470_v28, %v4466_v4  ;;  %6958 = vtanh.f32 %v4288_v10  ;;  %v3965_v53 = vmul.f32 0.5, %v9951_v50 }
 0x8b2   : > { %v6949_v29 = vpop.eup %6948  ;;  %v4515_v2 = vpack.c.bf16 %v4471_v47, %v4467_v38  ;;  %v4516_v22 = vpack.c.bf16 %v4472_v62, %v4468_v51  ;;  %6960 = vtanh.f32 %v4283_v9  ;;  %v3966_v54 = vmul.f32 0.5, %v9963_v11 }
 0x8b3   : > { %v6951_v48 = vpop.eup %6950  ;;  %6962 = vtanh.f32 %v4284_v7  ;;  %v4409_v36 = vadd.f32 1.0, %v6949_v29  ;;  %v3967_v57 = vmul.f32 0.5, %v9969_v27  ;;  %v3968_v8 = vmul.f32 0.5, %v9974_v31 }
 0x8b4   : > { %v6953_v34 = vpop.eup %6952  ;;  %v4413_v3 = vadd.f32 1.0, %v6951_v48  ;;  %v3961_v17 = vmul.f32 0.5, %v9942_v61  ;;  %v3962_v59 = vmul.f32 0.5, %v9958_v20  ;;  %v3963_v16 = vmul.f32 0.5, %v9980_v0 }
 0x8b5   : > { %v6955_v25 = vpop.eup %6954  ;;  %v4410_v41 = vadd.f32 1.0, %v6953_v34  ;;  %v3964_v50 = vmul.f32 0.5, %v9985_v46 }
 0x8b6   : > { %v6957_v14 = vpop.eup %6956  ;;  %v4414_v23 = vadd.f32 1.0, %v6955_v25  ;;  %v4477_v60 = vmul.f32 %v4413_v3, %v3965_v53  ;;  %v4473_v11 = vmul.f32 %v4409_v36, %v3961_v17 }
 0x8b7   : > { %4814 = vmatmul.bf16.gmra.mxu1 %v4513_v12  ;;  %4863 = vmatmul.bf16.gmra.mxu2 %v4514_v44  ;;  %v6959_v43 = vpop.eup %6958  ;;  %v4415_v33 = vadd.f32 1.0, %v6957_v14  ;;  %v4474_v32 = vmul.f32 %v4410_v41, %v3962_v59 }
 0x8b8   : > { %4912 = vmatmul.bf16.gmra.mxu3 %v4515_v2  ;;  %4961 = vmatmul.bf16.gmra.mxu0 %v4516_v22  ;;  %v6961_v56 = vpop.eup %6960  ;;  %v4416_v40 = vadd.f32 1.0, %v6959_v43  ;;  %v4478_v49 = vmul.f32 %v4414_v23, %v3966_v54  ;;  %v4517_v18 = vpack.c.bf16 %v4477_v60, %v4473_v11  ;;  %v10044_v23 = vld [vmem:[%s7748_s20] sm:$0xff] }
 0x8b9   : > { %v6963_v58 = vpop.eup %6962  ;;  %v4411_v26 = vadd.f32 1.0, %v6961_v56  ;;  %v4479_v21 = vmul.f32 %v4415_v33, %v3967_v57  ;;  %v10047_v33 = vperm.slane %v10044_v23, 3 }
 0x8ba   : > { %v4412_v42 = vadd.f32 1.0, %v6963_v58  ;;  %v4480_v39 = vmul.f32 %v4416_v40, %v3968_v8  ;;  %v4518_v37 = vpack.c.bf16 %v4478_v49, %v4474_v32 }
 0x8bb   : > { %v4475_v15 = vmul.f32 %v4411_v26, %v3963_v16 }
 0x8bc   : > { %v4476_v27 = vmul.f32 %v4412_v42, %v3964_v50 }
 0x8bd   : > { %v4519_v31 = vpack.c.bf16 %v4479_v21, %v4475_v15 }
 0x8be   : > { %v4520_v45 = vpack.c.bf16 %v4480_v39, %v4476_v27 }
 0x8c7   : > { %4819 = vmatmul.bf16.gmra.mxu1 %v4517_v18  ;;  %4868 = vmatmul.bf16.gmra.mxu2 %v4518_v37 }
 0x8c8   : > { %4917 = vmatmul.bf16.gmra.mxu3 %v4519_v31  ;;  %4966 = vmatmul.bf16.gmra.mxu0 %v4520_v45 }
 0x8d4   : > { %v3764_v61 = vpop.f32.mrf.mxu1 }
 0x8d5   : > { %v3765_v20 = vadd.f32 %v3764_v61, %v9298_v24  ;;  %v3911_v0 = vpop.f32.mrf.mxu0 }
 0x8d6   : > { %v3912_v1 = vadd.f32 %v3911_v0, %v9310_v19 }
 0x8d7   : > { %v4033_v46 = vmul.f32 0.044715, %v3765_v20  ;;  %v3969_v36 = vmul.f32 0.5, %v3765_v20 }
 0x8d8   : > { %v4036_v5 = vmul.f32 0.044715, %v3912_v1  ;;  %v10051_v8 = vmul.f32 0.5, %v3912_v1 }
 0x8d9   : > { %v4097_v35 = vmul.f32 %v4033_v46, %v3765_v20 }
 0x8da   : > { %v4100_v30 = vmul.f32 %v4036_v5, %v3912_v1  ;;  %v3813_v6 = vpop.f32.mrf.mxu2 }
 0x8db   : > { %v3814_v28 = vadd.f32 %v3813_v6, %v9305_v63  ;;  %v3862_v10 = vpop.f32.mrf.mxu3  ;;  %v4161_v47 = vmul.f32 %v4097_v35, %v3765_v20 }
 0x8dc   : > { %v3863_v62 = vadd.f32 %v3862_v10, %v9308_v55  ;;  %v3766_v9 = vpop.f32.mrf.mxu1  ;;  %v4164_v52 = vmul.f32 %v4100_v30, %v3912_v1 }
 0x8dd   : > { %v4034_v4 = vmul.f32 0.044715, %v3814_v28  ;;  %v3767_v7 = vadd.f32 %v3766_v9, %v9298_v24  ;;  %v3913_v38 = vpop.f32.mrf.mxu0  ;;  %v4225_v51 = vadd.f32 %v4161_v47, %v3765_v20 }
 0x8de   : > { %v4035_v12 = vmul.f32 0.044715, %v3863_v62  ;;  %v3914_v44 = vadd.f32 %v3913_v38, %v9310_v19  ;;  %v4228_v29 = vadd.f32 %v4164_v52, %v3912_v1  ;;  %v10061_v1 = vmul.f32 0.5, %v3814_v28 }
 0x8df   : > { %v4098_v2 = vmul.f32 %v4034_v4, %v3814_v28  ;;  %v4037_v22 = vmul.f32 0.044715, %v3767_v7  ;;  %v4289_v48 = vmul.f32 0.7978846, %v4225_v51  ;;  %v3973_v39 = vmul.f32 0.5, %v3767_v7 }
 0x8e0   : > { %v4099_v34 = vmul.f32 %v4035_v12, %v3863_v62  ;;  %v4040_v25 = vmul.f32 0.044715, %v3914_v44  ;;  %v4292_v43 = vmul.f32 0.7978846, %v4228_v29  ;;  %v3976_v45 = vmul.f32 0.5, %v3914_v44 }
 0x8e1   : > { %v4101_v14 = vmul.f32 %v4037_v22, %v3767_v7  ;;  %v4162_v56 = vmul.f32 %v4098_v2, %v3814_v28  ;;  %6964 = vtanh.f32 %v4289_v48  ;;  %v10065_v30 = vmul.f32 0.5, %v3863_v62 }
 0x8e2   : > { %v4104_v58 = vmul.f32 %v4040_v25, %v3914_v44  ;;  %v3815_v3 = vpop.f32.mrf.mxu2  ;;  %v4163_v17 = vmul.f32 %v4099_v34, %v3863_v62  ;;  %6966 = vtanh.f32 %v4292_v43 }
 0x8e3   : > { %v3816_v40 = vadd.f32 %v3815_v3, %v9305_v63  ;;  %v3864_v53 = vpop.f32.mrf.mxu3  ;;  %v4165_v54 = vmul.f32 %v4101_v14, %v3767_v7  ;;  %v4226_v41 = vadd.f32 %v4162_v56, %v3814_v28 }
 0x8e4   : > { %v3865_v57 = vadd.f32 %v3864_v53, %v9308_v55  ;;  %v3769_v26 = vpop.f32.mrf.mxu1  ;;  %v4168_v42 = vmul.f32 %v4104_v58, %v3914_v44  ;;  %v4227_v20 = vadd.f32 %v4163_v17, %v3863_v62 }
 0x8e5   : > { %v4038_v60 = vmul.f32 0.044715, %v3816_v40  ;;  %v10054_v59 = vadd.f32 %v3769_v26, %v9298_v24  ;;  %v3916_v49 = vpop.f32.mrf.mxu0  ;;  %v4229_v16 = vadd.f32 %v4165_v54, %v3767_v7  ;;  %v4290_v18 = vmul.f32 0.7978846, %v4226_v41 }
 0x8e6   : > { %v4039_v21 = vmul.f32 0.044715, %v3865_v57  ;;  %v10057_v50 = vadd.f32 %v3916_v49, %v9310_v19  ;;  %v4232_v11 = vadd.f32 %v4168_v42, %v3914_v44  ;;  %v10063_v35 = vmul.f32 0.5, %v3816_v40 }
 0x8e7   : > { %v4102_v32 = vmul.f32 %v4038_v60, %v3816_v40  ;;  %v4041_v15 = vmul.f32 0.044715, %v10054_v59  ;;  %v4293_v27 = vmul.f32 0.7978846, %v4229_v16  ;;  %v6965_v37 = vpop.eup %6964  ;;  %v10071_v38 = vmul.f32 0.5, %v3865_v57 }
 0x8e8   : > { %v4103_v31 = vmul.f32 %v4039_v21, %v3865_v57  ;;  %v4296_v61 = vmul.f32 0.7978846, %v4232_v11  ;;  %v6967_v10 = vpop.eup %6966  ;;  %v4044_v47 = vmul.f32 0.044715, %v10057_v50  ;;  %v4417_v52 = vadd.f32 1.0, %v6965_v37 }
 0x8e9   : > { %v4105_v0 = vmul.f32 %v4041_v15, %v10054_v59  ;;  %6968 = vtanh.f32 %v4293_v27  ;;  %v4166_v46 = vmul.f32 %v4102_v32, %v3816_v40  ;;  %v4291_v12 = vmul.f32 0.7978846, %v4227_v20 }
 0x8ea   : > { %v3818_v5 = vpop.f32.mrf.mxu2  ;;  %6970 = vtanh.f32 %v4296_v61  ;;  %v4167_v6 = vmul.f32 %v4103_v31, %v3865_v57  ;;  %v4420_v34 = vadd.f32 1.0, %v6967_v10  ;;  %v4108_v43 = vmul.f32 %v4044_v47, %v10057_v50 }
 0x8eb   : > { %v3867_v9 = vpop.f32.mrf.mxu3  ;;  %v4230_v4 = vadd.f32 %v4166_v46, %v3816_v40  ;;  %6972 = vtanh.f32 %v4290_v18  ;;  %v10069_v7 = vadd.f32 %v3818_v5, %v9305_v63  ;;  %v4169_v22 = vmul.f32 %v4105_v0, %v10054_v59 }
 0x8ec   : > { %v3771_v28 = vpop.f32.mrf.mxu1  ;;  %v4231_v51 = vadd.f32 %v4167_v6, %v3865_v57  ;;  %v10074_v44 = vadd.f32 %v3867_v9, %v9308_v55  ;;  %6974 = vtanh.f32 %v4291_v12  ;;  %v4481_v58 = vmul.f32 %v4417_v52, %v3969_v36 }
 0x8ed   : > { %v10077_v62 = vadd.f32 %v3771_v28, %v9298_v24  ;;  %v3918_v29 = vpop.f32.mrf.mxu0  ;;  %v4294_v2 = vmul.f32 0.7978846, %v4230_v4  ;;  %v4042_v24 = vmul.f32 0.044715, %v10069_v7  ;;  %v4233_v26 = vadd.f32 %v4169_v22, %v10054_v59 }
 0x8ee   : > { %v10081_v48 = vadd.f32 %v3918_v29, %v9310_v19  ;;  %v4295_v25 = vmul.f32 0.7978846, %v4231_v51  ;;  %v4043_v19 = vmul.f32 0.044715, %v10074_v44  ;;  %v4484_v60 = vmul.f32 %v4420_v34, %v10051_v8 }
 0x8ef   : > { %v6969_v14 = vpop.eup %6968  ;;  %v4045_v56 = vmul.f32 0.044715, %v10077_v62  ;;  %6976 = vtanh.f32 %v4294_v2  ;;  %v4297_v15 = vmul.f32 0.7978846, %v4233_v26  ;;  %v4106_v18 = vmul.f32 %v4042_v24, %v10069_v7 }
 0x8f0   : > { %v6971_v3 = vpop.eup %6970  ;;  %v4048_v40 = vmul.f32 0.044715, %v10081_v48  ;;  %v4421_v53 = vadd.f32 1.0, %v6969_v14  ;;  %6978 = vtanh.f32 %v4295_v25  ;;  %v4107_v20 = vmul.f32 %v4043_v19, %v10074_v44 }
 0x8f1   : > { %v6973_v54 = vpop.eup %6972  ;;  %v4109_v41 = vmul.f32 %v4045_v56, %v10077_v62  ;;  %v4424_v57 = vadd.f32 1.0, %v6971_v3  ;;  %6980 = vtanh.f32 %v4297_v15  ;;  %v4170_v56 = vmul.f32 %v4106_v18, %v10069_v7 }
 0x8f2   : > { %v4112_v42 = vmul.f32 %v4048_v40, %v10081_v48  ;;  %v3820_v17 = vpop.f32.mrf.mxu2  ;;  %v4485_v36 = vmul.f32 %v4421_v53, %v3973_v39  ;;  %v4418_v49 = vadd.f32 1.0, %v6973_v54  ;;  %v6975_v27 = vpop.eup %6974  ;;  %v4172_v39 = vmul.f32 %v4108_v43, %v10057_v50 }
 0x8f3   : > { %v10093_v16 = vadd.f32 %v3820_v17, %v9305_v63  ;;  %v3869_v21 = vpop.f32.mrf.mxu3  ;;  %v4488_v11 = vmul.f32 %v4424_v57, %v3976_v45  ;;  %v4173_v32 = vmul.f32 %v4109_v41, %v10077_v62  ;;  %v4419_v46 = vadd.f32 1.0, %v6975_v27 }
 0x8f4   : > { %v10098_v37 = vadd.f32 %v3869_v21, %v9308_v55  ;;  %v4795_v31 = vpop.f32.mrf.mxu1  ;;  %v4521_v61 = vpack.c.bf16 %v4485_v36, %v4481_v58  ;;  %v4482_v9 = vmul.f32 %v4418_v49, %v10061_v1  ;;  %v4176_v4 = vmul.f32 %v4112_v42, %v10081_v48 }
 0x8f5   : > { %v6977_v8 = vpop.eup %6976  ;;  %v4046_v63 = vmul.f32 0.044715, %v10093_v16  ;;  %v4942_v0 = vpop.f32.mrf.mxu0  ;;  %v4524_v45 = vpack.c.bf16 %v4488_v11, %v4484_v60  ;;  %v4237_v55 = vadd.f32 %v4173_v32, %v10077_v62  ;;  %v4796_v28 = vadd.f32 %v4795_v31, %v10047_v33 }
 0x8f6   : > { %v6979_v5 = vpop.eup %6978  ;;  %v4047_v6 = vmul.f32 0.044715, %v10098_v37  ;;  %4824 = vmatmul.bf16.gmra.mxu1 %v4521_v61  ;;  %v4422_v10 = vadd.f32 1.0, %v6977_v8  ;;  %v4236_v29 = vadd.f32 %v4172_v39, %v10057_v50  ;;  %v4483_v22 = vmul.f32 %v4419_v46, %v10065_v30 }
 0x8f7   : > { %v4110_v47 = vmul.f32 %v4046_v63, %v10093_v16  ;;  %4971 = vmatmul.bf16.gmra.mxu0 %v4524_v45  ;;  %v4423_v52 = vadd.f32 1.0, %v6979_v5  ;;  %v4301_v12 = vmul.f32 0.7978846, %v4237_v55  ;;  %v4240_v25 = vadd.f32 %v4176_v4, %v10081_v48  ;;  %v6981_v53 = vpop.eup %6980 }
 0x8f8   : > { %v4486_v51 = vmul.f32 %v4422_v10, %v10063_v35  ;;  %v4111_v2 = vmul.f32 %v4047_v6, %v10098_v37  ;;  %v4300_v43 = vmul.f32 0.7978846, %v4236_v29  ;;  %v4234_v30 = vadd.f32 %v4170_v56, %v10069_v7 }
 0x8f9   : > { %v4487_v34 = vmul.f32 %v4423_v52, %v10071_v38  ;;  %6982 = vtanh.f32 %v4301_v12  ;;  %v4304_v24 = vmul.f32 0.7978846, %v4240_v25  ;;  %v4174_v40 = vmul.f32 %v4110_v47, %v10093_v16 }
 0x8fa   : > { %v4844_v14 = vpop.f32.mrf.mxu2  ;;  %v4522_v1 = vpack.c.bf16 %v4486_v51, %v4482_v9  ;;  %6984 = vtanh.f32 %v4300_v43  ;;  %v4298_v57 = vmul.f32 0.7978846, %v4234_v30  ;;  %v4171_v26 = vmul.f32 %v4107_v20, %v10074_v44 }
 0x8fb   : > { %v4845_v58 = vadd.f32 %v4844_v14, %v4796_v28  ;;  %v4893_v3 = vpop.f32.mrf.mxu3  ;;  %v4523_v35 = vpack.c.bf16 %v4487_v34, %v4483_v22  ;;  %6986 = vtanh.f32 %v4304_v24  ;;  %v4238_v41 = vadd.f32 %v4174_v40, %v10093_v16  ;;  %v10524_v34 = vld [vmem:[#allocation37_spill] sm:$0xff] }
 0x8fc   : > { %v4797_v54 = vpop.f32.mrf.mxu1  ;;  %4873 = vmatmul.bf16.gmra.mxu2 %v4522_v1  ;;  %v4175_v42 = vmul.f32 %v4111_v2, %v10098_v37  ;;  %v3977_v36 = vmul.f32 0.5, %v10054_v59  ;;  %v4425_v60 = vadd.f32 1.0, %v6981_v53  ;;  %6988 = vtanh.f32 %v4298_v57 }
 0x8fd   : > { %v4894_v38 = vadd.f32 %v4893_v3, %v4845_v58  ;;  %4922 = vmatmul.bf16.gmra.mxu3 %v4523_v35  ;;  %v4944_v19 = vpop.f32.mrf.mxu0  ;;  %v4302_v21 = vmul.f32 0.7978846, %v4238_v41  ;;  %v4235_v11 = vadd.f32 %v4171_v26, %v10074_v44  ;;  %v4798_v15 = vadd.f32 %v4797_v54, %v10047_v33 }
 0x8fe   : > { %v4239_v32 = vadd.f32 %v4175_v42, %v10098_v37  ;;  %v3981_v18 = vmul.f32 0.5, %v10077_v62  ;;  %v4489_v45 = vmul.f32 %v4425_v60, %v3977_v36  ;;  %v3984_v10 = vmul.f32 0.5, %v10081_v48  ;;  %v10525_v36 = vld [vmem:[#allocation38_spill] sm:$0xff] }
 0x8ff   : > { %v4943_v17 = vadd.f32 %v4942_v0, %v4894_v38  ;;  %v6983_v49 = vpop.eup %6982  ;;  %6990 = vtanh.f32 %v4302_v21  ;;  %v4299_v59 = vmul.f32 0.7978846, %v4235_v11  ;;  %v3978_v22 = vmul.f32 0.5, %v10069_v7 }
 0x900   : > { %v4429_v31 = vadd.f32 1.0, %v6983_v49  ;;  %v6985_v61 = vpop.eup %6984  ;;  %v4303_v8 = vmul.f32 0.7978846, %v4239_v32  ;;  %v3982_v25 = vmul.f32 0.5, %v10093_v16  ;;  %v3979_v53 = vmul.f32 0.5, %v10074_v44 }
 0x901   : > { %v10126_v27 = vadd.f32 %v4943_v17, %v9180_v13  ;;  %v6987_v20 = vpop.eup %6986  ;;  %v4428_v5 = vadd.f32 1.0, %v6985_v61  ;;  %v3980_v13 = vmul.f32 0.5, %v10057_v50  ;;  %6992 = vtanh.f32 %v4299_v59 }
 0x902   : > { %v4846_v39 = vpop.f32.mrf.mxu2  ;;  %v4493_v46 = vmul.f32 %v4429_v31, %v3981_v18  ;;  %v4432_v62 = vadd.f32 1.0, %v6987_v20  ;;  %v6989_v52 = vpop.eup %6988  ;;  %6994 = vtanh.f32 %v4303_v8  ;;  %v3983_v38 = vmul.f32 0.5, %v10098_v37  ;;  %v10526_v31 = vld [vmem:[#allocation39_spill] sm:$0xff] }
 0x903   : > { %v4847_v63 = vadd.f32 %v4846_v39, %v4798_v15  ;;  %v4895_v0 = vpop.f32.mrf.mxu3  ;;  %4998 = vadd.xlane.f32.xlu1 %v10126_v27  ;;  %v4492_v4 = vmul.f32 %v4428_v5, %v3980_v13  ;;  %v4426_v12 = vadd.f32 1.0, %v6989_v52  ;;  %v10527_v5 = vld [vmem:[#allocation40_spill] sm:$0xff] }
 0x904   : > { %v4800_v6 = vpop.f32.mrf.mxu1  ;;  %v4525_v9 = vpack.c.bf16 %v4493_v46, %v4489_v45  ;;  %v4496_v28 = vmul.f32 %v4432_v62, %v3984_v10 }
 0x905   : > { %v4896_v55 = vadd.f32 %v4895_v0, %v4847_v63  ;;  %v4947_v47 = vpop.f32.mrf.mxu0  ;;  %v6991_v29 = vpop.eup %6990  ;;  %v4801_v50 = vadd.f32 %v4800_v6, %v10047_v33  ;;  %v4490_v3 = vmul.f32 %v4426_v12, %v3978_v22 }
 0x906   : > { %4829 = vmatmul.bf16.gmra.mxu1 %v4525_v9  ;;  %v4528_v2 = vpack.c.bf16 %v4496_v28, %v4492_v4  ;;  %v4430_v14 = vadd.f32 1.0, %v6991_v29  ;;  %v10528_v28 = vld [vmem:[#allocation41_spill] sm:$0xff] }
 0x907   : > { %v4945_v51 = vadd.f32 %v4944_v19, %v4896_v55  ;;  %v6993_v1 = vpop.eup %6992 }
 0x908   : > { %4976 = vmatmul.bf16.gmra.mxu0 %v4528_v2  ;;  %v4494_v35 = vmul.f32 %v4430_v14, %v3982_v25  ;;  %v4427_v24 = vadd.f32 1.0, %v6993_v1  ;;  %v6995_v40 = vpop.eup %6994  ;;  %v10529_v1 = vld [vmem:[#allocation42_spill] sm:$0xff] }
 0x909   : > { %v10135_v48 = vadd.f32 %v4945_v51, %v10524_v34  ;;  %v4431_v16 = vadd.f32 1.0, %v6995_v40 }
 0x90a   : > { %v4849_v43 = vpop.f32.mrf.mxu2  ;;  %v4526_v30 = vpack.c.bf16 %v4494_v35, %v4490_v3  ;;  %v4491_v57 = vmul.f32 %v4427_v24, %v3979_v53 }
 0x90b   : > { %v4850_v56 = vadd.f32 %v4849_v43, %v4801_v50  ;;  %v4898_v58 = vpop.f32.mrf.mxu3  ;;  %5000 = vadd.xlane.f32.xlu0 %v10135_v48  ;;  %v4495_v26 = vmul.f32 %v4431_v16, %v3983_v38 }
 0x90c   : > { %v4802_v7 = vpop.f32.mrf.mxu1  ;;  %4878 = vmatmul.bf16.gmra.mxu2 %v4526_v30 }
 0x90d   : > { %v4899_v54 = vadd.f32 %v4898_v58, %v4850_v56  ;;  %v4949_v19 = vpop.f32.mrf.mxu0  ;;  %v4803_v42 = vadd.f32 %v4802_v7, %v10047_v33  ;;  %v4527_v17 = vpack.c.bf16 %v4495_v26, %v4491_v57 }
 0x90f   : > { %v4948_v41 = vadd.f32 %v4947_v47, %v4899_v54  ;;  %4927 = vmatmul.bf16.gmra.mxu3 %v4527_v17  ;;  %v10530_v54 = vld [vmem:[#allocation43_spill] sm:$0xff]  ;;  %v10531_v17 = vld [vmem:[#allocation44_spill] sm:$0xff] }
 0x911   : > { %v10143_v60 = vadd.f32 %v4948_v41, %v10525_v36 }
 0x912   : > { %v4851_v49 = vpop.f32.mrf.mxu2 }
 0x913   : > { %v4852_v21 = vadd.f32 %v4851_v49, %v4803_v42  ;;  %v4900_v44 = vpop.f32.mrf.mxu3  ;;  %5002 = vadd.xlane.f32.xlu2 %v10143_v60 }
 0x914   : > { %v4805_v11 = vpop.f32.mrf.mxu1 }
 0x915   : > { %v4901_v37 = vadd.f32 %v4900_v44, %v4852_v21  ;;  %v4952_v32 = vpop.f32.mrf.mxu0  ;;  %v4806_v18 = vadd.f32 %v4805_v11, %v10047_v33 }
 0x917   : > { %v4950_v15 = vadd.f32 %v4949_v19, %v4901_v37 }
 0x919   : > { %v10148_v61 = vadd.f32 %v4950_v15, %v10526_v31  ;;  %v10532_v31 = vld [vmem:[#allocation45_spill] sm:$0xff] }
 0x91a   : > { %v4854_v39 = vpop.f32.mrf.mxu2 }
 0x91b   : > { %v4855_v59 = vadd.f32 %v4854_v39, %v4806_v18  ;;  %v4903_v8 = vpop.f32.mrf.mxu3  ;;  %5004 = vadd.xlane.f32.xlu1 %v10148_v61 }
 0x91c   : > { %v4807_v20 = vpop.f32.mrf.mxu1 }
 0x91d   : > { %v4904_v63 = vadd.f32 %v4903_v8, %v4855_v59  ;;  %v4954_v0 = vpop.f32.mrf.mxu0  ;;  %v4808_v46 = vadd.f32 %v4807_v20, %v10047_v33 }
 0x91f   : > { %v4953_v45 = vadd.f32 %v4952_v32, %v4904_v63 }
 0x921   : > { %v10153_v6 = vadd.f32 %v4953_v45, %v10527_v5 }
 0x922   : > { %v4856_v13 = vpop.f32.mrf.mxu2 }
 0x923   : > { %v4857_v10 = vadd.f32 %v4856_v13, %v4808_v46  ;;  %v4905_v62 = vpop.f32.mrf.mxu3  ;;  %5006 = vadd.xlane.f32.xlu0 %v10153_v6  ;;  %v10533_v13 = vld [vmem:[#allocation47_spill] sm:$0xff] }
 0x924   : > { %v4810_v55 = vpop.f32.mrf.mxu1 }
 0x925   : > { %v4906_v47 = vadd.f32 %v4905_v62, %v4857_v10  ;;  %v4957_v9 = vpop.f32.mrf.mxu0  ;;  %v4811_v4 = vadd.f32 %v4810_v55, %v10047_v33 }
 0x927   : > { %v4955_v52 = vadd.f32 %v4954_v0, %v4906_v47 }
 0x929   : > { %v10158_v51 = vadd.f32 %v4955_v52, %v10528_v28  ;;  %v10534_v28 = vld [vmem:[#allocation46_spill] sm:$0xff] }
 0x92a   : > { %v4859_v12 = vpop.f32.mrf.mxu2 }
 0x92b   : > { %v4860_v29 = vadd.f32 %v4859_v12, %v4811_v4  ;;  %v4908_v2 = vpop.f32.mrf.mxu3  ;;  %5008 = vadd.xlane.f32.xlu2 %v10158_v51 }
 0x92c   : > { %v4812_v22 = vpop.f32.mrf.mxu1 }
 0x92d   : > { %v4909_v50 = vadd.f32 %v4908_v2, %v4860_v29  ;;  %v4959_v34 = vpop.f32.mrf.mxu0  ;;  %v4813_v14 = vadd.f32 %v4812_v22, %v10047_v33 }
 0x92f   : > { %v4958_v25 = vadd.f32 %v4957_v9, %v4909_v50 }
 0x931   : > { %v10163_v43 = vadd.f32 %v4958_v25, %v10529_v1 }
 0x932   : > { %v4861_v56 = vpop.f32.mrf.mxu2 }
 0x933   : > { %v4862_v58 = vadd.f32 %v4861_v56, %v4813_v14  ;;  %v4910_v3 = vpop.f32.mrf.mxu3  ;;  %5010 = vadd.xlane.f32.xlu1 %v10163_v43 }
 0x934   : > { %v4815_v35 = vpop.f32.mrf.mxu1 }
 0x935   : > { %v4911_v24 = vadd.f32 %v4910_v3, %v4862_v58  ;;  %v4962_v7 = vpop.f32.mrf.mxu0  ;;  %v4816_v53 = vadd.f32 %v4815_v35, %v10047_v33  ;;  %v10535_v3 = vld [vmem:[#allocation48_spill] sm:$0xff] }
 0x937   : > { %v4960_v40 = vadd.f32 %v4959_v34, %v4911_v24 }
 0x939   : > { %v10168_v30 = vadd.f32 %v4960_v40, %v10530_v54 }
 0x93a   : > { %v4864_v38 = vpop.f32.mrf.mxu2 }
 0x93b   : > { %v4865_v16 = vadd.f32 %v4864_v38, %v4816_v53  ;;  %v4913_v19 = vpop.f32.mrf.mxu3  ;;  %5012 = vadd.xlane.f32.xlu0 %v10168_v30 }
 0x93c   : > { %v4817_v41 = vpop.f32.mrf.mxu1 }
 0x93d   : > { %v4914_v57 = vadd.f32 %v4913_v19, %v4865_v16  ;;  %v4818_v42 = vadd.f32 %v4817_v41, %v10047_v33  ;;  %v4964_v49 = vpop.f32.mrf.mxu0  ;;  %v10536_v41 = vld [vmem:[#allocation36_spill] sm:$0xff] }
 0x93f   : > { %v4963_v26 = vadd.f32 %v4962_v7, %v4914_v57 }
 0x941   : > { %v10173_v36 = vadd.f32 %v4963_v26, %v10531_v17  ;;  %v10537_v26 = vld [vmem:[#allocation49_spill] sm:$0xff] }
 0x942   : > { %v4866_v21 = vpop.f32.mrf.mxu2 }
 0x943   : > { %v4867_v44 = vadd.f32 %v4866_v21, %v4818_v42  ;;  %v4915_v11 = vpop.f32.mrf.mxu3  ;;  %5014 = vadd.xlane.f32.xlu2 %v10173_v36 }
 0x944   : > { %v4820_v37 = vpop.f32.mrf.mxu1 }
 0x945   : > { %v4916_v32 = vadd.f32 %v4915_v11, %v4867_v44  ;;  %v4821_v18 = vadd.f32 %v4820_v37, %v10047_v33  ;;  %v4967_v63 = vpop.f32.mrf.mxu0 }
 0x947   : > { %v4965_v15 = vadd.f32 %v4964_v49, %v4916_v32 }
 0x949   : > { %v10178_v39 = vadd.f32 %v4965_v15, %v10532_v31 }
 0x94a   : > { %v4869_v59 = vpop.f32.mrf.mxu2 }
 0x94b   : > { %v4870_v8 = vadd.f32 %v4869_v59, %v4821_v18  ;;  %v4918_v20 = vpop.f32.mrf.mxu3  ;;  %5016 = vadd.xlane.f32.xlu1 %v10178_v39 }
 0x94c   : > { %v4822_v45 = vpop.f32.mrf.mxu1 }
 0x94d   : > { %v4919_v0 = vadd.f32 %v4918_v20, %v4870_v8  ;;  %v4823_v5 = vadd.f32 %v4822_v45, %v10047_v33  ;;  %v4969_v52 = vpop.f32.mrf.mxu0 }
 0x94f   : > { %v4968_v46 = vadd.f32 %v4967_v63, %v4919_v0 }
 0x951   : > { %v10183_v10 = vadd.f32 %v4968_v46, %v10533_v13 }
 0x952   : > { %v4871_v62 = vpop.f32.mrf.mxu2 }
 0x953   : > { %v4872_v55 = vadd.f32 %v4871_v62, %v4823_v5  ;;  %5018 = vadd.xlane.f32.xlu0 %v10183_v10  ;;  %v4920_v47 = vpop.f32.mrf.mxu3  ;;  %v10538_v5 = vld [vmem:[#allocation50_spill] sm:$0xff] }
 0x955   : > { %v4921_v9 = vadd.f32 %v4920_v47, %v4872_v55 }
 0x957   : > { %v4970_v4 = vadd.f32 %v4969_v52, %v4921_v9 }
 0x959   : > { %v10187_v12 = vadd.f32 %v4970_v4, %v10534_v28 }
 0x95b   : > { %5020 = vadd.xlane.f32.xlu2 %v10187_v12 }
 0x973   : > { %v4825_v29 = vpop.f32.mrf.mxu1 }
 0x974   : > { %v4826_v2 = vadd.f32 %v4825_v29, %v10047_v33  ;;  %v4972_v25 = vpop.f32.mrf.mxu0 }
 0x976   : > { %v4999_v54 = vpop.xlane.xlu1 %4998 }
 0x977   : > { %v5030_v57 = vmul.f32 %v4999_v54, %v10536_v41 }
 0x979   : > { %v10203_v49 = vsub.f32 %v10126_v27, %v5030_v57 }
 0x97b   : > { %v4827_v14 = vpop.f32.mrf.mxu1  ;;  %v5062_v31 = vmul.f32 %v10203_v49, %v10203_v49 }
 0x97c   : > { %v4828_v58 = vadd.f32 %v4827_v14, %v10047_v33  ;;  %v4974_v38 = vpop.f32.mrf.mxu0 }
 0x97e   : > { %v5001_v8 = vpop.xlane.xlu0 %5000 }
 0x97f   : > { %v4874_v22 = vpop.f32.mrf.mxu2  ;;  %v5031_v45 = vmul.f32 %v5001_v8, %v10536_v41 }
 0x980   : > { %v4875_v50 = vadd.f32 %v4874_v22, %v4826_v2  ;;  %v4923_v34 = vpop.f32.mrf.mxu3  ;;  %v10539_v2 = vld [vmem:[#allocation51_spill] sm:$0xff] }
 0x981   : > { %v10220_v47 = vsub.f32 %v10135_v48, %v5031_v45 }
 0x982   : > { %v4924_v1 = vadd.f32 %v4923_v34, %v4875_v50 }
 0x983   : > { %v4830_v16 = vpop.f32.mrf.mxu1  ;;  %v5063_v50 = vmul.f32 %v10220_v47, %v10220_v47 }
 0x984   : > { %v4973_v56 = vadd.f32 %v4972_v25, %v4924_v1  ;;  %v4831_v17 = vadd.f32 %v4830_v16, %v10047_v33 }
 0x985   : > { %v4977_v37 = vpop.f32.mrf.mxu0 }
 0x986   : > { %v10193_v35 = vadd.f32 %v4973_v56, %v10535_v3 }
 0x987   : > { %v4876_v24 = vpop.f32.mrf.mxu2 }
 0x988   : > { %v4877_v40 = vadd.f32 %v4876_v24, %v4828_v58  ;;  %5022 = vadd.xlane.f32.xlu1 %v10193_v35  ;;  %v4925_v7 = vpop.f32.mrf.mxu3 }
 0x98a   : > { %v4926_v53 = vadd.f32 %v4925_v7, %v4877_v40 }
 0x98b   : > { %v4832_v32 = vpop.f32.mrf.mxu1 }
 0x98c   : > { %v4975_v19 = vadd.f32 %v4974_v38, %v4926_v53  ;;  %v4833_v20 = vadd.f32 %v4832_v32, %v10047_v33  ;;  %v5003_v33 = vpop.xlane.xlu2 %5002 }
 0x98d   : > { %v5032_v28 = vmul.f32 %v5003_v33, %v10536_v41 }
 0x98e   : > { %v10198_v42 = vadd.f32 %v4975_v19, %v10537_v26  ;;  %v5005_v44 = vpop.xlane.xlu1 %5004 }
 0x98f   : > { %v4879_v21 = vpop.f32.mrf.mxu2  ;;  %v5033_v15 = vmul.f32 %v5005_v44, %v10536_v41  ;;  %v10231_v34 = vsub.f32 %v10143_v60, %v5032_v28 }
 0x990   : > { %5024 = vadd.xlane.f32.xlu0 %v10198_v42  ;;  %v4880_v11 = vadd.f32 %v4879_v21, %v4831_v17 }
 0x991   : > { %v10210_v27 = vsub.f32 %v10148_v61, %v5033_v15  ;;  %v4979_v61 = vpop.f32.mrf.mxu0  ;;  %v5064_v3 = vmul.f32 %v10231_v34, %v10231_v34 }
 0x992   : > { %v4928_v18 = vpop.f32.mrf.mxu3 }
 0x993   : > { %v4929_v59 = vadd.f32 %v4928_v18, %v4880_v11  ;;  %v5065_v55 = vmul.f32 %v10210_v27, %v10210_v27 }
 0x995   : > { %v4978_v63 = vadd.f32 %v4977_v37, %v4929_v59 }
 0x996   : > { %v5007_v52 = vpop.xlane.xlu0 %5006 }
 0x997   : > { %v4881_v0 = vpop.f32.mrf.mxu2  ;;  %v10214_v13 = vadd.f32 %v4978_v63, %v10538_v5  ;;  %v5034_v29 = vmul.f32 %v5007_v52, %v10536_v41 }
 0x998   : > { %5078 = vadd.xlane.f32.xlu0 %v5062_v31  ;;  %v4882_v46 = vadd.f32 %v4881_v0, %v4833_v20 }
 0x999   : > { %5026 = vadd.xlane.f32.xlu2 %v10214_v13  ;;  %v10234_v25 = vsub.f32 %v10153_v6, %v5034_v29 }
 0x99a   : > { %v4930_v62 = vpop.f32.mrf.mxu3 }
 0x99b   : > { %v4931_v9 = vadd.f32 %v4930_v62, %v4882_v46  ;;  %v5066_v24 = vmul.f32 %v10234_v25, %v10234_v25 }
 0x99d   : > { %v4980_v4 = vadd.f32 %v4979_v61, %v4931_v9 }
 0x99e   : > { %v5009_v1 = vpop.xlane.xlu2 %5008 }
 0x99f   : > { %v10225_v22 = vadd.f32 %v4980_v4, %v10539_v2  ;;  %v5035_v58 = vmul.f32 %v5009_v1, %v10536_v41 }
 0x9a0   : > { %5084 = vadd.xlane.f32.xlu0 %v5065_v55 }
 0x9a1   : > { %5028 = vadd.xlane.f32.xlu1 %v10225_v22  ;;  %5080 = vadd.xlane.f32.xlu2 %v5063_v50  ;;  %v10248_v40 = vsub.f32 %v10158_v51, %v5035_v58 }
 0x9a3   : > { %v5067_v53 = vmul.f32 %v10248_v40, %v10248_v40 }
 0x9a6   : > { %v5011_v48 = vpop.xlane.xlu1 %5010 }
 0x9a7   : > { %v5036_v14 = vmul.f32 %v5011_v48, %v10536_v41 }
 0x9a9   : > { %v10238_v56 = vsub.f32 %v10163_v43, %v5036_v14  ;;  %5082 = vadd.xlane.f32.xlu1 %v5064_v3  ;;  %5086 = vadd.xlane.f32.xlu2 %v5066_v24 }
 0x9ab   : > { %v5068_v60 = vmul.f32 %v10238_v56, %v10238_v56 }
 0x9ad   : > { %5090 = vadd.xlane.f32.xlu0 %v5068_v60 }
 0x9ae   : > { %v5013_v6 = vpop.xlane.xlu0 %5012 }
 0x9af   : > { %v5037_v43 = vmul.f32 %v5013_v6, %v10536_v41  ;;  %v10310_v6 = vperm.slane %v10044_v23, 6 }
 0x9b1   : > { %v10252_v7 = vsub.f32 %v10168_v30, %v5037_v43  ;;  %5088 = vadd.xlane.f32.xlu1 %v5067_v53 }
 0x9b3   : > { %v5069_v54 = vmul.f32 %v10252_v7, %v10252_v7 }
 0x9b5   : > { %5092 = vadd.xlane.f32.xlu2 %v5069_v54 }
 0x9b6   : > { %v5015_v38 = vpop.xlane.xlu2 %5014 }
 0x9b7   : > { %v5038_v16 = vmul.f32 %v5015_v38, %v10536_v41 }
 0x9b9   : > { %v10260_v19 = vsub.f32 %v10173_v36, %v5038_v16 }
 0x9bb   : > { %v5070_v51 = vmul.f32 %v10260_v19, %v10260_v19 }
 0x9bd   : > { %5094 = vadd.xlane.f32.xlu1 %v5070_v51 }
 0x9be   : > { %v5017_v30 = vpop.xlane.xlu1 %5016 }
 0x9bf   : > { %v5039_v57 = vmul.f32 %v5017_v30, %v10536_v41  ;;  %v10315_v30 = vperm.slane %v10044_v23, 7 }
 0x9c1   : > { %v10266_v26 = vsub.f32 %v10178_v39, %v5039_v57 }
 0x9c3   : > { %v5071_v17 = vmul.f32 %v10266_v26, %v10266_v26 }
 0x9c5   : > { %5096 = vadd.xlane.f32.xlu0 %v5071_v17 }
 0x9c6   : > { %v5019_v21 = vpop.xlane.xlu0 %5018 }
 0x9c7   : > { %v5040_v44 = vmul.f32 %v5019_v21, %v10536_v41 }
 0x9c9   : > { %v10272_v36 = vsub.f32 %v10183_v10, %v5040_v44 }
 0x9cb   : > { %v5072_v11 = vmul.f32 %v10272_v36, %v10272_v36 }
 0x9cd   : > { %5098 = vadd.xlane.f32.xlu2 %v5072_v11 }
 0x9ce   : > { %v5021_v37 = vpop.xlane.xlu2 %5020 }
 0x9cf   : > { %v5041_v32 = vmul.f32 %v5021_v37, %v10536_v41 }
 0x9d1   : > { %v10278_v39 = vsub.f32 %v10187_v12, %v5041_v32 }
 0x9d3   : > { %v5073_v15 = vmul.f32 %v10278_v39, %v10278_v39 }
 0x9d5   : > { %5100 = vadd.xlane.f32.xlu1 %v5073_v15 }
 0x9fb   : > { %v5023_v18 = vpop.xlane.xlu1 %5022 }
 0x9fc   : > { %v5042_v31 = vmul.f32 %v5023_v18, %v10536_v41 }
 0x9fe   : > { %v10284_v10 = vsub.f32 %v10193_v35, %v5042_v31 }
 0xa00   : > { %v5074_v59 = vmul.f32 %v10284_v10, %v10284_v10 }
 0xa02   : > { %5102 = vadd.xlane.f32.xlu0 %v5074_v59 }
 0xa03   : > { %v5025_v8 = vpop.xlane.xlu0 %5024 }
 0xa04   : > { %v5043_v20 = vmul.f32 %v5025_v8, %v10536_v41 }
 0xa06   : > { %v10290_v12 = vsub.f32 %v10198_v42, %v5043_v20 }
 0xa08   : > { %v5075_v63 = vmul.f32 %v10290_v12, %v10290_v12 }
 0xa0a   : > { %5104 = vadd.xlane.f32.xlu2 %v5075_v63 }
 0xa0b   : > { %v5079_v0 = vpop.xlane.xlu0 %5078 }
 0xa0c   : > { %v5110_v45 = vmul.f32 %v5079_v0, %v10536_v41  ;;  %v5027_v35 = vpop.xlane.xlu2 %5026 }
 0xa0d   : > { %v5044_v5 = vmul.f32 %v5027_v35, %v10536_v41 }
 0xa0e   : > { %v5126_v46 = vadd.f32 1e-12, %v5110_v45 }
 0xa0f   : > { %v10297_v62 = vsub.f32 %v10214_v13, %v5044_v5 }
 0xa10   : > { %6996 = vrsqrt.f32 %v5126_v46  ;;  %vm5148_vm7 = vweird.f32 %v5126_v46 }
 0xa11   : > { %v5076_v42 = vmul.f32 %v10297_v62, %v10297_v62 }
 0xa13   : > { %v5085_v55 = vpop.xlane.xlu0 %5084  ;;  %5106 = vadd.xlane.f32.xlu1 %v5076_v42 }
 0xa14   : > { %v5113_v33 = vmul.f32 %v5085_v55, %v10536_v41  ;;  %v5029_v4 = vpop.xlane.xlu1 %5028  ;;  %v5081_v28 = vpop.xlane.xlu2 %5080 }
 0xa15   : > { %v5045_v2 = vmul.f32 %v5029_v4, %v10536_v41  ;;  %v5111_v50 = vmul.f32 %v5081_v28, %v10536_v41 }
 0xa16   : > { %v6997_v9 = vpop.eup %6996  ;;  %v5129_v61 = vadd.f32 1e-12, %v5113_v33 }
 0xa17   : > { %v5143_v52 = vmul.f32 %v6997_v9, %v5126_v46  ;;  %v10305_v48 = vsub.f32 %v10225_v22, %v5045_v2  ;;  %v5127_v14 = vadd.f32 1e-12, %v5111_v50  ;;  %vm5149_vm6 = vweird.f32 %v6997_v9 }
 0xa18   : > { %6998 = vrsqrt.f32 %v5129_v61  ;;  %vm5150_vm8 = vmor %vm5148_vm7, %vm5149_vm6  ;;  %vm5178_vm10 = vweird.f32 %v5129_v61 }
 0xa19   : > { %v5144_v29 = vmul.f32 %v6997_v9, %v5143_v52  ;;  %7000 = vrsqrt.f32 %v5127_v14  ;;  %v5077_v58 = vmul.f32 %v10305_v48, %v10305_v48  ;;  %vm5158_vm13 = vweird.f32 %v5127_v14 }
 0xa1b   : > { %v5145_v13 = vmul.f32 0.5, %v5144_v29  ;;  %5108 = vadd.xlane.f32.xlu0 %v5077_v58 }
 0xa1c   : > { %v5083_v43 = vpop.xlane.xlu1 %5082  ;;  %v5087_v53 = vpop.xlane.xlu2 %5086 }
 0xa1d   : > { %v5146_v1 = vsub.f32 1.5, %v5145_v13  ;;  %v5112_v38 = vmul.f32 %v5083_v43, %v10536_v41  ;;  %v5114_v16 = vmul.f32 %v5087_v53, %v10536_v41 }
 0xa1e   : > { %v6999_v3 = vpop.eup %6998 }
 0xa1f   : > { %v5147_v24 = vmul.f32 %v6997_v9, %v5146_v1  ;;  %v5173_v60 = vmul.f32 %v6999_v3, %v5129_v61  ;;  %v7001_v21 = vpop.eup %7000  ;;  %v10319_v11 = vadd.f32 1e-12, %v5112_v38  ;;  %v10321_v37 = vadd.f32 1e-12, %v5114_v16 }
 0xa20   : > { %v5091_v51 = vpop.xlane.xlu0 %5090  ;;  %v5153_v15 = vmul.f32 %v7001_v21, %v5127_v14  ;;  %vm5179_vm9 = vweird.f32 %v6999_v3  ;;  %vm5159_vm12 = vweird.f32 %v7001_v21 }
 0xa21   : > { %v5151_v22 = vsel %vm5150_vm8, %v6997_v9, %v5147_v24  ;;  %v5174_v54 = vmul.f32 %v6999_v3, %v5173_v60  ;;  %v5116_v17 = vmul.f32 %v5091_v51, %v10536_v41  ;;  %7002 = vrsqrt.f32 %v10319_v11  ;;  %vm5180_vm11 = vmor %vm5178_vm10, %vm5179_vm9 }
 0xa22   : > { %v5302_v57 = vmul.f32 %v5151_v22, %v10203_v49  ;;  %v5154_v49 = vmul.f32 %v7001_v21, %v5153_v15  ;;  %7004 = vrsqrt.f32 %v10321_v37  ;;  %vm5160_vm14 = vmor %vm5158_vm13, %vm5159_vm12  ;;  %vm5168_vm15 = vweird.f32 %v10319_v11 }
 0xa23   : > { %v5175_v44 = vmul.f32 0.5, %v5174_v54  ;;  %v10324_v18 = vadd.f32 1e-12, %v5116_v17  ;;  %vm5188_vm4 = vweird.f32 %v10321_v37 }
 0xa24   : > { %v5319_v32 = vmul.f32 %v10310_v6, %v5302_v57  ;;  %v5155_v8 = vmul.f32 0.5, %v5154_v49  ;;  %v5089_v20 = vpop.xlane.xlu1 %5088 }
 0xa25   : > { %v5176_v31 = vsub.f32 1.5, %v5175_v44  ;;  %7006 = vrsqrt.f32 %v10324_v18  ;;  %v5115_v45 = vmul.f32 %v5089_v20, %v10536_v41  ;;  %vm5208_vm5 = vweird.f32 %v10324_v18 }
 0xa26   : > { %v5336_v23 = vadd.f32 %v10315_v30, %v5319_v32  ;;  %v5156_v5 = vsub.f32 1.5, %v5155_v8 }
 0xa27   : > { %v5177_v59 = vmul.f32 %v6999_v3, %v5176_v31  ;;  %v7003_v55 = vpop.eup %7002  ;;  %v10333_v33 = vadd.f32 1e-12, %v5115_v45 }
 0xa28   : > { %5352 = vst [vmem:[#allocation2] sm:$0xff] %v5336_v23  ;;  %v5093_v63 = vpop.xlane.xlu2 %5092  ;;  %v7005_v9 = vpop.eup %7004  ;;  %v5157_v52 = vmul.f32 %v7001_v21, %v5156_v5  ;;  %v5163_v4 = vmul.f32 %v7003_v55, %v10319_v11  ;;  %vm5169_vm0 = vweird.f32 %v7003_v55 }
 0xa29   : > { %v5181_v0 = vsel %vm5180_vm11, %v6999_v3, %v5177_v59  ;;  %v5117_v46 = vmul.f32 %v5093_v63, %v10536_v41  ;;  %v5183_v29 = vmul.f32 %v7005_v9, %v10321_v37  ;;  %7008 = vrsqrt.f32 %v10333_v33  ;;  %vm5170_vm3 = vmor %vm5168_vm15, %vm5169_vm0 }
 0xa2a   : > { %v5305_v35 = vmul.f32 %v5181_v0, %v10210_v27  ;;  %v5161_v2 = vsel %vm5160_vm14, %v7001_v21, %v5157_v52  ;;  %v5164_v50 = vmul.f32 %v7003_v55, %v5163_v4  ;;  %vm5189_vm1 = vweird.f32 %v7005_v9 }
 0xa2b   : > { %v10335_v42 = vadd.f32 1e-12, %v5117_v46  ;;  %v7007_v28 = vpop.eup %7006  ;;  %v5303_v1 = vmul.f32 %v5161_v2, %v10220_v47  ;;  %v5184_v58 = vmul.f32 %v7005_v9, %v5183_v29  ;;  %vm5190_vm6 = vmor %vm5188_vm4, %vm5189_vm1  ;;  %vm5198_vm8 = vweird.f32 %v10333_v33 }
 0xa2c   : > { %v5322_v61 = vmul.f32 %v10310_v6, %v5305_v35  ;;  %v5203_v13 = vmul.f32 %v7007_v28, %v10324_v18  ;;  %v5165_v14 = vmul.f32 0.5, %v5164_v50  ;;  %vm5209_vm2 = vweird.f32 %v7007_v28 }
 0xa2d   : > { %7010 = vrsqrt.f32 %v10335_v42  ;;  %v5320_v60 = vmul.f32 %v10310_v6, %v5303_v1  ;;  %v5185_v43 = vmul.f32 0.5, %v5184_v58  ;;  %vm5210_vm7 = vmor %vm5208_vm5, %vm5209_vm2  ;;  %vm5218_vm12 = vweird.f32 %v10335_v42 }
 0xa2e   : > { %v5339_v27 = vadd.f32 %v10315_v30, %v5322_v61  ;;  %v5204_v3 = vmul.f32 %v7007_v28, %v5203_v13  ;;  %v5166_v22 = vsub.f32 1.5, %v5165_v14 }
 0xa2f   : > { %v7009_v38 = vpop.eup %7008  ;;  %v5337_v47 = vadd.f32 %v10315_v30, %v5320_v60  ;;  %v5186_v16 = vsub.f32 1.5, %v5185_v43 }
 0xa30   : > { %5355 = vst [vmem:[#allocation2 + $0x18] sm:$0xff] %v5339_v27  ;;  %v5095_v24 = vpop.xlane.xlu1 %5094  ;;  %v5205_v54 = vmul.f32 0.5, %v5204_v3  ;;  %v5167_v57 = vmul.f32 %v7003_v55, %v5166_v22  ;;  %v5193_v21 = vmul.f32 %v7009_v38, %v10333_v33  ;;  %vm5199_vm9 = vweird.f32 %v7009_v38 }
 0xa31   : > { %v5118_v53 = vmul.f32 %v5095_v24, %v10536_v41  ;;  %5353 = vst [vmem:[#allocation2 + $0x8] sm:$0xff] %v5337_v47  ;;  %v5187_v32 = vmul.f32 %v7005_v9, %v5186_v16  ;;  %vm5200_vm11 = vmor %vm5198_vm8, %vm5199_vm9 }
 0xa32   : > { %v5206_v17 = vsub.f32 1.5, %v5205_v54  ;;  %v5171_v11 = vsel %vm5170_vm3, %v7003_v55, %v5167_v57  ;;  %v5194_v31 = vmul.f32 %v7009_v38, %v5193_v21 }
 0xa33   : > { %v10349_v51 = vadd.f32 1e-12, %v5118_v53  ;;  %v7011_v44 = vpop.eup %7010  ;;  %v5304_v49 = vmul.f32 %v5171_v11, %v10231_v34  ;;  %v5191_v59 = vsel %vm5190_vm6, %v7005_v9, %v5187_v32 }
 0xa34   : > { %v5207_v15 = vmul.f32 %v7007_v28, %v5206_v17  ;;  %v5213_v23 = vmul.f32 %v7011_v44, %v10335_v42  ;;  %v5306_v8 = vmul.f32 %v5191_v59, %v10234_v25  ;;  %v5195_v63 = vmul.f32 0.5, %v5194_v31 }
 0xa35   : > { %7012 = vrsqrt.f32 %v10349_v51  ;;  %v5321_v18 = vmul.f32 %v10310_v6, %v5304_v49  ;;  %vm5219_vm10 = vweird.f32 %v7011_v44  ;;  %vm5228_vm15 = vweird.f32 %v10349_v51 }
 0xa36   : > { %v5211_v20 = vsel %vm5210_vm7, %v7007_v28, %v5207_v15  ;;  %v5214_v37 = vmul.f32 %v7011_v44, %v5213_v23  ;;  %v5323_v35 = vmul.f32 %v10310_v6, %v5306_v8  ;;  %v5196_v34 = vsub.f32 1.5, %v5195_v63  ;;  %vm5220_vm13 = vmor %vm5218_vm12, %vm5219_vm10 }
 0xa37   : > { %v5308_v45 = vmul.f32 %v5211_v20, %v10238_v56  ;;  %v5338_v25 = vadd.f32 %v10315_v30, %v5321_v18 }
 0xa38   : > { %v5097_v0 = vpop.xlane.xlu0 %5096  ;;  %v5215_v5 = vmul.f32 0.5, %v5214_v37  ;;  %v5340_v52 = vadd.f32 %v10315_v30, %v5323_v35  ;;  %v5197_v4 = vmul.f32 %v7009_v38, %v5196_v34 }
 0xa39   : > { %v5119_v46 = vmul.f32 %v5097_v0, %v10536_v41  ;;  %v5325_v9 = vmul.f32 %v10310_v6, %v5308_v45  ;;  %5354 = vst [vmem:[#allocation2 + $0x10] sm:$0xff] %v5338_v25 }
 0xa3a   : > { %v5216_v56 = vsub.f32 1.5, %v5215_v5  ;;  %5356 = vst [vmem:[#allocation2 + $0x20] sm:$0xff] %v5340_v52  ;;  %v5201_v27 = vsel %vm5200_vm11, %v7009_v38, %v5197_v4 }
 0xa3b   : > { %v7013_v55 = vpop.eup %7012  ;;  %v5135_v61 = vadd.f32 1e-12, %v5119_v46  ;;  %v5342_v29 = vadd.f32 %v10315_v30, %v5325_v9  ;;  %v5307_v13 = vmul.f32 %v5201_v27, %v10248_v40 }
 0xa3c   : > { %v5223_v28 = vmul.f32 %v7013_v55, %v10349_v51  ;;  %v5217_v2 = vmul.f32 %v7011_v44, %v5216_v56  ;;  %vm5229_vm14 = vweird.f32 %v7013_v55 }
 0xa3d   : > { %7014 = vrsqrt.f32 %v5135_v61  ;;  %5358 = vst [vmem:[#allocation2 + $0x30] sm:$0xff] %v5342_v29  ;;  %v5324_v3 = vmul.f32 %v10310_v6, %v5307_v13  ;;  %vm5230_vm0 = vmor %vm5228_vm15, %vm5229_vm14  ;;  %vm5238_vm2 = vweird.f32 %v5135_v61 }
 0xa3e   : > { %v5224_v50 = vmul.f32 %v7013_v55, %v5223_v28  ;;  %v5221_v1 = vsel %vm5220_vm13, %v7011_v44, %v5217_v2 }
 0xa3f   : > { %v5309_v33 = vmul.f32 %v5221_v1, %v10252_v7  ;;  %v5341_v42 = vadd.f32 %v10315_v30, %v5324_v3 }
 0xa40   : > { %v5225_v58 = vmul.f32 0.5, %v5224_v50  ;;  %v5099_v14 = vpop.xlane.xlu2 %5098 }
 0xa41   : > { %v5120_v24 = vmul.f32 %v5099_v14, %v10536_v41  ;;  %v5326_v53 = vmul.f32 %v10310_v6, %v5309_v33  ;;  %5357 = vst [vmem:[#allocation2 + $0x28] sm:$0xff] %v5341_v42 }
 0xa42   : > { %v5226_v60 = vsub.f32 1.5, %v5225_v58 }
 0xa43   : > { %v7015_v43 = vpop.eup %7014  ;;  %v5136_v22 = vadd.f32 1e-12, %v5120_v24  ;;  %v5343_v38 = vadd.f32 %v10315_v30, %v5326_v53 }
 0xa44   : > { %v5227_v40 = vmul.f32 %v7013_v55, %v5226_v60  ;;  %v5233_v54 = vmul.f32 %v7015_v43, %v5135_v61  ;;  %vm5239_vm1 = vweird.f32 %v7015_v43 }
 0xa45   : > { %7016 = vrsqrt.f32 %v5136_v22  ;;  %5359 = vst [vmem:[#allocation2 + $0x38] sm:$0xff] %v5343_v38  ;;  %vm5240_vm3 = vmor %vm5238_vm2, %vm5239_vm1  ;;  %vm5248_vm5 = vweird.f32 %v5136_v22 }
 0xa46   : > { %v5231_v7 = vsel %vm5230_vm0, %v7013_v55, %v5227_v40  ;;  %v5234_v47 = vmul.f32 %v7015_v43, %v5233_v54 }
 0xa47   : > { %v5310_v16 = vmul.f32 %v5231_v7, %v10260_v19 }
 0xa48   : > { %v5235_v57 = vmul.f32 0.5, %v5234_v47  ;;  %v5101_v17 = vpop.xlane.xlu1 %5100 }
 0xa49   : > { %v5327_v21 = vmul.f32 %v10310_v6, %v5310_v16  ;;  %v5121_v44 = vmul.f32 %v5101_v17, %v10536_v41 }
 0xa4a   : > { %v5236_v32 = vsub.f32 1.5, %v5235_v57 }
 0xa4b   : > { %v7017_v51 = vpop.eup %7016  ;;  %v5344_v11 = vadd.f32 %v10315_v30, %v5327_v21  ;;  %v5137_v15 = vadd.f32 1e-12, %v5121_v44 }
 0xa4c   : > { %v5237_v31 = vmul.f32 %v7015_v43, %v5236_v32  ;;  %v5243_v23 = vmul.f32 %v7017_v51, %v5136_v22  ;;  %vm5249_vm4 = vweird.f32 %v7017_v51 }
 0xa4d   : > { %5360 = vst [vmem:[#allocation2 + $0x40] sm:$0xff] %v5344_v11  ;;  %7018 = vrsqrt.f32 %v5137_v15  ;;  %vm5250_vm6 = vmor %vm5248_vm5, %vm5249_vm4  ;;  %vm5258_vm8 = vweird.f32 %v5137_v15 }
 0xa4e   : > { %v5241_v49 = vsel %vm5240_vm3, %v7015_v43, %v5237_v31  ;;  %v5244_v19 = vmul.f32 %v7017_v51, %v5243_v23 }
 0xa4f   : > { %v5311_v59 = vmul.f32 %v5241_v49, %v10266_v26 }
 0xa50   : > { %v5245_v8 = vmul.f32 0.5, %v5244_v19 }
 0xa51   : > { %v5328_v20 = vmul.f32 %v10310_v6, %v5311_v59 }
 0xa52   : > { %v5246_v63 = vsub.f32 1.5, %v5245_v8 }
 0xa53   : > { %v7019_v37 = vpop.eup %7018  ;;  %v5345_v0 = vadd.f32 %v10315_v30, %v5328_v20 }
 0xa54   : > { %v5247_v18 = vmul.f32 %v7017_v51, %v5246_v63  ;;  %v5253_v45 = vmul.f32 %v7019_v37, %v5137_v15  ;;  %vm5259_vm7 = vweird.f32 %v7019_v37 }
 0xa55   : > { %5361 = vst [vmem:[#allocation2 + $0x48] sm:$0xff] %v5345_v0  ;;  %vm5260_vm9 = vmor %vm5258_vm8, %vm5259_vm7 }
 0xa56   : > { %v5251_v46 = vsel %vm5250_vm6, %v7017_v51, %v5247_v18  ;;  %v5254_v35 = vmul.f32 %v7019_v37, %v5253_v45 }
 0xa57   : > { %v5312_v34 = vmul.f32 %v5251_v46, %v10272_v36 }
 0xa58   : > { %v5255_v5 = vmul.f32 0.5, %v5254_v35 }
 0xa59   : > { %v5329_v26 = vmul.f32 %v10310_v6, %v5312_v34 }
 0xa5a   : > { %v5256_v55 = vsub.f32 1.5, %v5255_v5 }
 0xa5b   : > { %v5346_v25 = vadd.f32 %v10315_v30, %v5329_v26 }
 0xa5c   : > { %v5257_v9 = vmul.f32 %v7019_v37, %v5256_v55 }
 0xa5d   : > { %5362 = vst [vmem:[#allocation2 + $0x50] sm:$0xff] %v5346_v25 }
 0xa5e   : > { %v5261_v61 = vsel %vm5260_vm9, %v7019_v37, %v5257_v9 }
 0xa5f   : > { %v5313_v52 = vmul.f32 %v5261_v61, %v10278_v39 }
 0xa61   : > { %v5330_v4 = vmul.f32 %v10310_v6, %v5313_v52 }
 0xa63   : > { %v5347_v56 = vadd.f32 %v10315_v30, %v5330_v4 }
 0xa65   : > { %5363 = vst [vmem:[#allocation2 + $0x58] sm:$0xff] %v5347_v56 }
 0xa75   : > { %v5103_v36 = vpop.xlane.xlu0 %5102 }
 0xa76   : > { %v5122_v28 = vmul.f32 %v5103_v36, %v10536_v41 }
 0xa78   : > { %v5138_v29 = vadd.f32 1e-12, %v5122_v28 }
 0xa7a   : > { %7020 = vrsqrt.f32 %v5138_v29  ;;  %vm5268_vm11 = vweird.f32 %v5138_v29 }
 0xa7d   : > { %v5105_v27 = vpop.xlane.xlu2 %5104 }
 0xa7e   : > { %v5123_v2 = vmul.f32 %v5105_v27, %v10536_v41 }
 0xa80   : > { %v7021_v50 = vpop.eup %7020  ;;  %v5139_v13 = vadd.f32 1e-12, %v5123_v2 }
 0xa81   : > { %v5263_v1 = vmul.f32 %v7021_v50, %v5138_v29  ;;  %vm5269_vm10 = vweird.f32 %v7021_v50 }
 0xa82   : > { %7022 = vrsqrt.f32 %v5139_v13  ;;  %vm5270_vm12 = vmor %vm5268_vm11, %vm5269_vm10  ;;  %vm5278_vm14 = vweird.f32 %v5139_v13 }
 0xa83   : > { %v5264_v58 = vmul.f32 %v7021_v50, %v5263_v1 }
 0xa85   : > { %v5265_v14 = vmul.f32 0.5, %v5264_v58 }
 0xa86   : > { %v5107_v60 = vpop.xlane.xlu1 %5106 }
 0xa87   : > { %v5266_v39 = vsub.f32 1.5, %v5265_v14  ;;  %v5124_v53 = vmul.f32 %v5107_v60, %v10536_v41 }
 0xa88   : > { %v7023_v3 = vpop.eup %7022 }
 0xa89   : > { %v5267_v33 = vmul.f32 %v7021_v50, %v5266_v39  ;;  %v5273_v24 = vmul.f32 %v7023_v3, %v5139_v13  ;;  %v5140_v54 = vadd.f32 1e-12, %v5124_v53  ;;  %vm5279_vm13 = vweird.f32 %v7023_v3 }
 0xa8a   : > { %vm5280_vm15 = vmor %vm5278_vm14, %vm5279_vm13 }
 0xa8b   : > { %v5271_v43 = vsel %vm5270_vm12, %v7021_v50, %v5267_v33  ;;  %v5274_v42 = vmul.f32 %v7023_v3, %v5273_v24  ;;  %7024 = vrsqrt.f32 %v5140_v54  ;;  %vm5288_vm1 = vweird.f32 %v5140_v54 }
 0xa8c   : > { %v5314_v22 = vmul.f32 %v5271_v43, %v10284_v10 }
 0xa8d   : > { %v5275_v40 = vmul.f32 0.5, %v5274_v42 }
 0xa8e   : > { %v5331_v38 = vmul.f32 %v10310_v6, %v5314_v22  ;;  %v5109_v57 = vpop.xlane.xlu0 %5108 }
 0xa8f   : > { %v5276_v7 = vsub.f32 1.5, %v5275_v40  ;;  %v5125_v21 = vmul.f32 %v5109_v57, %v10536_v41 }
 0xa90   : > { %v5348_v47 = vadd.f32 %v10315_v30, %v5331_v38 }
 0xa91   : > { %v5277_v16 = vmul.f32 %v7023_v3, %v5276_v7  ;;  %v7025_v10 = vpop.eup %7024  ;;  %v5141_v32 = vadd.f32 1e-12, %v5125_v21 }
 0xa92   : > { %5364 = vst [vmem:[#allocation2 + $0x60] sm:$0xff] %v5348_v47  ;;  %v5283_v11 = vmul.f32 %v7025_v10, %v5140_v54  ;;  %vm5289_vm0 = vweird.f32 %v7025_v10 }
 0xa93   : > { %v5281_v17 = vsel %vm5280_vm15, %v7023_v3, %v5277_v16  ;;  %7026 = vrsqrt.f32 %v5141_v32  ;;  %vm5290_vm2 = vmor %vm5288_vm1, %vm5289_vm0  ;;  %vm5298_vm4 = vweird.f32 %v5141_v32 }
 0xa94   : > { %v5315_v44 = vmul.f32 %v5281_v17, %v10290_v12  ;;  %v5284_v31 = vmul.f32 %v7025_v10, %v5283_v11 }
 0xa96   : > { %v5332_v51 = vmul.f32 %v10310_v6, %v5315_v44  ;;  %v5285_v23 = vmul.f32 0.5, %v5284_v31 }
 0xa98   : > { %v5349_v15 = vadd.f32 %v10315_v30, %v5332_v51  ;;  %v5286_v49 = vsub.f32 1.5, %v5285_v23 }
 0xa99   : > { %v7027_v19 = vpop.eup %7026 }
 0xa9a   : > { %5365 = vst [vmem:[#allocation2 + $0x68] sm:$0xff] %v5349_v15  ;;  %v5287_v59 = vmul.f32 %v7025_v10, %v5286_v49  ;;  %v5293_v8 = vmul.f32 %v7027_v19, %v5141_v32  ;;  %vm5299_vm3 = vweird.f32 %v7027_v19 }
 0xa9b   : > { %vm5300_vm5 = vmor %vm5298_vm4, %vm5299_vm3 }
 0xa9c   : > { %v5291_v41 = vsel %vm5290_vm2, %v7025_v10, %v5287_v59  ;;  %v5294_v12 = vmul.f32 %v7027_v19, %v5293_v8 }
 0xa9d   : > { %v5316_v20 = vmul.f32 %v5291_v41, %v10297_v62 }
 0xa9e   : > { %v5295_v63 = vmul.f32 0.5, %v5294_v12 }
 0xa9f   : > { %v5333_v37 = vmul.f32 %v10310_v6, %v5316_v20 }
 0xaa0   : > { %v5296_v0 = vsub.f32 1.5, %v5295_v63 }
 0xaa1   : > { %v5350_v18 = vadd.f32 %v10315_v30, %v5333_v37 }
 0xaa2   : > { %v5297_v45 = vmul.f32 %v7027_v19, %v5296_v0 }
 0xaa3   : > { %5366 = vst [vmem:[#allocation2 + $0x70] sm:$0xff] %v5350_v18 }
 0xaa4   : > { %v5301_v46 = vsel %vm5300_vm5, %v7027_v19, %v5297_v45 }
 0xaa5   : > { %v5317_v35 = vmul.f32 %v5301_v46, %v10305_v48 }
 0xaa7   : > { %v5334_v34 = vmul.f32 %v10310_v6, %v5317_v35  ;;  %5371 = sbr.rel (%p6224_p1) target bundleno = 3294 (0xcde), region = 108 }
 0xaa9   : > { %v5351_v5 = vadd.f32 %v10315_v30, %v5334_v34 }
 0xaab   : > { %5367 = vst [vmem:[#allocation2 + $0x78] sm:$0xff] %v5351_v5 }
 0xaac   : > { %v6400_v62 = vld [vmem:[#allocation18 + $0x38] sm:$0xff]  ;;  %v6399_v26 = vld [vmem:[#allocation18 + $0x30] sm:$0xff]  ;;  %v6398_v25 = vld [vmem:[#allocation18 + $0x28] sm:$0xff]  ;;  %vm5539_vm6 = vcmask 1043456  }
 0xaad   : > { %5446 = vmatpush.bf16.msra.mxu0 %v6400_v62  ;;  %v6408_v55 = vld [vmem:[#allocation19 + $0x38] sm:$0xff]  ;;  %v6407_v9 = vld [vmem:[#allocation19 + $0x30] sm:$0xff]  ;;  %v6397_v61 = vld [vmem:[#allocation18 + $0x20] sm:$0xff] }
 0xaae   : > { %5526 = vmatpush.bf16.msra.mxu1 %v6408_v55  ;;  %v6406_v48 = vld [vmem:[#allocation19 + $0x28] sm:$0xff]  ;;  %v5373_v52 = vld [vmem:[#allocation2] ss:$32 sm:$0x1]  ;;  %v6396_v6 = vld [vmem:[#allocation18 + $0x18] sm:$0xff] }
 0xaaf   : > { %v5374_v30 = vld [vmem:[#allocation2] ss:$32 sm:$0x2]  ;;  %v6405_v4 = vld [vmem:[#allocation19 + $0x20] sm:$0xff]  ;;  %v6404_v29 = vld [vmem:[#allocation19 + $0x18] sm:$0xff] }
 0xab0   : > { %v5375_v56 = vor.u32 %v5374_v30, %v5373_v52  ;;  %v6395_v36 = vld [vmem:[#allocation18 + $0x10] sm:$0xff]  ;;  %v6394_v2 = vld [vmem:[#allocation18 + $0x8] sm:$0xff]  ;;  %v6393_v1 = vld [vmem:[#allocation18] sm:$0xff] }
 0xab1   : > { %5447 = vmatpush.bf16.msra.mxu0 %v6399_v26  ;;  %v5376_v28 = vld [vmem:[#allocation2] ss:$32 sm:$0x4]  ;;  %v6402_v39 = vld [vmem:[#allocation19 + $0x8] sm:$0xff]  ;;  %v6401_v3 = vld [vmem:[#allocation19] sm:$0xff] }
 0xab2   : > { %5527 = vmatpush.bf16.msra.mxu1 %v6407_v9  ;;  %v5377_v27 = vor.u32 %v5376_v28, %v5375_v56  ;;  %v5378_v50 = vld [vmem:[#allocation2] ss:$32 sm:$0x8]  ;;  %v5372_v33 = vld [vmem:[#allocation9] sm:$0xf] }
 0xab3   : > { %v6403_v14 = vld [vmem:[#allocation19 + $0x10] sm:$0xff]  ;;  %v5397_v24 = vperm.slane %v5372_v33, 2  ;;  %v5477_v40 = vperm.slane %v5372_v33, 3 }
 0xab4   : > { %v5379_v13 = vor.u32 %v5378_v50, %v5377_v27 }
 0xab5   : > { %5448 = vmatpush.bf16.msra.mxu0 %v6398_v25 }
 0xab6   : > { %5528 = vmatpush.bf16.msra.mxu1 %v6406_v48  ;;  %v5380_v58 = vpack.c.bf16 %v5379_v13, %v5379_v13 }
 0xab9   : > { %5449 = vmatpush.bf16.msra.mxu0 %v6397_v61 }
 0xaba   : > { %5529 = vmatpush.bf16.msra.mxu1 %v6405_v4 }
 0xabd   : > { %5450 = vmatpush.bf16.msra.mxu0 %v6396_v6 }
 0xabe   : > { %5530 = vmatpush.bf16.msra.mxu1 %v6404_v29 }
 0xac1   : > { %5451 = vmatpush.bf16.msra.mxu0 %v6395_v36 }
 0xac2   : > { %5531 = vmatpush.bf16.msra.mxu1 %v6403_v14 }
 0xac5   : > { %5452 = vmatpush.bf16.msra.mxu0 %v6394_v2 }
 0xac6   : > { %5532 = vmatpush.bf16.msra.mxu1 %v6402_v39 }
 0xac9   : > { %5453 = vmatpush.bf16.msra.mxu0 %v6393_v1 }
 0xaca   : > { %5533 = vmatpush.bf16.msra.mxu1 %v6401_v3 }
 0xacc   : > { %5454 = vmatmul.bf16.vlgmr.msra.gmra.mxu0 %v5380_v58 }
 0xb49   : > { %v5455_v60 = vpop.f32.mrf.mxu0 }
 0xb4a   : > { %v5456_v43 = vadd.f32 %v5455_v60, %v5397_v24 }
 0xb4c   : > { %7049 = vtanh.f32 %v5456_v43 }
 0xb51   : > { %v5457_v42 = vpop.f32.mrf.mxu0 }
 0xb52   : > { %v7050_v53 = vpop.eup %7049 }
 0xb53   : > { %v5460_v22 = vpack.c.bf16 %v7050_v53, %v7050_v53 }
 0xb55   : > { %5534 = vmatmul.bf16.vlgmr.msra.gmra.mxu1 %v5460_v22 }
 0xbd2   : > { %v5535_v54 = vpop.f32.mrf.mxu1 }
 0xbd3   : > { %v5536_v38 = vadd.f32 %v5535_v54, %v5477_v40 }
 0xbd5   : > { %v5540_v7 = vsel %vm5539_vm6, %v5536_v38, -inf }
 0xbd6   : > { %5541 = vmax.xlane.f32.xlu0 %v5540_v7 }
 0xbda   : > { %v5537_v47 = vpop.f32.mrf.mxu1 }
 0xc49   : > { %v5542_v16 = vpop.xlane.xlu0 %5541 }
 0xc4a   : > { %v5543_v57 = vsub.f32 %v5536_v38, %v5542_v16 }
 0xc4c   : > { %v5544_v17 = vmul.f32 1.442695, %v5543_v57 }
 0xc4e   : > { %7051 = vpow2.f32 %v5544_v17 }
 0xc54   : > { %v7052_v21 = vpop.eup %7051 }
 0xc55   : > { %v5546_v44 = vsel %vm5539_vm6, %v7052_v21, 0.0 }
 0xc56   : > { %5547 = vadd.xlane.f32.xlu0 %v5546_v44 }
 0xcc9   : > { %v5548_v10 = vpop.xlane.xlu0 %5547 }
 0xcca   : > { %7053 = vrcp.f32 %v5548_v10  ;;  %v5560_v15 = vand.u32 2147483648, %v5548_v10  ;;  %v5558_v23 = vand.u32 2147483647, %v5548_v10  ;;  %vm5554_vm8 = vweird.f32 %v5548_v10 }
 0xccc   : > { %v5561_v19 = vor.u32 1.1754944e-38, %v5560_v15  ;;  %vm5559_vm10 = vcmp.eq.f32.partialorder %v5558_v23, 8.507059e+37 }
 0xcd0   : > { %v7054_v32 = vpop.eup %7053 }
 0xcd1   : > { %v5550_v51 = vmul.f32 %v7054_v32, %v5548_v10  ;;  %vm5555_vm7 = vweird.f32 %v7054_v32 }
 0xcd2   : > { %vm5556_vm9 = vmor %vm5554_vm8, %vm5555_vm7 }
 0xcd3   : > { %v5551_v11 = vsub.f32 1.0, %v5550_v51 }
 0xcd5   : > { %v5552_v31 = vmul.f32 %v7054_v32, %v5551_v11 }
 0xcd7   : > { %v5553_v49 = vadd.f32 %v7054_v32, %v5552_v31 }
 0xcd9   : > { %v5557_v59 = vsel %vm5556_vm9, %v7054_v32, %v5553_v49 }
 0xcda   : > { %v5562_v8 = vsel %vm5559_vm10, %v5561_v19, %v5557_v59 }
 0xcdb   : > { %v5563_v41 = vmul.f32 %v7052_v21, %v5562_v8 }
 0xcdd   : > { %5564 = vst [vmem:[#allocation21] sm:$0xf] %v5563_v41 }
 0xcde PF: > { %s10541_s17 = sld [smem:[#allocation32_spill]]  ;;  %s7463_s3 = smov [#allocation21]  }
 0xcdf   : > { %s5571_s24 = sshll.u32 %s7463_s3, 4  ;;  %s10542_s13 = sld [smem:[#allocation56_spill]]  ;;  %s5572_s24 = int_to_ptr.vmem [resolvable:$true] %s5571_s24 }
 0xce4   : > { %p6501_p4 = scmp.eq.s32.totalorder %s10541_s17, 1 }
 0xce5   : > { %s5573_s15 = sshll.u32 %s10542_s13, 4  ;;  %s5574_s15 = int_to_ptr.hbm [resolvable:$true] %s5573_s15 }
 0xce6   : > { %6455 = dma.vmem_to_hbm [thread:$0]  (%p6501_p4), %s5572_s24, 64, %s5574_s15, [#allocation6]  }
 0xce7   : > { %7428 = dma.done.wait (%p6501_p4), [#allocation6], 64  }
 0xce8   : > { %7430 = vsyncadd (%p6501_p4), [#allocation6], 4294967232 }
 0xce9 PF: > { %s10543_s16 = sld [smem:[#allocation34_spill]] }
 0xcea   : > { %s10544_s13 = sld [smem:[#allocation30_spill]] }
 0xceb   : > { %s10545_s14 = sld [smem:[#allocation31_spill]] }
 0xcec   : > { %s10546_s15 = sld [smem:[#allocation35_spill]] }
 0xcef   : > { %p30_p5 = scmp.ge.s32.totalorder %s10543_s16, 4  }
 0xcf1   :  { %32 = sbr.rel (!%p30_p5) target bundleno = 17 (0x11), region = 174 }
 0xcf6   :  { %5587 = vsyncpa [#allocation5], 1 }
 0xcf7   :  { %5589 = vsyncpa [#allocation5 + $0x1], 1 }
 0xcf8   :  { %5590 = vsyncpa [#allocation8], 1 }
 0xcf9   :  { %5591 = vsyncpa [#allocation11], 1 }
 0xcfa   :  { %5593 = vsyncpa [#allocation11 + $0x1], 1 }
 0xcfb   :  { %5594 = vsyncpa [#allocation14], 1 }
 0xcfc   :  { %5596 = vsyncpa [#allocation14 + $0x1], 1 }
 0xcfd   :  { %5597 = vsyncpa [#allocation17], 1 }
 0xcfe   :  { %5599 = vsyncpa [#allocation17 + $0x1], 1 }
 0xcff   :  { %5600 = vsyncpa [#allocation20], 1 }
 0xd00   :  { %5601 = vsyncpa [#allocation6], 1 }
 0xd01   :  { %5603 = vsyncpa [#allocation6 + $0x1], 1 }

</bundles_post_ra>
